<compile_context>
chip_gen: v7x
topology: tpu7x:2x2x1
jax: 0.10.0
libtpu: 0.0.40
codegen_flags: <defaults>
</compile_context>

<pallas_src>
import functools

import jax
import jax.numpy as jnp
import numpy as np
from jax.experimental import pallas as pl
from jax.experimental.pallas import tpu as pltpu

EPS = 1e-5                 # nn.BatchNorm2d default eps
MXU_DTYPE = jnp.bfloat16   # matmul operand / h-intermediate dtype (f32 accum)
LANE = 128                 # lane width -> channel padding target


def _round_up(x, m):
    return ((x + m - 1) // m) * m


@functools.lru_cache(maxsize=None)
def _vmem_limit_bytes():
    # Generation-aware scoped-VMEM budget: ~3/4 of physical capacity
    # (v5e/v6e: 128 MiB -> 96 MiB, v7x: 64 MiB -> 48 MiB).
    try:
        cap = int(pltpu.get_tpu_info().vmem_capacity_bytes)
    except Exception:
        cap = 64 * 1024 * 1024
    return (cap * 3) // 4


def _compiler_params():
    return pltpu.CompilerParams(
        dimension_semantics=("parallel",),
        vmem_limit_bytes=_vmem_limit_bytes())


# ---------------------------------------------------------------------------
# In-kernel helpers
# ---------------------------------------------------------------------------
def _conv3x3_taps(xpad_ref, w_ref, acc_ref, H, W):
    """3x3 conv as 9 shifted MXU matmuls, accumulated into a f32 VMEM scratch.

    xpad_ref: (H+2, W+2, Cin) bf16 spatially padded tile (VMEM scratch)
    w_ref   : (3, 3, Cin, Cpad) bf16 resident weights
    acc_ref : (H*W, Cpad) f32 VMEM accumulator
    """
    Cin = xpad_ref.shape[-1]
    HW = H * W
    first = True
    for ky in range(3):                       # static unroll: 9 taps
        for kx in range(3):
            tap = xpad_ref[ky:ky + H, kx:kx + W, :].reshape(HW, Cin)
            contrib = jnp.dot(tap, w_ref[ky, kx],
                              preferred_element_type=jnp.float32)
            if first:
                acc_ref[...] = contrib
                first = False
            else:
                acc_ref[...] += contrib


def _emit_stats(acc, s_ref):
    """Per-tile channel [sum | sum-of-squares] with a single ones(8,HW) MXU
    matmul (row 0 of the result is the reduction); avoids an XLU axis-0
    reduction and halves the wasted output rows vs two separate matmuls."""
    HW = acc.shape[0]
    ones = jnp.ones((8, HW), jnp.float32)
    both = jnp.concatenate([acc, acc * acc], axis=1)       # (HW, 2*Cpad)
    s_ref[0] = jnp.dot(ones, both, preferred_element_type=jnp.float32)[0:1, :]


def _bn_scale_shift(s, g, b, inv_count):
    """Global-batch-stat BN affine: returns (scale, shift) of shape (1, Cpad)."""
    mean = s[0:1, :] * inv_count
    var = jnp.maximum(s[1:2, :] * inv_count - mean * mean, 0.0)
    scale = jax.lax.rsqrt(var + EPS) * g
    shift = b - mean * scale
    return scale, shift


# ---------------------------------------------------------------------------
# Pass A1: conv1 (pre-BN output in bf16) + per-tile BN1 partial statistics
# ---------------------------------------------------------------------------
def _conv1_kernel(x_ref, w_ref, h_ref, s_ref, xpad_ref, acc_ref):
    # x_ref : (1, H, W, Cin)     f32   unpadded input tile (one image)
    # w_ref : (3, 3, Cin, Cpad)  bf16  resident across the whole grid
    # h_ref : (1, H*W, Cpad)     bf16  pre-BN conv1 output
    # s_ref : (1, 1, 2*Cpad)     f32   per-tile [sum | sumsq]
    # xpad_ref: (H+2, W+2, Cin)  bf16  scratch: spatially padded tile
    # acc_ref : (H*W, Cpad)      f32   scratch accumulator
    _, H, W, _ = x_ref.shape
    # 1-pixel halo pad in VMEM (zero every step: scratch is per-core under
    # megacore partitioning, so a program_id==0 guard would be unsafe).
    xpad_ref[...] = jnp.zeros_like(xpad_ref)
    xpad_ref[1:H + 1, 1:W + 1, :] = x_ref[0].astype(MXU_DTYPE)

    _conv3x3_taps(xpad_ref, w_ref, acc_ref, H, W)
    acc = acc_ref[...]
    h_ref[0] = acc.astype(h_ref.dtype)
    _emit_stats(acc, s_ref)


def _conv1_pass(x_nhwc, w1m, Cpad):
    N, H, W, Cin = x_nhwc.shape
    HW = H * W
    return pl.pallas_call(
        _conv1_kernel,
        out_shape=(jax.ShapeDtypeStruct((N, HW, Cpad), MXU_DTYPE),
                   jax.ShapeDtypeStruct((N, 1, 2 * Cpad), jnp.float32)),
        grid=(N,),
        in_specs=[
            pl.BlockSpec((1, H, W, Cin), lambda n: (n, 0, 0, 0)),
            # weights resident: same block every grid step -> no re-DMA
            pl.BlockSpec((3, 3, Cin, Cpad), lambda n: (0, 0, 0, 0)),
        ],
        out_specs=(
            pl.BlockSpec((1, HW, Cpad), lambda n: (n, 0, 0)),
            pl.BlockSpec((1, 1, 2 * Cpad), lambda n: (n, 0, 0)),
        ),
        scratch_shapes=[pltpu.VMEM((H + 2, W + 2, Cin), MXU_DTYPE),
                        pltpu.VMEM((HW, Cpad), jnp.float32)],
        compiler_params=_compiler_params(),
    )(x_nhwc, w1m)


# ---------------------------------------------------------------------------
# Pass A2 (fused): BN1(global stats) + ReLU + in-VMEM halo pad + conv2 + stats
# ---------------------------------------------------------------------------
def _bn1_relu_conv2_kernel(h1_ref, s1_ref, g1_ref, b1_ref, w_ref,
                           h2_ref, s2_ref, xpad_ref, acc_ref, *, inv_count):
    # h1_ref : (1, H*W, Cpad)   bf16   pre-BN conv1 output tile
    # s1_ref : (2, Cpad)        f32    GLOBAL [sum, sumsq]   (resident)
    # g1_ref/b1_ref: (1, Cpad)  f32    BN1 affine            (resident)
    # w_ref  : (3, 3, Cpad, Cpad) bf16 conv2 weights         (resident)
    # h2_ref : (1, H*W, Cpad)   bf16   pre-BN conv2 output
    # s2_ref : (1, 1, 2*Cpad)   f32    per-tile [sum | sumsq]
    # xpad_ref: (H+2, W+2, Cpad) bf16  scratch: padded BN1+ReLU activation
    # acc_ref : (H*W, Cpad)     f32    scratch accumulator
    Hp, Wp, Cpad = xpad_ref.shape
    H, W = Hp - 2, Wp - 2

    scale, shift = _bn_scale_shift(s1_ref[...], g1_ref[...], b1_ref[...],
                                   inv_count)
    out1 = jnp.maximum(h1_ref[0].astype(jnp.float32) * scale + shift, 0.0)

    xpad_ref[...] = jnp.zeros_like(xpad_ref)
    xpad_ref[1:H + 1, 1:W + 1, :] = out1.astype(MXU_DTYPE).reshape(H, W, Cpad)

    _conv3x3_taps(xpad_ref, w_ref, acc_ref, H, W)
    acc = acc_ref[...]
    h2_ref[0] = acc.astype(h2_ref.dtype)
    _emit_stats(acc, s2_ref)


def _bn1_relu_conv2_pass(h1, stats1, g1, b1, w2m, H, W):
    N, HW, Cpad = h1.shape
    inv_count = 1.0 / float(N * HW)
    return pl.pallas_call(
        functools.partial(_bn1_relu_conv2_kernel, inv_count=inv_count),
        out_shape=(jax.ShapeDtypeStruct((N, HW, Cpad), MXU_DTYPE),
                   jax.ShapeDtypeStruct((N, 1, 2 * Cpad), jnp.float32)),
        grid=(N,),
        in_specs=[
            pl.BlockSpec((1, HW, Cpad), lambda n: (n, 0, 0)),
            pl.BlockSpec((2, Cpad), lambda n: (0, 0)),        # resident
            pl.BlockSpec((1, Cpad), lambda n: (0, 0)),        # resident
            pl.BlockSpec((1, Cpad), lambda n: (0, 0)),        # resident
            pl.BlockSpec((3, 3, Cpad, Cpad), lambda n: (0, 0, 0, 0)),
        ],
        out_specs=(
            pl.BlockSpec((1, HW, Cpad), lambda n: (n, 0, 0)),
            pl.BlockSpec((1, 1, 2 * Cpad), lambda n: (n, 0, 0)),
        ),
        scratch_shapes=[pltpu.VMEM((H + 2, W + 2, Cpad), MXU_DTYPE),
                        pltpu.VMEM((HW, Cpad), jnp.float32)],
        compiler_params=_compiler_params(),
    )(h1, stats1, g1, b1, w2m)


# ---------------------------------------------------------------------------
# Pass B: BN2 (global stats) + residual add (natural-width residual/output)
# ---------------------------------------------------------------------------
def _bn2_residual_kernel(h2_ref, s2_ref, g2_ref, b2_ref, x_ref, o_ref, *,
                         inv_count):
    # h2_ref: (1, H*W, Cpad) bf16      s2_ref: (2, Cpad) f32 global [sum,sumsq]
    # g2_ref/b2_ref: (1, Cpad) f32     x_ref/o_ref: (1, H, W, C) f32
    _, H, W, C = x_ref.shape
    scale, shift = _bn_scale_shift(s2_ref[...], g2_ref[...], b2_ref[...],
                                   inv_count)
    out = h2_ref[0].astype(jnp.float32) * scale + shift        # (HW, Cpad)
    res = x_ref[0].reshape(H * W, C)
    o_ref[0] = (out[:, :C] + res).reshape(H, W, C)


def _bn2_residual_pass(h2, stats2, g2, b2, x_nhwc):
    N, H, W, C = x_nhwc.shape
    HW = H * W
    Cpad = h2.shape[-1]
    inv_count = 1.0 / float(N * HW)
    return pl.pallas_call(
        functools.partial(_bn2_residual_kernel, inv_count=inv_count),
        out_shape=jax.ShapeDtypeStruct((N, H, W, C), jnp.float32),
        grid=(N,),
        in_specs=[
            pl.BlockSpec((1, HW, Cpad), lambda n: (n, 0, 0)),
            pl.BlockSpec((2, Cpad), lambda n: (0, 0)),         # resident
            pl.BlockSpec((1, Cpad), lambda n: (0, 0)),         # resident
            pl.BlockSpec((1, Cpad), lambda n: (0, 0)),         # resident
            pl.BlockSpec((1, H, W, C), lambda n: (n, 0, 0, 0)),
        ],
        out_specs=pl.BlockSpec((1, H, W, C), lambda n: (n, 0, 0, 0)),
        compiler_params=_compiler_params(),
    )(h2, stats2, g2, b2, x_nhwc)


# ---------------------------------------------------------------------------
# Plain-JAX glue: weight/vector layout prep and the full forward
# ---------------------------------------------------------------------------
def _prep_weight(w_oihw, cin_pad, cout_pad):
    """(Cout, Cin, 3, 3) -> (3, 3, cin_pad, cout_pad) bf16 (zero padded)."""
    w = jnp.transpose(w_oihw, (2, 3, 1, 0))          # (3, 3, Cin, Cout)
    _, _, cin, cout = w.shape
    w = jnp.pad(w, ((0, 0), (0, 0), (0, cin_pad - cin), (0, cout_pad - cout)))
    return w.astype(MXU_DTYPE)


def _pad_vec(v, cpad):
    return jnp.pad(v.astype(jnp.float32), (0, cpad - v.shape[0])).reshape(1, cpad)


def residual_block_forward(x_nchw, params):
    """ResidualBlock(in_c, out_c, stride=1, downsample=None).forward in
    training mode (BatchNorm uses exact batch statistics).  NCHW in/out."""
    N, C, H, W = x_nchw.shape
    Cout = params["w1"].shape[0]
    assert Cout == C, "stride=1 / no downsample requires in_channels == out_channels"
    Cpad = _round_up(max(Cout, LANE), LANE)

    x_nhwc = jnp.transpose(x_nchw, (0, 2, 3, 1)).astype(jnp.float32)

    # ---- pass A1: conv1 -> h1 (bf16) + per-tile stats ----
    w1m = _prep_weight(params["w1"], cin_pad=C, cout_pad=Cpad)
    h1, part1 = _conv1_pass(x_nhwc, w1m, Cpad)
    stats1 = jnp.sum(part1, axis=(0, 1)).reshape(2, Cpad)   # tiny glue reduction

    # ---- pass A2 (fused): BN1 + ReLU + conv2 -> h2 (bf16) + per-tile stats ----
    w2m = _prep_weight(params["w2"], cin_pad=Cpad, cout_pad=Cpad)
    h2, part2 = _bn1_relu_conv2_pass(
        h1, stats1, _pad_vec(params["g1"], Cpad), _pad_vec(params["b1"], Cpad),
        w2m, H, W)
    stats2 = jnp.sum(part2, axis=(0, 1)).reshape(2, Cpad)

    # ---- pass B: BN2 + residual add ----
    out_nhwc = _bn2_residual_pass(
        h2, stats2, _pad_vec(params["g2"], Cpad), _pad_vec(params["b2"], Cpad),
        x_nhwc)
    return jnp.transpose(out_nhwc, (0, 3, 1, 2))


# ---------------------------------------------------------------------------
# Pure-JAX reference (NCHW, mirrors the PyTorch module in training mode)
# ---------------------------------------------------------------------------
def _ref_forward(x, params, conv_dtype=jnp.float32):
    def conv(h, w):
        return jax.lax.conv_general_dilated(
            h.astype(conv_dtype), w.astype(conv_dtype),
            window_strides=(1, 1), padding=((1, 1), (1, 1)),
            dimension_numbers=("NCHW", "OIHW", "NCHW"),
            preferred_element_type=jnp.float32,
            precision=jax.lax.Precision.HIGHEST)

    def bn(h, g, b):
        mean = jnp.mean(h, axis=(0, 2, 3), keepdims=True)
        var = jnp.mean((h - mean) ** 2, axis=(0, 2, 3), keepdims=True)
        xn = (h - mean) * jax.lax.rsqrt(var + EPS)
        return xn * g.reshape(1, -1, 1, 1) + b.reshape(1, -1, 1, 1)

    out = jnp.maximum(bn(conv(x, params["w1"]), params["g1"], params["b1"]), 0.0)
    out = bn(conv(out, params["w2"]), params["g2"], params["b2"])
    return out + x


# ---------------------------------------------------------------------------
if __name__ == "__main__":
    # stride=1, downsample=None  =>  in_channels == out_channels
    N, C, H, W = 2, 4, 16, 16

    key = jax.random.PRNGKey(0)
    k_x, k_w1, k_w2, k_g1, k_b1, k_g2, k_b2 = jax.random.split(key, 7)

    x = jax.random.normal(k_x, (N, C, H, W), dtype=jnp.float32)
    params = {
        "w1": 0.1 * jax.random.normal(k_w1, (C, C, 3, 3), dtype=jnp.float32),
        "w2": 0.1 * jax.random.normal(k_w2, (C, C, 3, 3), dtype=jnp.float32),
        "g1": 1.0 + 0.1 * jax.random.normal(k_g1, (C,), dtype=jnp.float32),
        "b1": 0.1 * jax.random.normal(k_b1, (C,), dtype=jnp.float32),
        "g2": 1.0 + 0.1 * jax.random.normal(k_g2, (C,), dtype=jnp.float32),
        "b2": 0.1 * jax.random.normal(k_b2, (C,), dtype=jnp.float32),
    }

    fwd = jax.jit(residual_block_forward)
    out = jax.block_until_ready(fwd(x, params))
    assert out.shape == (N, C, H, W), out.shape

    # Check against a reference with matching conv numerics (bf16 operands,
    # f32 accumulation).  The kernel additionally stores the pre-BN conv
    # outputs in bf16, which adds ~1e-2-scale differences.
    ref_bf16 = jax.block_until_ready(_ref_forward(x, params, conv_dtype=jnp.bfloat16))
    np.testing.assert_allclose(np.asarray(out), np.asarray(ref_bf16),
                               rtol=2e-2, atol=3e-2)

    # Loose sanity check against the exact f32 PyTorch-equivalent forward.
    ref_f32 = jax.block_until_ready(_ref_forward(x, params, conv_dtype=jnp.float32))
    np.testing.assert_allclose(np.asarray(out), np.asarray(ref_f32),
                               rtol=5e-2, atol=7e-2)

    print("KERNEL_OK")
</pallas_src>

<mosaic_0001>
module attributes {stable_mosaic.version = 11 : i64} {
  func.func @_conv1_kernel(%arg0: i32, %arg1: memref<1x16x16x4xf32, #tpu.memory_space<vmem>>, %arg2: memref<3x3x4x128xbf16, #tpu.memory_space<vmem>>, %arg3: memref<1x256x128xbf16, #tpu.memory_space<vmem>>, %arg4: memref<1x1x256xf32, #tpu.memory_space<vmem>>, %arg5: memref<18x18x4xbf16, #tpu.memory_space<vmem>>, %arg6: memref<256x128xf32, #tpu.memory_space<vmem>>) attributes {dimension_semantics = [#tpu.dimension_semantics<parallel>], iteration_bounds = array<i64: 2>, scalar_prefetch = 0 : i64, scratch_operands = 2 : i64, tpu.core_type = #tpu.core_type<tc>, window_params = [{transform_indices = @transform_0, window_bounds = array<i64: 1, 16, 16, 4>}, {pipeline_mode = #tpu.pipeline_mode<synchronous>, transform_indices = @transform_1, window_bounds = array<i64: 3, 3, 4, 128>}, {transform_indices = @transform_2, window_bounds = array<i64: 1, 256, 128>}, {transform_indices = @transform_3, window_bounds = array<i64: 1, 1, 256>}]} {
    %cst = arith.constant 0.000000e+00 : bf16
    %0 = vector.broadcast %cst : bf16 to vector<18x18x4xbf16>
    %c0 = arith.constant 0 : index
    %c0_0 = arith.constant 0 : index
    %c0_1 = arith.constant 0 : index
    %1 = vector.load %arg5[%c0, %c0_0, %c0_1] : memref<18x18x4xbf16, #tpu.memory_space<vmem>>, vector<18x18x4xbf16>
    tpu.vector_store %arg5[%c0, %c0_0, %c0_1], %0 {strides = array<i32>} : memref<18x18x4xbf16, #tpu.memory_space<vmem>>, vector<18x18x4xbf16>,
    %c0_2 = arith.constant 0 : index
    %c0_3 = arith.constant 0 : index
    %c0_4 = arith.constant 0 : index
    %c0_5 = arith.constant 0 : index
    %2 = vector.load %arg1[%c0_2, %c0_3, %c0_4, %c0_5] : memref<1x16x16x4xf32, #tpu.memory_space<vmem>>, vector<1x16x16x4xf32>
    %3 = vector.shape_cast %2 : vector<1x16x16x4xf32> to vector<16x16x4xf32>
    %4 = arith.truncf %3 : vector<16x16x4xf32> to vector<16x16x4xbf16>
    %c1 = arith.constant 1 : index
    %c1_6 = arith.constant 1 : index
    %c0_7 = arith.constant 0 : index
    %5 = vector.load %arg5[%c1, %c1_6, %c0_7] : memref<18x18x4xbf16, #tpu.memory_space<vmem>>, vector<16x16x4xbf16>
    tpu.vector_store %arg5[%c1, %c1_6, %c0_7], %4 {strides = array<i32>} : memref<18x18x4xbf16, #tpu.memory_space<vmem>>, vector<16x16x4xbf16>,
    %c0_8 = arith.constant 0 : index
    %c0_9 = arith.constant 0 : index
    %c0_10 = arith.constant 0 : index
    %6 = vector.load %arg5[%c0_8, %c0_9, %c0_10] : memref<18x18x4xbf16, #tpu.memory_space<vmem>>, vector<16x16x4xbf16>
    %7 = vector.shape_cast %6 : vector<16x16x4xbf16> to vector<256x4xbf16>
    %c0_11 = arith.constant 0 : index
    %c0_12 = arith.constant 0 : index
    %c0_13 = arith.constant 0 : index
    %c0_14 = arith.constant 0 : index
    %8 = vector.load %arg2[%c0_11, %c0_12, %c0_13, %c0_14] : memref<3x3x4x128xbf16, #tpu.memory_space<vmem>>, vector<1x1x4x128xbf16>
    %9 = vector.shape_cast %8 : vector<1x1x4x128xbf16> to vector<4x128xbf16>
    %cst_15 = arith.constant dense<0.000000e+00> : vector<256x128xf32>
    %10 = tpu.matmul %7, %9, %cst_15 {dimension_numbers = #tpu.dot_dimension_numbers<[1], [0], [0], [1], [0, 0, 1, 1], [], []>} : vector<256x4xbf16>, vector<4x128xbf16>, vector<256x128xf32> -> vector<256x128xf32>
    %c0_16 = arith.constant 0 : index
    %c0_17 = arith.constant 0 : index
    %11 = vector.load %arg6[%c0_16, %c0_17] : memref<256x128xf32, #tpu.memory_space<vmem>>, vector<256x128xf32>
    tpu.vector_store %arg6[%c0_16, %c0_17], %10 {strides = array<i32>} : memref<256x128xf32, #tpu.memory_space<vmem>>, vector<256x128xf32>,
    %c0_18 = arith.constant 0 : index
    %c1_19 = arith.constant 1 : index
    %c0_20 = arith.constant 0 : index
    %12 = vector.load %arg5[%c0_18, %c1_19, %c0_20] : memref<18x18x4xbf16, #tpu.memory_space<vmem>>, vector<16x16x4xbf16>
    %13 = vector.shape_cast %12 : vector<16x16x4xbf16> to vector<256x4xbf16>
    %c0_21 = arith.constant 0 : index
    %c1_22 = arith.constant 1 : index
    %c0_23 = arith.constant 0 : index
    %c0_24 = arith.constant 0 : index
    %14 = vector.load %arg2[%c0_21, %c1_22, %c0_23, %c0_24] : memref<3x3x4x128xbf16, #tpu.memory_space<vmem>>, vector<1x1x4x128xbf16>
    %15 = vector.shape_cast %14 : vector<1x1x4x128xbf16> to vector<4x128xbf16>
    %cst_25 = arith.constant dense<0.000000e+00> : vector<256x128xf32>
    %16 = tpu.matmul %13, %15, %cst_25 {dimension_numbers = #tpu.dot_dimension_numbers<[1], [0], [0], [1], [0, 0, 1, 1], [], []>} : vector<256x4xbf16>, vector<4x128xbf16>, vector<256x128xf32> -> vector<256x128xf32>
    %c0_26 = arith.constant 0 : index
    %c0_27 = arith.constant 0 : index
    %17 = vector.load %arg6[%c0_26, %c0_27] : memref<256x128xf32, #tpu.memory_space<vmem>>, vector<256x128xf32>
    %18 = arith.addf %17, %16 : vector<256x128xf32>
    %c0_28 = arith.constant 0 : index
    %c0_29 = arith.constant 0 : index
    %19 = vector.load %arg6[%c0_28, %c0_29] : memref<256x128xf32, #tpu.memory_space<vmem>>, vector<256x128xf32>
    tpu.vector_store %arg6[%c0_28, %c0_29], %18 {strides = array<i32>} : memref<256x128xf32, #tpu.memory_space<vmem>>, vector<256x128xf32>,
    %c0_30 = arith.constant 0 : index
    %c2 = arith.constant 2 : index
    %c0_31 = arith.constant 0 : index
    %20 = vector.load %arg5[%c0_30, %c2, %c0_31] : memref<18x18x4xbf16, #tpu.memory_space<vmem>>, vector<16x16x4xbf16>
    %21 = vector.shape_cast %20 : vector<16x16x4xbf16> to vector<256x4xbf16>
    %c0_32 = arith.constant 0 : index
    %c2_33 = arith.constant 2 : index
    %c0_34 = arith.constant 0 : index
    %c0_35 = arith.constant 0 : index
    %22 = vector.load %arg2[%c0_32, %c2_33, %c0_34, %c0_35] : memref<3x3x4x128xbf16, #tpu.memory_space<vmem>>, vector<1x1x4x128xbf16>
    %23 = vector.shape_cast %22 : vector<1x1x4x128xbf16> to vector<4x128xbf16>
    %cst_36 = arith.constant dense<0.000000e+00> : vector<256x128xf32>
    %24 = tpu.matmul %21, %23, %cst_36 {dimension_numbers = #tpu.dot_dimension_numbers<[1], [0], [0], [1], [0, 0, 1, 1], [], []>} : vector<256x4xbf16>, vector<4x128xbf16>, vector<256x128xf32> -> vector<256x128xf32>
    %c0_37 = arith.constant 0 : index
    %c0_38 = arith.constant 0 : index
    %25 = vector.load %arg6[%c0_37, %c0_38] : memref<256x128xf32, #tpu.memory_space<vmem>>, vector<256x128xf32>
    %26 = arith.addf %25, %24 : vector<256x128xf32>
    %c0_39 = arith.constant 0 : index
    %c0_40 = arith.constant 0 : index
    %27 = vector.load %arg6[%c0_39, %c0_40] : memref<256x128xf32, #tpu.memory_space<vmem>>, vector<256x128xf32>
    tpu.vector_store %arg6[%c0_39, %c0_40], %26 {strides = array<i32>} : memref<256x128xf32, #tpu.memory_space<vmem>>, vector<256x128xf32>,
    %c1_41 = arith.constant 1 : index
    %c0_42 = arith.constant 0 : index
    %c0_43 = arith.constant 0 : index
    %28 = vector.load %arg5[%c1_41, %c0_42, %c0_43] : memref<18x18x4xbf16, #tpu.memory_space<vmem>>, vector<16x16x4xbf16>
    %29 = vector.shape_cast %28 : vector<16x16x4xbf16> to vector<256x4xbf16>
    %c1_44 = arith.constant 1 : index
    %c0_45 = arith.constant 0 : index
    %c0_46 = arith.constant 0 : index
    %c0_47 = arith.constant 0 : index
    %30 = vector.load %arg2[%c1_44, %c0_45, %c0_46, %c0_47] : memref<3x3x4x128xbf16, #tpu.memory_space<vmem>>, vector<1x1x4x128xbf16>
    %31 = vector.shape_cast %30 : vector<1x1x4x128xbf16> to vector<4x128xbf16>
    %cst_48 = arith.constant dense<0.000000e+00> : vector<256x128xf32>
    %32 = tpu.matmul %29, %31, %cst_48 {dimension_numbers = #tpu.dot_dimension_numbers<[1], [0], [0], [1], [0, 0, 1, 1], [], []>} : vector<256x4xbf16>, vector<4x128xbf16>, vector<256x128xf32> -> vector<256x128xf32>
    %c0_49 = arith.constant 0 : index
    %c0_50 = arith.constant 0 : index
    %33 = vector.load %arg6[%c0_49, %c0_50] : memref<256x128xf32, #tpu.memory_space<vmem>>, vector<256x128xf32>
    %34 = arith.addf %33, %32 : vector<256x128xf32>
    %c0_51 = arith.constant 0 : index
    %c0_52 = arith.constant 0 : index
    %35 = vector.load %arg6[%c0_51, %c0_52] : memref<256x128xf32, #tpu.memory_space<vmem>>, vector<256x128xf32>
    tpu.vector_store %arg6[%c0_51, %c0_52], %34 {strides = array<i32>} : memref<256x128xf32, #tpu.memory_space<vmem>>, vector<256x128xf32>,
    %c1_53 = arith.constant 1 : index
    %c1_54 = arith.constant 1 : index
    %c0_55 = arith.constant 0 : index
    %36 = vector.load %arg5[%c1_53, %c1_54, %c0_55] : memref<18x18x4xbf16, #tpu.memory_space<vmem>>, vector<16x16x4xbf16>
    %37 = vector.shape_cast %36 : vector<16x16x4xbf16> to vector<256x4xbf16>
    %c1_56 = arith.constant 1 : index
    %c1_57 = arith.constant 1 : index
    %c0_58 = arith.constant 0 : index
    %c0_59 = arith.constant 0 : index
    %38 = vector.load %arg2[%c1_56, %c1_57, %c0_58, %c0_59] : memref<3x3x4x128xbf16, #tpu.memory_space<vmem>>, vector<1x1x4x128xbf16>
    %39 = vector.shape_cast %38 : vector<1x1x4x128xbf16> to vector<4x128xbf16>
    %cst_60 = arith.constant dense<0.000000e+00> : vector<256x128xf32>
    %40 = tpu.matmul %37, %39, %cst_60 {dimension_numbers = #tpu.dot_dimension_numbers<[1], [0], [0], [1], [0, 0, 1, 1], [], []>} : vector<256x4xbf16>, vector<4x128xbf16>, vector<256x128xf32> -> vector<256x128xf32>
    %c0_61 = arith.constant 0 : index
    %c0_62 = arith.constant 0 : index
    %41 = vector.load %arg6[%c0_61, %c0_62] : memref<256x128xf32, #tpu.memory_space<vmem>>, vector<256x128xf32>
    %42 = arith.addf %41, %40 : vector<256x128xf32>
    %c0_63 = arith.constant 0 : index
    %c0_64 = arith.constant 0 : index
    %43 = vector.load %arg6[%c0_63, %c0_64] : memref<256x128xf32, #tpu.memory_space<vmem>>, vector<256x128xf32>
    tpu.vector_store %arg6[%c0_63, %c0_64], %42 {strides = array<i32>} : memref<256x128xf32, #tpu.memory_space<vmem>>, vector<256x128xf32>,
    %c1_65 = arith.constant 1 : index
    %c2_66 = arith.constant 2 : index
    %c0_67 = arith.constant 0 : index
    %44 = vector.load %arg5[%c1_65, %c2_66, %c0_67] : memref<18x18x4xbf16, #tpu.memory_space<vmem>>, vector<16x16x4xbf16>
    %45 = vector.shape_cast %44 : vector<16x16x4xbf16> to vector<256x4xbf16>
    %c1_68 = arith.constant 1 : index
    %c2_69 = arith.constant 2 : index
    %c0_70 = arith.constant 0 : index
    %c0_71 = arith.constant 0 : index
    %46 = vector.load %arg2[%c1_68, %c2_69, %c0_70, %c0_71] : memref<3x3x4x128xbf16, #tpu.memory_space<vmem>>, vector<1x1x4x128xbf16>
    %47 = vector.shape_cast %46 : vector<1x1x4x128xbf16> to vector<4x128xbf16>
    %cst_72 = arith.constant dense<0.000000e+00> : vector<256x128xf32>
    %48 = tpu.matmul %45, %47, %cst_72 {dimension_numbers = #tpu.dot_dimension_numbers<[1], [0], [0], [1], [0, 0, 1, 1], [], []>} : vector<256x4xbf16>, vector<4x128xbf16>, vector<256x128xf32> -> vector<256x128xf32>
    %c0_73 = arith.constant 0 : index
    %c0_74 = arith.constant 0 : index
    %49 = vector.load %arg6[%c0_73, %c0_74] : memref<256x128xf32, #tpu.memory_space<vmem>>, vector<256x128xf32>
    %50 = arith.addf %49, %48 : vector<256x128xf32>
    %c0_75 = arith.constant 0 : index
    %c0_76 = arith.constant 0 : index
    %51 = vector.load %arg6[%c0_75, %c0_76] : memref<256x128xf32, #tpu.memory_space<vmem>>, vector<256x128xf32>
    tpu.vector_store %arg6[%c0_75, %c0_76], %50 {strides = array<i32>} : memref<256x128xf32, #tpu.memory_space<vmem>>, vector<256x128xf32>,
    %c2_77 = arith.constant 2 : index
    %c0_78 = arith.constant 0 : index
    %c0_79 = arith.constant 0 : index
    %52 = vector.load %arg5[%c2_77, %c0_78, %c0_79] : memref<18x18x4xbf16, #tpu.memory_space<vmem>>, vector<16x16x4xbf16>
    %53 = vector.shape_cast %52 : vector<16x16x4xbf16> to vector<256x4xbf16>
    %c2_80 = arith.constant 2 : index
    %c0_81 = arith.constant 0 : index
    %c0_82 = arith.constant 0 : index
    %c0_83 = arith.constant 0 : index
    %54 = vector.load %arg2[%c2_80, %c0_81, %c0_82, %c0_83] : memref<3x3x4x128xbf16, #tpu.memory_space<vmem>>, vector<1x1x4x128xbf16>
    %55 = vector.shape_cast %54 : vector<1x1x4x128xbf16> to vector<4x128xbf16>
    %cst_84 = arith.constant dense<0.000000e+00> : vector<256x128xf32>
    %56 = tpu.matmul %53, %55, %cst_84 {dimension_numbers = #tpu.dot_dimension_numbers<[1], [0], [0], [1], [0, 0, 1, 1], [], []>} : vector<256x4xbf16>, vector<4x128xbf16>, vector<256x128xf32> -> vector<256x128xf32>
    %c0_85 = arith.constant 0 : index
    %c0_86 = arith.constant 0 : index
    %57 = vector.load %arg6[%c0_85, %c0_86] : memref<256x128xf32, #tpu.memory_space<vmem>>, vector<256x128xf32>
    %58 = arith.addf %57, %56 : vector<256x128xf32>
    %c0_87 = arith.constant 0 : index
    %c0_88 = arith.constant 0 : index
    %59 = vector.load %arg6[%c0_87, %c0_88] : memref<256x128xf32, #tpu.memory_space<vmem>>, vector<256x128xf32>
    tpu.vector_store %arg6[%c0_87, %c0_88], %58 {strides = array<i32>} : memref<256x128xf32, #tpu.memory_space<vmem>>, vector<256x128xf32>,
    %c2_89 = arith.constant 2 : index
    %c1_90 = arith.constant 1 : index
    %c0_91 = arith.constant 0 : index
    %60 = vector.load %arg5[%c2_89, %c1_90, %c0_91] : memref<18x18x4xbf16, #tpu.memory_space<vmem>>, vector<16x16x4xbf16>
    %61 = vector.shape_cast %60 : vector<16x16x4xbf16> to vector<256x4xbf16>
    %c2_92 = arith.constant 2 : index
    %c1_93 = arith.constant 1 : index
    %c0_94 = arith.constant 0 : index
    %c0_95 = arith.constant 0 : index
    %62 = vector.load %arg2[%c2_92, %c1_93, %c0_94, %c0_95] : memref<3x3x4x128xbf16, #tpu.memory_space<vmem>>, vector<1x1x4x128xbf16>
    %63 = vector.shape_cast %62 : vector<1x1x4x128xbf16> to vector<4x128xbf16>
    %cst_96 = arith.constant dense<0.000000e+00> : vector<256x128xf32>
    %64 = tpu.matmul %61, %63, %cst_96 {dimension_numbers = #tpu.dot_dimension_numbers<[1], [0], [0], [1], [0, 0, 1, 1], [], []>} : vector<256x4xbf16>, vector<4x128xbf16>, vector<256x128xf32> -> vector<256x128xf32>
    %c0_97 = arith.constant 0 : index
    %c0_98 = arith.constant 0 : index
    %65 = vector.load %arg6[%c0_97, %c0_98] : memref<256x128xf32, #tpu.memory_space<vmem>>, vector<256x128xf32>
    %66 = arith.addf %65, %64 : vector<256x128xf32>
    %c0_99 = arith.constant 0 : index
    %c0_100 = arith.constant 0 : index
    %67 = vector.load %arg6[%c0_99, %c0_100] : memref<256x128xf32, #tpu.memory_space<vmem>>, vector<256x128xf32>
    tpu.vector_store %arg6[%c0_99, %c0_100], %66 {strides = array<i32>} : memref<256x128xf32, #tpu.memory_space<vmem>>, vector<256x128xf32>,
    %c2_101 = arith.constant 2 : index
    %c2_102 = arith.constant 2 : index
    %c0_103 = arith.constant 0 : index
    %68 = vector.load %arg5[%c2_101, %c2_102, %c0_103] : memref<18x18x4xbf16, #tpu.memory_space<vmem>>, vector<16x16x4xbf16>
    %69 = vector.shape_cast %68 : vector<16x16x4xbf16> to vector<256x4xbf16>
    %c2_104 = arith.constant 2 : index
    %c2_105 = arith.constant 2 : index
    %c0_106 = arith.constant 0 : index
    %c0_107 = arith.constant 0 : index
    %70 = vector.load %arg2[%c2_104, %c2_105, %c0_106, %c0_107] : memref<3x3x4x128xbf16, #tpu.memory_space<vmem>>, vector<1x1x4x128xbf16>
    %71 = vector.shape_cast %70 : vector<1x1x4x128xbf16> to vector<4x128xbf16>
    %cst_108 = arith.constant dense<0.000000e+00> : vector<256x128xf32>
    %72 = tpu.matmul %69, %71, %cst_108 {dimension_numbers = #tpu.dot_dimension_numbers<[1], [0], [0], [1], [0, 0, 1, 1], [], []>} : vector<256x4xbf16>, vector<4x128xbf16>, vector<256x128xf32> -> vector<256x128xf32>
    %c0_109 = arith.constant 0 : index
    %c0_110 = arith.constant 0 : index
    %73 = vector.load %arg6[%c0_109, %c0_110] : memref<256x128xf32, #tpu.memory_space<vmem>>, vector<256x128xf32>
    %74 = arith.addf %73, %72 : vector<256x128xf32>
    %c0_111 = arith.constant 0 : index
    %c0_112 = arith.constant 0 : index
    %75 = vector.load %arg6[%c0_111, %c0_112] : memref<256x128xf32, #tpu.memory_space<vmem>>, vector<256x128xf32>
    tpu.vector_store %arg6[%c0_111, %c0_112], %74 {strides = array<i32>} : memref<256x128xf32, #tpu.memory_space<vmem>>, vector<256x128xf32>,
    %c0_113 = arith.constant 0 : index
    %c0_114 = arith.constant 0 : index
    %76 = vector.load %arg6[%c0_113, %c0_114] : memref<256x128xf32, #tpu.memory_space<vmem>>, vector<256x128xf32>
    %77 = arith.truncf %76 : vector<256x128xf32> to vector<256x128xbf16>
    %c0_115 = arith.constant 0 : index
    %c0_116 = arith.constant 0 : index
    %c0_117 = arith.constant 0 : index
    %78 = vector.load %arg3[%c0_115, %c0_116, %c0_117] : memref<1x256x128xbf16, #tpu.memory_space<vmem>>, vector<1x256x128xbf16>
    %79 = vector.shape_cast %78 : vector<1x256x128xbf16> to vector<256x128xbf16>
    %80 = vector.shape_cast %77 : vector<256x128xbf16> to vector<1x256x128xbf16>
    tpu.vector_store %arg3[%c0_115, %c0_116, %c0_117], %80 {strides = array<i32>} : memref<1x256x128xbf16, #tpu.memory_space<vmem>>, vector<1x256x128xbf16>,
    %cst_118 = arith.constant 1.000000e+00 : f32
    %81 = vector.broadcast %cst_118 : f32 to vector<8x256xf32>
    %82 = arith.mulf %76, %76 : vector<256x128xf32>
    %83 = tpu.concatenate %76, %82 in 1 : vector<256x128xf32>, vector<256x128xf32> -> vector<256x256xf32>
    %cst_119 = arith.constant dense<0.000000e+00> : vector<8x256xf32>
    %84 = tpu.matmul %81, %83, %cst_119 {dimension_numbers = #tpu.dot_dimension_numbers<[1], [0], [0], [1], [0, 0, 1, 1], [], []>} : vector<8x256xf32>, vector<256x256xf32>, vector<8x256xf32> -> vector<8x256xf32>
    %85 = vector.extract_strided_slice %84 {offsets = [0, 0], sizes = [1, 256], strides = [1, 1]} : vector<8x256xf32> to vector<1x256xf32>
    %c0_120 = arith.constant 0 : index
    %c0_121 = arith.constant 0 : index
    %c0_122 = arith.constant 0 : index
    %86 = vector.load %arg4[%c0_120, %c0_121, %c0_122] : memref<1x1x256xf32, #tpu.memory_space<vmem>>, vector<1x1x256xf32>
    %87 = vector.shape_cast %86 : vector<1x1x256xf32> to vector<1x256xf32>
    %88 = vector.shape_cast %85 : vector<1x256xf32> to vector<1x1x256xf32>
    tpu.vector_store %arg4[%c0_120, %c0_121, %c0_122], %88 {strides = array<i32>} : memref<1x1x256xf32, #tpu.memory_space<vmem>>, vector<1x1x256xf32>,
    return
  }
  func.func @transform_0(%arg0: i32) -> (i32, i32, i32, i32) {
    %c0_i32 = arith.constant 0 : i32
    %c0_i32_0 = arith.constant 0 : i32
    %c0_i32_1 = arith.constant 0 : i32
    %c0_i32_2 = arith.constant 0 : i32
    return %arg0, %c0_i32, %c0_i32_0, %c0_i32_1 : i32, i32, i32, i32
  }
  func.func @transform_1(%arg0: i32) -> (i32, i32, i32, i32) {
    %c0_i32 = arith.constant 0 : i32
    %c0_i32_0 = arith.constant 0 : i32
    %c0_i32_1 = arith.constant 0 : i32
    %c0_i32_2 = arith.constant 0 : i32
    %c0_i32_3 = arith.constant 0 : i32
    return %c0_i32, %c0_i32_0, %c0_i32_1, %c0_i32_2 : i32, i32, i32, i32
  }
  func.func @transform_2(%arg0: i32) -> (i32, i32, i32) {
    %c0_i32 = arith.constant 0 : i32
    %c0_i32_0 = arith.constant 0 : i32
    %c0_i32_1 = arith.constant 0 : i32
    return %arg0, %c0_i32, %c0_i32_0 : i32, i32, i32
  }
  func.func @transform_3(%arg0: i32) -> (i32, i32, i32) {
    %c0_i32 = arith.constant 0 : i32
    %c0_i32_0 = arith.constant 0 : i32
    %c0_i32_1 = arith.constant 0 : i32
    return %arg0, %c0_i32, %c0_i32_0 : i32, i32, i32
  }
}

module attributes {stable_mosaic.version = 11 : i64} {
  func.func @_bn1_relu_conv2_kernel(%arg0: i32, %arg1: memref<1x256x128xbf16, #tpu.memory_space<vmem>>, %arg2: memref<2x128xf32, #tpu.memory_space<vmem>>, %arg3: memref<1x128xf32, #tpu.memory_space<vmem>>, %arg4: memref<1x128xf32, #tpu.memory_space<vmem>>, %arg5: memref<3x3x128x128xbf16, #tpu.memory_space<vmem>>, %arg6: memref<1x256x128xbf16, #tpu.memory_space<vmem>>, %arg7: memref<1x1x256xf32, #tpu.memory_space<vmem>>, %arg8: memref<18x18x128xbf16, #tpu.memory_space<vmem>>, %arg9: memref<256x128xf32, #tpu.memory_space<vmem>>) attributes {dimension_semantics = [#tpu.dimension_semantics<parallel>], iteration_bounds = array<i64: 2>, scalar_prefetch = 0 : i64, scratch_operands = 2 : i64, tpu.core_type = #tpu.core_type<tc>, window_params = [{transform_indices = @transform_0, window_bounds = array<i64: 1, 256, 128>}, {pipeline_mode = #tpu.pipeline_mode<synchronous>, transform_indices = @transform_1, window_bounds = array<i64: 2, 128>}, {pipeline_mode = #tpu.pipeline_mode<synchronous>, transform_indices = @transform_2, window_bounds = array<i64: 1, 128>}, {pipeline_mode = #tpu.pipeline_mode<synchronous>, transform_indices = @transform_3, window_bounds = array<i64: 1, 128>}, {pipeline_mode = #tpu.pipeline_mode<synchronous>, transform_indices = @transform_4, window_bounds = array<i64: 3, 3, 128, 128>}, {transform_indices = @transform_5, window_bounds = array<i64: 1, 256, 128>}, {transform_indices = @transform_6, window_bounds = array<i64: 1, 1, 256>}]} {
    %c0 = arith.constant 0 : index
    %c0_0 = arith.constant 0 : index
    %0 = vector.load %arg2[%c0, %c0_0] : memref<2x128xf32, #tpu.memory_space<vmem>>, vector<2x128xf32>
    %c0_1 = arith.constant 0 : index
    %c0_2 = arith.constant 0 : index
    %1 = vector.load %arg3[%c0_1, %c0_2] : memref<1x128xf32, #tpu.memory_space<vmem>>, vector<1x128xf32>
    %c0_3 = arith.constant 0 : index
    %c0_4 = arith.constant 0 : index
    %2 = vector.load %arg4[%c0_3, %c0_4] : memref<1x128xf32, #tpu.memory_space<vmem>>, vector<1x128xf32>
    %3 = vector.extract_strided_slice %0 {offsets = [0, 0], sizes = [1, 128], strides = [1, 1]} : vector<2x128xf32> to vector<1x128xf32>
    %cst = arith.constant 0.001953125 : f32
    %4 = vector.broadcast %cst : f32 to vector<1x128xf32>
    %5 = arith.mulf %3, %4 : vector<1x128xf32>
    %6 = vector.extract_strided_slice %0 {offsets = [1, 0], sizes = [1, 128], strides = [1, 1]} : vector<2x128xf32> to vector<1x128xf32>
    %cst_5 = arith.constant 0.001953125 : f32
    %7 = vector.broadcast %cst_5 : f32 to vector<1x128xf32>
    %8 = arith.mulf %6, %7 : vector<1x128xf32>
    %9 = arith.mulf %5, %5 : vector<1x128xf32>
    %10 = arith.subf %8, %9 : vector<1x128xf32>
    %cst_6 = arith.constant 0.000000e+00 : f32
    %11 = vector.broadcast %cst_6 : f32 to vector<1x128xf32>
    %12 = arith.maximumf %10, %11 : vector<1x128xf32>
    %cst_7 = arith.constant 9.99999974E-6 : f32
    %13 = vector.broadcast %cst_7 : f32 to vector<1x128xf32>
    %14 = arith.addf %12, %13 : vector<1x128xf32>
    %15 = math.rsqrt %14 : vector<1x128xf32>
    %16 = arith.mulf %15, %1 : vector<1x128xf32>
    %17 = arith.mulf %5, %16 : vector<1x128xf32>
    %18 = arith.subf %2, %17 : vector<1x128xf32>
    %c0_8 = arith.constant 0 : index
    %c0_9 = arith.constant 0 : index
    %c0_10 = arith.constant 0 : index
    %19 = vector.load %arg1[%c0_8, %c0_9, %c0_10] : memref<1x256x128xbf16, #tpu.memory_space<vmem>>, vector<1x256x128xbf16>
    %20 = vector.shape_cast %19 : vector<1x256x128xbf16> to vector<256x128xbf16>
    %21 = arith.extf %20 : vector<256x128xbf16> to vector<256x128xf32>
    %22 = vector.broadcast %16 : vector<1x128xf32> to vector<256x128xf32>
    %23 = arith.mulf %21, %22 : vector<256x128xf32>
    %24 = vector.broadcast %18 : vector<1x128xf32> to vector<256x128xf32>
    %25 = arith.addf %23, %24 : vector<256x128xf32>
    %cst_11 = arith.constant 0.000000e+00 : f32
    %26 = vector.broadcast %cst_11 : f32 to vector<256x128xf32>
    %27 = arith.maximumf %25, %26 : vector<256x128xf32>
    %cst_12 = arith.constant 0.000000e+00 : bf16
    %28 = vector.broadcast %cst_12 : bf16 to vector<18x18x128xbf16>
    %c0_13 = arith.constant 0 : index
    %c0_14 = arith.constant 0 : index
    %c0_15 = arith.constant 0 : index
    %29 = vector.load %arg8[%c0_13, %c0_14, %c0_15] : memref<18x18x128xbf16, #tpu.memory_space<vmem>>, vector<18x18x128xbf16>
    tpu.vector_store %arg8[%c0_13, %c0_14, %c0_15], %28 {strides = array<i32>} : memref<18x18x128xbf16, #tpu.memory_space<vmem>>, vector<18x18x128xbf16>,
    %30 = arith.truncf %27 : vector<256x128xf32> to vector<256x128xbf16>
    %31 = vector.shape_cast %30 : vector<256x128xbf16> to vector<16x16x128xbf16>
    %c1 = arith.constant 1 : index
    %c1_16 = arith.constant 1 : index
    %c0_17 = arith.constant 0 : index
    %32 = vector.load %arg8[%c1, %c1_16, %c0_17] : memref<18x18x128xbf16, #tpu.memory_space<vmem>>, vector<16x16x128xbf16>
    tpu.vector_store %arg8[%c1, %c1_16, %c0_17], %31 {strides = array<i32>} : memref<18x18x128xbf16, #tpu.memory_space<vmem>>, vector<16x16x128xbf16>,
    %c0_18 = arith.constant 0 : index
    %c0_19 = arith.constant 0 : index
    %c0_20 = arith.constant 0 : index
    %33 = vector.load %arg8[%c0_18, %c0_19, %c0_20] : memref<18x18x128xbf16, #tpu.memory_space<vmem>>, vector<16x16x128xbf16>
    %34 = vector.shape_cast %33 : vector<16x16x128xbf16> to vector<256x128xbf16>
    %c0_21 = arith.constant 0 : index
    %c0_22 = arith.constant 0 : index
    %c0_23 = arith.constant 0 : index
    %c0_24 = arith.constant 0 : index
    %35 = vector.load %arg5[%c0_21, %c0_22, %c0_23, %c0_24] : memref<3x3x128x128xbf16, #tpu.memory_space<vmem>>, vector<1x1x128x128xbf16>
    %36 = vector.shape_cast %35 : vector<1x1x128x128xbf16> to vector<128x128xbf16>
    %cst_25 = arith.constant dense<0.000000e+00> : vector<256x128xf32>
    %37 = tpu.matmul %34, %36, %cst_25 {dimension_numbers = #tpu.dot_dimension_numbers<[1], [0], [0], [1], [0, 0, 1, 1], [], []>} : vector<256x128xbf16>, vector<128x128xbf16>, vector<256x128xf32> -> vector<256x128xf32>
    %c0_26 = arith.constant 0 : index
    %c0_27 = arith.constant 0 : index
    %38 = vector.load %arg9[%c0_26, %c0_27] : memref<256x128xf32, #tpu.memory_space<vmem>>, vector<256x128xf32>
    tpu.vector_store %arg9[%c0_26, %c0_27], %37 {strides = array<i32>} : memref<256x128xf32, #tpu.memory_space<vmem>>, vector<256x128xf32>,
    %c0_28 = arith.constant 0 : index
    %c1_29 = arith.constant 1 : index
    %c0_30 = arith.constant 0 : index
    %39 = vector.load %arg8[%c0_28, %c1_29, %c0_30] : memref<18x18x128xbf16, #tpu.memory_space<vmem>>, vector<16x16x128xbf16>
    %40 = vector.shape_cast %39 : vector<16x16x128xbf16> to vector<256x128xbf16>
    %c0_31 = arith.constant 0 : index
    %c1_32 = arith.constant 1 : index
    %c0_33 = arith.constant 0 : index
    %c0_34 = arith.constant 0 : index
    %41 = vector.load %arg5[%c0_31, %c1_32, %c0_33, %c0_34] : memref<3x3x128x128xbf16, #tpu.memory_space<vmem>>, vector<1x1x128x128xbf16>
    %42 = vector.shape_cast %41 : vector<1x1x128x128xbf16> to vector<128x128xbf16>
    %cst_35 = arith.constant dense<0.000000e+00> : vector<256x128xf32>
    %43 = tpu.matmul %40, %42, %cst_35 {dimension_numbers = #tpu.dot_dimension_numbers<[1], [0], [0], [1], [0, 0, 1, 1], [], []>} : vector<256x128xbf16>, vector<128x128xbf16>, vector<256x128xf32> -> vector<256x128xf32>
    %c0_36 = arith.constant 0 : index
    %c0_37 = arith.constant 0 : index
    %44 = vector.load %arg9[%c0_36, %c0_37] : memref<256x128xf32, #tpu.memory_space<vmem>>, vector<256x128xf32>
    %45 = arith.addf %44, %43 : vector<256x128xf32>
    %c0_38 = arith.constant 0 : index
    %c0_39 = arith.constant 0 : index
    %46 = vector.load %arg9[%c0_38, %c0_39] : memref<256x128xf32, #tpu.memory_space<vmem>>, vector<256x128xf32>
    tpu.vector_store %arg9[%c0_38, %c0_39], %45 {strides = array<i32>} : memref<256x128xf32, #tpu.memory_space<vmem>>, vector<256x128xf32>,
    %c0_40 = arith.constant 0 : index
    %c2 = arith.constant 2 : index
    %c0_41 = arith.constant 0 : index
    %47 = vector.load %arg8[%c0_40, %c2, %c0_41] : memref<18x18x128xbf16, #tpu.memory_space<vmem>>, vector<16x16x128xbf16>
    %48 = vector.shape_cast %47 : vector<16x16x128xbf16> to vector<256x128xbf16>
    %c0_42 = arith.constant 0 : index
    %c2_43 = arith.constant 2 : index
    %c0_44 = arith.constant 0 : index
    %c0_45 = arith.constant 0 : index
    %49 = vector.load %arg5[%c0_42, %c2_43, %c0_44, %c0_45] : memref<3x3x128x128xbf16, #tpu.memory_space<vmem>>, vector<1x1x128x128xbf16>
    %50 = vector.shape_cast %49 : vector<1x1x128x128xbf16> to vector<128x128xbf16>
    %cst_46 = arith.constant dense<0.000000e+00> : vector<256x128xf32>
    %51 = tpu.matmul %48, %50, %cst_46 {dimension_numbers = #tpu.dot_dimension_numbers<[1], [0], [0], [1], [0, 0, 1, 1], [], []>} : vector<256x128xbf16>, vector<128x128xbf16>, vector<256x128xf32> -> vector<256x128xf32>
    %c0_47 = arith.constant 0 : index
    %c0_48 = arith.constant 0 : index
    %52 = vector.load %arg9[%c0_47, %c0_48] : memref<256x128xf32, #tpu.memory_space<vmem>>, vector<256x128xf32>
    %53 = arith.addf %52, %51 : vector<256x128xf32>
    %c0_49 = arith.constant 0 : index
    %c0_50 = arith.constant 0 : index
    %54 = vector.load %arg9[%c0_49, %c0_50] : memref<256x128xf32, #tpu.memory_space<vmem>>, vector<256x128xf32>
    tpu.vector_store %arg9[%c0_49, %c0_50], %53 {strides = array<i32>} : memref<256x128xf32, #tpu.memory_space<vmem>>, vector<256x128xf32>,
    %c1_51 = arith.constant 1 : index
    %c0_52 = arith.constant 0 : index
    %c0_53 = arith.constant 0 : index
    %55 = vector.load %arg8[%c1_51, %c0_52, %c0_53] : memref<18x18x128xbf16, #tpu.memory_space<vmem>>, vector<16x16x128xbf16>
    %56 = vector.shape_cast %55 : vector<16x16x128xbf16> to vector<256x128xbf16>
    %c1_54 = arith.constant 1 : index
    %c0_55 = arith.constant 0 : index
    %c0_56 = arith.constant 0 : index
    %c0_57 = arith.constant 0 : index
    %57 = vector.load %arg5[%c1_54, %c0_55, %c0_56, %c0_57] : memref<3x3x128x128xbf16, #tpu.memory_space<vmem>>, vector<1x1x128x128xbf16>
    %58 = vector.shape_cast %57 : vector<1x1x128x128xbf16> to vector<128x128xbf16>
    %cst_58 = arith.constant dense<0.000000e+00> : vector<256x128xf32>
    %59 = tpu.matmul %56, %58, %cst_58 {dimension_numbers = #tpu.dot_dimension_numbers<[1], [0], [0], [1], [0, 0, 1, 1], [], []>} : vector<256x128xbf16>, vector<128x128xbf16>, vector<256x128xf32> -> vector<256x128xf32>
    %c0_59 = arith.constant 0 : index
    %c0_60 = arith.constant 0 : index
    %60 = vector.load %arg9[%c0_59, %c0_60] : memref<256x128xf32, #tpu.memory_space<vmem>>, vector<256x128xf32>
    %61 = arith.addf %60, %59 : vector<256x128xf32>
    %c0_61 = arith.constant 0 : index
    %c0_62 = arith.constant 0 : index
    %62 = vector.load %arg9[%c0_61, %c0_62] : memref<256x128xf32, #tpu.memory_space<vmem>>, vector<256x128xf32>
    tpu.vector_store %arg9[%c0_61, %c0_62], %61 {strides = array<i32>} : memref<256x128xf32, #tpu.memory_space<vmem>>, vector<256x128xf32>,
    %c1_63 = arith.constant 1 : index
    %c1_64 = arith.constant 1 : index
    %c0_65 = arith.constant 0 : index
    %63 = vector.load %arg8[%c1_63, %c1_64, %c0_65] : memref<18x18x128xbf16, #tpu.memory_space<vmem>>, vector<16x16x128xbf16>
    %64 = vector.shape_cast %63 : vector<16x16x128xbf16> to vector<256x128xbf16>
    %c1_66 = arith.constant 1 : index
    %c1_67 = arith.constant 1 : index
    %c0_68 = arith.constant 0 : index
    %c0_69 = arith.constant 0 : index
    %65 = vector.load %arg5[%c1_66, %c1_67, %c0_68, %c0_69] : memref<3x3x128x128xbf16, #tpu.memory_space<vmem>>, vector<1x1x128x128xbf16>
    %66 = vector.shape_cast %65 : vector<1x1x128x128xbf16> to vector<128x128xbf16>
    %cst_70 = arith.constant dense<0.000000e+00> : vector<256x128xf32>
    %67 = tpu.matmul %64, %66, %cst_70 {dimension_numbers = #tpu.dot_dimension_numbers<[1], [0], [0], [1], [0, 0, 1, 1], [], []>} : vector<256x128xbf16>, vector<128x128xbf16>, vector<256x128xf32> -> vector<256x128xf32>
    %c0_71 = arith.constant 0 : index
    %c0_72 = arith.constant 0 : index
    %68 = vector.load %arg9[%c0_71, %c0_72] : memref<256x128xf32, #tpu.memory_space<vmem>>, vector<256x128xf32>
    %69 = arith.addf %68, %67 : vector<256x128xf32>
    %c0_73 = arith.constant 0 : index
    %c0_74 = arith.constant 0 : index
    %70 = vector.load %arg9[%c0_73, %c0_74] : memref<256x128xf32, #tpu.memory_space<vmem>>, vector<256x128xf32>
    tpu.vector_store %arg9[%c0_73, %c0_74], %69 {strides = array<i32>} : memref<256x128xf32, #tpu.memory_space<vmem>>, vector<256x128xf32>,
    %c1_75 = arith.constant 1 : index
    %c2_76 = arith.constant 2 : index
    %c0_77 = arith.constant 0 : index
    %71 = vector.load %arg8[%c1_75, %c2_76, %c0_77] : memref<18x18x128xbf16, #tpu.memory_space<vmem>>, vector<16x16x128xbf16>
    %72 = vector.shape_cast %71 : vector<16x16x128xbf16> to vector<256x128xbf16>
    %c1_78 = arith.constant 1 : index
    %c2_79 = arith.constant 2 : index
    %c0_80 = arith.constant 0 : index
    %c0_81 = arith.constant 0 : index
    %73 = vector.load %arg5[%c1_78, %c2_79, %c0_80, %c0_81] : memref<3x3x128x128xbf16, #tpu.memory_space<vmem>>, vector<1x1x128x128xbf16>
    %74 = vector.shape_cast %73 : vector<1x1x128x128xbf16> to vector<128x128xbf16>
    %cst_82 = arith.constant dense<0.000000e+00> : vector<256x128xf32>
    %75 = tpu.matmul %72, %74, %cst_82 {dimension_numbers = #tpu.dot_dimension_numbers<[1], [0], [0], [1], [0, 0, 1, 1], [], []>} : vector<256x128xbf16>, vector<128x128xbf16>, vector<256x128xf32> -> vector<256x128xf32>
    %c0_83 = arith.constant 0 : index
    %c0_84 = arith.constant 0 : index
    %76 = vector.load %arg9[%c0_83, %c0_84] : memref<256x128xf32, #tpu.memory_space<vmem>>, vector<256x128xf32>
    %77 = arith.addf %76, %75 : vector<256x128xf32>
    %c0_85 = arith.constant 0 : index
    %c0_86 = arith.constant 0 : index
    %78 = vector.load %arg9[%c0_85, %c0_86] : memref<256x128xf32, #tpu.memory_space<vmem>>, vector<256x128xf32>
    tpu.vector_store %arg9[%c0_85, %c0_86], %77 {strides = array<i32>} : memref<256x128xf32, #tpu.memory_space<vmem>>, vector<256x128xf32>,
    %c2_87 = arith.constant 2 : index
    %c0_88 = arith.constant 0 : index
    %c0_89 = arith.constant 0 : index
    %79 = vector.load %arg8[%c2_87, %c0_88, %c0_89] : memref<18x18x128xbf16, #tpu.memory_space<vmem>>, vector<16x16x128xbf16>
    %80 = vector.shape_cast %79 : vector<16x16x128xbf16> to vector<256x128xbf16>
    %c2_90 = arith.constant 2 : index
    %c0_91 = arith.constant 0 : index
    %c0_92 = arith.constant 0 : index
    %c0_93 = arith.constant 0 : index
    %81 = vector.load %arg5[%c2_90, %c0_91, %c0_92, %c0_93] : memref<3x3x128x128xbf16, #tpu.memory_space<vmem>>, vector<1x1x128x128xbf16>
    %82 = vector.shape_cast %81 : vector<1x1x128x128xbf16> to vector<128x128xbf16>
    %cst_94 = arith.constant dense<0.000000e+00> : vector<256x128xf32>
    %83 = tpu.matmul %80, %82, %cst_94 {dimension_numbers = #tpu.dot_dimension_numbers<[1], [0], [0], [1], [0, 0, 1, 1], [], []>} : vector<256x128xbf16>, vector<128x128xbf16>, vector<256x128xf32> -> vector<256x128xf32>
    %c0_95 = arith.constant 0 : index
    %c0_96 = arith.constant 0 : index
    %84 = vector.load %arg9[%c0_95, %c0_96] : memref<256x128xf32, #tpu.memory_space<vmem>>, vector<256x128xf32>
    %85 = arith.addf %84, %83 : vector<256x128xf32>
    %c0_97 = arith.constant 0 : index
    %c0_98 = arith.constant 0 : index
    %86 = vector.load %arg9[%c0_97, %c0_98] : memref<256x128xf32, #tpu.memory_space<vmem>>, vector<256x128xf32>
    tpu.vector_store %arg9[%c0_97, %c0_98], %85 {strides = array<i32>} : memref<256x128xf32, #tpu.memory_space<vmem>>, vector<256x128xf32>,
    %c2_99 = arith.constant 2 : index
    %c1_100 = arith.constant 1 : index
    %c0_101 = arith.constant 0 : index
    %87 = vector.load %arg8[%c2_99, %c1_100, %c0_101] : memref<18x18x128xbf16, #tpu.memory_space<vmem>>, vector<16x16x128xbf16>
    %88 = vector.shape_cast %87 : vector<16x16x128xbf16> to vector<256x128xbf16>
    %c2_102 = arith.constant 2 : index
    %c1_103 = arith.constant 1 : index
    %c0_104 = arith.constant 0 : index
    %c0_105 = arith.constant 0 : index
    %89 = vector.load %arg5[%c2_102, %c1_103, %c0_104, %c0_105] : memref<3x3x128x128xbf16, #tpu.memory_space<vmem>>, vector<1x1x128x128xbf16>
    %90 = vector.shape_cast %89 : vector<1x1x128x128xbf16> to vector<128x128xbf16>
    %cst_106 = arith.constant dense<0.000000e+00> : vector<256x128xf32>
    %91 = tpu.matmul %88, %90, %cst_106 {dimension_numbers = #tpu.dot_dimension_numbers<[1], [0], [0], [1], [0, 0, 1, 1], [], []>} : vector<256x128xbf16>, vector<128x128xbf16>, vector<256x128xf32> -> vector<256x128xf32>
    %c0_107 = arith.constant 0 : index
    %c0_108 = arith.constant 0 : index
    %92 = vector.load %arg9[%c0_107, %c0_108] : memref<256x128xf32, #tpu.memory_space<vmem>>, vector<256x128xf32>
    %93 = arith.addf %92, %91 : vector<256x128xf32>
    %c0_109 = arith.constant 0 : index
    %c0_110 = arith.constant 0 : index
    %94 = vector.load %arg9[%c0_109, %c0_110] : memref<256x128xf32, #tpu.memory_space<vmem>>, vector<256x128xf32>
    tpu.vector_store %arg9[%c0_109, %c0_110], %93 {strides = array<i32>} : memref<256x128xf32, #tpu.memory_space<vmem>>, vector<256x128xf32>,
    %c2_111 = arith.constant 2 : index
    %c2_112 = arith.constant 2 : index
    %c0_113 = arith.constant 0 : index
    %95 = vector.load %arg8[%c2_111, %c2_112, %c0_113] : memref<18x18x128xbf16, #tpu.memory_space<vmem>>, vector<16x16x128xbf16>
    %96 = vector.shape_cast %95 : vector<16x16x128xbf16> to vector<256x128xbf16>
    %c2_114 = arith.constant 2 : index
    %c2_115 = arith.constant 2 : index
    %c0_116 = arith.constant 0 : index
    %c0_117 = arith.constant 0 : index
    %97 = vector.load %arg5[%c2_114, %c2_115, %c0_116, %c0_117] : memref<3x3x128x128xbf16, #tpu.memory_space<vmem>>, vector<1x1x128x128xbf16>
    %98 = vector.shape_cast %97 : vector<1x1x128x128xbf16> to vector<128x128xbf16>
    %cst_118 = arith.constant dense<0.000000e+00> : vector<256x128xf32>
    %99 = tpu.matmul %96, %98, %cst_118 {dimension_numbers = #tpu.dot_dimension_numbers<[1], [0], [0], [1], [0, 0, 1, 1], [], []>} : vector<256x128xbf16>, vector<128x128xbf16>, vector<256x128xf32> -> vector<256x128xf32>
    %c0_119 = arith.constant 0 : index
    %c0_120 = arith.constant 0 : index
    %100 = vector.load %arg9[%c0_119, %c0_120] : memref<256x128xf32, #tpu.memory_space<vmem>>, vector<256x128xf32>
    %101 = arith.addf %100, %99 : vector<256x128xf32>
    %c0_121 = arith.constant 0 : index
    %c0_122 = arith.constant 0 : index
    %102 = vector.load %arg9[%c0_121, %c0_122] : memref<256x128xf32, #tpu.memory_space<vmem>>, vector<256x128xf32>
    tpu.vector_store %arg9[%c0_121, %c0_122], %101 {strides = array<i32>} : memref<256x128xf32, #tpu.memory_space<vmem>>, vector<256x128xf32>,
    %c0_123 = arith.constant 0 : index
    %c0_124 = arith.constant 0 : index
    %103 = vector.load %arg9[%c0_123, %c0_124] : memref<256x128xf32, #tpu.memory_space<vmem>>, vector<256x128xf32>
    %104 = arith.truncf %103 : vector<256x128xf32> to vector<256x128xbf16>
    %c0_125 = arith.constant 0 : index
    %c0_126 = arith.constant 0 : index
    %c0_127 = arith.constant 0 : index
    %105 = vector.load %arg6[%c0_125, %c0_126, %c0_127] : memref<1x256x128xbf16, #tpu.memory_space<vmem>>, vector<1x256x128xbf16>
    %106 = vector.shape_cast %105 : vector<1x256x128xbf16> to vector<256x128xbf16>
    %107 = vector.shape_cast %104 : vector<256x128xbf16> to vector<1x256x128xbf16>
    tpu.vector_store %arg6[%c0_125, %c0_126, %c0_127], %107 {strides = array<i32>} : memref<1x256x128xbf16, #tpu.memory_space<vmem>>, vector<1x256x128xbf16>,
    %cst_128 = arith.constant 1.000000e+00 : f32
    %108 = vector.broadcast %cst_128 : f32 to vector<8x256xf32>
    %109 = arith.mulf %103, %103 : vector<256x128xf32>
    %110 = tpu.concatenate %103, %109 in 1 : vector<256x128xf32>, vector<256x128xf32> -> vector<256x256xf32>
    %cst_129 = arith.constant dense<0.000000e+00> : vector<8x256xf32>
    %111 = tpu.matmul %108, %110, %cst_129 {dimension_numbers = #tpu.dot_dimension_numbers<[1], [0], [0], [1], [0, 0, 1, 1], [], []>} : vector<8x256xf32>, vector<256x256xf32>, vector<8x256xf32> -> vector<8x256xf32>
    %112 = vector.extract_strided_slice %111 {offsets = [0, 0], sizes = [1, 256], strides = [1, 1]} : vector<8x256xf32> to vector<1x256xf32>
    %c0_130 = arith.constant 0 : index
    %c0_131 = arith.constant 0 : index
    %c0_132 = arith.constant 0 : index
    %113 = vector.load %arg7[%c0_130, %c0_131, %c0_132] : memref<1x1x256xf32, #tpu.memory_space<vmem>>, vector<1x1x256xf32>
    %114 = vector.shape_cast %113 : vector<1x1x256xf32> to vector<1x256xf32>
    %115 = vector.shape_cast %112 : vector<1x256xf32> to vector<1x1x256xf32>
    tpu.vector_store %arg7[%c0_130, %c0_131, %c0_132], %115 {strides = array<i32>} : memref<1x1x256xf32, #tpu.memory_space<vmem>>, vector<1x1x256xf32>,
    return
  }
  func.func @transform_0(%arg0: i32) -> (i32, i32, i32) {
    %c0_i32 = arith.constant 0 : i32
    %c0_i32_0 = arith.constant 0 : i32
    %c0_i32_1 = arith.constant 0 : i32
    return %arg0, %c0_i32, %c0_i32_0 : i32, i32, i32
  }
  func.func @transform_1(%arg0: i32) -> (i32, i32) {
    %c0_i32 = arith.constant 0 : i32
    %c0_i32_0 = arith.constant 0 : i32
    %c0_i32_1 = arith.constant 0 : i32
    return %c0_i32, %c0_i32_0 : i32, i32
  }
  func.func @transform_2(%arg0: i32) -> (i32, i32) {
    %c0_i32 = arith.constant 0 : i32
    %c0_i32_0 = arith.constant 0 : i32
    %c0_i32_1 = arith.constant 0 : i32
    return %c0_i32, %c0_i32_0 : i32, i32
  }
  func.func @transform_3(%arg0: i32) -> (i32, i32) {
    %c0_i32 = arith.constant 0 : i32
    %c0_i32_0 = arith.constant 0 : i32
    %c0_i32_1 = arith.constant 0 : i32
    return %c0_i32, %c0_i32_0 : i32, i32
  }
  func.func @transform_4(%arg0: i32) -> (i32, i32, i32, i32) {
    %c0_i32 = arith.constant 0 : i32
    %c0_i32_0 = arith.constant 0 : i32
    %c0_i32_1 = arith.constant 0 : i32
    %c0_i32_2 = arith.constant 0 : i32
    %c0_i32_3 = arith.constant 0 : i32
    return %c0_i32, %c0_i32_0, %c0_i32_1, %c0_i32_2 : i32, i32, i32, i32
  }
  func.func @transform_5(%arg0: i32) -> (i32, i32, i32) {
    %c0_i32 = arith.constant 0 : i32
    %c0_i32_0 = arith.constant 0 : i32
    %c0_i32_1 = arith.constant 0 : i32
    return %arg0, %c0_i32, %c0_i32_0 : i32, i32, i32
  }
  func.func @transform_6(%arg0: i32) -> (i32, i32, i32) {
    %c0_i32 = arith.constant 0 : i32
    %c0_i32_0 = arith.constant 0 : i32
    %c0_i32_1 = arith.constant 0 : i32
    return %arg0, %c0_i32, %c0_i32_0 : i32, i32, i32
  }
}

module attributes {stable_mosaic.version = 11 : i64} {
  func.func @_bn2_residual_kernel(%arg0: i32, %arg1: memref<1x256x128xbf16, #tpu.memory_space<vmem>>, %arg2: memref<2x128xf32, #tpu.memory_space<vmem>>, %arg3: memref<1x128xf32, #tpu.memory_space<vmem>>, %arg4: memref<1x128xf32, #tpu.memory_space<vmem>>, %arg5: memref<1x16x16x4xf32, #tpu.memory_space<vmem>>, %arg6: memref<1x16x16x4xf32, #tpu.memory_space<vmem>>) attributes {dimension_semantics = [#tpu.dimension_semantics<parallel>], iteration_bounds = array<i64: 2>, scalar_prefetch = 0 : i64, scratch_operands = 0 : i64, tpu.core_type = #tpu.core_type<tc>, window_params = [{transform_indices = @transform_0, window_bounds = array<i64: 1, 256, 128>}, {pipeline_mode = #tpu.pipeline_mode<synchronous>, transform_indices = @transform_1, window_bounds = array<i64: 2, 128>}, {pipeline_mode = #tpu.pipeline_mode<synchronous>, transform_indices = @transform_2, window_bounds = array<i64: 1, 128>}, {pipeline_mode = #tpu.pipeline_mode<synchronous>, transform_indices = @transform_3, window_bounds = array<i64: 1, 128>}, {transform_indices = @transform_4, window_bounds = array<i64: 1, 16, 16, 4>}, {transform_indices = @transform_5, window_bounds = array<i64: 1, 16, 16, 4>}]} {
    %c0 = arith.constant 0 : index
    %c0_0 = arith.constant 0 : index
    %0 = vector.load %arg2[%c0, %c0_0] : memref<2x128xf32, #tpu.memory_space<vmem>>, vector<2x128xf32>
    %c0_1 = arith.constant 0 : index
    %c0_2 = arith.constant 0 : index
    %1 = vector.load %arg3[%c0_1, %c0_2] : memref<1x128xf32, #tpu.memory_space<vmem>>, vector<1x128xf32>
    %c0_3 = arith.constant 0 : index
    %c0_4 = arith.constant 0 : index
    %2 = vector.load %arg4[%c0_3, %c0_4] : memref<1x128xf32, #tpu.memory_space<vmem>>, vector<1x128xf32>
    %3 = vector.extract_strided_slice %0 {offsets = [0, 0], sizes = [1, 128], strides = [1, 1]} : vector<2x128xf32> to vector<1x128xf32>
    %cst = arith.constant 0.001953125 : f32
    %4 = vector.broadcast %cst : f32 to vector<1x128xf32>
    %5 = arith.mulf %3, %4 : vector<1x128xf32>
    %6 = vector.extract_strided_slice %0 {offsets = [1, 0], sizes = [1, 128], strides = [1, 1]} : vector<2x128xf32> to vector<1x128xf32>
    %cst_5 = arith.constant 0.001953125 : f32
    %7 = vector.broadcast %cst_5 : f32 to vector<1x128xf32>
    %8 = arith.mulf %6, %7 : vector<1x128xf32>
    %9 = arith.mulf %5, %5 : vector<1x128xf32>
    %10 = arith.subf %8, %9 : vector<1x128xf32>
    %cst_6 = arith.constant 0.000000e+00 : f32
    %11 = vector.broadcast %cst_6 : f32 to vector<1x128xf32>
    %12 = arith.maximumf %10, %11 : vector<1x128xf32>
    %cst_7 = arith.constant 9.99999974E-6 : f32
    %13 = vector.broadcast %cst_7 : f32 to vector<1x128xf32>
    %14 = arith.addf %12, %13 : vector<1x128xf32>
    %15 = math.rsqrt %14 : vector<1x128xf32>
    %16 = arith.mulf %15, %1 : vector<1x128xf32>
    %17 = arith.mulf %5, %16 : vector<1x128xf32>
    %18 = arith.subf %2, %17 : vector<1x128xf32>
    %c0_8 = arith.constant 0 : index
    %c0_9 = arith.constant 0 : index
    %c0_10 = arith.constant 0 : index
    %19 = vector.load %arg1[%c0_8, %c0_9, %c0_10] : memref<1x256x128xbf16, #tpu.memory_space<vmem>>, vector<1x256x128xbf16>
    %20 = vector.shape_cast %19 : vector<1x256x128xbf16> to vector<256x128xbf16>
    %21 = arith.extf %20 : vector<256x128xbf16> to vector<256x128xf32>
    %22 = vector.broadcast %16 : vector<1x128xf32> to vector<256x128xf32>
    %23 = arith.mulf %21, %22 : vector<256x128xf32>
    %24 = vector.broadcast %18 : vector<1x128xf32> to vector<256x128xf32>
    %25 = arith.addf %23, %24 : vector<256x128xf32>
    %c0_11 = arith.constant 0 : index
    %c0_12 = arith.constant 0 : index
    %c0_13 = arith.constant 0 : index
    %c0_14 = arith.constant 0 : index
    %26 = vector.load %arg5[%c0_11, %c0_12, %c0_13, %c0_14] : memref<1x16x16x4xf32, #tpu.memory_space<vmem>>, vector<1x16x16x4xf32>
    %27 = vector.shape_cast %26 : vector<1x16x16x4xf32> to vector<16x16x4xf32>
    %28 = vector.shape_cast %27 : vector<16x16x4xf32> to vector<256x4xf32>
    %29 = vector.extract_strided_slice %25 {offsets = [0, 0], sizes = [256, 4], strides = [1, 1]} : vector<256x128xf32> to vector<256x4xf32>
    %30 = arith.addf %29, %28 : vector<256x4xf32>
    %31 = vector.shape_cast %30 : vector<256x4xf32> to vector<16x16x4xf32>
    %c0_15 = arith.constant 0 : index
    %c0_16 = arith.constant 0 : index
    %c0_17 = arith.constant 0 : index
    %c0_18 = arith.constant 0 : index
    %32 = vector.load %arg6[%c0_15, %c0_16, %c0_17, %c0_18] : memref<1x16x16x4xf32, #tpu.memory_space<vmem>>, vector<1x16x16x4xf32>
    %33 = vector.shape_cast %32 : vector<1x16x16x4xf32> to vector<16x16x4xf32>
    %34 = vector.shape_cast %31 : vector<16x16x4xf32> to vector<1x16x16x4xf32>
    tpu.vector_store %arg6[%c0_15, %c0_16, %c0_17, %c0_18], %34 {strides = array<i32>} : memref<1x16x16x4xf32, #tpu.memory_space<vmem>>, vector<1x16x16x4xf32>,
    return
  }
  func.func @transform_0(%arg0: i32) -> (i32, i32, i32) {
    %c0_i32 = arith.constant 0 : i32
    %c0_i32_0 = arith.constant 0 : i32
    %c0_i32_1 = arith.constant 0 : i32
    return %arg0, %c0_i32, %c0_i32_0 : i32, i32, i32
  }
  func.func @transform_1(%arg0: i32) -> (i32, i32) {
    %c0_i32 = arith.constant 0 : i32
    %c0_i32_0 = arith.constant 0 : i32
    %c0_i32_1 = arith.constant 0 : i32
    return %c0_i32, %c0_i32_0 : i32, i32
  }
  func.func @transform_2(%arg0: i32) -> (i32, i32) {
    %c0_i32 = arith.constant 0 : i32
    %c0_i32_0 = arith.constant 0 : i32
    %c0_i32_1 = arith.constant 0 : i32
    return %c0_i32, %c0_i32_0 : i32, i32
  }
  func.func @transform_3(%arg0: i32) -> (i32, i32) {
    %c0_i32 = arith.constant 0 : i32
    %c0_i32_0 = arith.constant 0 : i32
    %c0_i32_1 = arith.constant 0 : i32
    return %c0_i32, %c0_i32_0 : i32, i32
  }
  func.func @transform_4(%arg0: i32) -> (i32, i32, i32, i32) {
    %c0_i32 = arith.constant 0 : i32
    %c0_i32_0 = arith.constant 0 : i32
    %c0_i32_1 = arith.constant 0 : i32
    %c0_i32_2 = arith.constant 0 : i32
    return %arg0, %c0_i32, %c0_i32_0, %c0_i32_1 : i32, i32, i32, i32
  }
  func.func @transform_5(%arg0: i32) -> (i32, i32, i32, i32) {
    %c0_i32 = arith.constant 0 : i32
    %c0_i32_0 = arith.constant 0 : i32
    %c0_i32_1 = arith.constant 0 : i32
    %c0_i32_2 = arith.constant 0 : i32
    return %arg0, %c0_i32, %c0_i32_0, %c0_i32_1 : i32, i32, i32, i32
  }
}

</mosaic_0001>

<bundles_post_ra>
// kernel: residual_block_forward.5
= control target key start
LH: loop header
LB: loop body
LE: loop exit
PB: predicated region body
PF: predicated region fallthrough
CT: control target
= control target key end

     0   :  { %s715_s18 = smov 0   ;;  %s1047_s0 = inlined_call_operand.vmem [shape: bf16[2,256,128], index: 0, kind: input, shape index: {}]   ;;  %s1048_s1 = inlined_call_operand.vmem [shape: f32[2,128], index: 1, kind: input, shape index: {}]   ;;  %s1049_s2 = inlined_call_operand.vmem [shape: f32[1,128], index: 2, kind: input, shape index: {}]   ;;  %s1050_s3 = inlined_call_operand.vmem [shape: f32[1,128], index: 3, kind: input, shape index: {}]   ;;  %s1051_s4 = inlined_call_operand.vmem [shape: f32[2,16,16,4], index: 4, kind: input, shape index: {}]   ;;  %s1052_s5 = inlined_call_operand.vmem [shape: f32[2,16,16,4], index: 5, kind: output, shape index: {}]  }
   0x1 LB: > { %s571_s19 = sadd.s32 4294967295, %s683_s18   ;;  %p575_p0 = scmp.ge.s32.totalorder %s683_s18, 1  ;;  %s683_s18 = sphi %s715_s18, %s15_s18  }
   0x2   : > { %p197_p1 = scmp.lt.s32.totalorder %s683_s18, 3 }
   0x4   : > { %p198_p2 = pnand %p575_p0, %p197_p1 }
   0x5   : > { %v245_v0 = vld [vmem:[%s1048_s1] sm:$0x3] (!%p198_p2)  ;;  %p230_p3 = scmp.lt.s32.totalorder (!%p198_p2), %s571_s19, 1  ;;  %v333_v6 = vlaneseq (!%p198_p2)  ;;  %vm471_vm0 = vcmask (!%p198_p2), 31744  }
   0x6   : > { %201 = sbr.rel (%p198_p2) target bundleno = 64 (0x40), region = 40  ;;  %v726_v1 = vmul.f32 (!%p198_p2), 0.001953125, %v245_v0  ;;  %v582_v28 = vld [vmem:[%s1049_s2] ss:$0 sm:$0xff] (!%p198_p2) }
   0x7   : > { %v739_v8 = vshrl.u32 (!%p198_p2), %v333_v6, 7  ;;  %v247_v60 = vld [vmem:[%s1050_s3] sm:$0x1] (!%p198_p2) }
   0x8   : > { %v249_v2 = vmul.f32 (!%p198_p2), %v726_v1, %v726_v1 }
   0x9   : > { %v335_v13 = vsub.s32 (!%p198_p2), 1, %v739_v8  ;;  %v372_v17 = vsub.s32 (!%p198_p2), 0, %v739_v8 }
   0xa   : > { %v251_v3 = vrot.slane (!%p198_p2), %v249_v2, 7 }
   0xc   : > { %v253_v4 = vsub.f32 (!%p198_p2), %v726_v1, %v251_v3 }
   0xd   : > { %s1054_s19 = smov (!%p230_p3, %s571_s19), 1 }
   0xe   : > { %v254_v5 = vmax.f32 %v253_v4, 0.0  ;;  %s585_s22 = sshll.u32 %s1054_s19, 7  ;;  %s586_s28 = sshll.u32 %s1054_s19, 8 }
   0xf   : > { %s737_s25 = scalar_lea.vmem %s1047_s0, %s585_s22  ;;  %s837_s8 = scalar_lea.vmem %s1051_s4, %s586_s28 }
  0x10   : > { %v255_v7 = vadd.f32 1e-05, %v254_v5  ;;  %v589_v9 = vld [vmem:[%s737_s25] sm:$0xff]   ;;  %v743_v10 = vld [vmem:[%s737_s25 + $0x8] sm:$0xff]   ;;  %v746_v11 = vld [vmem:[%s737_s25 + $0x10] sm:$0xff]   ;;  %s888_s11 = scalar_lea.vmem %s1052_s5, %s586_s28 }
  0x11   : > { %v749_v12 = vld [vmem:[%s737_s25 + $0x18] sm:$0xff]   ;;  %v753_v14 = vld [vmem:[%s737_s25 + $0x20] sm:$0xff]   ;;  %v756_v15 = vld [vmem:[%s737_s25 + $0x28] sm:$0xff]   ;;  %v590_v16 = vunpack.c.l.bf16 %v589_v9  ;;  %v591_v18 = vunpack.c.h.bf16 %v589_v9  ;;  %v594_v19 = vunpack.c.l.bf16 %v743_v10  ;;  %v595_v22 = vunpack.c.h.bf16 %v743_v10 }
  0x12   : > { %675 = vrsqrt.f32 %v255_v7  ;;  %v761_v20 = vld [vmem:[%s737_s25 + $0x30] sm:$0xff]   ;;  %v764_v21 = vld [vmem:[%s737_s25 + $0x38] sm:$0xff]   ;;  %v598_v23 = vunpack.c.l.bf16 %v746_v11  ;;  %v599_v24 = vunpack.c.h.bf16 %v746_v11  ;;  %v602_v25 = vunpack.c.l.bf16 %v749_v12  ;;  %v771_v26 = vld [vmem:[%s737_s25 + $0x40] sm:$0xff]  }
  0x13   : > { %v774_v27 = vld [vmem:[%s737_s25 + $0x48] sm:$0xff]   ;;  %v603_v29 = vunpack.c.h.bf16 %v749_v12  ;;  %v606_v30 = vunpack.c.l.bf16 %v753_v14  ;;  %v607_v31 = vunpack.c.h.bf16 %v753_v14  ;;  %v610_v32 = vunpack.c.l.bf16 %v756_v15  ;;  %v784_v33 = vld [vmem:[%s737_s25 + $0x50] sm:$0xff]   ;;  %v791_v38 = vld [vmem:[%s737_s25 + $0x58] sm:$0xff]  }
  0x14   : > { %v611_v34 = vunpack.c.h.bf16 %v756_v15  ;;  %v614_v35 = vunpack.c.l.bf16 %v761_v20  ;;  %v615_v36 = vunpack.c.h.bf16 %v761_v20  ;;  %v618_v37 = vunpack.c.l.bf16 %v764_v21  ;;  %v794_v39 = vld [vmem:[%s737_s25 + $0x60] sm:$0xff]   ;;  %v801_v45 = vld [vmem:[%s737_s25 + $0x68] sm:$0xff]   ;;  %v807_v50 = vld [vmem:[%s737_s25 + $0x70] sm:$0xff]  }
  0x15   : > { %v619_v41 = vunpack.c.h.bf16 %v764_v21  ;;  %v622_v42 = vunpack.c.l.bf16 %v771_v26  ;;  %v623_v43 = vunpack.c.h.bf16 %v771_v26  ;;  %v626_v44 = vunpack.c.l.bf16 %v774_v27  ;;  %v810_v51 = vld [vmem:[%s737_s25 + $0x78] sm:$0xff]   ;;  %v407_v20 = vld [vmem:[%s837_s8] sm:$0xff]  ;;  %v408_v21 = vld [vmem:[%s837_s8 + $0x8] sm:$0xff] }
  0x16   : > { %v627_v47 = vunpack.c.h.bf16 %v774_v27  ;;  %v630_v48 = vunpack.c.l.bf16 %v784_v33  ;;  %v631_v49 = vunpack.c.h.bf16 %v784_v33  ;;  %v634_v52 = vunpack.c.l.bf16 %v791_v38  ;;  %v410_v26 = vld [vmem:[%s837_s8 + $0x18] sm:$0xff]  ;;  %v411_v27 = vld [vmem:[%s837_s8 + $0x20] sm:$0xff]  ;;  %v429_v33 = vld [vmem:[%s837_s8 + $0xb0] sm:$0xff] }
  0x17   : > { %v635_v53 = vunpack.c.h.bf16 %v791_v38  ;;  %v638_v54 = vunpack.c.l.bf16 %v794_v39  ;;  %v639_v55 = vunpack.c.h.bf16 %v794_v39  ;;  %v642_v58 = vunpack.c.l.bf16 %v801_v45  ;;  %v433_v39 = vld [vmem:[%s837_s8 + $0xd0] sm:$0xff] }
  0x18   : > { %v643_v59 = vunpack.c.h.bf16 %v801_v45  ;;  %v646_v61 = vunpack.c.l.bf16 %v807_v50  ;;  %v647_v62 = vunpack.c.h.bf16 %v807_v50  ;;  %v650_v63 = vunpack.c.l.bf16 %v810_v51  ;;  %v437_v50 = vld [vmem:[%s837_s8 + $0xf0] sm:$0xff] }
  0x19   : > { %v651_v0 = vunpack.c.h.bf16 %v810_v51 }
  0x1c   : > { %v676_v40 = vpop.eup %675 }
  0x1d   : > { %v263_v46 = vmul.f32 %v676_v40, %v582_v28 }
  0x1f   : > { %v265_v56 = vrot.slane %v263_v46, 1  ;;  %v817_v57 = vrot.slane %v263_v46, %v335_v13 }
  0x21   : > { %v267_v2 = vmul.f32 %v265_v56, %v726_v1  ;;  %v337_v3 = vmul.f32 %v590_v16, %v817_v57  ;;  %v338_v4 = vmul.f32 %v591_v18, %v817_v57  ;;  %v339_v5 = vmul.f32 %v594_v19, %v817_v57  ;;  %v415_v56 = vld [vmem:[%s837_s8 + $0x40] sm:$0xff] }
  0x22   : > { %v340_v6 = vmul.f32 %v595_v22, %v817_v57  ;;  %v341_v7 = vmul.f32 %v598_v23, %v817_v57  ;;  %v342_v1 = vmul.f32 %v599_v24, %v817_v57  ;;  %v343_v9 = vmul.f32 %v602_v25, %v817_v57  ;;  %v409_v25 = vld [vmem:[%s837_s8 + $0x10] sm:$0xff] }
  0x23   : > { %v268_v10 = vsub.f32 %v247_v60, %v267_v2  ;;  %v344_v11 = vmul.f32 %v603_v29, %v817_v57  ;;  %v345_v12 = vmul.f32 %v606_v30, %v817_v57  ;;  %v346_v13 = vmul.f32 %v607_v31, %v817_v57  ;;  %v416_v60 = vld [vmem:[%s837_s8 + $0x48] sm:$0xff] }
  0x24   : > { %v347_v14 = vmul.f32 %v610_v32, %v817_v57  ;;  %v348_v15 = vmul.f32 %v611_v34, %v817_v57  ;;  %v349_v16 = vmul.f32 %v614_v35, %v817_v57  ;;  %v350_v18 = vmul.f32 %v615_v36, %v817_v57  ;;  %v412_v35 = vld [vmem:[%s837_s8 + $0x28] sm:$0xff]  ;;  %v413_v36 = vld [vmem:[%s837_s8 + $0x30] sm:$0xff] }
  0x25   : > { %v852_v19 = vrot.slane %v268_v10, %v372_v17  ;;  %v351_v22 = vmul.f32 %v618_v37, %v817_v57  ;;  %v352_v23 = vmul.f32 %v619_v41, %v817_v57  ;;  %v859_v24 = vmul.f32 %v622_v42, %v817_v57  ;;  %v414_v37 = vld [vmem:[%s837_s8 + $0x38] sm:$0xff] }
  0x26   : > { %v865_v8 = vmul.f32 %v623_v43, %v817_v57  ;;  %v868_v17 = vmul.f32 %v626_v44, %v817_v57  ;;  %v871_v28 = vmul.f32 %v627_v47, %v817_v57  ;;  %v874_v29 = vmul.f32 %v630_v48, %v817_v57 }
  0x27   : > { %v375_v30 = vadd.f32 %v852_v19, %v337_v3  ;;  %v376_v31 = vadd.f32 %v852_v19, %v338_v4  ;;  %v377_v32 = vadd.f32 %v852_v19, %v339_v5  ;;  %v378_v34 = vadd.f32 %v852_v19, %v340_v6  ;;  %v417_v6 = vld [vmem:[%s837_s8 + $0x50] sm:$0xff] }
  0x28   : > { %v379_v40 = vadd.f32 %v852_v19, %v341_v7  ;;  %v380_v41 = vadd.f32 %v852_v19, %v342_v1  ;;  %v381_v42 = vadd.f32 %v852_v19, %v343_v9  ;;  %v382_v43 = vadd.f32 %v852_v19, %v344_v11  ;;  %v418_v7 = vld [vmem:[%s837_s8 + $0x58] sm:$0xff]  ;;  %v419_v1 = vld [vmem:[%s837_s8 + $0x60] sm:$0xff] }
  0x29   : > { %v439_v44 = vadd.f32 %v407_v20, %v375_v30  ;;  %v440_v46 = vadd.f32 %v408_v21, %v376_v31  ;;  %v441_v47 = vadd.f32 %v409_v25, %v377_v32  ;;  %v442_v48 = vadd.f32 %v410_v26, %v378_v34  ;;  %v420_v21 = vld [vmem:[%s837_s8 + $0x68] sm:$0xff]  ;;  %v421_v25 = vld [vmem:[%s837_s8 + $0x70] sm:$0xff]  ;;  %v422_v26 = vld [vmem:[%s837_s8 + $0x78] sm:$0xff] }
  0x2a   : > { %v443_v2 = vadd.f32 %v411_v27, %v379_v40  ;;  %v444_v3 = vadd.f32 %v412_v35, %v380_v41  ;;  %v445_v4 = vadd.f32 %v413_v36, %v381_v42  ;;  %v446_v5 = vadd.f32 %v414_v37, %v382_v43  ;;  %v423_v34 = vld [vmem:[%s837_s8 + $0x80] sm:$0xff]  ;;  %v424_v37 = vld [vmem:[%s837_s8 + $0x88] sm:$0xff]  ;;  %v426_v40 = vld [vmem:[%s837_s8 + $0x98] sm:$0xff] }
  0x2b   : > { %472 = vst.msk [vmem:[%s888_s11] sm:$0xff] %vm471_vm0, %v439_v44  ;;  %473 = vst.msk [vmem:[%s888_s11 + $0x8] sm:$0xff] %vm471_vm0, %v440_v46  ;;  %v383_v9 = vadd.f32 %v852_v19, %v345_v12  ;;  %v384_v10 = vadd.f32 %v852_v19, %v346_v13  ;;  %v385_v11 = vadd.f32 %v852_v19, %v347_v14  ;;  %v427_v44 = vld [vmem:[%s837_s8 + $0xa0] sm:$0xff] }
  0x2c   : > { %474 = vst.msk [vmem:[%s888_s11 + $0x10] sm:$0xff] %vm471_vm0, %v441_v47  ;;  %475 = vst.msk [vmem:[%s888_s11 + $0x18] sm:$0xff] %vm471_vm0, %v442_v48  ;;  %v386_v20 = vadd.f32 %v852_v19, %v348_v15  ;;  %v387_v12 = vadd.f32 %v852_v19, %v349_v16  ;;  %v388_v13 = vadd.f32 %v852_v19, %v350_v18 }
  0x2d   : > { %476 = vst.msk [vmem:[%s888_s11 + $0x20] sm:$0xff] %vm471_vm0, %v443_v2  ;;  %477 = vst.msk [vmem:[%s888_s11 + $0x28] sm:$0xff] %vm471_vm0, %v444_v3  ;;  %v389_v14 = vadd.f32 %v852_v19, %v351_v22  ;;  %v390_v15 = vadd.f32 %v852_v19, %v352_v23  ;;  %v447_v27 = vadd.f32 %v415_v56, %v383_v9  ;;  %v425_v22 = vld [vmem:[%s837_s8 + $0x90] sm:$0xff]  ;;  %v428_v56 = vld [vmem:[%s837_s8 + $0xa8] sm:$0xff] }
  0x2e   : > { %478 = vst.msk [vmem:[%s888_s11 + $0x30] sm:$0xff] %vm471_vm0, %v445_v4  ;;  %479 = vst.msk [vmem:[%s888_s11 + $0x38] sm:$0xff] %vm471_vm0, %v446_v5  ;;  %v448_v30 = vadd.f32 %v416_v60, %v384_v10  ;;  %v449_v31 = vadd.f32 %v417_v6, %v385_v11  ;;  %v450_v32 = vadd.f32 %v418_v7, %v386_v20  ;;  %v430_v60 = vld [vmem:[%s837_s8 + $0xb8] sm:$0xff]  ;;  %v431_v3 = vld [vmem:[%s837_s8 + $0xc0] sm:$0xff] }
  0x2f   : > { %v451_v35 = vadd.f32 %v419_v1, %v387_v12  ;;  %v452_v36 = vadd.f32 %v420_v21, %v388_v13  ;;  %v453_v16 = vadd.f32 %v421_v25, %v389_v14  ;;  %v454_v18 = vadd.f32 %v422_v26, %v390_v15  ;;  %480 = vst.msk [vmem:[%s888_s11 + $0x40] sm:$0xff] %vm471_vm0, %v447_v27  ;;  %v432_v9 = vld [vmem:[%s837_s8 + $0xc8] sm:$0xff]  ;;  %v434_v10 = vld [vmem:[%s837_s8 + $0xd8] sm:$0xff]  ;;  %v435_v20 = vld [vmem:[%s837_s8 + $0xe0] sm:$0xff] }
  0x30   : > { %481 = vst.msk [vmem:[%s888_s11 + $0x48] sm:$0xff] %vm471_vm0, %v448_v30  ;;  %482 = vst.msk [vmem:[%s888_s11 + $0x50] sm:$0xff] %vm471_vm0, %v449_v31  ;;  %v391_v23 = vadd.f32 %v852_v19, %v859_v24  ;;  %v392_v41 = vadd.f32 %v852_v19, %v865_v8  ;;  %v393_v42 = vadd.f32 %v852_v19, %v868_v17  ;;  %v436_v27 = vld [vmem:[%s837_s8 + $0xe8] sm:$0xff] }
  0x31   : > { %483 = vst.msk [vmem:[%s888_s11 + $0x58] sm:$0xff] %vm471_vm0, %v450_v32  ;;  %v394_v43 = vadd.f32 %v852_v19, %v871_v28  ;;  %484 = vst.msk [vmem:[%s888_s11 + $0x60] sm:$0xff] %vm471_vm0, %v451_v35  ;;  %v395_v24 = vadd.f32 %v852_v19, %v874_v29  ;;  %v358_v8 = vmul.f32 %v631_v49, %v817_v57 }
  0x32   : > { %485 = vst.msk [vmem:[%s888_s11 + $0x68] sm:$0xff] %vm471_vm0, %v452_v36  ;;  %486 = vst.msk [vmem:[%s888_s11 + $0x70] sm:$0xff] %vm471_vm0, %v453_v16  ;;  %v359_v17 = vmul.f32 %v634_v52, %v817_v57  ;;  %v360_v28 = vmul.f32 %v635_v53, %v817_v57  ;;  %v455_v46 = vadd.f32 %v423_v34, %v391_v23 }
  0x33   : > { %487 = vst.msk [vmem:[%s888_s11 + $0x78] sm:$0xff] %vm471_vm0, %v454_v18  ;;  %v456_v47 = vadd.f32 %v424_v37, %v392_v41  ;;  %v457_v48 = vadd.f32 %v425_v22, %v393_v42  ;;  %v458_v29 = vadd.f32 %v426_v40, %v394_v43  ;;  %v459_v49 = vadd.f32 %v427_v44, %v395_v24 }
  0x34   : > { %v396_v2 = vadd.f32 %v852_v19, %v358_v8  ;;  %v397_v52 = vadd.f32 %v852_v19, %v359_v17  ;;  %v398_v38 = vadd.f32 %v852_v19, %v360_v28  ;;  %488 = vst.msk [vmem:[%s888_s11 + $0x80] sm:$0xff] %vm471_vm0, %v455_v46  ;;  %v361_v53 = vmul.f32 %v638_v54, %v817_v57 }
  0x35   : > { %489 = vst.msk [vmem:[%s888_s11 + $0x88] sm:$0xff] %vm471_vm0, %v456_v47  ;;  %490 = vst.msk [vmem:[%s888_s11 + $0x90] sm:$0xff] %vm471_vm0, %v457_v48  ;;  %v362_v4 = vmul.f32 %v639_v55, %v817_v57  ;;  %v363_v5 = vmul.f32 %v642_v58, %v817_v57  ;;  %v364_v6 = vmul.f32 %v643_v59, %v817_v57 }
  0x36   : > { %491 = vst.msk [vmem:[%s888_s11 + $0x98] sm:$0xff] %vm471_vm0, %v458_v29  ;;  %492 = vst.msk [vmem:[%s888_s11 + $0xa0] sm:$0xff] %vm471_vm0, %v459_v49  ;;  %v460_v54 = vadd.f32 %v428_v56, %v396_v2  ;;  %v461_v7 = vadd.f32 %v429_v33, %v397_v52  ;;  %v462_v1 = vadd.f32 %v430_v60, %v398_v38 }
  0x37   : > { %v365_v55 = vmul.f32 %v646_v61, %v817_v57  ;;  %v399_v58 = vadd.f32 %v852_v19, %v361_v53  ;;  %v400_v45 = vadd.f32 %v852_v19, %v362_v4  ;;  %v401_v59 = vadd.f32 %v852_v19, %v363_v5 }
  0x38   : > { %v402_v11 = vadd.f32 %v852_v19, %v364_v6  ;;  %493 = vst.msk [vmem:[%s888_s11 + $0xa8] sm:$0xff] %vm471_vm0, %v460_v54  ;;  %494 = vst.msk [vmem:[%s888_s11 + $0xb0] sm:$0xff] %vm471_vm0, %v461_v7  ;;  %v366_v21 = vmul.f32 %v647_v62, %v817_v57  ;;  %v367_v25 = vmul.f32 %v650_v63, %v817_v57  ;;  %v438_v62 = vld [vmem:[%s837_s8 + $0xf8] sm:$0xff] }
  0x39   : > { %495 = vst.msk [vmem:[%s888_s11 + $0xb8] sm:$0xff] %vm471_vm0, %v462_v1  ;;  %v403_v61 = vadd.f32 %v852_v19, %v365_v55  ;;  %v368_v26 = vmul.f32 %v651_v0, %v817_v57  ;;  %v463_v12 = vadd.f32 %v431_v3, %v399_v58  ;;  %v464_v13 = vadd.f32 %v432_v9, %v400_v45 }
  0x3a   : > { %v465_v14 = vadd.f32 %v433_v39, %v401_v59  ;;  %v466_v15 = vadd.f32 %v434_v10, %v402_v11  ;;  %v404_v31 = vadd.f32 %v852_v19, %v366_v21  ;;  %v405_v63 = vadd.f32 %v852_v19, %v367_v25 }
  0x3b   : > { %v467_v30 = vadd.f32 %v435_v20, %v403_v61  ;;  %v406_v51 = vadd.f32 %v852_v19, %v368_v26  ;;  %496 = vst.msk [vmem:[%s888_s11 + $0xc0] sm:$0xff] %vm471_vm0, %v463_v12  ;;  %497 = vst.msk [vmem:[%s888_s11 + $0xc8] sm:$0xff] %vm471_vm0, %v464_v13 }
  0x3c   : > { %498 = vst.msk [vmem:[%s888_s11 + $0xd0] sm:$0xff] %vm471_vm0, %v465_v14  ;;  %499 = vst.msk [vmem:[%s888_s11 + $0xd8] sm:$0xff] %vm471_vm0, %v466_v15  ;;  %v468_v57 = vadd.f32 %v436_v27, %v404_v31  ;;  %v469_v0 = vadd.f32 %v437_v50, %v405_v63 }
  0x3d   : > { %500 = vst.msk [vmem:[%s888_s11 + $0xe0] sm:$0xff] %vm471_vm0, %v467_v30  ;;  %v470_v32 = vadd.f32 %v438_v62, %v406_v51 }
  0x3e   : > { %501 = vst.msk [vmem:[%s888_s11 + $0xe8] sm:$0xff] %vm471_vm0, %v468_v57  ;;  %502 = vst.msk [vmem:[%s888_s11 + $0xf0] sm:$0xff] %vm471_vm0, %v469_v0 }
  0x3f   : > { %503 = vst.msk [vmem:[%s888_s11 + $0xf8] sm:$0xff] %vm471_vm0, %v470_v32 }
  0x40 PF: > { %s15_s18 = sadd.s32 1, %s683_s18  }
  0x41   : > { %p12_p4 = scmp.ge.s32.totalorder %s15_s18, 4  }
  0x43   :  { %14 = sbr.rel (!%p12_p4) target bundleno = 1 (0x1), region = 73 }

// kernel: residual_block_forward.3
= control target key start
LH: loop header
LB: loop body
LE: loop exit
PB: predicated region body
PF: predicated region fallthrough
CT: control target
= control target key end

     0   :  { %s7949_s12 = smov 0   ;;  %s9089_s0 = inlined_call_operand.vmem [shape: f32[2,16,16,4], index: 0, kind: input, shape index: {}]   ;;  %s9090_s1 = inlined_call_operand.vmem [shape: bf16[3,3,4,128], index: 1, kind: input, shape index: {}]   ;;  %s9091_s2 = inlined_call_operand.vmem [shape: bf16[2,256,128], index: 2, kind: output, shape index: {0}]   ;;  %s9092_s3 = inlined_call_operand.vmem [shape: f32[2,1,256], index: 3, kind: output, shape index: {1}]  }
   0x1 LB: > { %s6490_s13 = sadd.s32 4294967295, %s7924_s12   ;;  %p6494_p0 = scmp.ge.s32.totalorder %s7924_s12, 1  ;;  %s7924_s12 = sphi %s7949_s12, %s14_s12  }
   0x2   : > { %p140_p1 = scmp.lt.s32.totalorder %s7924_s12, 3 }
   0x4   : > { %p141_p2 = pnand %p6494_p0, %p140_p1 }
   0x5   : > { %v840_v0 = vld [vmem:[%s9090_s1] sm:$0x3] (!%p141_p2)  ;;  %vm970_vm0 = vcmask (!%p141_p2), 1041408   ;;  %vm183_vm1 = vcmask (!%p141_p2), 27648   ;;  %v7926_v2 = vmov (!%p141_p2), 0   ;;  %p168_p3 = scmp.lt.s32.totalorder (!%p141_p2), %s6490_s13, 1 }
   0x6   : > { %144 = sbr.rel (%p141_p2) target bundleno = 902 (0x386), region = 28  ;;  %7850 = vmatprep.subr.msk.bf16.mxu1 (!%p141_p2), %vm970_vm0, %v840_v0  ;;  %v972_v1 = vsel (!%p141_p2), %vm970_vm0, %v840_v0, 0  ;;  %184 = vst.msk [vmem:[#allocation2] sm:$0xf] (!%p141_p2), %vm183_vm1, %v7926_v2  ;;  %185 = vst.msk [vmem:[#allocation2 + $0x4] sm:$0xf] (!%p141_p2), %vm183_vm1, %v7926_v2 }
   0x7   : > { %188 = vst.msk [vmem:[#allocation2 + $0xc] sm:$0xf] (!%p141_p2), %vm183_vm1, %v7926_v2  ;;  %189 = vst.msk [vmem:[#allocation2 + $0x10] sm:$0xf] (!%p141_p2), %vm183_vm1, %v7926_v2  ;;  %7225 = vmatpush3.bf16.msra.mxu1 (!%p141_p2), %v972_v1  ;;  %v6679_v3 = vld [vmem:[%s9090_s1 + $0x8] sm:$0x3] (!%p141_p2) }
   0x8   : > { %191 = vst.msk [vmem:[#allocation2 + $0x18] sm:$0xf] (!%p141_p2), %vm183_vm1, %v7926_v2  ;;  %192 = vst.msk [vmem:[#allocation2 + $0x1c] sm:$0xf] (!%p141_p2), %vm183_vm1, %v7926_v2  ;;  %vm186_vm2 = vcmask (!%p141_p2), 24576   ;;  %7854 = vmatprep.subr.msk.bf16.mxu0 (!%p141_p2), %vm970_vm0, %v6679_v3  ;;  %v3482_v4 = vsel (!%p141_p2), %vm970_vm0, %v6679_v3, 0 }
   0x9   : > { %194 = vst.msk [vmem:[#allocation2 + $0x24] sm:$0xf] (!%p141_p2), %vm183_vm1, %v7926_v2  ;;  %195 = vst.msk [vmem:[#allocation2 + $0x28] sm:$0xf] (!%p141_p2), %vm183_vm1, %v7926_v2  ;;  %7361 = vmatpush3.bf16.msra.mxu0 (!%p141_p2), %v3482_v4  ;;  %v6728_v5 = vld [vmem:[%s9090_s1 + $0xa] sm:$0x3] (!%p141_p2) }
   0xa   : > { %197 = vst.msk [vmem:[#allocation2 + $0x30] sm:$0xf] (!%p141_p2), %vm183_vm1, %v7926_v2  ;;  %198 = vst.msk [vmem:[#allocation2 + $0x34] sm:$0xf] (!%p141_p2), %vm183_vm1, %v7926_v2  ;;  %7855 = vmatprep.subr.msk.bf16.mxu0 (!%p141_p2), %vm970_vm0, %v6728_v5  ;;  %vm921_vm3 = vcmask (!%p141_p2), 31744   ;;  %v8050_v28 = vsel (!%p141_p2), %vm970_vm0, %v6728_v5, 0 }
   0xb   : > { %200 = vst.msk [vmem:[#allocation2 + $0x3c] sm:$0xf] (!%p141_p2), %vm183_vm1, %v7926_v2  ;;  %201 = vst.msk [vmem:[#allocation2 + $0x40] sm:$0xf] (!%p141_p2), %vm183_vm1, %v7926_v2  ;;  %vm367_vm4 = vsmask.f32 (!%p141_p2), 256 }
   0xc   : > { %203 = vst.msk [vmem:[#allocation2 + $0x48] sm:$0xf] (!%p141_p2), %vm183_vm1, %v7926_v2  ;;  %204 = vst.msk [vmem:[#allocation2 + $0x4c] sm:$0xf] (!%p141_p2), %vm183_vm1, %v7926_v2  ;;  %vm368_vm5 = vsmask.f32 (!%p141_p2), 4368 }
   0xd   : > { %206 = vst.msk [vmem:[#allocation2 + $0x54] sm:$0xf] %vm183_vm1, %v7926_v2  ;;  %207 = vst.msk [vmem:[#allocation2 + $0x58] sm:$0xf] %vm183_vm1, %v7926_v2  ;;  %s9104_s13 = smov (!%p168_p3, %s6490_s13), 1  ;;  %v7870_v9 = vld [vmem:[#allocation2] sm:$0xff]  }
   0xe   : > { %209 = vst.msk [vmem:[#allocation2 + $0x60] sm:$0xf] %vm183_vm1, %v7926_v2  ;;  %210 = vst.msk [vmem:[#allocation2 + $0x64] sm:$0xf] %vm183_vm1, %v7926_v2  ;;  %s6910_s20 = sshll.u32 %s9104_s13, 8  ;;  %7226 = vmatprep.mubr.msk.bf16.mxu1 %vm921_vm3, %v7870_v9  ;;  %vm2056_vm13 = vcmask 1042432  }
   0xf   : > { %212 = vst.msk [vmem:[#allocation2 + $0x6c] sm:$0xf] %vm183_vm1, %v7926_v2  ;;  %213 = vst.msk [vmem:[#allocation2 + $0x70] sm:$0xf] %vm183_vm1, %v7926_v2  ;;  %s8035_s23 = scalar_lea.vmem %s9089_s0, %s6910_s20  ;;  %vm692_vm6 = vsmask.f32 7938 }
  0x10   : > { %215 = vst.msk [vmem:[#allocation2 + $0x78] sm:$0xf] %vm183_vm1, %v7926_v2  ;;  %216 = vst.msk [vmem:[#allocation2 + $0x7c] sm:$0xf] %vm183_vm1, %v7926_v2  ;;  %v239_v6 = vld [vmem:[%s8035_s23] sm:$0xff]  ;;  %v240_v7 = vld [vmem:[%s8035_s23 + $0x8] sm:$0xff] }
  0x11   : > { %218 = vst.msk [vmem:[#allocation2 + $0x84] sm:$0xf] %vm183_vm1, %v7926_v2  ;;  %219 = vst.msk [vmem:[#allocation2 + $0x88] sm:$0xf] %vm183_vm1, %v7926_v2  ;;  %v241_v8 = vld [vmem:[%s8035_s23 + $0x10] sm:$0xff]  ;;  %v6912_v10 = vpack.c.bf16 %v239_v6, %v239_v6  ;;  %v6913_v11 = vpack.c.bf16 %v240_v7, %v240_v7  ;;  %v242_v13 = vld [vmem:[%s8035_s23 + $0x18] sm:$0xff] }
  0x12   : > { %221 = vst.msk [vmem:[#allocation2 + $0x90] sm:$0xf] %vm183_vm1, %v7926_v2  ;;  %222 = vst.msk [vmem:[#allocation2 + $0x94] sm:$0xf] %vm183_vm1, %v7926_v2  ;;  %v6914_v12 = vpack.c.bf16 %v241_v8, %v241_v8  ;;  %v243_v18 = vld [vmem:[%s8035_s23 + $0x20] sm:$0xff]  ;;  %v244_v19 = vld [vmem:[%s8035_s23 + $0x28] sm:$0xff]  ;;  %v6915_v20 = vpack.c.bf16 %v242_v13, %v242_v13 }
  0x13   : > { %224 = vst.msk [vmem:[#allocation2 + $0x9c] sm:$0xf] %vm183_vm1, %v7926_v2  ;;  %225 = vst.msk [vmem:[#allocation2 + $0xa0] sm:$0xf] %vm183_vm1, %v7926_v2  ;;  %v371_v14 = vshrl.u32 %v6912_v10, 16  ;;  %v374_v15 = vshll.u32 %v6912_v10, 16  ;;  %v6916_v23 = vpack.c.bf16 %v243_v18, %v243_v18  ;;  %v6917_v27 = vpack.c.bf16 %v244_v19, %v244_v19 }
  0x14   : > { %227 = vst.msk [vmem:[#allocation2 + $0xa8] sm:$0xf] %vm183_vm1, %v7926_v2  ;;  %228 = vst.msk [vmem:[#allocation2 + $0xac] sm:$0xf] %vm183_vm1, %v7926_v2  ;;  %v379_v16 = vshrl.u32 %v6913_v11, 16  ;;  %v382_v17 = vshll.u32 %v6913_v11, 16 }
  0x15   : > { %230 = vst.msk [vmem:[#allocation2 + $0xb4] sm:$0xf] %vm183_vm1, %v7926_v2  ;;  %231 = vst.msk [vmem:[#allocation2 + $0xb8] sm:$0xf] %vm183_vm1, %v7926_v2  ;;  %v388_v21 = vshrl.u32 %v6914_v12, 16  ;;  %v391_v22 = vshll.u32 %v6914_v12, 16 }
  0x16   : > { %233 = vst.msk [vmem:[#allocation2 + $0xc0] sm:$0xf] %vm183_vm1, %v7926_v2  ;;  %234 = vst.msk [vmem:[#allocation2 + $0xc4] sm:$0xf] %vm183_vm1, %v7926_v2  ;;  %v373_v25 = vrot.slane %v371_v14, 7  ;;  %v381_v26 = vrot.slane %v379_v16, 7 }
  0x17   : > { %236 = vst.msk [vmem:[#allocation2 + $0xcc] sm:$0xf] %vm183_vm1, %v7926_v2  ;;  %237 = vst.msk [vmem:[#allocation2 + $0xd0] sm:$0xf] %vm183_vm1, %v7926_v2  ;;  %v694_v30 = vld [vmem:[#allocation2 + $0xc] sm:$0xf] }
  0x18   : > { %190 = vst.msk [vmem:[#allocation2 + $0x14] sm:$0x1] %vm186_vm2, %v7926_v2  ;;  %187 = vst.msk [vmem:[#allocation2 + $0x8] sm:$0x1] %vm186_vm2, %v7926_v2  ;;  %v390_v31 = vrot.slane %v388_v21, 7  ;;  %v396_v32 = vshrl.u32 %v6915_v20, 16  ;;  %v376_v35 = vor.u32 %v374_v15, %v373_v25  ;;  %v384_v37 = vor.u32 %v382_v17, %v381_v26 }
  0x19   : > { %193 = vst.msk [vmem:[#allocation2 + $0x20] sm:$0x1] %vm186_vm2, %v7926_v2  ;;  %196 = vst.msk [vmem:[#allocation2 + $0x2c] sm:$0x1] %vm186_vm2, %v7926_v2  ;;  %v399_v33 = vshll.u32 %v6915_v20, 16  ;;  %v405_v34 = vshrl.u32 %v6916_v23, 16 }
  0x1a   : > { %199 = vst.msk [vmem:[#allocation2 + $0x38] sm:$0x1] %vm186_vm2, %v7926_v2  ;;  %202 = vst.msk [vmem:[#allocation2 + $0x44] sm:$0x1] %vm186_vm2, %v7926_v2  ;;  %v377_v36 = vrot.slane %v373_v25, 4  ;;  %v408_v39 = vshll.u32 %v6916_v23, 16  ;;  %v393_v40 = vor.u32 %v391_v22, %v390_v31 }
  0x1b   : > { %205 = vst.msk [vmem:[#allocation2 + $0x50] sm:$0x1] %vm186_vm2, %v7926_v2  ;;  %208 = vst.msk [vmem:[#allocation2 + $0x5c] sm:$0x1] %vm186_vm2, %v7926_v2  ;;  %v703_v38 = vld [vmem:[#allocation2 + $0x18] sm:$0xf] }
  0x1c   : > { %211 = vst.msk [vmem:[#allocation2 + $0x68] sm:$0x1] %vm186_vm2, %v7926_v2  ;;  %214 = vst.msk [vmem:[#allocation2 + $0x74] sm:$0x1] %vm186_vm2, %v7926_v2  ;;  %v394_v41 = vrot.slane %v390_v31, 4  ;;  %v398_v42 = vrot.slane %v396_v32, 7 }
  0x1d   : > { %217 = vst.msk [vmem:[#allocation2 + $0x80] sm:$0x1] %vm186_vm2, %v7926_v2  ;;  %220 = vst.msk [vmem:[#allocation2 + $0x8c] sm:$0x1] %vm186_vm2, %v7926_v2  ;;  %v407_v43 = vrot.slane %v405_v34, 7  ;;  %v245_v45 = vld [vmem:[%s8035_s23 + $0x30] sm:$0xff] }
  0x1e   : > { %223 = vst.msk [vmem:[#allocation2 + $0x98] sm:$0x1] %vm186_vm2, %v7926_v2  ;;  %226 = vst.msk [vmem:[#allocation2 + $0xa4] sm:$0x1] %vm186_vm2, %v7926_v2  ;;  %v710_v44 = vld [vmem:[#allocation2 + $0x24] sm:$0xf]  ;;  %v401_v53 = vor.u32 %v399_v33, %v398_v42  ;;  %v6918_v61 = vpack.c.bf16 %v245_v45, %v245_v45 }
  0x1f   : > { %229 = vst.msk [vmem:[#allocation2 + $0xb0] sm:$0x1] %vm186_vm2, %v7926_v2  ;;  %232 = vst.msk [vmem:[#allocation2 + $0xbc] sm:$0x1] %vm186_vm2, %v7926_v2  ;;  %v413_v48 = vshrl.u32 %v6917_v27, 16  ;;  %v416_v49 = vshll.u32 %v6917_v27, 16  ;;  %v410_v56 = vor.u32 %v408_v39, %v407_v43 }
  0x20   : > { %235 = vst.msk [vmem:[#allocation2 + $0xc8] sm:$0x1] %vm186_vm2, %v7926_v2  ;;  %238 = vst.msk [vmem:[#allocation2 + $0xd4] sm:$0x1] %vm186_vm2, %v7926_v2  ;;  %v707_v51 = vld [vmem:[#allocation2 + $0x20] sm:$0x1] }
  0x21   : > { %vm8045_vm7 = vmor %vm367_vm4, %vm368_vm5  ;;  %v246_v52 = vld [vmem:[%s8035_s23 + $0x38] sm:$0xff]  ;;  %v403_v54 = vrot.slane %v398_v42, 4  ;;  %v700_v57 = vld [vmem:[#allocation2 + $0x14] sm:$0x1]  ;;  %v411_v58 = vrot.slane %v407_v43, 4  ;;  %v415_v59 = vrot.slane %v413_v48, 7 }
  0x22   : > { %vm8054_vm8 = vmand %vm183_vm1, %vm692_vm6  ;;  %v385_v46 = vsel %vm8045_vm7, %v377_v36, %v384_v37  ;;  %v386_v60 = vrot.slane %v381_v26, 4  ;;  %v247_v62 = vld [vmem:[%s8035_s23 + $0x40] sm:$0xff]  ;;  %v402_v63 = vsel %vm8045_vm7, %v394_v41, %v401_v53  ;;  %v6919_v2 = vpack.c.bf16 %v246_v52, %v246_v52  ;;  %v248_v3 = vld [vmem:[%s8035_s23 + $0x48] sm:$0xff]  ;;  %s6911_s9 = sshll.u32 %s9104_s13, 7  ;;  %s6499_s15 = sshll.u32 %s9104_s13, 1 }
  0x23   : > { %v695_v47 = vsel %vm8054_vm8, %v376_v35, %v694_v30  ;;  %vm8065_vm9 = vmand %vm186_vm2, %vm367_vm4  ;;  %697 = vst.msk [vmem:[#allocation2 + $0x10] sm:$0xf] %vm183_vm1, %v385_v46  ;;  %v704_v55 = vsel %vm8054_vm8, %v393_v40, %v703_v38  ;;  %v711_v0 = vsel %vm8054_vm8, %v410_v56, %v710_v44  ;;  %v714_v4 = vld [vmem:[#allocation2 + $0x2c] sm:$0x1]  ;;  %v418_v5 = vor.u32 %v416_v49, %v415_v59  ;;  %v249_v9 = vld [vmem:[%s8035_s23 + $0x50] sm:$0xff]  ;;  %s9039_s14 = scalar_lea.vmem %s9091_s2, %s6911_s9  ;;  %s181_s18 = scalar_lea.vmem %s9092_s3, %s6499_s15 }
  0x24   : > { %696 = vst [vmem:[#allocation2 + $0xc] sm:$0xf] %v695_v47  ;;  %705 = vst [vmem:[#allocation2 + $0x18] sm:$0xf] %v704_v55  ;;  %v708_v1 = vsel %vm8065_vm9, %v403_v54, %v707_v51  ;;  %v420_v6 = vrot.slane %v415_v59, 4  ;;  %v701_v7 = vsel %vm8065_vm9, %v386_v60, %v700_v57  ;;  %v422_v8 = vshrl.u32 %v6918_v61, 16 }
  0x25   : > { %706 = vst.msk [vmem:[#allocation2 + $0x1c] sm:$0xf] %vm183_vm1, %v402_v63  ;;  %712 = vst [vmem:[#allocation2 + $0x24] sm:$0xf] %v711_v0  ;;  %vm1215_vm10 = vsmask.f32 3328  ;;  %v8085_v13 = vpack.c.bf16 %v247_v62, %v247_v62  ;;  %v419_v16 = vsel %vm8045_vm7, %v411_v58, %v418_v5  ;;  %v8091_v18 = vpack.c.bf16 %v248_v3, %v248_v3 }
  0x26   : > { %vm1216_vm11 = vsmask.f32 7440  ;;  %709 = vst [vmem:[#allocation2 + $0x20] sm:$0x1] %v708_v1  ;;  %702 = vst [vmem:[#allocation2 + $0x14] sm:$0x1] %v701_v7  ;;  %v715_v19 = vsel %vm8065_vm9, %v420_v6, %v714_v4  ;;  %v8103_v30 = vpack.c.bf16 %v249_v9, %v249_v9 }
  0x27   : > { %v425_v10 = vshll.u32 %v6918_v61, 16  ;;  %v430_v11 = vshrl.u32 %v6919_v2, 16  ;;  %v433_v12 = vshll.u32 %v6919_v2, 16  ;;  %v250_v14 = vld [vmem:[%s8035_s23 + $0x58] sm:$0xff]  ;;  %v251_v15 = vld [vmem:[%s8035_s23 + $0x60] sm:$0xff]  ;;  %v424_v17 = vrot.slane %v422_v8, 7  ;;  %vm8134_vm12 = vmor %vm1215_vm10, %vm1216_vm11 }
  0x28   : > { %v252_v20 = vld [vmem:[%s8035_s23 + $0x68] sm:$0xff]  ;;  %v253_v21 = vld [vmem:[%s8035_s23 + $0x70] sm:$0xff]  ;;  %v254_v22 = vld [vmem:[%s8035_s23 + $0x78] sm:$0xff]  ;;  %713 = vst.msk [vmem:[#allocation2 + $0x28] sm:$0xf] %vm183_vm1, %v419_v16  ;;  %v439_v26 = vshrl.u32 %v8085_v13, 16  ;;  %v8106_v35 = vpack.c.bf16 %v250_v14, %v250_v14  ;;  %v8108_v36 = vpack.c.bf16 %v251_v15, %v251_v15 }
  0x29   : > { %v8099_v23 = vrot.slane %v430_v11, 7  ;;  %v717_v25 = vld [vmem:[#allocation2 + $0x30] sm:$0xf]  ;;  %v442_v27 = vshll.u32 %v8085_v13, 16  ;;  %716 = vst [vmem:[#allocation2 + $0x2c] sm:$0x1] %v715_v19  ;;  %v427_v33 = vor.u32 %v425_v10, %v424_v17  ;;  %v8113_v42 = vpack.c.bf16 %v252_v20, %v252_v20 }
  0x2a   : > { %v255_v31 = vld [vmem:[%s8035_s23 + $0x80] sm:$0xff]  ;;  %v428_v34 = vrot.slane %v424_v17, 4  ;;  %v256_v37 = vld [vmem:[%s8035_s23 + $0x88] sm:$0xff]  ;;  %v257_v38 = vld [vmem:[%s8035_s23 + $0x90] sm:$0xff]  ;;  %v8115_v43 = vpack.c.bf16 %v253_v21, %v253_v21  ;;  %v8117_v44 = vpack.c.bf16 %v254_v22, %v254_v22  ;;  %v441_v21 = vrot.slane %v439_v26, 7 }
  0x2b   : > { %v7871_v32 = vld [vmem:[#allocation2 + $0xc] sm:$0xff]   ;;  %v435_v41 = vor.u32 %v433_v12, %v8099_v23  ;;  %v2954_v49 = vld [vmem:[#allocation2 + $0x18] sm:$0xf]  ;;  %v718_v54 = vsel %vm8054_vm8, %v427_v33, %v717_v25  ;;  %v8124_v55 = vpack.c.bf16 %v255_v31, %v255_v31  ;;  %v8128_v1 = vpack.c.bf16 %v256_v37, %v256_v37 }
  0x2c   : > { %v2951_v39 = vld [vmem:[#allocation2 + $0xc] sm:$0xf]  ;;  %v2952_v40 = vld [vmem:[#allocation2 + $0x10] sm:$0xf]  ;;  %7227 = vmatmul.mubr.msk.bf16.vlgmr.msra.gmra.mrb[0].mxu1 %vm921_vm3, %v7871_v32  ;;  %v7872_v51 = vld [vmem:[#allocation2 + $0x18] sm:$0xff]   ;;  %v3024_v52 = vshrl.u32 %v2954_v49, 16  ;;  %v8130_v2 = vpack.c.bf16 %v257_v38, %v257_v38  ;;  %v444_v26 = vor.u32 %v442_v27, %v441_v21 }
  0x2d   : > { %v3000_v45 = vshrl.u32 %v2951_v39, 16  ;;  %v3003_v46 = vshll.u32 %v2951_v39, 16  ;;  %v3009_v47 = vshll.u32 %v2952_v40, 16  ;;  %v3013_v48 = vshrl.u32 %v2952_v40, 16  ;;  %v2953_v56 = vld [vmem:[#allocation2 + $0x14] sm:$0x1]  ;;  %7230 = vmatprep.mubr.msk.bf16.mxu1 %vm921_vm3, %v7872_v51 }
  0x2e   : > { %v436_v53 = vsel %vm8045_vm7, %v428_v34, %v435_v41  ;;  %719 = vst [vmem:[#allocation2 + $0x30] sm:$0xf] %v718_v54  ;;  %v3019_v61 = vshll.u32 %v2953_v56, 16  ;;  %v2955_v62 = vld [vmem:[#allocation2 + $0x1c] sm:$0xf]  ;;  %v3026_v0 = vrot.slane %v3024_v52, 4 }
  0x2f   : > { %v3002_v57 = vrot.slane %v3000_v45, 4  ;;  %v3005_v58 = vrot.slane %v3003_v46, 5  ;;  %v3011_v59 = vrot.slane %v3009_v47, 5  ;;  %v3015_v60 = vrot.slane %v3013_v48, 4  ;;  %720 = vst.msk [vmem:[#allocation2 + $0x34] sm:$0xf] %vm183_vm1, %v436_v53 }
  0x30   : > { %v2956_v63 = vld [vmem:[#allocation2 + $0x20] sm:$0x1]  ;;  %v7873_v3 = vld [vmem:[#allocation2 + $0x24] sm:$0xff]   ;;  %v3027_v6 = vshll.u32 %v2954_v49, 16  ;;  %v3033_v7 = vshll.u32 %v2955_v62, 16  ;;  %v3021_v9 = vrot.slane %v3019_v61, 5 }
  0x31   : > { %v3006_v4 = vor.u32 %v3005_v58, %v3002_v57  ;;  %v3016_v5 = vor.u32 %v3015_v60, %v3011_v59  ;;  %v3037_v10 = vshrl.u32 %v2955_v62, 16  ;;  %v3043_v11 = vshll.u32 %v2956_v63, 16  ;;  %v2957_v25 = vld [vmem:[#allocation2 + $0x24] sm:$0xf]  ;;  %v724_v34 = vld [vmem:[#allocation2 + $0x3c] sm:$0xf] }
  0x32   : > { %v437_v12 = vrot.slane %v8099_v23, 4  ;;  %v3029_v16 = vrot.slane %v3027_v6, 5  ;;  %v3035_v17 = vrot.slane %v3033_v7, 5  ;;  %v447_v22 = vshrl.u32 %v8091_v18, 16  ;;  %v2958_v37 = vld [vmem:[#allocation2 + $0x28] sm:$0xf] }
  0x33   : > { %v3007_v14 = vrot.slane %v3006_v4, 4  ;;  %v3017_v15 = vrot.slane %v3016_v5, 4  ;;  %v3039_v19 = vrot.slane %v3037_v10, 4  ;;  %v3045_v20 = vrot.slane %v3043_v11, 5  ;;  %v721_v49 = vld [vmem:[#allocation2 + $0x38] sm:$0x1] }
  0x34   : > { %7231 = vmatmul.mubr.msk.bf16.gmra.mrb[4].mxu1 %vm921_vm3, %v7873_v3  ;;  %v3030_v33 = vor.u32 %v3029_v16, %v3026_v0  ;;  %v450_v23 = vshll.u32 %v8091_v18, 16  ;;  %v445_v41 = vrot.slane %v441_v21, 4  ;;  %v8148_v46 = vrot.slane %v447_v22, 7  ;;  %v2959_v52 = vld [vmem:[#allocation2 + $0x2c] sm:$0x1] }
  0x35   : > { %v3012_v31 = vsel %vm8134_vm12, %v3007_v14, %v3011_v59  ;;  %v3022_v32 = vsel %vm8134_vm12, %v3017_v15, %v3021_v9  ;;  %v3040_v39 = vor.u32 %v3039_v19, %v3035_v17  ;;  %v3048_v47 = vshrl.u32 %v2957_v25, 16  ;;  %v2960_v58 = vld [vmem:[#allocation2 + $0x30] sm:$0xf] }
  0x36   : > { %v6680_v38 = vcombine.low %v3012_v31, %v3022_v32  ;;  %v7874_v40 = vld [vmem:[#allocation2 + $0x30] sm:$0xff]   ;;  %v3031_v45 = vrot.slane %v3030_v33, 4  ;;  %v3051_v48 = vshll.u32 %v2957_v25, 16  ;;  %v725_v18 = vsel %vm8054_vm8, %v444_v26, %v724_v34  ;;  %v731_v32 = vld [vmem:[#allocation2 + $0x48] sm:$0xf] }
  0x37   : > { %v3041_v51 = vrot.slane %v3040_v39, 4  ;;  %7234 = vmatprep.mubr.msk.bf16.mxu1 %vm921_vm3, %v7874_v40  ;;  %v3057_v53 = vshll.u32 %v2958_v37, 16  ;;  %v3061_v54 = vshrl.u32 %v2958_v37, 16  ;;  %v452_v27 = vor.u32 %v450_v23, %v8148_v46  ;;  %726 = vst [vmem:[#allocation2 + $0x3c] sm:$0xf] %v725_v18 }
  0x38   : > { %7362 = vmatprep.mubr.msk.bf16.mxu0 %vm921_vm3, %v6680_v38  ;;  %v3036_v13 = vsel %vm8134_vm12, %v3031_v45, %v3035_v17  ;;  %v454_v56 = vrot.slane %v8148_v46, 4  ;;  %v3050_v57 = vrot.slane %v3048_v47, 4  ;;  %v3053_v60 = vrot.slane %v3051_v48, 5  ;;  %v2961_v63 = vld [vmem:[#allocation2 + $0x34] sm:$0xf]  ;;  %v258_v38 = vld [vmem:[%s8035_s23 + $0x98] sm:$0xff] }
  0x39   : > { %v3046_v59 = vsel %vm8134_vm12, %v3041_v51, %v3045_v20  ;;  %v3059_v61 = vrot.slane %v3057_v53, 5  ;;  %v3063_v62 = vrot.slane %v3061_v54, 4  ;;  %v453_v3 = vsel %vm8045_vm7, %v445_v41, %v452_v27 }
  0x3a   : > { %v6681_v0 = vcombine.low %v3036_v13, %v3046_v59  ;;  %v3067_v4 = vshll.u32 %v2959_v52, 16  ;;  %v722_v5 = vsel %vm8065_vm9, %v437_v12, %v721_v49  ;;  %727 = vst.msk [vmem:[#allocation2 + $0x40] sm:$0xf] %vm183_vm1, %v453_v3  ;;  %v3054_v6 = vor.u32 %v3053_v60, %v3050_v57 }
  0x3b   : > { %v3064_v7 = vor.u32 %v3063_v62, %v3059_v61  ;;  %723 = vst [vmem:[#allocation2 + $0x38] sm:$0x1] %v722_v5  ;;  %v3072_v9 = vshrl.u32 %v2960_v58, 16  ;;  %v3075_v10 = vshll.u32 %v2960_v58, 16  ;;  %v3081_v14 = vshll.u32 %v2961_v63, 16 }
  0x3c   : > { %7363 = vmatmul.mubr.msk.bf16.vlgmr.msra.gmra.mrb[0].mxu0 %vm921_vm3, %v6681_v0  ;;  %v3069_v11 = vrot.slane %v3067_v4, 5  ;;  %v3085_v15 = vshrl.u32 %v2961_v63, 16  ;;  %v456_v16 = vshrl.u32 %v8103_v30, 16  ;;  %v3055_v17 = vrot.slane %v3054_v6, 4  ;;  %v738_v63 = vld [vmem:[#allocation2 + $0x54] sm:$0xf] }
  0x3d   : > { %7395 = vmatpush3.bf16.msra.mxu0 %v8050_v28  ;;  %v3065_v19 = vrot.slane %v3064_v7, 4  ;;  %v3074_v12 = vrot.slane %v3072_v9, 4  ;;  %v3077_v20 = vrot.slane %v3075_v10, 5  ;;  %v3083_v21 = vrot.slane %v3081_v14, 5  ;;  %v728_v28 = vld [vmem:[#allocation2 + $0x44] sm:$0x1] }
  0x3e   : > { %v3087_v22 = vrot.slane %v3085_v15, 4  ;;  %v458_v25 = vrot.slane %v456_v16, 7  ;;  %v459_v31 = vshll.u32 %v8103_v30, 16  ;;  %v3060_v33 = vsel %vm8134_vm12, %v3055_v17, %v3059_v61  ;;  %v8178_v30 = vld [vmem:[%s9090_s1 + $0x2] sm:$0x3] }
  0x3f   : > { %v3070_v23 = vsel %vm8134_vm12, %v3065_v19, %v3069_v11  ;;  %v3078_v34 = vor.u32 %v3077_v20, %v3074_v12  ;;  %v464_v37 = vshrl.u32 %v8106_v35, 16  ;;  %v467_v47 = vshll.u32 %v8106_v35, 16  ;;  %v2963_v49 = vld [vmem:[#allocation2 + $0x3c] sm:$0xf]  ;;  %7851 = vmatprep.subr.msk.bf16.mxu1 %vm970_vm0, %v8178_v30  ;;  %v735_v6 = vld [vmem:[#allocation2 + $0x50] sm:$0x1] }
  0x40   : > { %v6682_v39 = vcombine.low %v3060_v33, %v3070_v23  ;;  %v3088_v40 = vor.u32 %v3087_v22, %v3083_v21  ;;  %v461_v26 = vor.u32 %v459_v31, %v458_v25  ;;  %v462_v41 = vrot.slane %v458_v25, 4  ;;  %v742_v11 = vld [vmem:[#allocation2 + $0x5c] sm:$0x1]  ;;  %v259_v17 = vld [vmem:[%s8035_s23 + $0xa0] sm:$0xff]  ;;  %v260_v19 = vld [vmem:[%s8035_s23 + $0xa8] sm:$0xff] }
  0x41   : > { %v3079_v45 = vrot.slane %v3078_v34, 4  ;;  %v466_v46 = vrot.slane %v464_v37, 7  ;;  %v473_v48 = vshrl.u32 %v8108_v36, 16  ;;  %v7875_v51 = vld [vmem:[#allocation2 + $0x3c] sm:$0xff]   ;;  %v729_v54 = vsel %vm8065_vm9, %v454_v56, %v728_v28 }
  0x42   : > { %7366 = vmatprep.mubr.msk.bf16.mxu0 %vm921_vm3, %v6682_v39  ;;  %v2962_v18 = vld [vmem:[#allocation2 + $0x38] sm:$0x1]  ;;  %v3089_v52 = vrot.slane %v3088_v40, 4  ;;  %v732_v53 = vsel %vm8054_vm8, %v461_v26, %v731_v32  ;;  %v8189_v13 = vpack.c.bf16 %v258_v38, %v258_v38  ;;  %730 = vst [vmem:[#allocation2 + $0x44] sm:$0x1] %v729_v54  ;;  %7235 = vmatmul.mubr.msk.bf16.gmra.mrb[8].mxu1 %vm921_vm3, %v7875_v51  ;;  %v476_v61 = vshll.u32 %v8108_v36, 16 }
  0x43   : > { %v3084_v35 = vsel %vm8134_vm12, %v3079_v45, %v3083_v21  ;;  %v3091_v27 = vshll.u32 %v2962_v18, 16  ;;  %v469_v57 = vor.u32 %v467_v47, %v466_v46  ;;  %v471_v58 = vrot.slane %v466_v46, 4  ;;  %733 = vst [vmem:[#allocation2 + $0x48] sm:$0xf] %v732_v53  ;;  %v2964_v59 = vld [vmem:[#allocation2 + $0x40] sm:$0xf] }
  0x44   : > { %v475_v60 = vrot.slane %v473_v48, 7  ;;  %v481_v62 = vshrl.u32 %v8113_v42, 16  ;;  %v484_v56 = vshll.u32 %v8113_v42, 16  ;;  %v3096_v4 = vshrl.u32 %v2963_v49, 16 }
  0x45   : > { %v3093_v0 = vrot.slane %v3091_v27, 5  ;;  %v470_v3 = vsel %vm8045_vm7, %v462_v41, %v469_v57  ;;  %v3099_v5 = vshll.u32 %v2963_v49, 16  ;;  %v3105_v36 = vshll.u32 %v2964_v59, 16 }
  0x46   : > { %734 = vst.msk [vmem:[#allocation2 + $0x4c] sm:$0xf] %vm183_vm1, %v470_v3  ;;  %v478_v7 = vor.u32 %v476_v61, %v475_v60  ;;  %v479_v9 = vrot.slane %v475_v60, 4  ;;  %v483_v10 = vrot.slane %v481_v62, 7  ;;  %v3098_v14 = vrot.slane %v3096_v4, 4 }
  0x47   : > { %v3094_v42 = vsel %vm8134_vm12, %v3089_v52, %v3093_v0  ;;  %v3101_v15 = vrot.slane %v3099_v5, 5  ;;  %v3109_v16 = vshrl.u32 %v2964_v59, 16  ;;  %v3107_v31 = vrot.slane %v3105_v36, 5  ;;  %v745_v62 = vld [vmem:[#allocation2 + $0x60] sm:$0xf] }
  0x48   : > { %v6683_v12 = vcombine.low %v3084_v35, %v3094_v42  ;;  %v486_v20 = vor.u32 %v484_v56, %v483_v10  ;;  %v488_v21 = vrot.slane %v483_v10, 4  ;;  %v739_v22 = vsel %vm8054_vm8, %v478_v7, %v738_v63 }
  0x49   : > { %740 = vst [vmem:[#allocation2 + $0x54] sm:$0xf] %v739_v22  ;;  %v3102_v25 = vor.u32 %v3101_v15, %v3098_v14  ;;  %v3111_v32 = vrot.slane %v3109_v16, 4  ;;  %v736_v33 = vsel %vm8065_vm9, %v471_v58, %v735_v6  ;;  %v2965_v34 = vld [vmem:[#allocation2 + $0x44] sm:$0x1]  ;;  %v8213_v38 = vpack.c.bf16 %v259_v17, %v259_v17 }
  0x4a   : > { %7367 = vmatmul.mubr.msk.bf16.gmra.mrb[4].mxu0 %vm921_vm3, %v6683_v12  ;;  %v487_v23 = vsel %vm8045_vm7, %v479_v9, %v486_v20  ;;  %737 = vst [vmem:[#allocation2 + $0x50] sm:$0x1] %v736_v33  ;;  %v2966_v37 = vld [vmem:[#allocation2 + $0x48] sm:$0xf]  ;;  %v743_v28 = vsel %vm8065_vm9, %v488_v21, %v742_v11  ;;  %v8215_v39 = vpack.c.bf16 %v260_v19, %v260_v19  ;;  %v3115_v41 = vshll.u32 %v2965_v34, 16 }
  0x4b   : > { %741 = vst.msk [vmem:[#allocation2 + $0x58] sm:$0xf] %vm183_vm1, %v487_v23  ;;  %v3103_v40 = vrot.slane %v3102_v25, 4  ;;  %v3112_v26 = vor.u32 %v3111_v32, %v3107_v31  ;;  %v3120_v45 = vshrl.u32 %v2966_v37, 16  ;;  %744 = vst [vmem:[#allocation2 + $0x5c] sm:$0x1] %v743_v28 }
  0x4c   : > { %v3123_v46 = vshll.u32 %v2966_v37, 16  ;;  %v490_v47 = vshrl.u32 %v8115_v43, 16  ;;  %v493_v48 = vshll.u32 %v8115_v43, 16  ;;  %v498_v49 = vshrl.u32 %v8117_v44, 16  ;;  %v752_v33 = vld [vmem:[#allocation2 + $0x6c] sm:$0xf] }
  0x4d   : > { %v7876_v51 = vld [vmem:[#allocation2 + $0x48] sm:$0xff]   ;;  %v3108_v18 = vsel %vm8134_vm12, %v3103_v40, %v3107_v31  ;;  %v3113_v52 = vrot.slane %v3112_v26, 4  ;;  %v3117_v53 = vrot.slane %v3115_v41, 5  ;;  %v3122_v54 = vrot.slane %v3120_v45, 4 }
  0x4e   : > { %v2967_v35 = vld [vmem:[#allocation2 + $0x4c] sm:$0xf]  ;;  %v3125_v27 = vrot.slane %v3123_v46, 5  ;;  %v492_v57 = vrot.slane %v490_v47, 7  ;;  %v8223_v58 = vrot.slane %v498_v49, 7  ;;  %v501_v59 = vshll.u32 %v8117_v44, 16  ;;  %7238 = vmatprep.mubr.msk.bf16.mxu1 %vm921_vm3, %v7876_v51 }
  0x4f   : > { %v3118_v43 = vsel %vm8134_vm12, %v3113_v52, %v3117_v53  ;;  %v3129_v60 = vshll.u32 %v2967_v35, 16  ;;  %v3133_v61 = vshrl.u32 %v2967_v35, 16  ;;  %v507_v56 = vshrl.u32 %v8124_v55, 16  ;;  %v749_v45 = vld [vmem:[#allocation2 + $0x68] sm:$0x1]  ;;  %v262_v35 = vld [vmem:[%s8035_s23 + $0xb8] sm:$0xff] }
  0x50   : > { %v6684_v63 = vcombine.low %v3108_v18, %v3118_v43  ;;  %v3126_v0 = vor.u32 %v3125_v27, %v3122_v54  ;;  %v495_v3 = vor.u32 %v493_v48, %v492_v57  ;;  %v496_v4 = vrot.slane %v492_v57, 4  ;;  %v2969_v5 = vld [vmem:[#allocation2 + $0x54] sm:$0xf]  ;;  %v8257_v43 = vld [vmem:[%s9090_s1 + $0xc] sm:$0x3] }
  0x51   : > { %v2968_v6 = vld [vmem:[#allocation2 + $0x50] sm:$0x1]  ;;  %v3131_v7 = vrot.slane %v3129_v60, 5  ;;  %v3135_v9 = vrot.slane %v3133_v61, 4  ;;  %v503_v44 = vor.u32 %v501_v59, %v8223_v58  ;;  %v505_v10 = vrot.slane %v8223_v58, 4  ;;  %7856 = vmatprep.subr.msk.bf16.mxu0 %vm970_vm0, %v8257_v43 }
  0x52   : > { %v7877_v36 = vld [vmem:[#allocation2 + $0x54] sm:$0xff]   ;;  %7370 = vmatprep.mubr.msk.bf16.mxu0 %vm921_vm3, %v6684_v63  ;;  %v3127_v11 = vrot.slane %v3126_v0, 4  ;;  %v3139_v42 = vshll.u32 %v2968_v6, 16  ;;  %v746_v14 = vsel %vm8054_vm8, %v495_v3, %v745_v62  ;;  %v509_v15 = vrot.slane %v507_v56, 7  ;;  %v2971_v21 = vld [vmem:[#allocation2 + $0x5c] sm:$0x1] }
  0x53   : > { %v3136_v16 = vor.u32 %v3135_v9, %v3131_v7  ;;  %v504_v17 = vsel %vm8045_vm7, %v496_v4, %v503_v44  ;;  %747 = vst [vmem:[#allocation2 + $0x60] sm:$0xf] %v746_v14  ;;  %v510_v19 = vshll.u32 %v8124_v55, 16  ;;  %v515_v12 = vshrl.u32 %v8128_v1, 16  ;;  %v2970_v20 = vld [vmem:[#allocation2 + $0x58] sm:$0xf]  ;;  %7239 = vmatmul.mubr.msk.bf16.gmra.mrb[12].mxu1 %vm921_vm3, %v7877_v36 }
  0x54   : > { %v3132_v22 = vsel %vm8134_vm12, %v3127_v11, %v3131_v7  ;;  %v3141_v25 = vrot.slane %v3139_v42, 5  ;;  %748 = vst.msk [vmem:[#allocation2 + $0x64] sm:$0xf] %vm183_vm1, %v504_v17  ;;  %v513_v31 = vrot.slane %v509_v15, 4  ;;  %v518_v32 = vshll.u32 %v8128_v1, 16  ;;  %v261_v54 = vld [vmem:[%s8035_s23 + $0xb0] sm:$0xff] }
  0x55   : > { %v3137_v23 = vrot.slane %v3136_v16, 4  ;;  %v512_v34 = vor.u32 %v510_v19, %v509_v15  ;;  %v517_v37 = vrot.slane %v515_v12, 7  ;;  %v3144_v55 = vshrl.u32 %v2969_v5, 16  ;;  %v756_v49 = vld [vmem:[#allocation2 + $0x74] sm:$0x1] }
  0x56   : > { %v3147_v28 = vshll.u32 %v2969_v5, 16  ;;  %v3153_v40 = vshll.u32 %v2970_v20, 16  ;;  %v3157_v26 = vshrl.u32 %v2970_v20, 16  ;;  %v3163_v41 = vshll.u32 %v2971_v21, 16  ;;  %v759_v15 = vld [vmem:[#allocation2 + $0x78] sm:$0xf] }
  0x57   : > { %v3142_v46 = vsel %vm8134_vm12, %v3137_v23, %v3141_v25  ;;  %v520_v47 = vor.u32 %v518_v32, %v517_v37  ;;  %v522_v48 = vrot.slane %v517_v37, 4  ;;  %v753_v1 = vsel %vm8054_vm8, %v512_v34, %v752_v33  ;;  %v263_v20 = vld [vmem:[%s8035_s23 + $0xc0] sm:$0xff]  ;;  %v264_v21 = vld [vmem:[%s8035_s23 + $0xc8] sm:$0xff] }
  0x58   : > { %v6685_v51 = vcombine.low %v3132_v22, %v3142_v46  ;;  %754 = vst [vmem:[#allocation2 + $0x6c] sm:$0xf] %v753_v1  ;;  %v3146_v18 = vrot.slane %v3144_v55, 4  ;;  %v3149_v52 = vrot.slane %v3147_v28, 5  ;;  %v3155_v53 = vrot.slane %v3153_v40, 5 }
  0x59   : > { %v521_v27 = vsel %vm8045_vm7, %v513_v31, %v520_v47  ;;  %v3159_v57 = vrot.slane %v3157_v26, 4  ;;  %v3165_v58 = vrot.slane %v3163_v41, 5  ;;  %v750_v59 = vsel %vm8065_vm9, %v505_v10, %v749_v45 }
  0x5a   : > { %7371 = vmatmul.mubr.msk.bf16.gmra.mrb[8].mxu0 %vm921_vm3, %v6685_v51  ;;  %755 = vst.msk [vmem:[#allocation2 + $0x70] sm:$0xf] %vm183_vm1, %v521_v27  ;;  %v3150_v60 = vor.u32 %v3149_v52, %v3146_v18  ;;  %751 = vst [vmem:[#allocation2 + $0x68] sm:$0x1] %v750_v59  ;;  %v2972_v61 = vld [vmem:[#allocation2 + $0x60] sm:$0xf]  ;;  %v757_v63 = vsel %vm8065_vm9, %v522_v48, %v756_v49  ;;  %v8267_v6 = vpack.c.bf16 %v261_v54, %v261_v54 }
  0x5b   : > { %v524_v62 = vshrl.u32 %v8130_v2, 16  ;;  %v527_v56 = vshll.u32 %v8130_v2, 16  ;;  %v7878_v0 = vld [vmem:[#allocation2 + $0x60] sm:$0xff]   ;;  %v3160_v3 = vor.u32 %v3159_v57, %v3155_v53  ;;  %v3168_v5 = vshrl.u32 %v2972_v61, 16  ;;  %758 = vst [vmem:[#allocation2 + $0x74] sm:$0x1] %v757_v63 }
  0x5c   : > { %v2973_v4 = vld [vmem:[#allocation2 + $0x64] sm:$0xf]  ;;  %v8269_v7 = vpack.c.bf16 %v262_v35, %v262_v35  ;;  %v3151_v9 = vrot.slane %v3150_v60, 4  ;;  %v3171_v44 = vshll.u32 %v2972_v61, 16  ;;  %7242 = vmatprep.mubr.msk.bf16.mxu1 %vm921_vm3, %v7878_v0  ;;  %v532_v14 = vshrl.u32 %v8189_v13, 16 }
  0x5d   : > { %v3177_v2 = vshll.u32 %v2973_v4, 16  ;;  %v3181_v10 = vshrl.u32 %v2973_v4, 16  ;;  %v3161_v36 = vrot.slane %v3160_v3, 4  ;;  %v3170_v11 = vrot.slane %v3168_v5, 4  ;;  %v766_v61 = vld [vmem:[#allocation2 + $0x84] sm:$0xf] }
  0x5e   : > { %v526_v42 = vrot.slane %v524_v62, 7  ;;  %v3156_v16 = vsel %vm8134_vm12, %v3151_v9, %v3155_v53  ;;  %v3173_v17 = vrot.slane %v3171_v44, 5  ;;  %v534_v32 = vrot.slane %v532_v14, 7  ;;  %v763_v3 = vld [vmem:[#allocation2 + $0x80] sm:$0x1] }
  0x5f   : > { %v3179_v19 = vrot.slane %v3177_v2, 5  ;;  %v3183_v12 = vrot.slane %v3181_v10, 4  ;;  %v3166_v22 = vsel %vm8134_vm12, %v3161_v36, %v3165_v58  ;;  %v535_v37 = vshll.u32 %v8189_v13, 16  ;;  %v2975_v55 = vld [vmem:[#allocation2 + $0x6c] sm:$0xf] }
  0x60   : > { %v529_v25 = vor.u32 %v527_v56, %v526_v42  ;;  %v530_v31 = vrot.slane %v526_v42, 4  ;;  %v6686_v33 = vcombine.low %v3156_v16, %v3166_v22  ;;  %v3174_v23 = vor.u32 %v3173_v17, %v3170_v11  ;;  %v770_v42 = vld [vmem:[#allocation2 + $0x8c] sm:$0x1] }
  0x61   : > { %v3184_v34 = vor.u32 %v3183_v12, %v3179_v19  ;;  %v7879_v28 = vld [vmem:[#allocation2 + $0x6c] sm:$0xff]   ;;  %v2974_v40 = vld [vmem:[#allocation2 + $0x68] sm:$0x1]  ;;  %v539_v26 = vrot.slane %v534_v32, 4  ;;  %v8282_v45 = vpack.c.bf16 %v263_v20, %v263_v20  ;;  %v8284_v46 = vpack.c.bf16 %v264_v21, %v264_v21 }
  0x62   : > { %v760_v41 = vsel %vm8054_vm8, %v529_v25, %v759_v15  ;;  %7374 = vmatprep.mubr.msk.bf16.mxu0 %vm921_vm3, %v6686_v33  ;;  %v3175_v47 = vrot.slane %v3174_v23, 4  ;;  %v3187_v1 = vshll.u32 %v2974_v40, 16  ;;  %v537_v49 = vor.u32 %v535_v37, %v534_v32  ;;  %v2976_v51 = vld [vmem:[#allocation2 + $0x70] sm:$0xf]  ;;  %7243 = vmatmul.mubr.msk.bf16.gmra.mrb[16].mxu1 %vm921_vm3, %v7879_v28  ;;  %v2977_v54 = vld [vmem:[#allocation2 + $0x74] sm:$0x1] }
  0x63   : > { %v3185_v48 = vrot.slane %v3184_v34, 4  ;;  %761 = vst [vmem:[#allocation2 + $0x78] sm:$0xf] %v760_v41  ;;  %v541_v13 = vshrl.u32 %v8213_v38, 16  ;;  %v544_v18 = vshll.u32 %v8213_v38, 16  ;;  %v549_v52 = vshrl.u32 %v8215_v39, 16 }
  0x64   : > { %v552_v53 = vshll.u32 %v8215_v39, 16  ;;  %v3180_v35 = vsel %vm8134_vm12, %v3175_v47, %v3179_v19  ;;  %v3189_v27 = vrot.slane %v3187_v1, 5  ;;  %v538_v57 = vsel %vm8045_vm7, %v530_v31, %v537_v49 }
  0x65   : > { %v3192_v58 = vshrl.u32 %v2975_v55, 16  ;;  %762 = vst.msk [vmem:[#allocation2 + $0x7c] sm:$0xf] %vm183_vm1, %v538_v57  ;;  %v543_v59 = vrot.slane %v541_v13, 7  ;;  %v551_v60 = vrot.slane %v549_v52, 7  ;;  %v3195_v62 = vshll.u32 %v2975_v55, 16 }
  0x66   : > { %v3201_v38 = vshll.u32 %v2976_v51, 16  ;;  %v3190_v56 = vsel %vm8134_vm12, %v3185_v48, %v3189_v27  ;;  %v3205_v63 = vshrl.u32 %v2976_v51, 16  ;;  %v3211_v0 = vshll.u32 %v2977_v54, 16  ;;  %v773_v51 = vld [vmem:[#allocation2 + $0x90] sm:$0xf] }
  0x67   : > { %v3194_v39 = vrot.slane %v3192_v58, 4  ;;  %v6687_v4 = vcombine.low %v3180_v35, %v3190_v56  ;;  %v546_v5 = vor.u32 %v544_v18, %v543_v59  ;;  %v547_v9 = vrot.slane %v543_v59, 4  ;;  %v265_v13 = vld [vmem:[%s8035_s23 + $0xd0] sm:$0xff]  ;;  %v266_v18 = vld [vmem:[%s8035_s23 + $0xd8] sm:$0xff] }
  0x68   : > { %v554_v44 = vor.u32 %v552_v53, %v551_v60  ;;  %v556_v2 = vrot.slane %v551_v60, 4  ;;  %v3197_v10 = vrot.slane %v3195_v62, 5  ;;  %v3203_v36 = vrot.slane %v3201_v38, 5  ;;  %v780_v38 = vld [vmem:[#allocation2 + $0x9c] sm:$0xf] }
  0x69   : > { %v3207_v11 = vrot.slane %v3205_v63, 4  ;;  %7375 = vmatmul.mubr.msk.bf16.gmra.mrb[12].mxu0 %vm921_vm3, %v6687_v4  ;;  %v767_v15 = vsel %vm8054_vm8, %v546_v5, %v766_v61  ;;  %v3213_v16 = vrot.slane %v3211_v0, 5  ;;  %v764_v17 = vsel %vm8065_vm9, %v539_v26, %v763_v3 }
  0x6a   : > { %v555_v14 = vsel %vm8045_vm7, %v547_v9, %v554_v44  ;;  %v2978_v19 = vld [vmem:[#allocation2 + $0x78] sm:$0xf]  ;;  %768 = vst [vmem:[#allocation2 + $0x84] sm:$0xf] %v767_v15  ;;  %v3198_v12 = vor.u32 %v3197_v10, %v3194_v39  ;;  %765 = vst [vmem:[#allocation2 + $0x80] sm:$0x1] %v764_v17  ;;  %v771_v28 = vsel %vm8065_vm9, %v556_v2, %v770_v42 }
  0x6b   : > { %769 = vst.msk [vmem:[#allocation2 + $0x88] sm:$0xf] %vm183_vm1, %v555_v14  ;;  %v3208_v20 = vor.u32 %v3207_v11, %v3203_v36  ;;  %v3216_v21 = vshrl.u32 %v2978_v19, 16  ;;  %v3219_v22 = vshll.u32 %v2978_v19, 16  ;;  %v558_v25 = vshrl.u32 %v8267_v6, 16 }
  0x6c   : > { %v561_v31 = vshll.u32 %v8267_v6, 16  ;;  %v566_v32 = vshrl.u32 %v8269_v7, 16  ;;  %v569_v33 = vshll.u32 %v8269_v7, 16  ;;  %v7880_v23 = vld [vmem:[#allocation2 + $0x78] sm:$0xff]   ;;  %v3199_v34 = vrot.slane %v3198_v12, 4 }
  0x6d   : > { %v3209_v37 = vrot.slane %v3208_v20, 4  ;;  %v3218_v55 = vrot.slane %v3216_v21, 4  ;;  %v2979_v40 = vld [vmem:[#allocation2 + $0x7c] sm:$0xf]  ;;  %v3221_v26 = vrot.slane %v3219_v22, 5  ;;  %v560_v41 = vrot.slane %v558_v25, 7  ;;  %7246 = vmatprep.mubr.msk.bf16.mxu1 %vm921_vm3, %v7880_v23 }
  0x6e   : > { %v8313_v47 = vrot.slane %v566_v32, 7  ;;  %v575_v6 = vshrl.u32 %v8282_v45, 16  ;;  %772 = vst [vmem:[#allocation2 + $0x8c] sm:$0x1] %v771_v28  ;;  %v3204_v7 = vsel %vm8134_vm12, %v3199_v34, %v3203_v36  ;;  %v3225_v1 = vshll.u32 %v2979_v40, 16 }
  0x6f   : > { %v3214_v48 = vsel %vm8134_vm12, %v3209_v37, %v3213_v16  ;;  %v3229_v49 = vshrl.u32 %v2979_v40, 16  ;;  %v3222_v53 = vor.u32 %v3221_v26, %v3218_v55  ;;  %v563_v54 = vor.u32 %v561_v31, %v560_v41  ;;  %v267_v37 = vld [vmem:[%s8035_s23 + $0xe0] sm:$0xff]  ;;  %v268_v55 = vld [vmem:[%s8035_s23 + $0xe8] sm:$0xff] }
  0x70   : > { %v6688_v52 = vcombine.low %v3204_v7, %v3214_v48  ;;  %v564_v35 = vrot.slane %v560_v41, 4  ;;  %v3227_v27 = vrot.slane %v3225_v1, 5  ;;  %v571_v58 = vor.u32 %v569_v33, %v8313_v47 }
  0x71   : > { %v3231_v57 = vrot.slane %v3229_v49, 4  ;;  %v573_v59 = vrot.slane %v8313_v47, 4  ;;  %v3223_v61 = vrot.slane %v3222_v53, 4  ;;  %v774_v62 = vsel %vm8054_vm8, %v563_v54, %v773_v51  ;;  %v2980_v63 = vld [vmem:[#allocation2 + $0x80] sm:$0x1] }
  0x72   : > { %v7881_v60 = vld [vmem:[#allocation2 + $0x84] sm:$0xff]   ;;  %7378 = vmatprep.mubr.msk.bf16.mxu0 %vm921_vm3, %v6688_v52  ;;  %v8328_v56 = vpack.c.bf16 %v265_v13, %v265_v13  ;;  %v8330_v39 = vpack.c.bf16 %v266_v18, %v266_v18  ;;  %v572_v3 = vsel %vm8045_vm7, %v564_v35, %v571_v58  ;;  %775 = vst [vmem:[#allocation2 + $0x90] sm:$0xf] %v774_v62  ;;  %v577_v4 = vrot.slane %v575_v6, 7 }
  0x73   : > { %v3232_v0 = vor.u32 %v3231_v57, %v3227_v27  ;;  %v578_v5 = vshll.u32 %v8282_v45, 16  ;;  %v2981_v9 = vld [vmem:[#allocation2 + $0x84] sm:$0xf]  ;;  %7247 = vmatmul.mubr.msk.bf16.gmra.mrb[20].mxu1 %vm921_vm3, %v7881_v60  ;;  %v3228_v44 = vsel %vm8134_vm12, %v3223_v61, %v3227_v27  ;;  %v3235_v2 = vshll.u32 %v2980_v63, 16  ;;  %776 = vst.msk [vmem:[#allocation2 + $0x94] sm:$0xf] %vm183_vm1, %v572_v3 }
  0x74   : > { %v583_v10 = vshrl.u32 %v8284_v46, 16  ;;  %v586_v36 = vshll.u32 %v8284_v46, 16  ;;  %v2982_v11 = vld [vmem:[#allocation2 + $0x88] sm:$0xf]  ;;  %v581_v15 = vrot.slane %v577_v4, 4  ;;  %v3240_v45 = vshrl.u32 %v2981_v9, 16 }
  0x75   : > { %v3233_v42 = vrot.slane %v3232_v0, 4  ;;  %v580_v14 = vor.u32 %v578_v5, %v577_v4  ;;  %v2983_v16 = vld [vmem:[#allocation2 + $0x8c] sm:$0x1]  ;;  %v3237_v17 = vrot.slane %v3235_v2, 5  ;;  %v3243_v12 = vshll.u32 %v2981_v9, 16 }
  0x76   : > { %v8341_v19 = vrot.slane %v583_v10, 7  ;;  %v3249_v20 = vshll.u32 %v2982_v11, 16  ;;  %v3242_v22 = vrot.slane %v3240_v45, 4  ;;  %v3253_v25 = vshrl.u32 %v2982_v11, 16  ;;  %v777_v46 = vld [vmem:[#allocation2 + $0x98] sm:$0x1] }
  0x77   : > { %v781_v21 = vsel %vm8054_vm8, %v580_v14, %v780_v38  ;;  %v3259_v31 = vshll.u32 %v2983_v16, 16  ;;  %v3238_v32 = vsel %vm8134_vm12, %v3233_v42, %v3237_v17  ;;  %v3245_v34 = vrot.slane %v3243_v12, 5  ;;  %v787_v62 = vld [vmem:[#allocation2 + $0xa8] sm:$0xf]  ;;  %v784_v4 = vld [vmem:[#allocation2 + $0xa4] sm:$0x1] }
  0x78   : > { %v588_v33 = vor.u32 %v586_v36, %v8341_v19  ;;  %v590_v23 = vrot.slane %v8341_v19, 4  ;;  %782 = vst [vmem:[#allocation2 + $0x9c] sm:$0xf] %v781_v21  ;;  %v6689_v28 = vcombine.low %v3228_v44, %v3238_v32  ;;  %v3251_v40 = vrot.slane %v3249_v20, 5  ;;  %v269_v10 = vld [vmem:[%s8035_s23 + $0xf0] sm:$0xff]  ;;  %v270_v36 = vld [vmem:[%s8035_s23 + $0xf8] sm:$0xff] }
  0x79   : > { %v3255_v26 = vrot.slane %v3253_v25, 4  ;;  %v3261_v41 = vrot.slane %v3259_v31, 5  ;;  %v3246_v6 = vor.u32 %v3245_v34, %v3242_v22  ;;  %v778_v7 = vsel %vm8065_vm9, %v573_v59, %v777_v46  ;;  %v2984_v48 = vld [vmem:[#allocation2 + $0x90] sm:$0xf] }
  0x7a   : > { %v589_v47 = vsel %vm8045_vm7, %v581_v15, %v588_v33  ;;  %v592_v1 = vshrl.u32 %v8328_v56, 16  ;;  %7379 = vmatmul.mubr.msk.bf16.gmra.mrb[16].mxu0 %vm921_vm3, %v6689_v28  ;;  %v7882_v49 = vld [vmem:[#allocation2 + $0x90] sm:$0xff]   ;;  %779 = vst [vmem:[#allocation2 + $0x98] sm:$0x1] %v778_v7  ;;  %v3264_v18 = vshrl.u32 %v2984_v48, 16  ;;  %v6940_v52 = vpack.c.bf16 %v267_v37, %v267_v37 }
  0x7b   : > { %783 = vst.msk [vmem:[#allocation2 + $0xa0] sm:$0xf] %vm183_vm1, %v589_v47  ;;  %v3256_v51 = vor.u32 %v3255_v26, %v3251_v40  ;;  %v2985_v13 = vld [vmem:[#allocation2 + $0x94] sm:$0xf]  ;;  %v8358_v53 = vpack.c.bf16 %v268_v55, %v268_v55  ;;  %v3247_v54 = vrot.slane %v3246_v6, 4  ;;  %v3267_v35 = vshll.u32 %v2984_v48, 16  ;;  %7250 = vmatprep.mubr.msk.bf16.mxu1 %vm921_vm3, %v7882_v49 }
  0x7c   : > { %v3273_v27 = vshll.u32 %v2985_v13, 16  ;;  %v3277_v57 = vshrl.u32 %v2985_v13, 16  ;;  %v3266_v59 = vrot.slane %v3264_v18, 4  ;;  %v594_v60 = vrot.slane %v592_v1, 7 }
  0x7d   : > { %v3257_v58 = vrot.slane %v3256_v51, 4  ;;  %v595_v61 = vshll.u32 %v8328_v56, 16  ;;  %v3252_v38 = vsel %vm8134_vm12, %v3247_v54, %v3251_v40  ;;  %v3269_v63 = vrot.slane %v3267_v35, 5  ;;  %v791_v51 = vld [vmem:[#allocation2 + $0xb0] sm:$0x1] }
  0x7e   : > { %v3275_v0 = vrot.slane %v3273_v27, 5  ;;  %v3279_v3 = vrot.slane %v3277_v57, 4  ;;  %v598_v44 = vrot.slane %v594_v60, 4  ;;  %v600_v2 = vshrl.u32 %v8330_v39, 16 }
  0x7f   : > { %v3262_v5 = vsel %vm8134_vm12, %v3257_v58, %v3261_v41  ;;  %v597_v9 = vor.u32 %v595_v61, %v594_v60  ;;  %v3270_v42 = vor.u32 %v3269_v63, %v3266_v59  ;;  %v603_v14 = vshll.u32 %v8330_v39, 16  ;;  %v2987_v19 = vld [vmem:[#allocation2 + $0x9c] sm:$0xf]  ;;  %v794_v41 = vld [vmem:[#allocation2 + $0xb4] sm:$0xf] }
  0x80   : > { %v6690_v11 = vcombine.low %v3252_v38, %v3262_v5  ;;  %v3280_v56 = vor.u32 %v3279_v3, %v3275_v0  ;;  %v602_v15 = vrot.slane %v600_v2, 7  ;;  %v609_v45 = vshrl.u32 %v6940_v52, 16  ;;  %v1167_v58 = vld [vmem:[#allocation2] sm:$0xf]  ;;  %v1168_v59 = vld [vmem:[#allocation2 + $0x4] sm:$0xf] }
  0x81   : > { %v788_v16 = vsel %vm8054_vm8, %v597_v9, %v787_v62  ;;  %v612_v17 = vshll.u32 %v6940_v52, 16  ;;  %v2986_v20 = vld [vmem:[#allocation2 + $0x98] sm:$0x1]  ;;  %v3271_v21 = vrot.slane %v3270_v42, 4  ;;  %v785_v22 = vsel %vm8065_vm9, %v590_v23, %v784_v4 }
  0x82   : > { %v7883_v12 = vld [vmem:[#allocation2 + $0x9c] sm:$0xff]   ;;  %7382 = vmatprep.mubr.msk.bf16.mxu0 %vm921_vm3, %v6690_v11  ;;  %789 = vst [vmem:[#allocation2 + $0xa8] sm:$0xf] %v788_v16  ;;  %v8375_v25 = vpack.c.bf16 %v269_v10, %v269_v10  ;;  %v8377_v31 = vpack.c.bf16 %v270_v36, %v270_v36  ;;  %v3281_v39 = vrot.slane %v3280_v56, 4  ;;  %v3283_v46 = vshll.u32 %v2986_v20, 16 }
  0x83   : > { %v605_v32 = vor.u32 %v603_v14, %v602_v15  ;;  %v607_v33 = vrot.slane %v602_v15, 4  ;;  %786 = vst [vmem:[#allocation2 + $0xa4] sm:$0x1] %v785_v22  ;;  %v2988_v34 = vld [vmem:[#allocation2 + $0xa0] sm:$0xf]  ;;  %7251 = vmatmul.mubr.msk.bf16.gmra.mrb[24].mxu1 %vm921_vm3, %v7883_v12  ;;  %v3276_v37 = vsel %vm8134_vm12, %v3271_v21, %v3275_v0  ;;  %v611_v55 = vrot.slane %v609_v45, 7 }
  0x84   : > { %v617_v28 = vshrl.u32 %v8358_v53, 16  ;;  %v620_v23 = vshll.u32 %v8358_v53, 16  ;;  %v3285_v40 = vrot.slane %v3283_v46, 5  ;;  %v3288_v47 = vshrl.u32 %v2987_v19, 16  ;;  %v1169_v36 = vld [vmem:[#allocation2 + $0x8] sm:$0x1] }
  0x85   : > { %v606_v26 = vsel %vm8045_vm7, %v598_v44, %v605_v32  ;;  %v3291_v6 = vshll.u32 %v2987_v19, 16  ;;  %v614_v7 = vor.u32 %v612_v17, %v611_v55  ;;  %v615_v48 = vrot.slane %v611_v55, 4  ;;  %v1170_v16 = vld [vmem:[#allocation2 + $0xc] sm:$0xf]  ;;  %v1171_v55 = vld [vmem:[#allocation2 + $0x10] sm:$0xf] }
  0x86   : > { %790 = vst.msk [vmem:[#allocation2 + $0xac] sm:$0xf] %vm183_vm1, %v606_v26  ;;  %v8387_v1 = vrot.slane %v617_v28, 7  ;;  %v3297_v49 = vshll.u32 %v2988_v34, 16  ;;  %v3286_v13 = vsel %vm8134_vm12, %v3281_v39, %v3285_v40  ;;  %v3290_v18 = vrot.slane %v3288_v47, 4 }
  0x87   : > { %v3293_v52 = vrot.slane %v3291_v6, 5  ;;  %v3301_v53 = vshrl.u32 %v2988_v34, 16  ;;  %v6691_v54 = vcombine.low %v3276_v37, %v3286_v13  ;;  %v795_v57 = vsel %vm8054_vm8, %v614_v7, %v794_v41  ;;  %v1172_v41 = vld [vmem:[#allocation2 + $0x14] sm:$0x1] }
  0x88   : > { %v622_v35 = vor.u32 %v620_v23, %v8387_v1  ;;  %v624_v27 = vrot.slane %v8387_v1, 4  ;;  %796 = vst [vmem:[#allocation2 + $0xb4] sm:$0xf] %v795_v57  ;;  %v3299_v61 = vrot.slane %v3297_v49, 5  ;;  %v792_v38 = vsel %vm8065_vm9, %v607_v33, %v791_v51 }
  0x89   : > { %v3294_v60 = vor.u32 %v3293_v52, %v3290_v18  ;;  %v3303_v62 = vrot.slane %v3301_v53, 4  ;;  %v2990_v63 = vld [vmem:[#allocation2 + $0xa8] sm:$0xf]  ;;  %7383 = vmatmul.mubr.msk.bf16.gmra.mrb[20].mxu0 %vm921_vm3, %v6691_v54  ;;  %793 = vst [vmem:[#allocation2 + $0xb0] sm:$0x1] %v792_v38  ;;  %v1701_v9 = vsel %vm970_vm0, %v8178_v30, 0 }
  0x8a   : > { %v623_v0 = vsel %vm8045_vm7, %v615_v48, %v622_v35  ;;  %v2989_v3 = vld [vmem:[#allocation2 + $0xa4] sm:$0x1]  ;;  %v3312_v4 = vshrl.u32 %v2990_v63, 16  ;;  %v3315_v5 = vshll.u32 %v2990_v63, 16  ;;  %7259 = vmatpush3.bf16.msra.mxu1 %v1701_v9  ;;  %v1219_v11 = vshrl.u32 %v1167_v58, 16 }
  0x8b   : > { %797 = vst.msk [vmem:[#allocation2 + $0xb8] sm:$0xf] %vm183_vm1, %v623_v0  ;;  %v3295_v44 = vrot.slane %v3294_v60, 4  ;;  %v3304_v2 = vor.u32 %v3303_v62, %v3299_v61  ;;  %v3307_v10 = vshll.u32 %v2989_v3, 16  ;;  %v1222_v14 = vshll.u32 %v1167_v58, 16 }
  0x8c   : > { %v3314_v42 = vrot.slane %v3312_v4, 4  ;;  %v3317_v56 = vrot.slane %v3315_v5, 5  ;;  %v1228_v15 = vshll.u32 %v1168_v59, 16  ;;  %v1221_v30 = vrot.slane %v1219_v11, 4 }
  0x8d   : > { %v7884_v45 = vld [vmem:[#allocation2 + $0xa8] sm:$0xff]   ;;  %v3300_v17 = vsel %vm8134_vm12, %v3295_v44, %v3299_v61  ;;  %v3305_v19 = vrot.slane %v3304_v2, 4  ;;  %v3309_v12 = vrot.slane %v3307_v10, 5  ;;  %v1224_v22 = vrot.slane %v1222_v14, 5 }
  0x8e   : > { %v2991_v20 = vld [vmem:[#allocation2 + $0xac] sm:$0xf]  ;;  %v3318_v21 = vor.u32 %v3317_v56, %v3314_v42  ;;  %v1230_v39 = vrot.slane %v1228_v15, 5  ;;  %v1232_v46 = vshrl.u32 %v1168_v59, 16  ;;  %7254 = vmatprep.mubr.msk.bf16.mxu1 %vm921_vm3, %v7884_v45  ;;  %v1238_v37 = vshll.u32 %v1169_v36, 16 }
  0x8f   : > { %v3310_v32 = vsel %vm8134_vm12, %v3305_v19, %v3309_v12  ;;  %v3321_v33 = vshll.u32 %v2991_v20, 16  ;;  %v3325_v34 = vshrl.u32 %v2991_v20, 16  ;;  %v1225_v40 = vor.u32 %v1224_v22, %v1221_v30  ;;  %v798_v59 = vld [vmem:[#allocation2 + $0xbc] sm:$0x1]  ;;  %v2993_v60 = vld [vmem:[#allocation2 + $0xb4] sm:$0xf] }
  0x90   : > { %v6692_v28 = vcombine.low %v3300_v17, %v3310_v32  ;;  %v3319_v23 = vrot.slane %v3318_v21, 4  ;;  %v1234_v26 = vrot.slane %v1232_v46, 4  ;;  %v2992_v47 = vld [vmem:[#allocation2 + $0xb0] sm:$0x1]  ;;  %v1240_v48 = vrot.slane %v1238_v37, 5 }
  0x91   : > { %v3323_v6 = vrot.slane %v3321_v33, 5  ;;  %v3327_v7 = vrot.slane %v3325_v34, 4  ;;  %v1243_v49 = vshrl.u32 %v1170_v16, 16  ;;  %v3331_v13 = vshll.u32 %v2992_v47, 16  ;;  %v1173_v30 = vld [vmem:[#allocation2 + $0x18] sm:$0xf] }
  0x92   : > { %v7885_v51 = vld [vmem:[#allocation2 + $0xb4] sm:$0xff]   ;;  %7386 = vmatprep.mubr.msk.bf16.mxu0 %vm921_vm3, %v6692_v28  ;;  %v1226_v18 = vrot.slane %v1225_v40, 4  ;;  %v1235_v52 = vor.u32 %v1234_v26, %v1230_v39  ;;  %v1246_v53 = vshll.u32 %v1170_v16, 16  ;;  %v1252_v58 = vshll.u32 %v1171_v55, 16  ;;  %v801_v37 = vld [vmem:[#allocation2 + $0xc0] sm:$0xf] }
  0x93   : > { %v3324_v54 = vsel %vm8134_vm12, %v3319_v23, %v3323_v6  ;;  %v3328_v35 = vor.u32 %v3327_v7, %v3323_v6  ;;  %v1245_v57 = vrot.slane %v1243_v49, 4  ;;  %7255 = vmatmul.mubr.msk.bf16.gmra.mrb[28].mxu1 %vm921_vm3, %v7885_v51  ;;  %v3333_v61 = vrot.slane %v3331_v13, 5  ;;  %v2994_v10 = vld [vmem:[#allocation2 + $0xb8] sm:$0xf]  ;;  %v805_v40 = vld [vmem:[#allocation2 + $0xc8] sm:$0x1] }
  0x94   : > { %v1231_v62 = vsel %vm8134_vm12, %v1226_v18, %v1230_v39  ;;  %v1236_v38 = vrot.slane %v1235_v52, 4  ;;  %v1248_v63 = vrot.slane %v1246_v53, 5  ;;  %v1254_v3 = vrot.slane %v1252_v58, 5  ;;  %v1176_v53 = vld [vmem:[#allocation2 + $0x24] sm:$0xf] }
  0x95   : > { %v3329_v0 = vrot.slane %v3328_v35, 4  ;;  %v1256_v4 = vshrl.u32 %v1171_v55, 16  ;;  %v1262_v5 = vshll.u32 %v1172_v41, 16  ;;  %v799_v2 = vsel %vm8065_vm9, %v624_v27, %v798_v59  ;;  %v1177_v58 = vld [vmem:[#allocation2 + $0x28] sm:$0xf] }
  0x96   : > { %v1241_v9 = vsel %vm8134_vm12, %v1236_v38, %v1240_v48  ;;  %v1249_v44 = vor.u32 %v1248_v63, %v1245_v57  ;;  %v3336_v36 = vshrl.u32 %v2993_v60, 16  ;;  %800 = vst [vmem:[#allocation2 + $0xbc] sm:$0x1] %v799_v2  ;;  %v3339_v17 = vshll.u32 %v2993_v60, 16  ;;  %v1175_v48 = vld [vmem:[#allocation2 + $0x20] sm:$0x1] }
  0x97   : > { %v3334_v11 = vsel %vm8134_vm12, %v3329_v0, %v3333_v61  ;;  %v6565_v42 = vcombine.low %v1231_v62, %v1241_v9  ;;  %v1258_v56 = vrot.slane %v1256_v4, 4  ;;  %v1264_v14 = vrot.slane %v1262_v5, 5  ;;  %v1178_v4 = vld [vmem:[#allocation2 + $0x2c] sm:$0x1] }
  0x98   : > { %v6693_v15 = vcombine.low %v3324_v54, %v3334_v11  ;;  %v1250_v16 = vrot.slane %v1249_v44, 4  ;;  %v3338_v45 = vrot.slane %v3336_v36, 4  ;;  %v3345_v1 = vshll.u32 %v2994_v10, 16 }
  0x99   : > { %7260 = vmatprep.mubr.msk.bf16.mxu1 %vm921_vm3, %v6565_v42  ;;  %v1259_v19 = vor.u32 %v1258_v56, %v1254_v3  ;;  %v3349_v12 = vshrl.u32 %v2994_v10, 16  ;;  %v626_v27 = vshrl.u32 %v8375_v25, 16  ;;  %v3341_v21 = vrot.slane %v3339_v17, 5 }
  0x9a   : > { %7387 = vmatmul.mubr.msk.bf16.gmra.mrb[24].mxu0 %vm921_vm3, %v6693_v15  ;;  %v1255_v20 = vsel %vm8134_vm12, %v1250_v16, %v1254_v3  ;;  %v629_v22 = vshll.u32 %v8375_v25, 16  ;;  %v634_v39 = vshrl.u32 %v8377_v31, 16  ;;  %v3347_v32 = vrot.slane %v3345_v1, 5  ;;  %v1174_v25 = vld [vmem:[#allocation2 + $0x1c] sm:$0xf] }
  0x9b   : > { %v1260_v46 = vrot.slane %v1259_v19, 4  ;;  %v3351_v33 = vrot.slane %v3349_v12, 4  ;;  %v628_v34 = vrot.slane %v626_v27, 7  ;;  %v3342_v55 = vor.u32 %v3341_v21, %v3338_v45  ;;  %v3742_v21 = vld [vmem:[#allocation2 + $0x10] sm:$0xf] }
  0x9c   : > { %v636_v28 = vrot.slane %v634_v39, 7  ;;  %v637_v23 = vshll.u32 %v8377_v31, 16  ;;  %v1267_v26 = vshrl.u32 %v1173_v30, 16  ;;  %v1270_v62 = vshll.u32 %v1173_v30, 16 }
  0x9d   : > { %v1265_v41 = vsel %vm8134_vm12, %v1260_v46, %v1264_v14  ;;  %v3352_v47 = vor.u32 %v3351_v33, %v3347_v32  ;;  %v631_v6 = vor.u32 %v629_v22, %v628_v34  ;;  %v632_v7 = vrot.slane %v628_v34, 4  ;;  %v2995_v51 = vld [vmem:[#allocation2 + $0xbc] sm:$0x1]  ;;  %v3741_v14 = vld [vmem:[#allocation2 + $0xc] sm:$0xe] }
  0x9e   : > { %v6566_v49 = vcombine.low %v1255_v20, %v1265_v41  ;;  %v3343_v13 = vrot.slane %v3342_v55, 4  ;;  %v639_v18 = vor.u32 %v637_v23, %v636_v28  ;;  %v641_v52 = vrot.slane %v636_v28, 4  ;;  %v3743_v22 = vld [vmem:[#allocation2 + $0x14] sm:$0x1] }
  0x9f   : > { %v3353_v54 = vrot.slane %v3352_v47, 4  ;;  %v3355_v35 = vshll.u32 %v2995_v51, 16  ;;  %v802_v31 = vsel %vm8054_vm8, %v631_v6, %v801_v37  ;;  %v1269_v57 = vrot.slane %v1267_v26, 4  ;;  %v3744_v26 = vld [vmem:[#allocation2 + $0x18] sm:$0xe] }
  0xa0   : > { %7261 = vmatmul.mubr.msk.bf16.vlgmr.msra.gmra.mrb[0].mxu1 %vm921_vm3, %v6566_v49  ;;  %v3348_v59 = vsel %vm8134_vm12, %v3343_v13, %v3347_v32  ;;  %v640_v60 = vsel %vm8045_vm7, %v632_v7, %v639_v18  ;;  %803 = vst [vmem:[#allocation2 + $0xc0] sm:$0xf] %v802_v31  ;;  %v806_v61 = vsel %vm8065_vm9, %v641_v52, %v805_v40  ;;  %v1276_v29 = vshll.u32 %v1174_v25, 16  ;;  %v3746_v52 = vld [vmem:[#allocation2 + $0x20] sm:$0x1] }
  0xa1   : > { %v3357_v38 = vrot.slane %v3355_v35, 5  ;;  %804 = vst.msk [vmem:[#allocation2 + $0xc4] sm:$0xf] %vm183_vm1, %v640_v60  ;;  %807 = vst [vmem:[#allocation2 + $0xc8] sm:$0x1] %v806_v61  ;;  %v1280_v63 = vshrl.u32 %v1174_v25, 16 }
  0xa2   : > { %v1286_v0 = vshll.u32 %v1175_v48, 16  ;;  %v1272_v3 = vrot.slane %v1270_v62, 5  ;;  %v1291_v5 = vshrl.u32 %v1176_v53, 16  ;;  %v1294_v9 = vshll.u32 %v1176_v53, 16  ;;  %v3745_v25 = vld [vmem:[#allocation2 + $0x1c] sm:$0xf] }
  0xa3   : > { %v1300_v44 = vshll.u32 %v1177_v58, 16  ;;  %v3358_v24 = vsel %vm8134_vm12, %v3353_v54, %v3357_v38  ;;  %v1278_v2 = vrot.slane %v1276_v29, 5  ;;  %v1282_v10 = vrot.slane %v1280_v63, 4  ;;  %v1179_v63 = vld [vmem:[#allocation2 + $0x30] sm:$0xf] }
  0xa4   : > { %v1288_v50 = vrot.slane %v1286_v0, 5  ;;  %v6694_v36 = vcombine.low %v3348_v59, %v3358_v24  ;;  %v1273_v11 = vor.u32 %v1272_v3, %v1269_v57  ;;  %v1293_v42 = vrot.slane %v1291_v5, 4 }
  0xa5   : > { %v1296_v56 = vrot.slane %v1294_v9, 5  ;;  %v1283_v15 = vor.u32 %v1282_v10, %v1278_v2  ;;  %v1302_v16 = vrot.slane %v1300_v44, 5  ;;  %v1304_v45 = vshrl.u32 %v1177_v58, 16  ;;  %v1180_v9 = vld [vmem:[#allocation2 + $0x34] sm:$0xf] }
  0xa6   : > { %v1310_v17 = vshll.u32 %v1178_v4, 16  ;;  %7390 = vmatprep.mubr.msk.bf16.mxu0 %vm921_vm3, %v6694_v36  ;;  %v1274_v19 = vrot.slane %v1273_v11, 4  ;;  %vm2057_vm14 = vcmask 1046532   ;;  %v6712_v39 = vrot.slane %v3741_v14, 9  ;;  %v8469_v44 = vld [vmem:[%s9090_s1 + $0x4] sm:$0x3] }
  0xa7   : > { %v1297_v1 = vor.u32 %v1296_v56, %v1293_v42  ;;  %v2996_v12 = vld [vmem:[#allocation2 + $0xc0] sm:$0xf]  ;;  %v1284_v27 = vrot.slane %v1283_v15, 4  ;;  %v1306_v30 = vrot.slane %v1304_v45, 4  ;;  %vm8451_vm15 = vmor %vm2056_vm13, %vm2057_vm14  ;;  %v3839_v35 = vrot.slane %v3742_v21, 5  ;;  %7852 = vmatprep.subr.msk.bf16.mxu1 %vm970_vm0, %v8469_v44 }
  0xa8   : > { %v1312_v20 = vrot.slane %v1310_v17, 5  ;;  %v2997_v46 = vld [vmem:[#allocation2 + $0xc4] sm:$0xf]  ;;  %v2998_v32 = vld [vmem:[#allocation2 + $0xc8] sm:$0x1]  ;;  %v3360_v33 = vshrl.u32 %v2996_v12, 16  ;;  %v1279_v37 = vsel %vm8134_vm12, %v1274_v19, %v1278_v2 }
  0xa9   : > { %v3363_v34 = vshll.u32 %v2996_v12, 16  ;;  %v3369_v55 = vshll.u32 %v2997_v46, 16  ;;  %v3373_v28 = vshrl.u32 %v2997_v46, 16  ;;  %v3379_v23 = vshll.u32 %v2998_v32, 16  ;;  %v1181_v36 = vld [vmem:[#allocation2 + $0x38] sm:$0x1] }
  0xaa   : > { %v1289_v40 = vsel %vm8134_vm12, %v1284_v27, %v1288_v50  ;;  %v3362_v41 = vrot.slane %v3360_v33, 4  ;;  %v1298_v7 = vrot.slane %v1297_v1, 4  ;;  %v1307_v13 = vor.u32 %v1306_v30, %v1302_v16  ;;  %v1182_v11 = vld [vmem:[#allocation2 + $0x3c] sm:$0xf]  ;;  %v1184_v1 = vld [vmem:[#allocation2 + $0x44] sm:$0x1] }
  0xab   : > { %v3365_v47 = vrot.slane %v3363_v34, 5  ;;  %v6567_v6 = vcombine.low %v1279_v37, %v1289_v40  ;;  %v3371_v48 = vrot.slane %v3369_v55, 5  ;;  %v3375_v49 = vrot.slane %v3373_v28, 4  ;;  %v3747_v21 = vld [vmem:[#allocation2 + $0x24] sm:$0xe] }
  0xac   : > { %v3381_v51 = vrot.slane %v3379_v23, 5  ;;  %v1303_v54 = vsel %vm8134_vm12, %v1298_v7, %v1302_v16  ;;  %v3842_v31 = vrot.slane %v3743_v22, 5  ;;  %v1308_v58 = vrot.slane %v1307_v13, 4  ;;  %v1183_v16 = vld [vmem:[#allocation2 + $0x40] sm:$0xf] }
  0xad   : > { %v3366_v53 = vor.u32 %v3365_v47, %v3362_v41  ;;  %7264 = vmatprep.mubr.msk.bf16.mxu1 %vm921_vm3, %v6567_v6  ;;  %v3376_v57 = vor.u32 %v3375_v49, %v3371_v48  ;;  %v6713_v59 = vrot.slane %v3744_v26, 9  ;;  %v3846_v60 = vrot.slane %v3745_v25, 5  ;;  %v3748_v33 = vld [vmem:[#allocation2 + $0x28] sm:$0xf]  ;;  %v3749_v23 = vld [vmem:[#allocation2 + $0x2c] sm:$0x1] }
  0xae   : > { %v3840_v62 = vsel %vm8451_vm15, %v6712_v39, %v3839_v35  ;;  %v3841_v38 = vrot.slane %v3839_v35, 4  ;;  %v3849_v29 = vrot.slane %v3746_v52, 5  ;;  %v1313_v3 = vsel %vm8134_vm12, %v1308_v58, %v1312_v20  ;;  %v3750_v6 = vld [vmem:[#allocation2 + $0x30] sm:$0xe]  ;;  %v3752_v35 = vld [vmem:[#allocation2 + $0x38] sm:$0x1] }
  0xaf   : > { %v3367_v61 = vrot.slane %v3366_v53, 4  ;;  %v3377_v0 = vrot.slane %v3376_v57, 4  ;;  %v8464_v4 = vsel %vm8451_vm15, %v6713_v59, %v3846_v60  ;;  %v3848_v5 = vrot.slane %v3846_v60, 4  ;;  %v1185_v60 = vld [vmem:[#allocation2 + $0x48] sm:$0xf] }
  0xb0   : > { %v6568_v2 = vcombine.low %v1303_v54, %v1313_v3  ;;  %v3843_v10 = vsel %vm8451_vm15, %v3841_v38, %v3842_v31  ;;  %v8477_v50 = vsel %vm970_vm0, %v8257_v43, 0  ;;  %v1315_v15 = vshrl.u32 %v1179_v63, 16 }
  0xb1   : > { %v3372_v24 = vsel %vm8134_vm12, %v3367_v61, %v3371_v48  ;;  %v3382_v42 = vsel %vm8134_vm12, %v3377_v0, %v3381_v51  ;;  %v6729_v56 = vcombine.low %v3840_v62, %v3843_v10  ;;  %v3850_v14 = vsel %vm8451_vm15, %v3848_v5, %v3849_v29  ;;  %v3751_v51 = vld [vmem:[#allocation2 + $0x34] sm:$0xf] }
  0xb2   : > { %v6695_v45 = vcombine.low %v3372_v24, %v3382_v42  ;;  %7265 = vmatmul.mubr.msk.bf16.gmra.mrb[4].mxu1 %vm921_vm3, %v6568_v2  ;;  %v6730_v43 = vcombine.low %v8464_v4, %v3850_v14  ;;  %v1318_v17 = vshll.u32 %v1179_v63, 16  ;;  %v1324_v19 = vshll.u32 %v1180_v9, 16  ;;  %v1186_v63 = vld [vmem:[#allocation2 + $0x4c] sm:$0xf]  ;;  %v1188_v24 = vld [vmem:[#allocation2 + $0x54] sm:$0xf] }
  0xb3   : > { %v1317_v12 = vrot.slane %v1315_v15, 4  ;;  %v1328_v27 = vshrl.u32 %v1180_v9, 16  ;;  %v1334_v30 = vshll.u32 %v1181_v36, 16  ;;  %v1339_v20 = vshrl.u32 %v1182_v11, 16  ;;  %v1187_v9 = vld [vmem:[#allocation2 + $0x50] sm:$0x1] }
  0xb4   : > { %7391 = vmatmul.mubr.msk.bf16.gmra.mrb[28].mxu0 %vm921_vm3, %v6695_v45  ;;  %v1320_v22 = vrot.slane %v1318_v17, 5  ;;  %v1326_v39 = vrot.slane %v1324_v19, 5  ;;  %v1342_v46 = vshll.u32 %v1182_v11, 16  ;;  %v1348_v32 = vshll.u32 %v1183_v16, 16  ;;  %v1189_v42 = vld [vmem:[#allocation2 + $0x58] sm:$0xf] }
  0xb5   : > { %7396 = vmatprep.mubr.msk.bf16.mxu0 %vm921_vm3, %v6729_v56  ;;  %v1330_v34 = vrot.slane %v1328_v27, 4  ;;  %v1336_v37 = vrot.slane %v1334_v30, 5  ;;  %v1341_v55 = vrot.slane %v1339_v20, 4  ;;  %v1352_v28 = vshrl.u32 %v1183_v16, 16  ;;  %v1190_v45 = vld [vmem:[#allocation2 + $0x5c] sm:$0x1] }
  0xb6   : > { %v1321_v40 = vor.u32 %v1320_v22, %v1317_v12  ;;  %v1344_v26 = vrot.slane %v1342_v46, 5  ;;  %v1350_v41 = vrot.slane %v1348_v32, 5  ;;  %v1358_v47 = vshll.u32 %v1184_v1, 16  ;;  %v3753_v17 = vld [vmem:[#allocation2 + $0x3c] sm:$0xe] }
  0xb7   : > { %v1331_v7 = vor.u32 %v1330_v34, %v1326_v39  ;;  %v1354_v25 = vrot.slane %v1352_v28, 4  ;;  %v6714_v48 = vrot.slane %v3747_v21, 9  ;;  %v3853_v49 = vrot.slane %v3748_v33, 5  ;;  %v3754_v22 = vld [vmem:[#allocation2 + $0x40] sm:$0xf] }
  0xb8   : > { %v1322_v13 = vrot.slane %v1321_v40, 4  ;;  %v1345_v52 = vor.u32 %v1344_v26, %v1341_v55  ;;  %v1360_v53 = vrot.slane %v1358_v47, 5  ;;  %v3856_v54 = vrot.slane %v3749_v23, 5  ;;  %v3755_v34 = vld [vmem:[#allocation2 + $0x44] sm:$0x1] }
  0xb9   : > { %v1332_v31 = vrot.slane %v1331_v7, 4  ;;  %v1355_v57 = vor.u32 %v1354_v25, %v1350_v41  ;;  %v3854_v58 = vsel %vm8451_vm15, %v6714_v48, %v3853_v49  ;;  %v3855_v59 = vrot.slane %v3853_v49, 4  ;;  %v3756_v40 = vld [vmem:[#allocation2 + $0x48] sm:$0xe]  ;;  %v3757_v7 = vld [vmem:[#allocation2 + $0x4c] sm:$0xf] }
  0xba   : > { %v1327_v61 = vsel %vm8134_vm12, %v1322_v13, %v1326_v39  ;;  %v1346_v62 = vrot.slane %v1345_v52, 4  ;;  %v6715_v38 = vrot.slane %v3750_v6, 9  ;;  %v3860_v29 = vrot.slane %v3751_v51, 5  ;;  %v3758_v13 = vld [vmem:[#allocation2 + $0x50] sm:$0x1] }
  0xbb   : > { %v1337_v0 = vsel %vm8134_vm12, %v1332_v31, %v1336_v37  ;;  %v1356_v3 = vrot.slane %v1355_v57, 4  ;;  %v3857_v4 = vsel %vm8451_vm15, %v3855_v59, %v3856_v54  ;;  %v3863_v5 = vrot.slane %v3752_v35, 5  ;;  %v1191_v31 = vld [vmem:[#allocation2 + $0x60] sm:$0xf]  ;;  %v1192_v57 = vld [vmem:[#allocation2 + $0x64] sm:$0xf] }
  0xbc   : > { %7397 = vmatmul.mubr.msk.bf16.vlgmr.msra.gmra.mrb[0].mxu0 %vm921_vm3, %v6730_v43  ;;  %v6569_v2 = vcombine.low %v1327_v61, %v1337_v0  ;;  %v1351_v10 = vsel %vm8134_vm12, %v1346_v62, %v1350_v41  ;;  %v6731_v36 = vcombine.low %v3854_v58, %v3857_v4  ;;  %v3861_v11 = vsel %vm8451_vm15, %v6715_v38, %v3860_v29 }
  0xbd   : > { %7429 = vmatpush3.bf16.msra.mxu0 %v8477_v50  ;;  %v1361_v56 = vsel %vm8134_vm12, %v1356_v3, %v1360_v53  ;;  %v3862_v14 = vrot.slane %v3860_v29, 4  ;;  %v1363_v15 = vshrl.u32 %v1185_v60, 16  ;;  %v1366_v16 = vshll.u32 %v1185_v60, 16  ;;  %v8510_v50 = vld [vmem:[%s9090_s1 + $0xe] sm:$0x3] }
  0xbe   : > { %7268 = vmatprep.mubr.msk.bf16.mxu1 %vm921_vm3, %v6569_v2  ;;  %v6570_v43 = vcombine.low %v1351_v10, %v1361_v56  ;;  %7400 = vmatprep.mubr.msk.bf16.mxu0 %vm921_vm3, %v6731_v36  ;;  %v1372_v19 = vshll.u32 %v1186_v63, 16  ;;  %v1376_v1 = vshrl.u32 %v1186_v63, 16  ;;  %v1382_v12 = vshll.u32 %v1187_v9, 16  ;;  %v1193_v9 = vld [vmem:[#allocation2 + $0x68] sm:$0x1] }
  0xbf   : > { %v3864_v27 = vsel %vm8451_vm15, %v3862_v14, %v3863_v5  ;;  %v1365_v30 = vrot.slane %v1363_v15, 4  ;;  %v1368_v20 = vrot.slane %v1366_v16, 5  ;;  %v1387_v21 = vshrl.u32 %v1188_v24, 16  ;;  %7857 = vmatprep.subr.msk.bf16.mxu0 %vm970_vm0, %v8510_v50 }
  0xc0   : > { %7269 = vmatmul.mubr.msk.bf16.gmra.mrb[8].mxu1 %vm921_vm3, %v6570_v43  ;;  %v6732_v39 = vcombine.low %v3861_v11, %v3864_v27  ;;  %v1374_v46 = vrot.slane %v1372_v19, 5  ;;  %v1378_v32 = vrot.slane %v1376_v1, 4  ;;  %v1384_v33 = vrot.slane %v1382_v12, 5  ;;  %v1194_v11 = vld [vmem:[#allocation2 + $0x6c] sm:$0xf] }
  0xc1   : > { %v1369_v37 = vor.u32 %v1368_v20, %v1365_v30  ;;  %v1389_v55 = vrot.slane %v1387_v21, 4  ;;  %v1390_v28 = vshll.u32 %v1188_v24, 16  ;;  %v1396_v23 = vshll.u32 %v1189_v42, 16  ;;  %v3759_v12 = vld [vmem:[#allocation2 + $0x54] sm:$0xe] }
  0xc2   : > { %v1379_v26 = vor.u32 %v1378_v32, %v1374_v46  ;;  %v1400_v41 = vshrl.u32 %v1189_v42, 16  ;;  %v1406_v47 = vshll.u32 %v1190_v45, 16  ;;  %v6716_v6 = vrot.slane %v3753_v17, 9  ;;  %v1195_v42 = vld [vmem:[#allocation2 + $0x70] sm:$0xf] }
  0xc3   : > { %v1370_v25 = vrot.slane %v1369_v37, 4  ;;  %v1392_v48 = vrot.slane %v1390_v28, 5  ;;  %v1398_v49 = vrot.slane %v1396_v23, 5  ;;  %v3867_v51 = vrot.slane %v3754_v22, 5  ;;  %v1196_v45 = vld [vmem:[#allocation2 + $0x74] sm:$0x1] }
  0xc4   : > { %7401 = vmatmul.mubr.msk.bf16.gmra.mrb[4].mxu0 %vm921_vm3, %v6732_v39  ;;  %v1380_v52 = vrot.slane %v1379_v26, 4  ;;  %v1402_v53 = vrot.slane %v1400_v41, 4  ;;  %v1408_v54 = vrot.slane %v1406_v47, 5  ;;  %v3870_v35 = vrot.slane %v3755_v34, 5  ;;  %v3760_v22 = vld [vmem:[#allocation2 + $0x58] sm:$0xf] }
  0xc5   : > { %v1375_v58 = vsel %vm8134_vm12, %v1370_v25, %v1374_v46  ;;  %v1393_v59 = vor.u32 %v1392_v48, %v1389_v55  ;;  %v3868_v60 = vsel %vm8451_vm15, %v6716_v6, %v3867_v51  ;;  %v3869_v61 = vrot.slane %v3867_v51, 4  ;;  %v3761_v23 = vld [vmem:[#allocation2 + $0x5c] sm:$0x1]  ;;  %v3762_v6 = vld [vmem:[#allocation2 + $0x60] sm:$0xe] }
  0xc6   : > { %v1385_v62 = vsel %vm8134_vm12, %v1380_v52, %v1384_v33  ;;  %v1403_v38 = vor.u32 %v1402_v53, %v1398_v49  ;;  %v6717_v29 = vrot.slane %v3756_v40, 9  ;;  %v3874_v63 = vrot.slane %v3757_v7, 5  ;;  %v3763_v51 = vld [vmem:[#allocation2 + $0x64] sm:$0xf] }
  0xc7   : > { %v6571_v0 = vcombine.low %v1375_v58, %v1385_v62  ;;  %v1394_v3 = vrot.slane %v1393_v59, 4  ;;  %v3871_v4 = vsel %vm8451_vm15, %v3869_v61, %v3870_v35  ;;  %v3877_v5 = vrot.slane %v3758_v13, 5  ;;  %v3764_v35 = vld [vmem:[#allocation2 + $0x68] sm:$0x1]  ;;  %v1198_v61 = vld [vmem:[#allocation2 + $0x7c] sm:$0xf] }
  0xc8   : > { %v1404_v24 = vrot.slane %v1403_v38, 4  ;;  %v6733_v2 = vcombine.low %v3868_v60, %v3871_v4  ;;  %v3875_v10 = vsel %vm8451_vm15, %v6717_v29, %v3874_v63  ;;  %v3876_v36 = vrot.slane %v3874_v63, 4  ;;  %v1197_v60 = vld [vmem:[#allocation2 + $0x78] sm:$0xf] }
  0xc9   : > { %7272 = vmatprep.mubr.msk.bf16.mxu1 %vm921_vm3, %v6571_v0  ;;  %v1399_v56 = vsel %vm8134_vm12, %v1394_v3, %v1398_v49  ;;  %v1411_v14 = vshrl.u32 %v1191_v31, 16  ;;  %v1414_v15 = vshll.u32 %v1191_v31, 16  ;;  %v1420_v16 = vshll.u32 %v1192_v57, 16 }
  0xca   : > { %v1409_v17 = vsel %vm8134_vm12, %v1404_v24, %v1408_v54  ;;  %7404 = vmatprep.mubr.msk.bf16.mxu0 %vm921_vm3, %v6733_v2  ;;  %v3878_v43 = vsel %vm8451_vm15, %v3876_v36, %v3877_v5  ;;  %v1424_v19 = vshrl.u32 %v1192_v57, 16  ;;  %v1430_v1 = vshll.u32 %v1193_v9, 16 }
  0xcb   : > { %v6572_v27 = vcombine.low %v1399_v56, %v1409_v17  ;;  %v6734_v30 = vcombine.low %v3875_v10, %v3878_v43  ;;  %v1413_v20 = vrot.slane %v1411_v14, 4  ;;  %v1416_v21 = vrot.slane %v1414_v15, 5  ;;  %v1199_v10 = vld [vmem:[#allocation2 + $0x80] sm:$0x1]  ;;  %v1200_v15 = vld [vmem:[#allocation2 + $0x84] sm:$0xf] }
  0xcc   : > { %v1422_v39 = vrot.slane %v1420_v16, 5  ;;  %v1426_v46 = vrot.slane %v1424_v19, 4  ;;  %v1432_v32 = vrot.slane %v1430_v1, 5  ;;  %v1435_v33 = vshrl.u32 %v1194_v11, 16  ;;  %v1201_v16 = vld [vmem:[#allocation2 + $0x88] sm:$0xf] }
  0xcd   : > { %7273 = vmatmul.mubr.msk.bf16.gmra.mrb[12].mxu1 %vm921_vm3, %v6572_v27  ;;  %7405 = vmatmul.mubr.msk.bf16.gmra.mrb[8].mxu0 %vm921_vm3, %v6734_v30  ;;  %v1417_v34 = vor.u32 %v1416_v21, %v1413_v20  ;;  %v1438_v37 = vshll.u32 %v1194_v11, 16  ;;  %v1444_v55 = vshll.u32 %v1195_v42, 16  ;;  %v1448_v28 = vshrl.u32 %v1195_v42, 16  ;;  %v1202_v1 = vld [vmem:[#allocation2 + $0x8c] sm:$0x1] }
  0xce   : > { %v1427_v40 = vor.u32 %v1426_v46, %v1422_v39  ;;  %v1437_v26 = vrot.slane %v1435_v33, 4  ;;  %v1454_v41 = vshll.u32 %v1196_v45, 16  ;;  %v6718_v47 = vrot.slane %v3759_v12, 9  ;;  %v3765_v12 = vld [vmem:[#allocation2 + $0x6c] sm:$0xe] }
  0xcf   : > { %v1418_v7 = vrot.slane %v1417_v34, 4  ;;  %v1440_v25 = vrot.slane %v1438_v37, 5  ;;  %v1446_v48 = vrot.slane %v1444_v55, 5  ;;  %v1450_v49 = vrot.slane %v1448_v28, 4  ;;  %v3768_v37 = vld [vmem:[#allocation2 + $0x78] sm:$0xe] }
  0xd0   : > { %v1428_v13 = vrot.slane %v1427_v40, 4  ;;  %v1456_v52 = vrot.slane %v1454_v41, 5  ;;  %v3881_v53 = vrot.slane %v3760_v22, 5  ;;  %v3884_v54 = vrot.slane %v3761_v23, 5  ;;  %v3766_v22 = vld [vmem:[#allocation2 + $0x70] sm:$0xf] }
  0xd1   : > { %v1423_v31 = vsel %vm8134_vm12, %v1418_v7, %v1422_v39  ;;  %v1441_v57 = vor.u32 %v1440_v25, %v1437_v26  ;;  %v1451_v58 = vor.u32 %v1450_v49, %v1446_v48  ;;  %v6719_v59 = vrot.slane %v3762_v6, 9  ;;  %v3767_v39 = vld [vmem:[#allocation2 + $0x74] sm:$0x1]  ;;  %v3769_v26 = vld [vmem:[#allocation2 + $0x7c] sm:$0xf] }
  0xd2   : > { %v1433_v62 = vsel %vm8134_vm12, %v1428_v13, %v1432_v32  ;;  %v3882_v38 = vsel %vm8451_vm15, %v6718_v47, %v3881_v53  ;;  %v3883_v29 = vrot.slane %v3881_v53, 4  ;;  %v3888_v63 = vrot.slane %v3763_v51, 5  ;;  %v3770_v25 = vld [vmem:[#allocation2 + $0x80] sm:$0x1] }
  0xd3   : > { %v6573_v0 = vcombine.low %v1423_v31, %v1433_v62  ;;  %v1442_v3 = vrot.slane %v1441_v57, 4  ;;  %v1452_v4 = vrot.slane %v1451_v58, 4  ;;  %v3891_v5 = vrot.slane %v3764_v35, 5  ;;  %v1203_v31 = vld [vmem:[#allocation2 + $0x90] sm:$0xf] }
  0xd4   : > { %v3885_v9 = vsel %vm8451_vm15, %v3883_v29, %v3884_v54  ;;  %v3889_v24 = vsel %vm8451_vm15, %v6719_v59, %v3888_v63  ;;  %v3890_v2 = vrot.slane %v3888_v63, 4  ;;  %v1459_v36 = vshrl.u32 %v1197_v60, 16 }
  0xd5   : > { %7276 = vmatprep.mubr.msk.bf16.mxu1 %vm921_vm3, %v6573_v0  ;;  %v1447_v11 = vsel %vm8134_vm12, %v1442_v3, %v1446_v48  ;;  %v1457_v42 = vsel %vm8134_vm12, %v1452_v4, %v1456_v52  ;;  %v6735_v56 = vcombine.low %v3882_v38, %v3885_v9  ;;  %v1462_v14 = vshll.u32 %v1197_v60, 16  ;;  %v1205_v0 = vld [vmem:[#allocation2 + $0x98] sm:$0x1] }
  0xd6   : > { %v6574_v45 = vcombine.low %v1447_v11, %v1457_v42  ;;  %v3892_v17 = vsel %vm8451_vm15, %v3890_v2, %v3891_v5  ;;  %v1461_v43 = vrot.slane %v1459_v36, 4  ;;  %v1468_v19 = vshll.u32 %v1198_v61, 16  ;;  %v1207_v42 = vld [vmem:[#allocation2 + $0xa0] sm:$0xf] }
  0xd7   : > { %7408 = vmatprep.mubr.msk.bf16.mxu0 %vm921_vm3, %v6735_v56  ;;  %v6736_v27 = vcombine.low %v3889_v24, %v3892_v17  ;;  %v1464_v30 = vrot.slane %v1462_v14, 5  ;;  %v1472_v20 = vshrl.u32 %v1198_v61, 16  ;;  %v1478_v21 = vshll.u32 %v1199_v10, 16  ;;  %v1204_v61 = vld [vmem:[#allocation2 + $0x94] sm:$0xf] }
  0xd8   : > { %7277 = vmatmul.mubr.msk.bf16.gmra.mrb[16].mxu1 %vm921_vm3, %v6574_v45  ;;  %v1470_v46 = vrot.slane %v1468_v19, 5  ;;  %v1483_v32 = vshrl.u32 %v1200_v15, 16  ;;  %v1486_v33 = vshll.u32 %v1200_v15, 16  ;;  %v1492_v34 = vshll.u32 %v1201_v16, 16  ;;  %v1206_v24 = vld [vmem:[#allocation2 + $0x9c] sm:$0xf] }
  0xd9   : > { %7409 = vmatmul.mubr.msk.bf16.gmra.mrb[12].mxu0 %vm921_vm3, %v6736_v27  ;;  %v1465_v55 = vor.u32 %v1464_v30, %v1461_v43  ;;  %v1474_v28 = vrot.slane %v1472_v20, 4  ;;  %v1480_v23 = vrot.slane %v1478_v21, 5  ;;  %v1496_v40 = vshrl.u32 %v1201_v16, 16  ;;  %v3771_v21 = vld [vmem:[#allocation2 + $0x84] sm:$0xe] }
  0xda   : > { %v1485_v41 = vrot.slane %v1483_v32, 4  ;;  %v1488_v47 = vrot.slane %v1486_v33, 5  ;;  %v1494_v6 = vrot.slane %v1492_v34, 5  ;;  %v1502_v7 = vshll.u32 %v1202_v1, 16  ;;  %v1208_v1 = vld [vmem:[#allocation2 + $0xa4] sm:$0x1] }
  0xdb   : > { %v1466_v48 = vrot.slane %v1465_v55, 4  ;;  %v1475_v49 = vor.u32 %v1474_v28, %v1470_v46  ;;  %v1498_v51 = vrot.slane %v1496_v40, 4  ;;  %v6720_v13 = vrot.slane %v3765_v12, 9  ;;  %v3772_v33 = vld [vmem:[#allocation2 + $0x88] sm:$0xf] }
  0xdc   : > { %v1489_v52 = vor.u32 %v1488_v47, %v1485_v41  ;;  %v1504_v53 = vrot.slane %v1502_v7, 5  ;;  %v3895_v54 = vrot.slane %v3766_v22, 5  ;;  %v3898_v35 = vrot.slane %v3767_v39, 5  ;;  %v3775_v7 = vld [vmem:[#allocation2 + $0x94] sm:$0xf] }
  0xdd   : > { %v1471_v57 = vsel %vm8134_vm12, %v1466_v48, %v1470_v46  ;;  %v1476_v58 = vrot.slane %v1475_v49, 4  ;;  %v1499_v59 = vor.u32 %v1498_v51, %v1494_v6  ;;  %v6721_v60 = vrot.slane %v3768_v37, 9 }
  0xde   : > { %v1490_v62 = vrot.slane %v1489_v52, 4  ;;  %v3896_v38 = vsel %vm8451_vm15, %v6720_v13, %v3895_v54  ;;  %v3897_v29 = vrot.slane %v3895_v54, 4  ;;  %v3902_v63 = vrot.slane %v3769_v26, 5  ;;  %v3776_v13 = vld [vmem:[#allocation2 + $0x98] sm:$0x1] }
  0xdf   : > { %v1481_v3 = vsel %vm8134_vm12, %v1476_v58, %v1480_v23  ;;  %v1500_v4 = vrot.slane %v1499_v59, 4  ;;  %v3905_v5 = vrot.slane %v3770_v25, 5  ;;  %v1507_v9 = vshrl.u32 %v1203_v31, 16  ;;  %v3773_v23 = vld [vmem:[#allocation2 + $0x8c] sm:$0x1] }
  0xe0   : > { %v6575_v2 = vcombine.low %v1471_v57, %v1481_v3  ;;  %v1495_v10 = vsel %vm8134_vm12, %v1490_v62, %v1494_v6  ;;  %v3899_v36 = vsel %vm8451_vm15, %v3897_v29, %v3898_v35  ;;  %v3903_v11 = vsel %vm8451_vm15, %v6721_v60, %v3902_v63  ;;  %v3774_v6 = vld [vmem:[#allocation2 + $0x90] sm:$0xe]  ;;  %v1209_v52 = vld [vmem:[#allocation2 + $0xa8] sm:$0xf]  ;;  %v1210_v57 = vld [vmem:[#allocation2 + $0xac] sm:$0xf] }
  0xe1   : > { %v1505_v56 = vsel %vm8134_vm12, %v1500_v4, %v1504_v53  ;;  %v6737_v14 = vcombine.low %v3896_v38, %v3899_v36  ;;  %v3904_v15 = vrot.slane %v3902_v63, 4  ;;  %v1509_v16 = vrot.slane %v1507_v9, 4 }
  0xe2   : > { %7280 = vmatprep.mubr.msk.bf16.mxu1 %vm921_vm3, %v6575_v2  ;;  %v6576_v45 = vcombine.low %v1495_v10, %v1505_v56  ;;  %v1510_v17 = vshll.u32 %v1203_v31, 16  ;;  %v1516_v43 = vshll.u32 %v1204_v61, 16  ;;  %v1520_v19 = vshrl.u32 %v1204_v61, 16 }
  0xe3   : > { %7412 = vmatprep.mubr.msk.bf16.mxu0 %vm921_vm3, %v6737_v14  ;;  %v3906_v12 = vsel %vm8451_vm15, %v3904_v15, %v3905_v5  ;;  %v1526_v27 = vshll.u32 %v1205_v0, 16  ;;  %v1531_v30 = vshrl.u32 %v1206_v24, 16  ;;  %v1534_v20 = vshll.u32 %v1206_v24, 16  ;;  %v1211_v0 = vld [vmem:[#allocation2 + $0xb0] sm:$0x1] }
  0xe4   : > { %7281 = vmatmul.mubr.msk.bf16.gmra.mrb[20].mxu1 %vm921_vm3, %v6576_v45  ;;  %v6738_v22 = vcombine.low %v3903_v11, %v3906_v12  ;;  %v1512_v39 = vrot.slane %v1510_v17, 5  ;;  %v1518_v46 = vrot.slane %v1516_v43, 5  ;;  %v1522_v32 = vrot.slane %v1520_v19, 4  ;;  %v1212_v24 = vld [vmem:[#allocation2 + $0xb4] sm:$0xf] }
  0xe5   : > { %v1528_v34 = vrot.slane %v1526_v27, 5  ;;  %v1533_v37 = vrot.slane %v1531_v30, 4  ;;  %v1536_v55 = vrot.slane %v1534_v20, 5  ;;  %v1540_v28 = vshll.u32 %v1207_v42, 16  ;;  %v1214_v45 = vld [vmem:[#allocation2 + $0xbc] sm:$0x1] }
  0xe6   : > { %7413 = vmatmul.mubr.msk.bf16.gmra.mrb[16].mxu0 %vm921_vm3, %v6738_v22  ;;  %v1513_v40 = vor.u32 %v1512_v39, %v1509_v16  ;;  %v1523_v26 = vor.u32 %v1522_v32, %v1518_v46  ;;  %v1544_v41 = vshrl.u32 %v1207_v42, 16  ;;  %v1550_v47 = vshll.u32 %v1208_v1, 16  ;;  %v1213_v42 = vld [vmem:[#allocation2 + $0xb8] sm:$0xf]  ;;  %v3777_v17 = vld [vmem:[#allocation2 + $0x9c] sm:$0xe] }
  0xe7   : > { %v1537_v25 = vor.u32 %v1536_v55, %v1533_v37  ;;  %v1542_v48 = vrot.slane %v1540_v28, 5  ;;  %v6722_v49 = vrot.slane %v3771_v21, 9  ;;  %v3909_v51 = vrot.slane %v3772_v33, 5  ;;  %v3778_v22 = vld [vmem:[#allocation2 + $0xa0] sm:$0xf] }
  0xe8   : > { %v1514_v53 = vrot.slane %v1513_v40, 4  ;;  %v1524_v54 = vrot.slane %v1523_v26, 4  ;;  %v1546_v35 = vrot.slane %v1544_v41, 4  ;;  %v1552_v31 = vrot.slane %v1550_v47, 5  ;;  %v3779_v39 = vld [vmem:[#allocation2 + $0xa4] sm:$0x1] }
  0xe9   : > { %v1538_v58 = vrot.slane %v1537_v25, 4  ;;  %v3910_v59 = vsel %vm8451_vm15, %v6722_v49, %v3909_v51  ;;  %v3911_v60 = vrot.slane %v3909_v51, 4  ;;  %v3912_v61 = vrot.slane %v3773_v23, 5  ;;  %v3780_v37 = vld [vmem:[#allocation2 + $0xa8] sm:$0xe] }
  0xea   : > { %v1519_v62 = vsel %vm8134_vm12, %v1514_v53, %v1518_v46  ;;  %v1529_v38 = vsel %vm8134_vm12, %v1524_v54, %v1528_v34  ;;  %v1547_v29 = vor.u32 %v1546_v35, %v1542_v48  ;;  %v6723_v63 = vrot.slane %v3774_v6, 9  ;;  %v3781_v26 = vld [vmem:[#allocation2 + $0xac] sm:$0xf]  ;;  %v3782_v25 = vld [vmem:[#allocation2 + $0xb0] sm:$0x1] }
  0xeb   : > { %v6577_v3 = vcombine.low %v1519_v62, %v1529_v38  ;;  %v1543_v4 = vsel %vm8134_vm12, %v1538_v58, %v1542_v48  ;;  %v3913_v5 = vsel %vm8451_vm15, %v3911_v60, %v3912_v61  ;;  %v3916_v9 = vrot.slane %v3775_v7, 5  ;;  %v1961_v61 = vld [vmem:[#allocation2 + $0x4] sm:$0xf]  ;;  %v1962_v62 = vld [vmem:[#allocation2 + $0x8] sm:$0x1] }
  0xec   : > { %v1548_v2 = vrot.slane %v1547_v29, 4  ;;  %v6739_v10 = vcombine.low %v3910_v59, %v3913_v5  ;;  %v3919_v36 = vrot.slane %v3776_v13, 5  ;;  %v1555_v11 = vshrl.u32 %v1209_v52, 16  ;;  %v1965_v5 = vld [vmem:[#allocation2 + $0x14] sm:$0x1] }
  0xed   : > { %7284 = vmatprep.mubr.msk.bf16.mxu1 %vm921_vm3, %v6577_v3  ;;  %v3917_v56 = vsel %vm8451_vm15, %v6723_v63, %v3916_v9  ;;  %v3918_v14 = vrot.slane %v3916_v9, 4  ;;  %v1558_v15 = vshll.u32 %v1209_v52, 16  ;;  %v1564_v16 = vshll.u32 %v1210_v57, 16  ;;  %v1963_v3 = vld [vmem:[#allocation2 + $0xc] sm:$0xe] }
  0xee   : > { %v1553_v43 = vsel %vm8134_vm12, %v1548_v2, %v1552_v31  ;;  %7416 = vmatprep.mubr.msk.bf16.mxu0 %vm921_vm3, %v6739_v10  ;;  %v1557_v19 = vrot.slane %v1555_v11, 4  ;;  %v1568_v1 = vshrl.u32 %v1210_v57, 16  ;;  %v1574_v12 = vshll.u32 %v1211_v0, 16  ;;  %v1960_v31 = vld [vmem:[#allocation2] sm:$0xe] }
  0xef   : > { %v6578_v27 = vcombine.low %v1543_v4, %v1553_v43  ;;  %v3920_v30 = vsel %vm8451_vm15, %v3918_v14, %v3919_v36  ;;  %v1560_v20 = vrot.slane %v1558_v15, 5  ;;  %v1566_v21 = vrot.slane %v1564_v16, 5  ;;  %v1964_v4 = vld [vmem:[#allocation2 + $0x10] sm:$0xf]  ;;  %v3783_v36 = vld [vmem:[#allocation2 + $0xb4] sm:$0xe] }
  0xf0   : > { %v6740_v46 = vcombine.low %v3917_v56, %v3920_v30  ;;  %v1570_v32 = vrot.slane %v1568_v1, 4  ;;  %v1576_v33 = vrot.slane %v1574_v12, 5  ;;  %v1579_v34 = vshrl.u32 %v1212_v24, 16  ;;  %v3784_v11 = vld [vmem:[#allocation2 + $0xb8] sm:$0xf] }
  0xf1   : > { %7285 = vmatmul.mubr.msk.bf16.gmra.mrb[24].mxu1 %vm921_vm3, %v6578_v27  ;;  %v1561_v55 = vor.u32 %v1560_v20, %v1557_v19  ;;  %v1582_v28 = vshll.u32 %v1212_v24, 16  ;;  %v1588_v23 = vshll.u32 %v1213_v42, 16  ;;  %v1592_v40 = vshrl.u32 %v1213_v42, 16  ;;  %v8607_v42 = vld [vmem:[%s9090_s1 + $0x6] sm:$0x3] }
  0xf2   : > { %7417 = vmatmul.mubr.msk.bf16.gmra.mrb[20].mxu0 %vm921_vm3, %v6740_v46  ;;  %v1571_v41 = vor.u32 %v1570_v32, %v1566_v21  ;;  %v1581_v47 = vrot.slane %v1579_v34, 4  ;;  %v1598_v6 = vshll.u32 %v1214_v45, 16  ;;  %v6724_v7 = vrot.slane %v3777_v17, 9  ;;  %v3785_v45 = vld [vmem:[#allocation2 + $0xbc] sm:$0x1] }
  0xf3   : > { %v1562_v48 = vrot.slane %v1561_v55, 4  ;;  %v1584_v49 = vrot.slane %v1582_v28, 5  ;;  %v1590_v51 = vrot.slane %v1588_v23, 5  ;;  %v1594_v13 = vrot.slane %v1592_v40, 4  ;;  %v3786_v17 = vld [vmem:[#allocation2 + $0xc0] sm:$0xe] }
  0xf4   : > { %v1572_v52 = vrot.slane %v1571_v41, 4  ;;  %v1600_v53 = vrot.slane %v1598_v6, 5  ;;  %v3923_v54 = vrot.slane %v3778_v22, 5  ;;  %v3926_v35 = vrot.slane %v3779_v39, 5  ;;  %v3787_v27 = vld [vmem:[#allocation2 + $0xc4] sm:$0xf] }
  0xf5   : > { %v1567_v57 = vsel %vm8134_vm12, %v1562_v48, %v1566_v21  ;;  %v1585_v58 = vor.u32 %v1584_v49, %v1581_v47  ;;  %v1595_v59 = vor.u32 %v1594_v13, %v1590_v51  ;;  %v6725_v60 = vrot.slane %v3780_v37, 9  ;;  %v3788_v22 = vld [vmem:[#allocation2 + $0xc8] sm:$0x1]  ;;  %v1966_v34 = vld [vmem:[#allocation2 + $0x18] sm:$0xe] }
  0xf6   : > { %v1577_v38 = vsel %vm8134_vm12, %v1572_v52, %v1576_v33  ;;  %v3924_v29 = vsel %vm8451_vm15, %v6724_v7, %v3923_v54  ;;  %v3925_v63 = vrot.slane %v3923_v54, 4  ;;  %v3930_v0 = vrot.slane %v3781_v26, 5  ;;  %v1967_v40 = vld [vmem:[#allocation2 + $0x1c] sm:$0xf]  ;;  %v1968_v26 = vld [vmem:[#allocation2 + $0x20] sm:$0x1] }
  0xf7   : > { %v6579_v9 = vcombine.low %v1567_v57, %v1577_v38  ;;  %v1586_v24 = vrot.slane %v1585_v58, 4  ;;  %v1596_v2 = vrot.slane %v1595_v59, 4  ;;  %v3933_v10 = vrot.slane %v3782_v25, 5  ;;  %v1969_v41 = vld [vmem:[#allocation2 + $0x24] sm:$0xe] }
  0xf8   : > { %v3927_v56 = vsel %vm8451_vm15, %v3925_v63, %v3926_v35  ;;  %v3931_v14 = vsel %vm8451_vm15, %v6725_v60, %v3930_v0  ;;  %v3932_v15 = vrot.slane %v3930_v0, 4  ;;  %v2270_v16 = vsel %vm970_vm0, %v8469_v44, 0  ;;  %v1970_v48 = vld [vmem:[#allocation2 + $0x28] sm:$0xf]  ;;  %v1972_v54 = vld [vmem:[#allocation2 + $0x30] sm:$0xe] }
  0xf9   : > { %7288 = vmatprep.mubr.msk.bf16.mxu1 %vm921_vm3, %v6579_v9  ;;  %v1591_v43 = vsel %vm8134_vm12, %v1586_v24, %v1590_v51  ;;  %v1601_v19 = vsel %vm8134_vm12, %v1596_v2, %v1600_v53  ;;  %v6741_v1 = vcombine.low %v3924_v29, %v3927_v56  ;;  %7293 = vmatpush3.bf16.msra.mxu1 %v2270_v16  ;;  %v6597_v12 = vrot.slane %v1960_v31, 9  ;;  %v1971_v53 = vld [vmem:[#allocation2 + $0x2c] sm:$0x1]  ;;  %v1973_v59 = vld [vmem:[#allocation2 + $0x34] sm:$0xf]  ;;  %v7886_v2 = vld [vmem:[#allocation2 + $0x18] sm:$0xff]  }
  0xfa   : > { %v6580_v30 = vcombine.low %v1591_v43, %v1601_v19  ;;  %v3934_v20 = vsel %vm8451_vm15, %v3932_v15, %v3933_v10  ;;  %v2061_v21 = vrot.slane %v1961_v61, 5  ;;  %v2064_v44 = vrot.slane %v1962_v62, 5  ;;  %7853 = vmatprep.subr.msk.bf16.mxu1 %vm970_vm0, %v8607_v42  ;;  %v1974_v60 = vld [vmem:[#allocation2 + $0x38] sm:$0x1]  ;;  %v1976_v10 = vld [vmem:[#allocation2 + $0x40] sm:$0xf] }
  0xfb   : > { %7420 = vmatprep.mubr.msk.bf16.mxu0 %vm921_vm3, %v6741_v1  ;;  %v6742_v39 = vcombine.low %v3931_v14, %v3934_v20  ;;  %v6598_v46 = vrot.slane %v1963_v3, 9  ;;  %v2068_v32 = vrot.slane %v1964_v4, 5  ;;  %v2071_v33 = vrot.slane %v1965_v5, 5  ;;  %v1977_v1 = vld [vmem:[#allocation2 + $0x44] sm:$0x1] }
  0xfc   : > { %7289 = vmatmul.mubr.msk.bf16.gmra.mrb[28].mxu1 %vm921_vm3, %v6580_v30  ;;  %v2062_v37 = vsel %vm8451_vm15, %v6597_v12, %v2061_v21  ;;  %v2063_v55 = vrot.slane %v2061_v21, 4  ;;  %v6726_v28 = vrot.slane %v3783_v36, 9  ;;  %v3937_v23 = vrot.slane %v3784_v11, 5 }
  0xfd   : > { %7421 = vmatmul.mubr.msk.bf16.gmra.mrb[24].mxu0 %vm921_vm3, %v6742_v39  ;;  %v2069_v47 = vsel %vm8451_vm15, %v6598_v46, %v2068_v32  ;;  %v2070_v6 = vrot.slane %v2068_v32, 4  ;;  %v3940_v7 = vrot.slane %v3785_v45, 5  ;;  %v6727_v25 = vrot.slane %v3786_v17, 9  ;;  %v1975_v17 = vld [vmem:[#allocation2 + $0x3c] sm:$0xe] }
  0xfe   : > { %v2065_v49 = vsel %vm8451_vm15, %v2063_v55, %v2064_v44  ;;  %v3938_v51 = vsel %vm8451_vm15, %v6726_v28, %v3937_v23  ;;  %v3939_v13 = vrot.slane %v3937_v23, 4  ;;  %v3944_v52 = vrot.slane %v3787_v27, 5  ;;  %v1979_v27 = vld [vmem:[#allocation2 + $0x4c] sm:$0xf]  ;;  %v1980_v39 = vld [vmem:[#allocation2 + $0x50] sm:$0x1] }
  0xff   : > { %v6614_v35 = vcombine.low %v2062_v37, %v2065_v49  ;;  %v2072_v31 = vsel %vm8451_vm15, %v2070_v6, %v2071_v33  ;;  %v3947_v57 = vrot.slane %v3788_v22, 5  ;;  %v6599_v58 = vrot.slane %v1966_v34, 9  ;;  %v1978_v22 = vld [vmem:[#allocation2 + $0x48] sm:$0xe]  ;;  %v1982_v6 = vld [vmem:[#allocation2 + $0x58] sm:$0xf] }
 0x100   : > { %v6615_v61 = vcombine.low %v2069_v47, %v2072_v31  ;;  %v3941_v62 = vsel %vm8451_vm15, %v3939_v13, %v3940_v7  ;;  %v3945_v38 = vsel %vm8451_vm15, %v6727_v25, %v3944_v52  ;;  %v3946_v29 = vrot.slane %v3944_v52, 4  ;;  %v7887_v34 = vld [vmem:[#allocation2 + $0x24] sm:$0xff]   ;;  %v1983_v49 = vld [vmem:[#allocation2 + $0x5c] sm:$0x1]  ;;  %v1984_v31 = vld [vmem:[#allocation2 + $0x60] sm:$0xe] }
 0x101   : > { %7294 = vmatprep.mubr.msk.bf16.mxu1 %vm921_vm3, %v6614_v35  ;;  %v6743_v63 = vcombine.low %v3938_v51, %v3941_v62  ;;  %v2075_v0 = vrot.slane %v1967_v40, 5  ;;  %v2078_v3 = vrot.slane %v1968_v26, 5  ;;  %v6600_v4 = vrot.slane %v1969_v41, 9  ;;  %v7888_v40 = vld [vmem:[#allocation2 + $0x30] sm:$0xff]   ;;  %v1985_v25 = vld [vmem:[#allocation2 + $0x64] sm:$0xf] }
 0x102   : > { %v3948_v5 = vsel %vm8451_vm15, %v3946_v29, %v3947_v57  ;;  %v2082_v9 = vrot.slane %v1970_v48, 5  ;;  %v2085_v24 = vrot.slane %v1971_v53, 5  ;;  %v6601_v14 = vrot.slane %v1972_v54, 9  ;;  %v1981_v48 = vld [vmem:[#allocation2 + $0x54] sm:$0xe]  ;;  %v7890_v29 = vld [vmem:[#allocation2 + $0x48] sm:$0xff]  }
 0x103   : > { %7424 = vmatprep.mubr.msk.bf16.mxu0 %vm921_vm3, %v6743_v63  ;;  %v6744_v36 = vcombine.low %v3945_v38, %v3948_v5  ;;  %v2076_v11 = vsel %vm8451_vm15, %v6599_v58, %v2075_v0  ;;  %v2077_v56 = vrot.slane %v2075_v0, 4  ;;  %v2089_v16 = vrot.slane %v1973_v59, 5  ;;  %v8667_v51 = vld [vmem:[%s9090_s1 + $0x10] sm:$0x3]  ;;  %v1986_v57 = vld [vmem:[#allocation2 + $0x68] sm:$0x1] }
 0x104   : > { %7295 = vmatmul.mubr.msk.bf16.vlgmr.msra.gmra.mrb[0].mxu1 %vm921_vm3, %v6615_v61  ;;  %v2084_v15 = vrot.slane %v2082_v9, 4  ;;  %v2092_v45 = vrot.slane %v1974_v60, 5  ;;  %v2083_v19 = vsel %vm8451_vm15, %v6600_v4, %v2082_v9  ;;  %v2096_v12 = vrot.slane %v1976_v10, 5  ;;  %v7889_v59 = vld [vmem:[#allocation2 + $0x3c] sm:$0xff]   ;;  %v1988_v4 = vld [vmem:[#allocation2 + $0x70] sm:$0xf] }
 0x105   : > { %7425 = vmatmul.mubr.msk.bf16.gmra.mrb[28].mxu0 %vm921_vm3, %v6744_v36  ;;  %v2079_v43 = vsel %vm8451_vm15, %v2077_v56, %v2078_v3  ;;  %v2090_v21 = vsel %vm8451_vm15, %v6601_v14, %v2089_v16  ;;  %v2091_v44 = vrot.slane %v2089_v16, 4  ;;  %v2103_v33 = vrot.slane %v1979_v27, 5  ;;  %v1991_v5 = vld [vmem:[#allocation2 + $0x7c] sm:$0xf]  ;;  %v1989_v56 = vld [vmem:[#allocation2 + $0x74] sm:$0x1] }
 0x106   : > { %v6616_v30 = vcombine.low %v2076_v11, %v2079_v43  ;;  %v2086_v20 = vsel %vm8451_vm15, %v2084_v15, %v2085_v24  ;;  %7430 = vmatprep.mubr.msk.bf16.mxu0 %vm921_vm3, %v7886_v2  ;;  %v6602_v55 = vrot.slane %v1975_v17, 9  ;;  %v2098_v28 = vrot.slane %v2096_v12, 4  ;;  %v1987_v11 = vld [vmem:[#allocation2 + $0x6c] sm:$0xe]  ;;  %v1990_v15 = vld [vmem:[#allocation2 + $0x78] sm:$0xe] }
 0x107   : > { %v6617_v46 = vcombine.low %v2083_v19, %v2086_v20  ;;  %v2093_v32 = vsel %vm8451_vm15, %v2091_v44, %v2092_v45  ;;  %v2099_v23 = vrot.slane %v1977_v1, 5  ;;  %v6603_v26 = vrot.slane %v1978_v22, 9  ;;  %v1992_v16 = vld [vmem:[#allocation2 + $0x80] sm:$0x1]  ;;  %v1994_v17 = vld [vmem:[#allocation2 + $0x88] sm:$0xf] }
 0x108   : > { %7298 = vmatprep.mubr.msk.bf16.mxu1 %vm921_vm3, %v6616_v30  ;;  %v6618_v37 = vcombine.low %v2090_v21, %v2093_v32  ;;  %v2105_v41 = vrot.slane %v2103_v33, 4  ;;  %v2106_v47 = vrot.slane %v1980_v39, 5  ;;  %v5261_v7 = vsel %vm970_vm0, %v8510_v50, 0  ;;  %v7891_v19 = vld [vmem:[#allocation2 + $0x54] sm:$0xff]   ;;  %v7892_v20 = vld [vmem:[#allocation2 + $0x60] sm:$0xff]  }
 0x109   : > { %v2097_v13 = vsel %vm8451_vm15, %v6602_v55, %v2096_v12  ;;  %v2100_v50 = vsel %vm8451_vm15, %v2098_v28, %v2099_v23  ;;  %v2110_v52 = vrot.slane %v1982_v6, 5  ;;  %v2104_v53 = vsel %vm8451_vm15, %v6603_v26, %v2103_v33  ;;  %v1997_v39 = vld [vmem:[#allocation2 + $0x94] sm:$0xf]  ;;  %v1995_v55 = vld [vmem:[#allocation2 + $0x8c] sm:$0x1] }
 0x10a   : > { %v2107_v54 = vsel %vm8451_vm15, %v2105_v41, %v2106_v47  ;;  %v2117_v35 = vrot.slane %v1985_v25, 5  ;;  %v6619_v58 = vcombine.low %v2097_v13, %v2100_v50  ;;  %v6604_v61 = vrot.slane %v1981_v48, 9  ;;  %v1996_v23 = vld [vmem:[#allocation2 + $0x90] sm:$0xe]  ;;  %v2000_v26 = vld [vmem:[#allocation2 + $0xa0] sm:$0xf] }
 0x10b   : > { %v6620_v60 = vcombine.low %v2104_v53, %v2107_v54  ;;  %v2112_v62 = vrot.slane %v2110_v52, 4  ;;  %v2113_v38 = vrot.slane %v1983_v49, 5  ;;  %v6605_v63 = vrot.slane %v1984_v31, 9  ;;  %v7893_v47 = vld [vmem:[#allocation2 + $0x6c] sm:$0xff]   ;;  %v7894_v13 = vld [vmem:[#allocation2 + $0x78] sm:$0xff]  }
 0x10c   : > { %7299 = vmatmul.mubr.msk.bf16.gmra.mrb[4].mxu1 %vm921_vm3, %v6617_v46  ;;  %v2119_v0 = vrot.slane %v2117_v35, 4  ;;  %v2120_v3 = vrot.slane %v1986_v57, 5  ;;  %v2111_v9 = vsel %vm8451_vm15, %v6604_v61, %v2110_v52  ;;  %v2124_v2 = vrot.slane %v1988_v4, 5  ;;  %v2003_v6 = vld [vmem:[#allocation2 + $0xac] sm:$0xf] }
 0x10d   : > { %7431 = vmatmul.mubr.msk.bf16.vlgmr.msra.gmra.mrb[0].mxu0 %vm921_vm3, %v7887_v34  ;;  %7302 = vmatprep.mubr.msk.bf16.mxu1 %vm921_vm3, %v6618_v37  ;;  %v2114_v24 = vsel %vm8451_vm15, %v2112_v62, %v2113_v38  ;;  %v2118_v10 = vsel %vm8451_vm15, %v6605_v63, %v2117_v35  ;;  %v2131_v14 = vrot.slane %v1991_v5, 5  ;;  %v2692_v43 = vsel %vm970_vm0, %v8607_v42, 0  ;;  %v1993_v37 = vld [vmem:[#allocation2 + $0x84] sm:$0xe]  ;;  %v1999_v50 = vld [vmem:[#allocation2 + $0x9c] sm:$0xe] }
 0x10e   : > { %7463 = vmatpush3.bf16.msra.mxu0 %v5261_v7  ;;  %7434 = vmatprep.mubr.msk.bf16.mxu0 %vm921_vm3, %v7888_v40  ;;  %v2121_v36 = vsel %vm8451_vm15, %v2119_v0, %v2120_v3  ;;  %v6621_v45 = vcombine.low %v2111_v9, %v2114_v24  ;;  %v6606_v12 = vrot.slane %v1987_v11, 9  ;;  %v2126_v27 = vrot.slane %v2124_v2, 4  ;;  %v1998_v40 = vld [vmem:[#allocation2 + $0x98] sm:$0x1]  ;;  %v2001_v35 = vld [vmem:[#allocation2 + $0xa4] sm:$0x1] }
 0x10f   : > { %7858 = vmatprep.subr.msk.bf16.mxu0 %vm970_vm0, %v8667_v51  ;;  %v6622_v1 = vcombine.low %v2118_v10, %v2121_v36  ;;  %v2127_v30 = vrot.slane %v1989_v56, 5  ;;  %7327 = vmatpush3.bf16.msra.mxu1 %v2692_v43  ;;  %v6607_v21 = vrot.slane %v1990_v15, 9  ;;  %v2133_v44 = vrot.slane %v2131_v14, 4  ;;  %v2002_v57 = vld [vmem:[#allocation2 + $0xa8] sm:$0xe] }
 0x110   : > { %v2134_v22 = vrot.slane %v1992_v16, 5  ;;  %v2125_v42 = vsel %vm8451_vm15, %v6606_v12, %v2124_v2  ;;  %v2138_v32 = vrot.slane %v1994_v17, 5  ;;  %v2145_v28 = vrot.slane %v1997_v39, 5  ;;  %v2005_v4 = vld [vmem:[#allocation2 + $0xb4] sm:$0xe]  ;;  %v7895_v11 = vld [vmem:[#allocation2 + $0x84] sm:$0xff]  }
 0x111   : > { %v2128_v46 = vsel %vm8451_vm15, %v2126_v27, %v2127_v30  ;;  %v2132_v33 = vsel %vm8451_vm15, %v6607_v21, %v2131_v14  ;;  %v6608_v25 = vrot.slane %v1993_v37, 9  ;;  %v2141_v49 = vrot.slane %v1995_v55, 5  ;;  %v2006_v24 = vld [vmem:[#allocation2 + $0xb8] sm:$0xf]  ;;  %v4731_v36 = vld [vmem:[#allocation2 + $0x1c] sm:$0xf] }
 0x112   : > { %v2135_v34 = vsel %vm8451_vm15, %v2133_v44, %v2134_v22  ;;  %v6623_v41 = vcombine.low %v2125_v42, %v2128_v46  ;;  %v2140_v48 = vrot.slane %v2138_v32, 4  ;;  %v6609_v52 = vrot.slane %v1996_v23, 9  ;;  %v4730_v2 = vld [vmem:[#allocation2 + $0x18] sm:$0xf]  ;;  %v2007_v43 = vld [vmem:[#allocation2 + $0xbc] sm:$0x1] }
 0x113   : > { %v6624_v7 = vcombine.low %v2132_v33, %v2135_v34  ;;  %v2147_v53 = vrot.slane %v2145_v28, 4  ;;  %v2148_v54 = vrot.slane %v1998_v40, 5  ;;  %v2152_v31 = vrot.slane %v2000_v26, 5  ;;  %v4732_v44 = vld [vmem:[#allocation2 + $0x20] sm:$0x1] }
 0x114   : > { %7303 = vmatmul.mubr.msk.bf16.gmra.mrb[8].mxu1 %vm921_vm3, %v6619_v58  ;;  %v2159_v58 = vrot.slane %v2003_v6, 5  ;;  %v2142_v61 = vsel %vm8451_vm15, %v2140_v48, %v2141_v49  ;;  %v6610_v62 = vrot.slane %v1999_v50, 9  ;;  %v2155_v38 = vrot.slane %v2001_v35, 5  ;;  %v4733_v22 = vld [vmem:[#allocation2 + $0x24] sm:$0xf]  ;;  %v7897_v48 = vld [vmem:[#allocation2 + $0x9c] sm:$0xff]  }
 0x115   : > { %7435 = vmatmul.mubr.msk.bf16.gmra.mrb[4].mxu0 %vm921_vm3, %v7889_v59  ;;  %7306 = vmatprep.mubr.msk.bf16.mxu1 %vm921_vm3, %v6620_v60  ;;  %v2004_v59 = vld [vmem:[#allocation2 + $0xb0] sm:$0x1]  ;;  %v2139_v60 = vsel %vm8451_vm15, %v6608_v25, %v2138_v32  ;;  %v2149_v63 = vsel %vm8451_vm15, %v2147_v53, %v2148_v54  ;;  %v2154_v0 = vrot.slane %v2152_v31, 4  ;;  %v6611_v3 = vrot.slane %v2002_v57, 9  ;;  %v4734_v39 = vld [vmem:[#allocation2 + $0x28] sm:$0xf] }
 0x116   : > { %7438 = vmatprep.mubr.msk.bf16.mxu0 %vm921_vm3, %v7890_v29  ;;  %v2146_v29 = vsel %vm8451_vm15, %v6609_v52, %v2145_v28  ;;  %v2161_v5 = vrot.slane %v2159_v58, 4  ;;  %v2162_v9 = vrot.slane %v2004_v59, 5  ;;  %v6625_v10 = vcombine.low %v2139_v60, %v2142_v61  ;;  %v4736_v34 = vld [vmem:[#allocation2 + $0x30] sm:$0xf]  ;;  %v4737_v37 = vld [vmem:[#allocation2 + $0x34] sm:$0xf] }
 0x117   : > { %v6626_v56 = vcombine.low %v2146_v29, %v2149_v63  ;;  %v2153_v14 = vsel %vm8451_vm15, %v6610_v62, %v2152_v31  ;;  %v6612_v15 = vrot.slane %v2005_v4, 9  ;;  %v2156_v16 = vsel %vm8451_vm15, %v2154_v0, %v2155_v38  ;;  %v4739_v26 = vld [vmem:[#allocation2 + $0x3c] sm:$0xf]  ;;  %v4740_v25 = vld [vmem:[#allocation2 + $0x40] sm:$0xf]  ;;  %v7898_v54 = vld [vmem:[#allocation2 + $0xa8] sm:$0xff]  }
 0x118   : > { %v2160_v17 = vsel %vm8451_vm15, %v6611_v3, %v2159_v58  ;;  %v2163_v12 = vsel %vm8451_vm15, %v2161_v5, %v2162_v9  ;;  %v4782_v27 = vshll.u32 %v4730_v2, 16  ;;  %v4788_v30 = vshll.u32 %v4731_v36, 16  ;;  %v4735_v62 = vld [vmem:[#allocation2 + $0x2c] sm:$0x1] }
 0x119   : > { %v2169_v21 = vrot.slane %v2007_v43, 5  ;;  %v6627_v42 = vcombine.low %v2153_v14, %v2156_v16  ;;  %v6628_v46 = vcombine.low %v2160_v17, %v2163_v12  ;;  %v4812_v6 = vshll.u32 %v4734_v39, 16  ;;  %v4742_v16 = vld [vmem:[#allocation2 + $0x48] sm:$0xf]  ;;  %v7900_v12 = vld [vmem:[#allocation2 + $0xc] sm:$0xff]  }
 0x11a   : > { %v4784_v28 = vrot.slane %v4782_v27, 5  ;;  %v8736_v23 = vrot.slane %v4788_v30, 5  ;;  %v4827_v49 = vshrl.u32 %v4736_v34, 16  ;;  %v4836_v50 = vshll.u32 %v4737_v37, 16 }
 0x11b   : > { %v4840_v52 = vshrl.u32 %v4737_v37, 16  ;;  %v4798_v35 = vshll.u32 %v4732_v44, 16  ;;  %v4851_v31 = vshrl.u32 %v4739_v26, 16  ;;  %v4854_v57 = vshll.u32 %v4739_v26, 16  ;;  %v4743_v44 = vld [vmem:[#allocation2 + $0x4c] sm:$0xf] }
 0x11c   : > { %7307 = vmatmul.mubr.msk.bf16.gmra.mrb[12].mxu1 %vm921_vm3, %v6621_v45  ;;  %v7896_v45 = vld [vmem:[#allocation2 + $0x90] sm:$0xff]   ;;  %v4860_v60 = vshll.u32 %v4740_v25, 16  ;;  %v4864_v61 = vshrl.u32 %v4740_v25, 16  ;;  %v8742_v63 = vrot.slane %v4812_v6, 5  ;;  %v4829_v3 = vrot.slane %v4827_v49, 4 }
 0x11d   : > { %7439 = vmatmul.mubr.msk.bf16.gmra.mrb[8].mxu0 %vm921_vm3, %v7891_v19  ;;  %7310 = vmatprep.mubr.msk.bf16.mxu1 %vm921_vm3, %v6622_v1  ;;  %v2166_v19 = vrot.slane %v2006_v24, 5  ;;  %v4779_v1 = vshrl.u32 %v4730_v2, 16  ;;  %v8746_v5 = vrot.slane %v4836_v50, 5  ;;  %v4842_v9 = vrot.slane %v4840_v52, 4  ;;  %v4738_v24 = vld [vmem:[#allocation2 + $0x38] sm:$0x1] }
 0x11e   : > { %7442 = vmatprep.mubr.msk.bf16.mxu0 %vm921_vm3, %v7892_v20  ;;  %v4792_v20 = vshrl.u32 %v4731_v36, 16  ;;  %v4741_v2 = vld [vmem:[#allocation2 + $0x44] sm:$0x1]  ;;  %v4856_v36 = vrot.slane %v4854_v57, 5  ;;  %v8749_v14 = vrot.slane %v4860_v60, 5  ;;  %v4800_v43 = vrot.slane %v4798_v35, 5 }
 0x11f   : > { %v8734_v32 = vsel %vm8451_vm15, %v6612_v15, %v2166_v19  ;;  %v2168_v33 = vrot.slane %v2166_v19, 4  ;;  %v4781_v55 = vrot.slane %v4779_v1, 4  ;;  %v4866_v15 = vrot.slane %v4864_v61, 4  ;;  %v7899_v1 = vld [vmem:[#allocation2 + $0xb4] sm:$0xff]   ;;  %v7903_v61 = vld [vmem:[#allocation2 + $0xcc] sm:$0xff]  }
 0x120   : > { %v4794_v40 = vrot.slane %v4792_v20, 4  ;;  %v4843_v20 = vor.u32 %v4842_v9, %v8746_v5  ;;  %v4884_v26 = vshll.u32 %v4743_v44, 16  ;;  %v7901_v57 = vld [vmem:[#allocation2 + $0x18] sm:$0xff]  }
 0x121   : > { %v2170_v53 = vsel %vm8451_vm15, %v2168_v33, %v2169_v21  ;;  %v4785_v58 = vor.u32 %v4784_v28, %v4781_v55  ;;  %v4846_v21 = vshll.u32 %v4738_v24, 16  ;;  %v4878_v33 = vshll.u32 %v4742_v16, 16  ;;  %v4745_v55 = vld [vmem:[#allocation2 + $0x54] sm:$0xf] }
 0x122   : > { %v4795_v59 = vor.u32 %v4794_v40, %v8736_v23  ;;  %v4867_v37 = vor.u32 %v4866_v15, %v8749_v14  ;;  %v4902_v35 = vshll.u32 %v4745_v55, 16  ;;  %v4749_v15 = vld [vmem:[#allocation2 + $0x64] sm:$0xf] }
 0x123   : > { %v4848_v25 = vrot.slane %v4846_v21, 5  ;;  %v4880_v50 = vrot.slane %v4878_v33, 5  ;;  %v4752_v21 = vld [vmem:[#allocation2 + $0x70] sm:$0xf]  ;;  %v4754_v33 = vld [vmem:[#allocation2 + $0x78] sm:$0xf] }
 0x124   : > { %7311 = vmatmul.mubr.msk.bf16.gmra.mrb[16].mxu1 %vm921_vm3, %v6623_v41  ;;  %v4803_v41 = vshrl.u32 %v4733_v22, 16  ;;  %v4796_v17 = vrot.slane %v4795_v59, 4  ;;  %v4868_v52 = vrot.slane %v4867_v37, 4 }
 0x125   : > { %7443 = vmatmul.mubr.msk.bf16.gmra.mrb[12].mxu0 %vm921_vm3, %v7893_v47  ;;  %7314 = vmatprep.mubr.msk.bf16.mxu1 %vm921_vm3, %v6624_v7  ;;  %v4806_v47 = vshll.u32 %v4733_v22, 16  ;;  %v4816_v7 = vshrl.u32 %v4734_v39, 16  ;;  %v7902_v22 = vld [vmem:[#allocation2 + $0xc0] sm:$0xff]  }
 0x126   : > { %7446 = vmatprep.mubr.msk.bf16.mxu0 %vm921_vm3, %v7894_v13  ;;  %v4830_v13 = vshll.u32 %v4736_v34, 16  ;;  %v4805_v38 = vrot.slane %v4803_v41, 4  ;;  %v4801_v28 = vsel %vm8134_vm12, %v4796_v17, %v4800_v43  ;;  %v4888_v41 = vshrl.u32 %v4743_v44, 16  ;;  %v7905_v44 = vld [vmem:[#allocation2 + $0x30] sm:$0xff]  }
 0x127   : > { %v4808_v29 = vrot.slane %v4806_v47, 5  ;;  %v4818_v0 = vrot.slane %v4816_v7, 4  ;;  %v4746_v47 = vld [vmem:[#allocation2 + $0x58] sm:$0xf] }
 0x128   : > { %v4832_v4 = vrot.slane %v4830_v13, 5  ;;  %v4890_v59 = vrot.slane %v4888_v41, 4  ;;  %v4912_v60 = vshrl.u32 %v4746_v47, 16 }
 0x129   : > { %v4809_v19 = vor.u32 %v4808_v29, %v4805_v38  ;;  %v4819_v27 = vor.u32 %v4818_v0, %v8742_v63 }
 0x12a   : > { %v4833_v30 = vor.u32 %v4832_v4, %v4829_v3  ;;  %v4748_v4 = vld [vmem:[#allocation2 + $0x60] sm:$0xf] }
 0x12b   : > { %v4810_v40 = vrot.slane %v4809_v19, 4  ;;  %v4820_v6 = vrot.slane %v4819_v27, 4  ;;  %v4923_v17 = vshrl.u32 %v4748_v4, 16  ;;  %v4926_v43 = vshll.u32 %v4748_v4, 16 }
 0x12c   : > { %7315 = vmatmul.mubr.msk.bf16.gmra.mrb[20].mxu1 %vm921_vm3, %v6625_v10  ;;  %v4853_v10 = vrot.slane %v4851_v31, 4  ;;  %v4834_v7 = vrot.slane %v4833_v30, 4  ;;  %v4908_v31 = vshll.u32 %v4746_v47, 16  ;;  %v5827_v19 = vsel %vm970_vm0, %v8667_v51, 0 }
 0x12d   : > { %7447 = vmatmul.mubr.msk.bf16.gmra.mrb[16].mxu0 %vm921_vm3, %v7895_v11  ;;  %7318 = vmatprep.mubr.msk.bf16.mxu1 %vm921_vm3, %v6626_v56  ;;  %v4786_v11 = vrot.slane %v4785_v58, 4  ;;  %v4822_v56 = vshll.u32 %v4735_v62, 16  ;;  %v8764_v58 = vrot.slane %v4884_v26, 5  ;;  %v7904_v62 = vld [vmem:[#allocation2 + $0x24] sm:$0xff]   ;;  %v4815_v29 = vsel %vm8134_vm12, %v4810_v40, %v8742_v63 }
 0x12e   : > { %7450 = vmatprep.mubr.msk.bf16.mxu0 %vm921_vm3, %v7896_v45  ;;  %v6629_v45 = vcombine.low %v8734_v32, %v2170_v53  ;;  %v4857_v39 = vor.u32 %v4856_v36, %v4853_v10  ;;  %v4744_v53 = vld [vmem:[#allocation2 + $0x50] sm:$0x1]  ;;  %v4839_v3 = vsel %vm8134_vm12, %v4834_v7, %v8746_v5  ;;  %v4932_v30 = vshll.u32 %v4749_v15, 16  ;;  %v4750_v40 = vld [vmem:[#allocation2 + $0x68] sm:$0x1] }
 0x12f   : > { %v4791_v32 = vsel %vm8134_vm12, %v4786_v11, %v8736_v23  ;;  %v4824_v34 = vrot.slane %v4822_v56, 5  ;;  %v4844_v23 = vrot.slane %v4843_v20, 4  ;;  %v4894_v10 = vshll.u32 %v4744_v53, 16 }
 0x130   : > { %v6795_v38 = vcombine.low %v4791_v32, %v4801_v28  ;;  %v4904_v11 = vrot.slane %v4902_v35, 5  ;;  %v8781_v56 = vrot.slane %v4908_v31, 5  ;;  %v4891_v5 = vor.u32 %v4890_v59, %v8764_v58  ;;  %v7906_v32 = vld [vmem:[#allocation2 + $0x3c] sm:$0xff]  }
 0x131   : > { %v4825_v0 = vsel %vm8134_vm12, %v4820_v6, %v4824_v34  ;;  %v4849_v9 = vsel %vm8134_vm12, %v4844_v23, %v4848_v25  ;;  %v4896_v27 = vrot.slane %v4894_v10, 5  ;;  %v4936_v20 = vshrl.u32 %v4749_v15, 16  ;;  %v4755_v28 = vld [vmem:[#allocation2 + $0x7c] sm:$0xf] }
 0x132   : > { %v4892_v34 = vrot.slane %v4891_v5, 4  ;;  %v4925_v51 = vrot.slane %v4923_v17, 4  ;;  %v4956_v47 = vshll.u32 %v4752_v21, 16  ;;  %v4960_v6 = vshrl.u32 %v4752_v21, 16 }
 0x133   : > { %v8793_v7 = vrot.slane %v4932_v30, 5  ;;  %v4938_v23 = vrot.slane %v4936_v20, 4  ;;  %v4971_v25 = vshrl.u32 %v4754_v33, 16  ;;  %v4942_v31 = vshll.u32 %v4750_v40, 16 }
 0x134   : > { %7319 = vmatmul.mubr.msk.bf16.gmra.mrb[24].mxu1 %vm921_vm3, %v6627_v42  ;;  %v4870_v42 = vshll.u32 %v4741_v2, 16  ;;  %v4897_v53 = vsel %vm8134_vm12, %v4892_v34, %v4896_v27 }
 0x135   : > { %7451 = vmatmul.mubr.msk.bf16.gmra.mrb[20].mxu0 %vm921_vm3, %v7897_v48  ;;  %7322 = vmatprep.mubr.msk.bf16.mxu1 %vm921_vm3, %v6628_v46  ;;  %v4875_v46 = vshrl.u32 %v4742_v16, 16  ;;  %v4858_v48 = vrot.slane %v4857_v39, 4  ;;  %v4747_v16 = vld [vmem:[#allocation2 + $0x5c] sm:$0x1]  ;;  %v4944_v30 = vrot.slane %v4942_v31, 5 }
 0x136   : > { %7454 = vmatprep.mubr.msk.bf16.mxu0 %vm921_vm3, %v7898_v54  ;;  %v4872_v49 = vrot.slane %v4870_v42, 5  ;;  %v4899_v54 = vshrl.u32 %v4745_v55, 16  ;;  %v4928_v55 = vrot.slane %v4926_v43, 5 }
 0x137   : > { %v4877_v13 = vrot.slane %v4875_v46, 4  ;;  %v4863_v24 = vsel %vm8134_vm12, %v4858_v48, %v8749_v14  ;;  %v6796_v14 = vcombine.low %v4815_v29, %v4825_v0  ;;  %v4918_v46 = vshll.u32 %v4747_v16, 16  ;;  %v4753_v0 = vld [vmem:[#allocation2 + $0x74] sm:$0x1] }
 0x138   : > { %v4873_v63 = vsel %vm8134_vm12, %v4868_v52, %v4872_v49  ;;  %v4901_v36 = vrot.slane %v4899_v54, 4  ;;  %v4974_v48 = vshll.u32 %v4754_v33, 16  ;;  %v4984_v52 = vshrl.u32 %v4755_v28, 16 }
 0x139   : > { %v4881_v2 = vor.u32 %v4880_v50, %v4877_v13  ;;  %v8798_v13 = vrot.slane %v4918_v46, 5  ;;  %v4980_v50 = vshll.u32 %v4755_v28, 16  ;;  %v4929_v35 = vor.u32 %v4928_v55, %v4925_v51  ;;  %v4759_v46 = vld [vmem:[#allocation2 + $0x8c] sm:$0x1] }
 0x13a   : > { %v4905_v42 = vor.u32 %v4904_v11, %v4901_v36  ;;  %v4939_v29 = vor.u32 %v4938_v23, %v8793_v7  ;;  %v4976_v4 = vrot.slane %v4974_v48, 5  ;;  %v7907_v36 = vld [vmem:[#allocation2 + $0x48] sm:$0xff]   ;;  %v5014_v48 = vshll.u32 %v4759_v46, 16 }
 0x13b   : > { %v4882_v39 = vrot.slane %v4881_v2, 4  ;;  %v4986_v2 = vrot.slane %v4984_v52, 4  ;;  %v4930_v17 = vrot.slane %v4929_v35, 4 }
 0x13c   : > { %7323 = vmatmul.mubr.msk.bf16.gmra.mrb[28].mxu1 %vm921_vm3, %v6629_v45  ;;  %v4914_v45 = vrot.slane %v4912_v60, 4  ;;  %v8803_v54 = vrot.slane %v4905_v42, 4  ;;  %v8807_v60 = vrot.slane %v4956_v47, 5  ;;  %v4940_v27 = vrot.slane %v4939_v29, 4  ;;  %v4761_v42 = vld [vmem:[#allocation2 + $0x94] sm:$0xf] }
 0x13d   : > { %7455 = vmatmul.mubr.msk.bf16.gmra.mrb[24].mxu0 %vm921_vm3, %v7899_v1  ;;  %7328 = vmatprep.mubr.msk.bf16.mxu1 %vm921_vm3, %v7900_v12  ;;  %v4751_v1 = vld [vmem:[#allocation2 + $0x6c] sm:$0xf]  ;;  %v6797_v12 = vcombine.low %v4839_v3, %v4849_v9  ;;  %v4887_v49 = vsel %vm8134_vm12, %v4882_v39, %v8764_v58  ;;  %v4973_v3 = vrot.slane %v4971_v25, 4  ;;  %v4756_v9 = vld [vmem:[#allocation2 + $0x80] sm:$0x1]  ;;  %v4935_v51 = vsel %vm8134_vm12, %v4930_v17, %v8793_v7 }
 0x13e   : > { %7458 = vmatprep.mubr.msk.bf16.mxu0 %vm921_vm3, %v7902_v22  ;;  %v8790_v22 = vcombine.low %v4863_v24, %v4873_v63  ;;  %v4915_v37 = vor.u32 %v4914_v45, %v8781_v56  ;;  %v4947_v26 = vshrl.u32 %v4751_v1, 16  ;;  %v4950_v41 = vshll.u32 %v4751_v1, 16  ;;  %v7908_v45 = vld [vmem:[#allocation2 + $0x54] sm:$0xff]   ;;  %v4760_v1 = vld [vmem:[#allocation2 + $0x90] sm:$0xf] }
 0x13f   : > { %v8811_v24 = vrot.slane %v4980_v50, 5  ;;  %v6799_v11 = vcombine.low %v4887_v49, %v4897_v53  ;;  %v4911_v15 = vsel %vm8134_vm12, %v8803_v54, %v8781_v56  ;;  %v4990_v20 = vshll.u32 %v4756_v9, 16  ;;  %v4763_v49 = vld [vmem:[#allocation2 + $0x9c] sm:$0xf]  ;;  %v7910_v54 = vld [vmem:[#allocation2 + $0x6c] sm:$0xff]  }
 0x140   : > { %v4949_v59 = vrot.slane %v4947_v26, 4  ;;  %v4952_v58 = vrot.slane %v4950_v41, 5  ;;  %v4977_v21 = vor.u32 %v4976_v4, %v4973_v3  ;;  %v5019_v34 = vshrl.u32 %v4760_v1, 16 }
 0x141   : > { %v4945_v26 = vsel %vm8134_vm12, %v4940_v27, %v4944_v30  ;;  %v4992_v41 = vrot.slane %v4990_v20, 5  ;;  %v5028_v47 = vshll.u32 %v4761_v42, 16  ;;  %v5046_v29 = vshll.u32 %v4763_v49, 16  ;;  %v4765_v30 = vld [vmem:[#allocation2 + $0xa4] sm:$0x1] }
 0x142   : > { %v4953_v43 = vor.u32 %v4952_v58, %v4949_v59  ;;  %v4978_v23 = vrot.slane %v4977_v21, 4  ;;  %v5021_v7 = vrot.slane %v5019_v34, 4  ;;  %v6801_v35 = vcombine.low %v4935_v51, %v4945_v26  ;;  %v4764_v59 = vld [vmem:[#allocation2 + $0xa0] sm:$0xf]  ;;  %v4766_v58 = vld [vmem:[#allocation2 + $0xa8] sm:$0xf] }
 0x143   : > { %v7912_v20 = vld [vmem:[#allocation2 + $0x84] sm:$0xff]   ;;  %v4769_v51 = vld [vmem:[#allocation2 + $0xb4] sm:$0xf]  ;;  %v4770_v26 = vld [vmem:[#allocation2 + $0xb8] sm:$0xf] }
 0x144   : > { %7329 = vmatmul.mubr.msk.bf16.vlgmr.msra.gmra.mrb[0].mxu1 %vm921_vm3, %v7901_v57  ;;  %v4757_v57 = vld [vmem:[#allocation2 + $0x84] sm:$0xf]  ;;  %v4954_v55 = vrot.slane %v4953_v43, 4  ;;  %v4983_v3 = vsel %vm8134_vm12, %v4978_v23, %v8811_v24 }
 0x145   : > { %7459 = vmatmul.mubr.msk.bf16.gmra.mrb[28].mxu0 %vm921_vm3, %v7903_v61  ;;  %7332 = vmatprep.mubr.msk.bf16.mxu1 %vm921_vm3, %v7904_v62  ;;  %v4962_v61 = vrot.slane %v4960_v6, 4  ;;  %v4758_v62 = vld [vmem:[#allocation2 + $0x88] sm:$0xf]  ;;  %v4995_v10 = vshrl.u32 %v4757_v57, 16  ;;  %v4998_v63 = vshll.u32 %v4757_v57, 16  ;;  %v5032_v6 = vshrl.u32 %v4761_v42, 16 }
 0x146   : > { %7464 = vmatprep.mubr.msk.bf16.mxu0 %vm921_vm3, %v6795_v38  ;;  %v4916_v38 = vrot.slane %v4915_v37, 4  ;;  %v5004_v5 = vshll.u32 %v4758_v62, 16  ;;  %v5008_v16 = vshrl.u32 %v4758_v62, 16  ;;  %v5022_v37 = vshll.u32 %v4760_v1, 16  ;;  %v4768_v42 = vld [vmem:[#allocation2 + $0xb0] sm:$0x1] }
 0x147   : > { %v4997_v56 = vrot.slane %v4995_v10, 4  ;;  %v5000_v39 = vrot.slane %v4998_v63, 5  ;;  %v4959_v31 = vsel %vm8134_vm12, %v4954_v55, %v8807_v60  ;;  %v5034_v62 = vrot.slane %v5032_v6, 4 }
 0x148   : > { %v8823_v33 = vrot.slane %v5004_v5, 5  ;;  %v5024_v52 = vrot.slane %v5022_v37, 5  ;;  %v5070_v5 = vshll.u32 %v4766_v58, 16  ;;  %v5086_v23 = vshll.u32 %v4768_v42, 16 }
 0x14a   : > { %v5025_v63 = vor.u32 %v5024_v52, %v5021_v7  ;;  %v5104_v7 = vshrl.u32 %v4770_v26, 16 }
 0x14c   : > { %7333 = vmatmul.mubr.msk.bf16.gmra.mrb[4].mxu1 %vm921_vm3, %v7905_v44  ;;  %v4987_v44 = vor.u32 %v4986_v2, %v8811_v24  ;;  %v4762_v2 = vld [vmem:[#allocation2 + $0x98] sm:$0x1] }
 0x14d   : > { %7465 = vmatmul.mubr.msk.bf16.vlgmr.msra.gmra.mrb[0].mxu0 %vm921_vm3, %v6796_v14  ;;  %7336 = vmatprep.mubr.msk.bf16.mxu1 %vm921_vm3, %v7906_v32  ;;  %v4963_v14 = vor.u32 %v4962_v61, %v8807_v60  ;;  %v5010_v32 = vrot.slane %v5008_v16, 4  ;;  %v8840_v61 = vrot.slane %v5028_v47, 5  ;;  %v5016_v60 = vrot.slane %v5014_v48, 5  ;;  %v4772_v47 = vld [vmem:[#allocation2 + $0xc0] sm:$0xf] }
 0x14e   : > { %7497 = vmatpush3.bf16.msra.mxu0 %v5827_v19  ;;  %7468 = vmatprep.mubr.msk.bf16.mxu0 %vm921_vm3, %v6797_v12  ;;  %v4966_v19 = vshll.u32 %v4753_v0, 16  ;;  %v4921_v12 = vsel %vm8134_vm12, %v4916_v38, %v8798_v13  ;;  %v4988_v25 = vrot.slane %v4987_v44, 4  ;;  %v7909_v13 = vld [vmem:[#allocation2 + $0x60] sm:$0xff]   ;;  %v5043_v38 = vshrl.u32 %v4763_v49, 16  ;;  %v4767_v0 = vld [vmem:[#allocation2 + $0xac] sm:$0xf] }
 0x14f   : > { %v4964_v28 = vrot.slane %v4963_v14, 4  ;;  %v5011_v50 = vor.u32 %v5010_v32, %v8823_v33  ;;  %v6800_v53 = vcombine.low %v4911_v15, %v4921_v12  ;;  %v5067_v15 = vshrl.u32 %v4766_v58, 16  ;;  %v4773_v48 = vld [vmem:[#allocation2 + $0xc4] sm:$0xf] }
 0x150   : > { %v4968_v40 = vrot.slane %v4966_v19, 5  ;;  %v4993_v4 = vsel %vm8134_vm12, %v4988_v25, %v4992_v41  ;;  %v5076_v16 = vshll.u32 %v4767_v0, 16  ;;  %v5080_v24 = vshrl.u32 %v4767_v0, 16  ;;  %v7911_v19 = vld [vmem:[#allocation2 + $0x78] sm:$0xff]  }
 0x151   : > { %v5012_v10 = vrot.slane %v5011_v50, 4  ;;  %v5038_v17 = vshll.u32 %v4762_v2, 16  ;;  %v5045_v43 = vrot.slane %v5043_v38, 4  ;;  %v5048_v14 = vrot.slane %v5046_v29, 5 }
 0x152   : > { %v4969_v57 = vsel %vm8134_vm12, %v4964_v28, %v4968_v40  ;;  %v6803_v12 = vcombine.low %v4983_v3, %v4993_v4  ;;  %v5026_v44 = vrot.slane %v5025_v63, 4  ;;  %v5069_v46 = vrot.slane %v5067_v15, 4  ;;  %v7914_v4 = vld [vmem:[#allocation2 + $0x9c] sm:$0xff]  }
 0x153   : > { %v6802_v1 = vcombine.low %v4959_v31, %v4969_v57  ;;  %v5017_v21 = vsel %vm8134_vm12, %v5012_v10, %v5016_v60  ;;  %v5072_v32 = vrot.slane %v5070_v5, 5  ;;  %v8859_v34 = vrot.slane %v5076_v16, 5  ;;  %v4771_v63 = vld [vmem:[#allocation2 + $0xbc] sm:$0x1] }
 0x154   : > { %7337 = vmatmul.mubr.msk.bf16.gmra.mrb[8].mxu1 %vm921_vm3, %v7907_v36  ;;  %v5052_v36 = vshll.u32 %v4764_v59, 16  ;;  %v5082_v37 = vrot.slane %v5080_v24, 4  ;;  %v5040_v28 = vrot.slane %v5038_v17, 5  ;;  %v5049_v40 = vor.u32 %v5048_v14, %v5045_v43  ;;  %v4776_v24 = vld [vmem:[#allocation2 + $0xd0] sm:$0xf] }
 0x155   : > { %7469 = vmatmul.mubr.msk.bf16.gmra.mrb[4].mxu0 %vm921_vm3, %v8790_v22  ;;  %7340 = vmatprep.mubr.msk.bf16.mxu1 %vm921_vm3, %v7908_v45  ;;  %v5001_v22 = vor.u32 %v5000_v39, %v4997_v56  ;;  %v5035_v45 = vor.u32 %v5034_v62, %v8840_v61  ;;  %v5091_v25 = vshrl.u32 %v4769_v51, 16  ;;  %v5073_v49 = vor.u32 %v5072_v32, %v5069_v46  ;;  %v7913_v62 = vld [vmem:[#allocation2 + $0x90] sm:$0xff]   ;;  %v4774_v14 = vld [vmem:[#allocation2 + $0xc8] sm:$0x1] }
 0x156   : > { %7472 = vmatprep.mubr.msk.bf16.mxu0 %vm921_vm3, %v6799_v11  ;;  %v5056_v11 = vshrl.u32 %v4764_v59, 16  ;;  %v8857_v56 = vrot.slane %v5052_v36, 5  ;;  %v5100_v50 = vshll.u32 %v4770_v26, 16  ;;  %v5031_v52 = vsel %vm8134_vm12, %v5026_v44, %v8840_v61  ;;  %v4775_v36 = vld [vmem:[#allocation2 + $0xcc] sm:$0xf] }
 0x157   : > { %v5002_v9 = vrot.slane %v5001_v22, 4  ;;  %v5036_v55 = vrot.slane %v5035_v45, 4  ;;  %v5094_v22 = vshll.u32 %v4769_v51, 16  ;;  %v5115_v31 = vshrl.u32 %v4772_v47, 16  ;;  %v7915_v46 = vld [vmem:[#allocation2 + $0xa8] sm:$0xff]  }
 0x158   : > { %v5058_v39 = vrot.slane %v5056_v11, 4  ;;  %v5118_v57 = vshll.u32 %v4772_v47, 16  ;;  %v5124_v59 = vshll.u32 %v4773_v48, 16  ;;  %v5128_v58 = vshrl.u32 %v4773_v48, 16 }
 0x159   : > { %v5007_v27 = vsel %vm8134_vm12, %v5002_v9, %v8823_v33  ;;  %v5062_v33 = vshll.u32 %v4765_v30, 16  ;;  %v5088_v29 = vrot.slane %v5086_v23, 5  ;;  %v5093_v0 = vrot.slane %v5091_v25, 4  ;;  %v4777_v25 = vld [vmem:[#allocation2 + $0xd4] sm:$0x1] }
 0x15a   : > { %v6804_v41 = vcombine.low %v5007_v27, %v5017_v21  ;;  %v5059_v6 = vor.u32 %v5058_v39, %v8857_v56  ;;  %v5096_v3 = vrot.slane %v5094_v22, 5  ;;  %v5074_v9 = vrot.slane %v5073_v49, 4  ;;  %v5521_v22 = vld [vmem:[#allocation2 + $0x1c] sm:$0xf] }
 0x15b   : > { %v5102_v2 = vrot.slane %v5100_v50, 5  ;;  %v5106_v10 = vrot.slane %v5104_v7, 4  ;;  %v5117_v11 = vrot.slane %v5115_v31, 4  ;;  %v5120_v15 = vrot.slane %v5118_v57, 5  ;;  %v5520_v31 = vld [vmem:[#allocation2 + $0x18] sm:$0xe] }
 0x15c   : > { %7341 = vmatmul.mubr.msk.bf16.gmra.mrb[12].mxu1 %vm921_vm3, %v7909_v13  ;;  %v5083_v13 = vor.u32 %v5082_v37, %v8859_v34  ;;  %v5060_v38 = vrot.slane %v5059_v6, 4  ;;  %v5126_v5 = vrot.slane %v5124_v59, 5  ;;  %v5130_v16 = vrot.slane %v5128_v58, 4  ;;  %v7916_v37 = vld [vmem:[#allocation2 + $0xb4] sm:$0xff]   ;;  %v5522_v57 = vld [vmem:[#allocation2 + $0x20] sm:$0x1] }
 0x15d   : > { %7473 = vmatmul.mubr.msk.bf16.gmra.mrb[8].mxu0 %vm921_vm3, %v6800_v53  ;;  %7344 = vmatprep.mubr.msk.bf16.mxu1 %vm921_vm3, %v7910_v54  ;;  %v5041_v53 = vsel %vm8134_vm12, %v5036_v55, %v5040_v28  ;;  %v5050_v54 = vrot.slane %v5049_v40, 4  ;;  %v5097_v43 = vor.u32 %v5096_v3, %v5093_v0  ;;  %v5110_v27 = vshll.u32 %v4771_v63, 16 }
 0x15e   : > { %7476 = vmatprep.mubr.msk.bf16.mxu0 %vm921_vm3, %v6801_v35  ;;  %v5064_v35 = vrot.slane %v5062_v33, 5  ;;  %v5084_v60 = vrot.slane %v5083_v13, 4  ;;  %v6805_v61 = vcombine.low %v5031_v52, %v5041_v53  ;;  %v5139_v30 = vshrl.u32 %v4775_v36, 16 }
 0x15f   : > { %v5055_v45 = vsel %vm8134_vm12, %v5050_v54, %v8857_v56  ;;  %v5148_v21 = vshll.u32 %v4776_v24, 16  ;;  %v5152_v44 = vshrl.u32 %v4776_v24, 16  ;;  %v5121_v56 = vor.u32 %v5120_v15, %v5117_v11  ;;  %v5523_v11 = vld [vmem:[#allocation2 + $0x24] sm:$0xe]  ;;  %v5525_v15 = vld [vmem:[#allocation2 + $0x2c] sm:$0x1] }
 0x160   : > { %v5065_v17 = vsel %vm8134_vm12, %v5060_v38, %v5064_v35  ;;  %v5131_v39 = vor.u32 %v5130_v16, %v5126_v5  ;;  %v5134_v42 = vshll.u32 %v4774_v14, 16  ;;  %v5098_v55 = vrot.slane %v5097_v43, 4  ;;  %v7917_v35 = vld [vmem:[#allocation2 + $0xc0] sm:$0xff]   ;;  %v5526_v16 = vld [vmem:[#allocation2 + $0x30] sm:$0xe] }
 0x161   : > { %v6806_v32 = vcombine.low %v5055_v45, %v5065_v17  ;;  %v5112_v28 = vrot.slane %v5110_v27, 5  ;;  %v5141_v40 = vrot.slane %v5139_v30, 4  ;;  %v5150_v26 = vrot.slane %v5148_v21, 5  ;;  %v5528_v24 = vld [vmem:[#allocation2 + $0x38] sm:$0x1] }
 0x162   : > { %v5122_v47 = vrot.slane %v5121_v56, 4  ;;  %v5132_v6 = vrot.slane %v5131_v39, 4  ;;  %v5136_v23 = vrot.slane %v5134_v42, 5  ;;  %v5103_v48 = vsel %vm8134_vm12, %v5098_v55, %v5102_v2  ;;  %v5530_v27 = vld [vmem:[#allocation2 + $0x40] sm:$0xf] }
 0x163   : > { %v5158_v7 = vshll.u32 %v4777_v25, 16  ;;  %v5618_v54 = vrot.slane %v5521_v22, 5  ;;  %v6827_v0 = vrot.slane %v5520_v31, 9  ;;  %v6828_v43 = vrot.slane %v5523_v11, 9  ;;  %v5533_v30 = vld [vmem:[#allocation2 + $0x4c] sm:$0xf] }
 0x164   : > { %7345 = vmatmul.mubr.msk.bf16.gmra.mrb[16].mxu1 %vm921_vm3, %v7911_v19  ;;  %v5079_v19 = vsel %vm8134_vm12, %v5074_v9, %v8859_v34  ;;  %v5127_v52 = vsel %vm8134_vm12, %v5122_v47, %v5126_v5  ;;  %v5137_v53 = vsel %vm8134_vm12, %v5132_v6, %v5136_v23  ;;  %v5524_v9 = vld [vmem:[#allocation2 + $0x28] sm:$0xf]  ;;  %v5529_v42 = vld [vmem:[#allocation2 + $0x3c] sm:$0xe]  ;;  %v5536_v6 = vld [vmem:[#allocation2 + $0x58] sm:$0xf] }
 0x165   : > { %7477 = vmatmul.mubr.msk.bf16.gmra.mrb[12].mxu0 %vm921_vm3, %v6802_v1  ;;  %7348 = vmatprep.mubr.msk.bf16.mxu1 %vm921_vm3, %v7912_v20  ;;  %v5089_v1 = vsel %vm8134_vm12, %v5084_v60, %v5088_v29  ;;  %v5142_v20 = vshll.u32 %v4775_v36, 16  ;;  %v6809_v58 = vcombine.low %v5127_v52, %v5137_v53  ;;  %v5160_v29 = vrot.slane %v5158_v7, 5  ;;  %v5527_v60 = vld [vmem:[#allocation2 + $0x34] sm:$0xf]  ;;  %v5539_v23 = vld [vmem:[#allocation2 + $0x64] sm:$0xf] }
 0x166   : > { %7480 = vmatprep.mubr.msk.bf16.mxu0 %vm921_vm3, %v6803_v12  ;;  %v5107_v12 = vor.u32 %v5106_v10, %v5102_v2  ;;  %v6807_v51 = vcombine.low %v5079_v19, %v5089_v1  ;;  %v5620_v3 = vrot.slane %v5618_v54, 4  ;;  %v5619_v63 = vsel %vm8451_vm15, %v6827_v0, %v5618_v54  ;;  %v5537_v7 = vld [vmem:[#allocation2 + $0x5c] sm:$0x1]  ;;  %v5538_v53 = vld [vmem:[#allocation2 + $0x60] sm:$0xe] }
 0x167   : > { %v5144_v33 = vrot.slane %v5142_v20, 5  ;;  %v5632_v5 = vrot.slane %v5527_v60, 5  ;;  %v5628_v19 = vrot.slane %v5525_v15, 5  ;;  %v6829_v1 = vrot.slane %v5526_v16, 9  ;;  %v5540_v54 = vld [vmem:[#allocation2 + $0x68] sm:$0x1] }
 0x168   : > { %v5108_v34 = vrot.slane %v5107_v12, 4  ;;  %v5635_v12 = vrot.slane %v5528_v24, 5  ;;  %v5660_v52 = vrot.slane %v5539_v23, 5  ;;  %v5542_v0 = vld [vmem:[#allocation2 + $0x70] sm:$0xf] }
 0x169   : > { %v5145_v13 = vor.u32 %v5144_v33, %v5141_v40  ;;  %v5634_v8 = vrot.slane %v5632_v5, 4  ;;  %v5633_v56 = vsel %vm8451_vm15, %v6829_v1, %v5632_v5  ;;  %v5667_v60 = vrot.slane %v5542_v0, 5  ;;  %v5544_v11 = vld [vmem:[#allocation2 + $0x78] sm:$0xe]  ;;  %v5546_v15 = vld [vmem:[#allocation2 + $0x80] sm:$0x1] }
 0x16a   : > { %v5113_v49 = vsel %vm8134_vm12, %v5108_v34, %v5112_v28  ;;  %v6830_v28 = vrot.slane %v5529_v42, 9  ;;  %v5548_v1 = vld [vmem:[#allocation2 + $0x88] sm:$0xf]  ;;  %v5550_v42 = vld [vmem:[#allocation2 + $0x90] sm:$0xe] }
 0x16b   : > { %v6808_v59 = vcombine.low %v5103_v48, %v5113_v49  ;;  %v5636_v39 = vsel %vm8451_vm15, %v5634_v8, %v5635_v12  ;;  %v5653_v48 = vrot.slane %v5536_v6, 5  ;;  %v5551_v8 = vld [vmem:[#allocation2 + $0x94] sm:$0xf] }
 0x16c   : > { %7349 = vmatmul.mubr.msk.bf16.gmra.mrb[20].mxu1 %vm921_vm3, %v7913_v62  ;;  %v5146_v62 = vrot.slane %v5145_v13, 4  ;;  %v6846_v34 = vcombine.low %v5633_v56, %v5636_v39  ;;  %v5549_v56 = vld [vmem:[#allocation2 + $0x8c] sm:$0x1]  ;;  %v5688_v39 = vrot.slane %v5551_v8, 5 }
 0x16d   : > { %7481 = vmatmul.mubr.msk.bf16.gmra.mrb[16].mxu0 %vm921_vm3, %v6804_v41  ;;  %7352 = vmatprep.mubr.msk.bf16.mxu1 %vm921_vm3, %v7914_v4  ;;  %v5154_v41 = vrot.slane %v5152_v44, 4  ;;  %v5621_v4 = vrot.slane %v5522_v57, 5  ;;  %v5639_v44 = vrot.slane %v5530_v27, 5 }
 0x16e   : > { %7484 = vmatprep.mubr.msk.bf16.mxu0 %vm921_vm3, %v6805_v61  ;;  %v5151_v2 = vsel %vm8134_vm12, %v5146_v62, %v5150_v26  ;;  %v5625_v61 = vrot.slane %v5524_v9, 5  ;;  %v6833_v62 = vrot.slane %v5538_v53, 9 }
 0x16f   : > { %v5155_v50 = vor.u32 %v5154_v41, %v5150_v26  ;;  %v5622_v36 = vsel %vm8451_vm15, %v5620_v3, %v5621_v4  ;;  %v5641_v40 = vrot.slane %v5639_v44, 4  ;;  %v5640_v25 = vsel %vm8451_vm15, %v6830_v28, %v5639_v44  ;;  %v5545_v3 = vld [vmem:[#allocation2 + $0x7c] sm:$0xf]  ;;  %v5547_v44 = vld [vmem:[#allocation2 + $0x84] sm:$0xe] }
 0x170   : > { %v6844_v17 = vcombine.low %v5619_v63, %v5622_v36  ;;  %v5627_v14 = vrot.slane %v5625_v61, 4  ;;  %v5626_v20 = vsel %vm8451_vm15, %v6828_v43, %v5625_v61  ;;  %v5541_v61 = vld [vmem:[#allocation2 + $0x6c] sm:$0xe]  ;;  %v5543_v63 = vld [vmem:[#allocation2 + $0x74] sm:$0x1]  ;;  %v5674_v36 = vrot.slane %v5545_v3, 5 }
 0x171   : > { %v5156_v38 = vrot.slane %v5155_v50, 4  ;;  %v5535_v50 = vld [vmem:[#allocation2 + $0x54] sm:$0xe]  ;;  %v6834_v24 = vrot.slane %v5541_v61, 9  ;;  %v6835_v43 = vrot.slane %v5544_v11, 9  ;;  %v6837_v28 = vrot.slane %v5550_v42, 9 }
 0x172   : > { %v5629_v21 = vsel %vm8451_vm15, %v5627_v14, %v5628_v19  ;;  %v6832_v57 = vrot.slane %v5535_v50, 9  ;;  %v5676_v14 = vrot.slane %v5674_v36, 4  ;;  %v5677_v19 = vrot.slane %v5546_v15, 5  ;;  %v5556_v50 = vld [vmem:[#allocation2 + $0xa8] sm:$0xe] }
 0x173   : > { %v5161_v10 = vsel %vm8134_vm12, %v5156_v38, %v5160_v29  ;;  %v6845_v55 = vcombine.low %v5626_v20, %v5629_v21  ;;  %v5662_v38 = vrot.slane %v5660_v52, 4  ;;  %v5663_v29 = vrot.slane %v5540_v54, 5  ;;  %v5562_v61 = vld [vmem:[#allocation2 + $0xc0] sm:$0xe] }
 0x174   : > { %7353 = vmatmul.mubr.msk.bf16.gmra.mrb[24].mxu1 %vm921_vm3, %v7915_v46  ;;  %v6810_v45 = vcombine.low %v5151_v2, %v5161_v10  ;;  %v5531_v46 = vld [vmem:[#allocation2 + $0x44] sm:$0x1]  ;;  %v5654_v4 = vsel %vm8451_vm15, %v6832_v57, %v5653_v48  ;;  %v5661_v2 = vsel %vm8451_vm15, %v6833_v62, %v5660_v52  ;;  %v5668_v12 = vsel %vm8451_vm15, %v6834_v24, %v5667_v60  ;;  %v5560_v62 = vld [vmem:[#allocation2 + $0xb8] sm:$0xf] }
 0x175   : > { %7485 = vmatmul.mubr.msk.bf16.gmra.mrb[20].mxu0 %vm921_vm3, %v6806_v32  ;;  %7356 = vmatprep.mubr.msk.bf16.mxu1 %vm921_vm3, %v7916_v37  ;;  %v5646_v32 = vrot.slane %v5533_v30, 5  ;;  %v5532_v37 = vld [vmem:[#allocation2 + $0x48] sm:$0xe]  ;;  %v5642_v33 = vrot.slane %v5531_v46, 5  ;;  %v5664_v10 = vsel %vm8451_vm15, %v5662_v38, %v5663_v29  ;;  %v5681_v30 = vrot.slane %v5548_v1, 5 }
 0x176   : > { %7488 = vmatprep.mubr.msk.bf16.mxu0 %vm921_vm3, %v6807_v51  ;;  %v5534_v51 = vld [vmem:[#allocation2 + $0x50] sm:$0x1]  ;;  %v6831_v26 = vrot.slane %v5532_v37, 9  ;;  %v6850_v16 = vcombine.low %v5661_v2, %v5664_v10  ;;  %v5675_v20 = vsel %vm8451_vm15, %v6835_v43, %v5674_v36  ;;  %v5678_v21 = vsel %vm8451_vm15, %v5676_v14, %v5677_v19  ;;  %v5552_v46 = vld [vmem:[#allocation2 + $0x98] sm:$0x1] }
 0x177   : > { %v5648_v41 = vrot.slane %v5646_v32, 4  ;;  %v5649_v47 = vrot.slane %v5534_v51, 5  ;;  %v5643_v22 = vsel %vm8451_vm15, %v5641_v40, %v5642_v33  ;;  %v6852_v37 = vcombine.low %v5675_v20, %v5678_v21  ;;  %v5563_v38 = vld [vmem:[#allocation2 + $0xc4] sm:$0xf]  ;;  %v5561_v2 = vld [vmem:[#allocation2 + $0xbc] sm:$0x1] }
 0x178   : > { %v5647_v49 = vsel %vm8451_vm15, %v6831_v26, %v5646_v32  ;;  %v6836_v51 = vrot.slane %v5547_v44, 9  ;;  %v5690_v40 = vrot.slane %v5688_v39, 4  ;;  %v5691_v33 = vrot.slane %v5552_v46, 5  ;;  %v5554_v26 = vld [vmem:[#allocation2 + $0xa0] sm:$0xf] }
 0x179   : > { %v5650_v13 = vsel %vm8451_vm15, %v5648_v41, %v5649_v47  ;;  %v5557_v41 = vld [vmem:[#allocation2 + $0xac] sm:$0xf]  ;;  %v5695_v23 = vrot.slane %v5554_v26, 5  ;;  %v6839_v57 = vrot.slane %v5556_v50, 9  ;;  %v5709_v3 = vrot.slane %v5560_v62, 5 }
 0x17a   : > { %v6848_v31 = vcombine.low %v5647_v49, %v5650_v13  ;;  %v5682_v47 = vsel %vm8451_vm15, %v6836_v51, %v5681_v30  ;;  %v5555_v49 = vld [vmem:[#allocation2 + $0xa4] sm:$0x1]  ;;  %v5702_v13 = vrot.slane %v5557_v41, 5  ;;  %v5716_v10 = vrot.slane %v5563_v38, 5  ;;  %v5566_v43 = vld [vmem:[#allocation2 + $0xd0] sm:$0xf] }
 0x17b   : > { %v6841_v24 = vrot.slane %v5562_v61, 9  ;;  %v5723_v1 = vrot.slane %v5566_v43, 5 }
 0x17c   : > { %7357 = vmatmul.mubr.msk.bf16.gmra.mrb[28].mxu1 %vm921_vm3, %v7917_v35  ;;  %v6847_v35 = vcombine.low %v5640_v25, %v5643_v22  ;;  %v5689_v25 = vsel %vm8451_vm15, %v6837_v28, %v5688_v39  ;;  %v5692_v22 = vsel %vm8451_vm15, %v5690_v40, %v5691_v33 }
 0x17d   : > { %7489 = vmatmul.mubr.msk.bf16.gmra.mrb[24].mxu0 %vm921_vm3, %v6808_v59  ;;  %v5655_v59 = vrot.slane %v5653_v48, 4  ;;  %v5553_v48 = vld [vmem:[#allocation2 + $0x9c] sm:$0xe]  ;;  %v6854_v53 = vcombine.low %v5689_v25, %v5692_v22  ;;  %v5717_v8 = vsel %vm8451_vm15, %v6841_v24, %v5716_v10 }
 0x17e   : > { %7492 = vmatprep.mubr.msk.bf16.mxu0 %vm921_vm3, %v6809_v58  ;;  %v5656_v58 = vrot.slane %v5537_v7, 5  ;;  %v5558_v7 = vld [vmem:[#allocation2 + $0xb0] sm:$0x1]  ;;  %v6838_v54 = vrot.slane %v5553_v48, 9 }
 0x180   : > { %v5657_v9 = vsel %vm8451_vm15, %v5655_v59, %v5656_v58  ;;  %v5704_v59 = vrot.slane %v5702_v13, 4  ;;  %v5705_v58 = vrot.slane %v5558_v7, 5  ;;  %v5696_v29 = vsel %vm8451_vm15, %v6838_v54, %v5695_v23 }
 0x181   : > { %v6849_v5 = vcombine.low %v5654_v4, %v5657_v9  ;;  %v5703_v4 = vsel %vm8451_vm15, %v6839_v57, %v5702_v13 }
 0x182   : > { %v5706_v9 = vsel %vm8451_vm15, %v5704_v59, %v5705_v58 }
 0x183   : > { %v6856_v11 = vcombine.low %v5703_v4, %v5706_v9 }
 0x185   : > { %7493 = vmatmul.mubr.msk.bf16.gmra.mrb[28].mxu0 %vm921_vm3, %v6810_v45  ;;  %v5669_v45 = vrot.slane %v5667_v60, 4  ;;  %v5559_v60 = vld [vmem:[#allocation2 + $0xb4] sm:$0xe] }
 0x186   : > { %7498 = vmatprep.mubr.msk.bf16.mxu0 %vm921_vm3, %v6844_v17  ;;  %v5670_v17 = vrot.slane %v5543_v63, 5  ;;  %v5564_v63 = vld [vmem:[#allocation2 + $0xc8] sm:$0x1]  ;;  %v6840_v15 = vrot.slane %v5559_v60, 9 }
 0x188   : > { %v5671_v27 = vsel %vm8451_vm15, %v5669_v45, %v5670_v17  ;;  %v5718_v45 = vrot.slane %v5716_v10, 4  ;;  %v5719_v17 = vrot.slane %v5564_v63, 5  ;;  %v5710_v14 = vsel %vm8451_vm15, %v6840_v15, %v5709_v3 }
 0x189   : > { %v6851_v32 = vcombine.low %v5668_v12, %v5671_v27  ;;  %v5565_v27 = vld [vmem:[#allocation2 + $0xcc] sm:$0xe] }
 0x18a   : > { %v5720_v12 = vsel %vm8451_vm15, %v5718_v45, %v5719_v17  ;;  %v6842_v44 = vrot.slane %v5565_v27, 9 }
 0x18b   : > { %v6858_v21 = vcombine.low %v5717_v8, %v5720_v12 }
 0x18c   : > { %v5724_v42 = vsel %vm8451_vm15, %v6842_v44, %v5723_v1 }
 0x18d   : > { %7499 = vmatmul.mubr.msk.bf16.vlgmr.msra.gmra.mrb[0].mxu0 %vm921_vm3, %v6845_v55  ;;  %v5683_v55 = vrot.slane %v5681_v30, 4  ;;  %v5567_v30 = vld [vmem:[#allocation2 + $0xd4] sm:$0x1] }
 0x18e   : > { %7502 = vmatprep.mubr.msk.bf16.mxu0 %vm921_vm3, %v6846_v34  ;;  %v5684_v34 = vrot.slane %v5549_v56, 5  ;;  %v5725_v56 = vrot.slane %v5723_v1, 4  ;;  %v5726_v39 = vrot.slane %v5567_v30, 5 }
 0x190   : > { %v5685_v6 = vsel %vm8451_vm15, %v5683_v55, %v5684_v34  ;;  %v5727_v46 = vsel %vm8451_vm15, %v5725_v56, %v5726_v39 }
 0x191   : > { %v6853_v52 = vcombine.low %v5682_v47, %v5685_v6  ;;  %v7927_v6 = vmov 1.0  }
 0x192   : > { %6374 = vmatprep.mubr.f32.mxu1 %v7927_v6 }
 0x195   : > { %7503 = vmatmul.mubr.msk.bf16.gmra.mrb[4].mxu0 %vm921_vm3, %v6847_v35  ;;  %v5697_v35 = vrot.slane %v5695_v23, 4 }
 0x196   : > { %7506 = vmatprep.mubr.msk.bf16.mxu0 %vm921_vm3, %v6848_v31  ;;  %v5698_v31 = vrot.slane %v5555_v49, 5 }
 0x198   : > { %v5699_v0 = vsel %vm8451_vm15, %v5697_v35, %v5698_v31 }
 0x199   : > { %v6855_v36 = vcombine.low %v5696_v29, %v5699_v0 }
 0x19d   : > { %7507 = vmatmul.mubr.msk.bf16.gmra.mrb[8].mxu0 %vm921_vm3, %v6849_v5  ;;  %v5711_v5 = vrot.slane %v5709_v3, 4 }
 0x19e   : > { %7510 = vmatprep.mubr.msk.bf16.mxu0 %vm921_vm3, %v6850_v16  ;;  %v5712_v16 = vrot.slane %v5561_v2, 5 }
 0x1a0   : > { %v5713_v19 = vsel %vm8451_vm15, %v5711_v5, %v5712_v16 }
 0x1a1   : > { %v6857_v20 = vcombine.low %v5710_v14, %v5713_v19 }
 0x1a5   : > { %7511 = vmatmul.mubr.msk.bf16.gmra.mrb[12].mxu0 %vm921_vm3, %v6851_v32  ;;  %v6859_v32 = vcombine.low %v5724_v42, %v5727_v46 }
 0x1a6   : > { %7514 = vmatprep.mubr.msk.bf16.mxu0 %vm921_vm3, %v6852_v37 }
 0x1ad   : > { %7515 = vmatmul.mubr.msk.bf16.gmra.mrb[16].mxu0 %vm921_vm3, %v6853_v52 }
 0x1ae   : > { %7518 = vmatprep.mubr.msk.bf16.mxu0 %vm921_vm3, %v6854_v53 }
 0x1b5   : > { %7519 = vmatmul.mubr.msk.bf16.gmra.mrb[20].mxu0 %vm921_vm3, %v6855_v36 }
 0x1b6   : > { %7522 = vmatprep.mubr.msk.bf16.mxu0 %vm921_vm3, %v6856_v11 }
 0x1bd   : > { %7523 = vmatmul.mubr.msk.bf16.gmra.mrb[24].mxu0 %vm921_vm3, %v6857_v20 }
 0x1be   : > { %7526 = vmatprep.mubr.msk.bf16.mxu0 %vm921_vm3, %v6858_v21 }
 0x1c5   : > { %7527 = vmatmul.mubr.msk.bf16.gmra.mrb[28].mxu0 %vm921_vm3, %v6859_v32 }
 0x217   : > { %v7330_v37 = vpop.f32.mrb[0].mxu1 }
 0x218   : > { %v2728_v51 = vpop.f32.mrb[1].mxu1 }
 0x219   : > { %v7331_v55 = vpop.f32.mrb[2].mxu1 }
 0x21a   : > { %v2731_v34 = vpop.f32.mrb[3].mxu1 }
 0x21f   : > { %v7334_v28 = vpop.f32.mrb[4].mxu1 }
 0x220   : > { %v2744_v40 = vpop.f32.mrb[5].mxu1 }
 0x221   : > { %v7335_v33 = vpop.f32.mrb[6].mxu1 }
 0x222   : > { %v2747_v26 = vpop.f32.mrb[7].mxu1 }
 0x227   : > { %v8986_v41 = vpop.f32.mrb[8].mxu1 }
 0x228   : > { %v8988_v47 = vpop.f32.mrb[9].mxu1 }
 0x229   : > { %v8991_v18 = vpop.f32.mrb[10].mxu1 }
 0x22a   : > { %v8993_v23 = vpop.f32.mrb[11].mxu1 }
 0x22f   : > { %v8995_v25 = vpop.f32.mrb[12].mxu1 }
 0x230   : > { %v8997_v22 = vpop.f32.mrb[13].mxu1 }
 0x231   : > { %v8999_v48 = vpop.f32.mrb[14].mxu1 }
 0x232   : > { %v9001_v49 = vpop.f32.mrb[15].mxu1 }
 0x237   : > { %v9003_v13 = vpop.f32.mrb[16].mxu1 }
 0x238   : > { %v9005_v50 = vpop.f32.mrb[17].mxu1 }
 0x239   : > { %v9007_v7 = vpop.f32.mrb[18].mxu1 }
 0x23a   : > { %v9009_v52 = vpop.f32.mrb[19].mxu1 }
 0x23f   : > { %v9011_v53 = vpop.f32.mrb[20].mxu1 }
 0x240   : > { %v9013_v54 = vpop.f32.mrb[21].mxu1 }
 0x241   : > { %v9015_v35 = vpop.f32.mrb[22].mxu1 }
 0x242   : > { %v9017_v31 = vpop.f32.mrb[23].mxu1 }
 0x247   : > { %v9019_v57 = vpop.f32.mrb[24].mxu1 }
 0x248   : > { %v9021_v59 = vpop.f32.mrb[25].mxu1 }
 0x249   : > { %v9023_v58 = vpop.f32.mrb[26].mxu1 }
 0x24a   : > { %v9025_v62 = vpop.f32.mrb[27].mxu1 }
 0x24f   : > { %v9027_v38 = vpop.f32.mrb[28].mxu1 }
 0x250   : > { %v9029_v29 = vpop.f32.mrb[29].mxu1 }
 0x251   : > { %v9031_v0 = vpop.f32.mrb[30].mxu1 }
 0x252   : > { %v9033_v3 = vpop.f32.mrb[31].mxu1 }
 0x260   : > { %v7500_v4 = vpop.f32.mrb[0].mxu0 }
 0x261   : > { %v7594_v9 = vadd.f32 %v7500_v4, %v7330_v37  ;;  %v5863_v60 = vpop.f32.mrb[1].mxu0 }
 0x262   : > { %v7595_v2 = vadd.f32 %v5863_v60, %v2728_v51  ;;  %v7501_v10 = vpop.f32.mrb[2].mxu0 }
 0x263   : > { %v7596_v61 = vadd.f32 %v7501_v10, %v7331_v55  ;;  %v5866_v63 = vpop.f32.mrb[3].mxu0  ;;  %v6280_v11 = vmul.f32 %v7594_v9, %v7594_v9 }
 0x264   : > { %v7597_v36 = vadd.f32 %v5866_v63, %v2731_v34  ;;  %v6278_v16 = vmul.f32 %v7595_v2, %v7595_v2 }
 0x265   : > { %v6984_v15 = vpack.c.bf16 %v7596_v61, %v7594_v9  ;;  %v6281_v5 = vmul.f32 %v7596_v61, %v7596_v61 }
 0x266   : > { %v6979_v24 = vpack.c.bf16 %v7597_v36, %v7595_v2  ;;  %v6279_v45 = vmul.f32 %v7597_v36, %v7597_v36 }
 0x267   : > { %7056 = vst [vmem:[%s9039_s14 + $0x8] sm:$0xff] %v6984_v15   ;;  %v7534_v17 = vpack.c.bf16 %v6281_v5, %v6280_v11 }
 0x268   : > { %6980 = vst [vmem:[%s9039_s14] sm:$0xff] %v6979_v24   ;;  %v7504_v43 = vpop.f32.mrb[4].mxu0  ;;  %v7530_v14 = vpack.c.bf16 %v6279_v45, %v6278_v16 }
 0x269   : > { %v7598_v19 = vadd.f32 %v7504_v43, %v7334_v28  ;;  %v5879_v1 = vpop.f32.mrb[5].mxu0 }
 0x26a   : > { %v7599_v8 = vadd.f32 %v5879_v1, %v2744_v40  ;;  %v7505_v12 = vpop.f32.mrb[6].mxu0  ;;  %7531 = vmatprep.subr.bf16.mxu1 %v7530_v14 }
 0x26b   : > { %v7600_v27 = vadd.f32 %v7505_v12, %v7335_v33  ;;  %v5882_v30 = vpop.f32.mrb[7].mxu0  ;;  %7533 = vmatpush1.bf16.msra.mxu1 %v6979_v24  ;;  %v6284_v21 = vmul.f32 %v7598_v19, %v7598_v19 }
 0x26c   : > { %v7601_v20 = vadd.f32 %v5882_v30, %v2747_v26  ;;  %7535 = vmatprep.subr.bf16.mxu1 %v7534_v17  ;;  %v6282_v39 = vmul.f32 %v7599_v8, %v7599_v8 }
 0x26d   : > { %v6994_v44 = vpack.c.bf16 %v7600_v27, %v7598_v19  ;;  %v6285_v56 = vmul.f32 %v7600_v27, %v7600_v27 }
 0x26e   : > { %v6989_v42 = vpack.c.bf16 %v7601_v20, %v7599_v8  ;;  %v6283_v46 = vmul.f32 %v7601_v20, %v7601_v20 }
 0x26f   : > { %7058 = vst [vmem:[%s9039_s14 + $0x18] sm:$0xff] %v6994_v44   ;;  %7537 = vmatpush1.bf16.msra.mxu1 %v6984_v15  ;;  %v7542_v32 = vpack.c.bf16 %v6285_v56, %v6284_v21 }
 0x270   : > { %7057 = vst [vmem:[%s9039_s14 + $0x10] sm:$0xff] %v6989_v42   ;;  %v7508_v37 = vpop.f32.mrb[8].mxu0  ;;  %v7538_v51 = vpack.c.bf16 %v6283_v46, %v6282_v39 }
 0x271   : > { %v7602_v55 = vadd.f32 %v7508_v37, %v8986_v41  ;;  %v5895_v34 = vpop.f32.mrb[9].mxu0 }
 0x272   : > { %v7603_v28 = vadd.f32 %v5895_v34, %v8988_v47  ;;  %v7509_v40 = vpop.f32.mrb[10].mxu0  ;;  %7539 = vmatprep.subr.bf16.mxu1 %v7538_v51 }
 0x273   : > { %v7604_v33 = vadd.f32 %v7509_v40, %v8991_v18  ;;  %v5898_v26 = vpop.f32.mrb[11].mxu0  ;;  %7541 = vmatpush1.bf16.msra.mxu1 %v6989_v42  ;;  %v6288_v9 = vmul.f32 %v7602_v55, %v7602_v55 }
 0x274   : > { %v7605_v4 = vadd.f32 %v5898_v26, %v8993_v23  ;;  %7543 = vmatprep.subr.bf16.mxu1 %v7542_v32  ;;  %v6286_v10 = vmul.f32 %v7603_v28, %v7603_v28 }
 0x275   : > { %v7004_v60 = vpack.c.bf16 %v7604_v33, %v7602_v55  ;;  %v6289_v2 = vmul.f32 %v7604_v33, %v7604_v33 }
 0x276   : > { %v6999_v61 = vpack.c.bf16 %v7605_v4, %v7603_v28  ;;  %v6287_v41 = vmul.f32 %v7605_v4, %v7605_v4 }
 0x277   : > { %7060 = vst [vmem:[%s9039_s14 + $0x28] sm:$0xff] %v7004_v60   ;;  %7545 = vmatpush1.bf16.msra.mxu1 %v6994_v44  ;;  %v7550_v63 = vpack.c.bf16 %v6289_v2, %v6288_v9 }
 0x278   : > { %7059 = vst [vmem:[%s9039_s14 + $0x20] sm:$0xff] %v6999_v61   ;;  %v7512_v47 = vpop.f32.mrb[12].mxu0  ;;  %v7546_v36 = vpack.c.bf16 %v6287_v41, %v6286_v10 }
 0x279   : > { %v7606_v11 = vadd.f32 %v7512_v47, %v8995_v25  ;;  %v5911_v18 = vpop.f32.mrb[13].mxu0 }
 0x27a   : > { %v7607_v15 = vadd.f32 %v5911_v18, %v8997_v22  ;;  %v7513_v23 = vpop.f32.mrb[14].mxu0  ;;  %7547 = vmatprep.subr.bf16.mxu1 %v7546_v36 }
 0x27b   : > { %v7608_v5 = vadd.f32 %v7513_v23, %v8999_v48  ;;  %v5914_v16 = vpop.f32.mrb[15].mxu0  ;;  %7549 = vmatpush1.bf16.msra.mxu1 %v6999_v61  ;;  %v6292_v45 = vmul.f32 %v7606_v11, %v7606_v11 }
 0x27c   : > { %v7609_v24 = vadd.f32 %v5914_v16, %v9001_v49  ;;  %7551 = vmatprep.subr.bf16.mxu1 %v7550_v63  ;;  %v6290_v14 = vmul.f32 %v7607_v15, %v7607_v15 }
 0x27d   : > { %v7014_v17 = vpack.c.bf16 %v7608_v5, %v7606_v11  ;;  %v6293_v43 = vmul.f32 %v7608_v5, %v7608_v5 }
 0x27e   : > { %v7009_v19 = vpack.c.bf16 %v7609_v24, %v7607_v15  ;;  %v6291_v25 = vmul.f32 %v7609_v24, %v7609_v24 }
 0x27f   : > { %7062 = vst [vmem:[%s9039_s14 + $0x38] sm:$0xff] %v7014_v17   ;;  %7553 = vmatpush1.bf16.msra.mxu1 %v7004_v60  ;;  %v7558_v1 = vpack.c.bf16 %v6293_v43, %v6292_v45 }
 0x280   : > { %7061 = vst [vmem:[%s9039_s14 + $0x30] sm:$0xff] %v7009_v19   ;;  %v7516_v22 = vpop.f32.mrb[16].mxu0  ;;  %v7554_v8 = vpack.c.bf16 %v6291_v25, %v6290_v14 }
 0x281   : > { %v7610_v12 = vadd.f32 %v7516_v22, %v9003_v13  ;;  %v5927_v48 = vpop.f32.mrb[17].mxu0 }
 0x282   : > { %v7611_v27 = vadd.f32 %v5927_v48, %v9005_v50  ;;  %v7517_v49 = vpop.f32.mrb[18].mxu0  ;;  %7555 = vmatprep.subr.bf16.mxu1 %v7554_v8 }
 0x283   : > { %v7612_v30 = vadd.f32 %v7517_v49, %v9007_v7  ;;  %v5930_v20 = vpop.f32.mrb[19].mxu0  ;;  %7557 = vmatpush1.bf16.msra.mxu1 %v7009_v19  ;;  %v6296_v44 = vmul.f32 %v7610_v12, %v7610_v12 }
 0x284   : > { %v7613_v21 = vadd.f32 %v5930_v20, %v9009_v52  ;;  %7559 = vmatprep.subr.bf16.mxu1 %v7558_v1  ;;  %v6294_v42 = vmul.f32 %v7611_v27, %v7611_v27 }
 0x285   : > { %v7024_v56 = vpack.c.bf16 %v7612_v30, %v7610_v12  ;;  %v6297_v39 = vmul.f32 %v7612_v30, %v7612_v30 }
 0x286   : > { %v7019_v46 = vpack.c.bf16 %v7613_v21, %v7611_v27  ;;  %v6295_v13 = vmul.f32 %v7613_v21, %v7613_v21  ;;  %v6387_v27 = vlaneseq }
 0x287   : > { %7064 = vst [vmem:[%s9039_s14 + $0x48] sm:$0xff] %v7024_v56   ;;  %7561 = vmatpush1.bf16.msra.mxu1 %v7014_v17  ;;  %v7566_v32 = vpack.c.bf16 %v6297_v39, %v6296_v44 }
 0x288   : > { %7063 = vst [vmem:[%s9039_s14 + $0x40] sm:$0xff] %v7019_v46   ;;  %v7520_v50 = vpop.f32.mrb[20].mxu0  ;;  %v7562_v37 = vpack.c.bf16 %v6295_v13, %v6294_v42  ;;  %v6388_v30 = vshrl.u32 %v6387_v27, 7  ;;  %vm6401_vm0 = vcmp.lt.s32.totalorder %v6387_v27, 256 }
 0x289   : > { %v7614_v51 = vadd.f32 %v7520_v50, %v9011_v53  ;;  %v5943_v7 = vpop.f32.mrb[21].mxu0 }
 0x28a   : > { %v7615_v55 = vadd.f32 %v5943_v7, %v9013_v54  ;;  %v7521_v52 = vpop.f32.mrb[22].mxu0  ;;  %7563 = vmatprep.subr.bf16.mxu1 %v7562_v37 }
 0x28b   : > { %v7616_v34 = vadd.f32 %v7521_v52, %v9015_v35  ;;  %v5946_v28 = vpop.f32.mrb[23].mxu0  ;;  %7565 = vmatpush1.bf16.msra.mxu1 %v7019_v46  ;;  %v6300_v33 = vmul.f32 %v7614_v51, %v7614_v51 }
 0x28c   : > { %v7617_v40 = vadd.f32 %v5946_v28, %v9017_v31  ;;  %7567 = vmatprep.subr.bf16.mxu1 %v7566_v32  ;;  %v6298_v9 = vmul.f32 %v7615_v55, %v7615_v55 }
 0x28d   : > { %v7034_v26 = vpack.c.bf16 %v7616_v34, %v7614_v51  ;;  %v6301_v4 = vmul.f32 %v7616_v34, %v7616_v34 }
 0x28e   : > { %v7029_v60 = vpack.c.bf16 %v7617_v40, %v7615_v55  ;;  %v6299_v53 = vmul.f32 %v7617_v40, %v7617_v40 }
 0x28f   : > { %7066 = vst [vmem:[%s9039_s14 + $0x58] sm:$0xff] %v7034_v26   ;;  %7569 = vmatpush1.bf16.msra.mxu1 %v7024_v56  ;;  %v7574_v2 = vpack.c.bf16 %v6301_v4, %v6300_v33 }
 0x290   : > { %7065 = vst [vmem:[%s9039_s14 + $0x50] sm:$0xff] %v7029_v60   ;;  %v7524_v54 = vpop.f32.mrb[24].mxu0  ;;  %v7570_v10 = vpack.c.bf16 %v6299_v53, %v6298_v9 }
 0x291   : > { %v7618_v61 = vadd.f32 %v7524_v54, %v9019_v57  ;;  %v5959_v35 = vpop.f32.mrb[25].mxu0 }
 0x292   : > { %v7619_v41 = vadd.f32 %v5959_v35, %v9021_v59  ;;  %v7525_v31 = vpop.f32.mrb[26].mxu0  ;;  %7571 = vmatprep.subr.bf16.mxu1 %v7570_v10 }
 0x293   : > { %v7620_v63 = vadd.f32 %v7525_v31, %v9023_v58  ;;  %v5962_v47 = vpop.f32.mrb[27].mxu0  ;;  %7573 = vmatpush1.bf16.msra.mxu1 %v7029_v60  ;;  %v6304_v11 = vmul.f32 %v7618_v61, %v7618_v61 }
 0x294   : > { %v7621_v36 = vadd.f32 %v5962_v47, %v9025_v62  ;;  %7575 = vmatprep.subr.bf16.mxu1 %v7574_v2  ;;  %v6302_v23 = vmul.f32 %v7619_v41, %v7619_v41 }
 0x295   : > { %v7044_v18 = vpack.c.bf16 %v7620_v63, %v7618_v61  ;;  %v6305_v15 = vmul.f32 %v7620_v63, %v7620_v63 }
 0x296   : > { %v7039_v5 = vpack.c.bf16 %v7621_v36, %v7619_v41  ;;  %v6303_v57 = vmul.f32 %v7621_v36, %v7621_v36 }
 0x297   : > { %7068 = vst [vmem:[%s9039_s14 + $0x68] sm:$0xff] %v7044_v18   ;;  %7577 = vmatpush1.bf16.msra.mxu1 %v7034_v26  ;;  %v7582_v16 = vpack.c.bf16 %v6305_v15, %v6304_v11 }
 0x298   : > { %7067 = vst [vmem:[%s9039_s14 + $0x60] sm:$0xff] %v7039_v5   ;;  %v7528_v59 = vpop.f32.mrb[28].mxu0  ;;  %v7578_v24 = vpack.c.bf16 %v6303_v57, %v6302_v23 }
 0x299   : > { %v7622_v45 = vadd.f32 %v7528_v59, %v9027_v38  ;;  %v5975_v58 = vpop.f32.mrb[29].mxu0 }
 0x29a   : > { %v7623_v17 = vadd.f32 %v5975_v58, %v9029_v29  ;;  %v7529_v62 = vpop.f32.mrb[30].mxu0  ;;  %7579 = vmatprep.subr.bf16.mxu1 %v7578_v24 }
 0x29b   : > { %v7624_v43 = vadd.f32 %v7529_v62, %v9031_v0  ;;  %v5978_v14 = vpop.f32.mrb[31].mxu0  ;;  %7581 = vmatpush1.bf16.msra.mxu1 %v7039_v5  ;;  %v6308_v25 = vmul.f32 %v7622_v45, %v7622_v45  ;;  %v7928_v0 = vmov 1966171168  }
 0x29c   : > { %v7625_v19 = vadd.f32 %v5978_v14, %v9033_v3  ;;  %7583 = vmatprep.subr.bf16.mxu1 %v7582_v16  ;;  %v6306_v8 = vmul.f32 %v7623_v17, %v7623_v17  ;;  %v6385_v3 = vunpack.c.l.s4 %v7928_v0 }
 0x29d   : > { %v7054_v1 = vpack.c.bf16 %v7624_v43, %v7622_v45  ;;  %v6309_v22 = vmul.f32 %v7624_v43, %v7624_v43 }
 0x29e   : > { %v7049_v12 = vpack.c.bf16 %v7625_v19, %v7623_v17  ;;  %v6307_v38 = vmul.f32 %v7625_v19, %v7625_v19  ;;  %v6386_v49 = vunpack.c.0.s8 %v6385_v3 }
 0x29f   : > { %7070 = vst [vmem:[%s9039_s14 + $0x78] sm:$0xff] %v7054_v1   ;;  %7585 = vmatpush1.bf16.msra.mxu1 %v7044_v18  ;;  %v7590_v48 = vpack.c.bf16 %v6309_v22, %v6308_v25 }
 0x2a0   : > { %7069 = vst [vmem:[%s9039_s14 + $0x70] sm:$0xff] %v7049_v12   ;;  %v7586_v29 = vpack.c.bf16 %v6307_v38, %v6306_v8  ;;  %v6389_v21 = vsub.s32 %v6386_v49, %v6388_v30 }
 0x2a2   : > { %7587 = vmatprep.subr.bf16.mxu1 %v7586_v29 }
 0x2a3   : > { %7589 = vmatpush1.bf16.msra.mxu1 %v7049_v12 }
 0x2a4   : > { %7591 = vmatprep.subr.bf16.mxu1 %v7590_v48 }
 0x2a7   : > { %7593 = vmatpush1.bf16.msra.mxu1 %v7054_v1 }
 0x2aa   : > { %6375 = vmatmul.mubr.f32.vlgmr.msra.gmra.mrb[32].mxu1 %v7927_v6 }
 0x37d   : > { %v6376_v20 = vpop.f32.mrb[32].mxu1 }
 0x37e   : > { %v6378_v44 = vpop.f32.mrb[33].mxu1 }
 0x37f   : > { %v6383_v56 = vcombine.low %v6376_v20, %v6378_v44 }
 0x381   : > { %v6390_v39 = vrot.slane %v6383_v56, %v6389_v21 }
 0x383   : > { %v6397_v42 = vrot.slane %v6390_v39, %v6389_v21 }
 0x385   : > { %6403 = vst.msk [vmem:[%s181_s18] sm:$0x3] %vm6401_vm0, %v6397_v42 }
 0x386 PF: > { %s14_s12 = sadd.s32 1, %s7924_s12  }
 0x387   : > { %p11_p4 = scmp.ge.s32.totalorder %s14_s12, 4  }
 0x389   :  { %13 = sbr.rel (!%p11_p4) target bundleno = 1 (0x1), region = 80 }

// kernel: residual_block_forward.4
= control target key start
LH: loop header
LB: loop body
LE: loop exit
PB: predicated region body
PF: predicated region fallthrough
CT: control target
= control target key end

     0   :  { %s8839_s21 = smov 0   ;;  %s10076_s0 = inlined_call_operand.vmem [shape: bf16[2,256,128], index: 0, kind: input, shape index: {}]   ;;  %s10077_s1 = inlined_call_operand.vmem [shape: f32[2,128], index: 1, kind: input, shape index: {}]   ;;  %s10078_s2 = inlined_call_operand.vmem [shape: f32[1,128], index: 2, kind: input, shape index: {}]   ;;  %s10079_s3 = inlined_call_operand.vmem [shape: f32[1,128], index: 3, kind: input, shape index: {}]   ;;  %s10080_s4 = inlined_call_operand.vmem [shape: bf16[3,3,128,128], index: 4, kind: input, shape index: {}]   ;;  %s10081_s5 = inlined_call_operand.vmem [shape: bf16[2,256,128], index: 5, kind: output, shape index: {0}]   ;;  %s10082_s6 = inlined_call_operand.vmem [shape: f32[2,1,256], index: 6, kind: output, shape index: {1}]  }
   0x1 LB: > { %s6981_s22 = sadd.s32 4294967295, %s8799_s21   ;;  %p6985_p0 = scmp.ge.s32.totalorder %s8799_s21, 1  ;;  %s8799_s21 = sphi %s8839_s21, %s17_s21  }
   0x2   : > { %p215_p1 = scmp.lt.s32.totalorder %s8799_s21, 3 }
   0x4   : > { %p216_p2 = pnand %p6985_p0, %p215_p1 }
   0x5   : > { %v8669_v0 = vld [vmem:[%s10080_s4] sm:$0xff] (!%p216_p2)   ;;  %v8853_v1 = vld [vmem:[%s10080_s4 + $0x8] sm:$0xff] (!%p216_p2)   ;;  %v8801_v2 = vmov (!%p216_p2), 0   ;;  %v8671_v4 = vld [vmem:[%s10080_s4 + $0x10] sm:$0xff] (!%p216_p2)   ;;  %p249_p3 = scmp.lt.s32.totalorder (!%p216_p2), %s6981_s22, 1  ;;  %v352_v24 = vlaneseq (!%p216_p2)  ;;  %vm932_vm2 = vcmask (!%p216_p2), 1043456  }
   0x6   : > { %219 = sbr.rel (%p216_p2) target bundleno = 938 (0x3aa), region = 40  ;;  %458 = vst [vmem:[#allocation2] sm:$0xf] (!%p216_p2), %v8801_v2  ;;  %459 = vst [vmem:[#allocation2 + $0x4] sm:$0xf] (!%p216_p2), %v8801_v2  ;;  %7906 = vmatprep.subr.bf16.mxu1 (!%p216_p2), %v8669_v0  ;;  %v8672_v3 = vld [vmem:[%s10080_s4 + $0x100] sm:$0xff] (!%p216_p2)  }
   0x7   : > { %460 = vst [vmem:[#allocation2 + $0x8] sm:$0x1] (!%p216_p2), %v8801_v2  ;;  %461 = vst [vmem:[#allocation2 + $0xc] sm:$0xf] (!%p216_p2), %v8801_v2  ;;  %7907 = vmatpush3.bf16.msra.mxu1 (!%p216_p2), %v8669_v0  ;;  %8098 = vmatprep.subr.bf16.mxu0 (!%p216_p2), %v8672_v3  ;;  %v8674_v5 = vld [vmem:[%s10080_s4 + $0x108] sm:$0xff] (!%p216_p2)   ;;  %v8676_v6 = vld [vmem:[%s10080_s4 + $0x110] sm:$0xff] (!%p216_p2)  }
   0x8   : > { %462 = vst [vmem:[#allocation2 + $0x10] sm:$0xf] (!%p216_p2), %v8801_v2  ;;  %463 = vst [vmem:[#allocation2 + $0x14] sm:$0x1] (!%p216_p2), %v8801_v2  ;;  %7908 = vmatprep.subr.bf16.mxu1 (!%p216_p2), %v8853_v1  ;;  %8099 = vmatpush3.bf16.msra.mxu0 (!%p216_p2), %v8672_v3  ;;  %v8673_v7 = vld [vmem:[%s10080_s4 + $0x18] sm:$0xff] (!%p216_p2)   ;;  %v8675_v9 = vld [vmem:[%s10080_s4 + $0x20] sm:$0xff] (!%p216_p2)  }
   0x9   : > { %464 = vst [vmem:[#allocation2 + $0x18] sm:$0xf] (!%p216_p2), %v8801_v2  ;;  %465 = vst [vmem:[#allocation2 + $0x1c] sm:$0xf] (!%p216_p2), %v8801_v2  ;;  %8100 = vmatprep.subr.bf16.mxu0 (!%p216_p2), %v8674_v5  ;;  %v8678_v8 = vld [vmem:[%s10080_s4 + $0x118] sm:$0xff] (!%p216_p2)   ;;  %v8680_v11 = vld [vmem:[%s10080_s4 + $0x120] sm:$0xff] (!%p216_p2)  }
   0xa   : > { %466 = vst [vmem:[#allocation2 + $0x20] sm:$0x1] (!%p216_p2), %v8801_v2  ;;  %467 = vst [vmem:[#allocation2 + $0x24] sm:$0xf] (!%p216_p2), %v8801_v2  ;;  %v264_v12 = vld [vmem:[%s10077_s1] sm:$0x3] (!%p216_p2) }
   0xb   : > { %468 = vst [vmem:[#allocation2 + $0x28] sm:$0xf] (!%p216_p2), %v8801_v2  ;;  %469 = vst [vmem:[#allocation2 + $0x2c] sm:$0x1] (!%p216_p2), %v8801_v2  ;;  %7909 = vmatpush3.bf16.msra.mxu1 (!%p216_p2), %v8853_v1  ;;  %v8677_v13 = vld [vmem:[%s10080_s4 + $0x28] sm:$0xff] (!%p216_p2)   ;;  %v8887_v14 = vmul.f32 (!%p216_p2), 0.001953125, %v264_v12 }
   0xc   : > { %470 = vst [vmem:[#allocation2 + $0x30] sm:$0xf] (!%p216_p2), %v8801_v2  ;;  %471 = vst [vmem:[#allocation2 + $0x34] sm:$0xf] (!%p216_p2), %v8801_v2  ;;  %7910 = vmatprep.subr.bf16.mxu1 (!%p216_p2), %v8671_v4  ;;  %8101 = vmatpush3.bf16.msra.mxu0 (!%p216_p2), %v8674_v5  ;;  %v8682_v16 = vld [vmem:[%s10080_s4 + $0x128] sm:$0xff] (!%p216_p2)   ;;  %v8679_v17 = vld [vmem:[%s10080_s4 + $0x30] sm:$0xff] (!%p216_p2)  }
   0xd   : > { %472 = vst [vmem:[#allocation2 + $0x38] sm:$0x1] %v8801_v2  ;;  %473 = vst [vmem:[#allocation2 + $0x3c] sm:$0xf] %v8801_v2  ;;  %8102 = vmatprep.subr.bf16.mxu0 %v8676_v6  ;;  %v8683_v10 = vld [vmem:[#allocation2] sm:$0xff]   ;;  %v268_v15 = vmul.f32 %v8887_v14, %v8887_v14  ;;  %s10094_s22 = smov (!%p249_p3, %s6981_s22), 1 }
   0xe   : > { %474 = vst [vmem:[#allocation2 + $0x40] sm:$0xf] %v8801_v2  ;;  %475 = vst [vmem:[#allocation2 + $0x44] sm:$0x1] %v8801_v2  ;;  %7922 = vmatprep.mubr.bf16.mxu1 %v8683_v10  ;;  %v8685_v20 = vld [vmem:[%s10080_s4 + $0x130] sm:$0xff]   ;;  %v8681_v21 = vld [vmem:[%s10080_s4 + $0x38] sm:$0xff]  }
   0xf   : > { %476 = vst [vmem:[#allocation2 + $0x48] sm:$0xf] %v8801_v2  ;;  %477 = vst [vmem:[#allocation2 + $0x4c] sm:$0xf] %v8801_v2  ;;  %7911 = vmatpush3.bf16.msra.mxu1 %v8671_v4  ;;  %v270_v18 = vrot.slane %v268_v15, 7  ;;  %s7450_s9 = sshll.u32 %s10094_s22, 7 }
  0x10   : > { %478 = vst [vmem:[#allocation2 + $0x50] sm:$0x1] %v8801_v2  ;;  %479 = vst [vmem:[#allocation2 + $0x54] sm:$0xf] %v8801_v2  ;;  %7912 = vmatprep.subr.bf16.mxu1 %v8673_v7  ;;  %8103 = vmatpush3.bf16.msra.mxu0 %v8676_v6  ;;  %v8686_v25 = vld [vmem:[%s10080_s4 + $0x138] sm:$0xff]   ;;  %s8919_s14 = scalar_lea.vmem %s10076_s0, %s7450_s9  ;;  %v8924_v26 = vld [vmem:[%s10080_s4 + $0x140] sm:$0xff]   ;;  %s10024_s12 = scalar_lea.vmem %s10081_s5, %s7450_s9 }
  0x11   : > { %480 = vst [vmem:[#allocation2 + $0x58] sm:$0xf] %v8801_v2  ;;  %481 = vst [vmem:[#allocation2 + $0x5c] sm:$0x1] %v8801_v2  ;;  %8104 = vmatprep.subr.bf16.mxu0 %v8678_v8  ;;  %v272_v19 = vsub.f32 %v8887_v14, %v270_v18  ;;  %v8927_v27 = vshrl.u32 %v352_v24, 7  ;;  %v8932_v28 = vld [vmem:[%s10080_s4 + $0x40] sm:$0xff]  }
  0x12   : > { %482 = vst [vmem:[#allocation2 + $0x60] sm:$0xf] %v8801_v2  ;;  %483 = vst [vmem:[#allocation2 + $0x64] sm:$0xf] %v8801_v2  ;;  %v7517_v29 = vld [vmem:[%s8919_s14] sm:$0xff]   ;;  %v7660_v30 = vld [vmem:[%s8919_s14 + $0x8] sm:$0xff]  }
  0x13   : > { %484 = vst [vmem:[#allocation2 + $0x68] sm:$0x1] %v8801_v2  ;;  %485 = vst [vmem:[#allocation2 + $0x6c] sm:$0xf] %v8801_v2  ;;  %7913 = vmatpush3.bf16.msra.mxu1 %v8673_v7  ;;  %v273_v22 = vmax.f32 %v272_v19, 0.0  ;;  %v7661_v31 = vld [vmem:[%s8919_s14 + $0x10] sm:$0xff]   ;;  %v7518_v35 = vunpack.c.l.bf16 %v7517_v29  ;;  %v7519_v40 = vunpack.c.h.bf16 %v7517_v29  ;;  %v7522_v41 = vunpack.c.l.bf16 %v7660_v30 }
  0x14   : > { %486 = vst [vmem:[#allocation2 + $0x70] sm:$0xf] %v8801_v2  ;;  %487 = vst [vmem:[#allocation2 + $0x74] sm:$0x1] %v8801_v2  ;;  %7914 = vmatprep.subr.bf16.mxu1 %v8675_v9  ;;  %8105 = vmatpush3.bf16.msra.mxu0 %v8678_v8  ;;  %v7662_v32 = vld [vmem:[%s8919_s14 + $0x18] sm:$0xff]   ;;  %v7663_v33 = vld [vmem:[%s8919_s14 + $0x20] sm:$0xff]   ;;  %v7523_v42 = vunpack.c.h.bf16 %v7660_v30  ;;  %v7526_v43 = vunpack.c.l.bf16 %v7661_v31  ;;  %v7527_v45 = vunpack.c.h.bf16 %v7661_v31 }
  0x15   : > { %488 = vst [vmem:[#allocation2 + $0x78] sm:$0xf] %v8801_v2  ;;  %489 = vst [vmem:[#allocation2 + $0x7c] sm:$0xf] %v8801_v2  ;;  %8106 = vmatprep.subr.bf16.mxu0 %v8680_v11  ;;  %v274_v23 = vadd.f32 1e-05, %v273_v22  ;;  %v7530_v46 = vunpack.c.l.bf16 %v7662_v32  ;;  %v7531_v47 = vunpack.c.h.bf16 %v7662_v32  ;;  %v7534_v48 = vunpack.c.l.bf16 %v7663_v33 }
  0x16   : > { %490 = vst [vmem:[#allocation2 + $0x80] sm:$0x1] %v8801_v2  ;;  %491 = vst [vmem:[#allocation2 + $0x84] sm:$0xf] %v8801_v2  ;;  %v6991_v34 = vld [vmem:[%s10078_s2] ss:$0 sm:$0xff]  ;;  %v7535_v52 = vunpack.c.h.bf16 %v7663_v33 }
  0x17   : > { %492 = vst [vmem:[#allocation2 + $0x88] sm:$0xf] %v8801_v2  ;;  %493 = vst [vmem:[#allocation2 + $0x8c] sm:$0x1] %v8801_v2  ;;  %7915 = vmatpush3.bf16.msra.mxu1 %v8675_v9  ;;  %8789 = vrsqrt.f32 %v274_v23  ;;  %v354_v36 = vsub.s32 1, %v8927_v27  ;;  %v391_v37 = vsub.s32 0, %v8927_v27 }
  0x18   : > { %494 = vst [vmem:[#allocation2 + $0x90] sm:$0xf] %v8801_v2  ;;  %495 = vst [vmem:[#allocation2 + $0x94] sm:$0xf] %v8801_v2  ;;  %7916 = vmatprep.subr.bf16.mxu1 %v8677_v13  ;;  %8107 = vmatpush3.bf16.msra.mxu0 %v8680_v11  ;;  %v7664_v38 = vld [vmem:[%s8919_s14 + $0x28] sm:$0xff]   ;;  %v7665_v39 = vld [vmem:[%s8919_s14 + $0x30] sm:$0xff]  }
  0x19   : > { %496 = vst [vmem:[#allocation2 + $0x98] sm:$0x1] %v8801_v2  ;;  %497 = vst [vmem:[#allocation2 + $0x9c] sm:$0xf] %v8801_v2  ;;  %8108 = vmatprep.subr.bf16.mxu0 %v8682_v16  ;;  %v7666_v44 = vld [vmem:[%s8919_s14 + $0x38] sm:$0xff]   ;;  %v7667_v49 = vld [vmem:[%s8919_s14 + $0x40] sm:$0xff]   ;;  %v7538_v53 = vunpack.c.l.bf16 %v7664_v38  ;;  %v7539_v54 = vunpack.c.h.bf16 %v7664_v38  ;;  %v7542_v55 = vunpack.c.l.bf16 %v7665_v39  ;;  %v7543_v58 = vunpack.c.h.bf16 %v7665_v39 }
  0x1a   : > { %498 = vst [vmem:[#allocation2 + $0xa0] sm:$0xf] %v8801_v2  ;;  %499 = vst [vmem:[#allocation2 + $0xa4] sm:$0x1] %v8801_v2  ;;  %v7668_v50 = vld [vmem:[%s8919_s14 + $0x48] sm:$0xff]   ;;  %v8952_v56 = vld [vmem:[%s8919_s14 + $0x50] sm:$0xff]   ;;  %v7546_v59 = vunpack.c.l.bf16 %v7666_v44  ;;  %v7547_v60 = vunpack.c.h.bf16 %v7666_v44  ;;  %v7550_v62 = vunpack.c.l.bf16 %v7667_v49  ;;  %v7551_v63 = vunpack.c.h.bf16 %v7667_v49 }
  0x1b   : > { %500 = vst [vmem:[#allocation2 + $0xa8] sm:$0xf] %v8801_v2  ;;  %501 = vst [vmem:[#allocation2 + $0xac] sm:$0xf] %v8801_v2  ;;  %7917 = vmatpush3.bf16.msra.mxu1 %v8677_v13  ;;  %v8955_v61 = vld [vmem:[%s8919_s14 + $0x58] sm:$0xff]   ;;  %v7554_v0 = vunpack.c.l.bf16 %v7668_v50  ;;  %v7555_v1 = vunpack.c.h.bf16 %v7668_v50  ;;  %v7558_v5 = vunpack.c.l.bf16 %v8952_v56  ;;  %v7559_v6 = vunpack.c.h.bf16 %v8952_v56  ;;  %s6990_s9 = sshll.u32 %s10094_s22, 1 }
  0x1c   : > { %502 = vst [vmem:[#allocation2 + $0xb0] sm:$0x1] %v8801_v2  ;;  %503 = vst [vmem:[#allocation2 + $0xb4] sm:$0xf] %v8801_v2  ;;  %7918 = vmatprep.subr.bf16.mxu1 %v8679_v17  ;;  %8109 = vmatpush3.bf16.msra.mxu0 %v8682_v16  ;;  %v266_v7 = vld [vmem:[%s10079_s3] sm:$0x1]  ;;  %v7562_v8 = vunpack.c.l.bf16 %v8955_v61  ;;  %v7563_v9 = vunpack.c.h.bf16 %v8955_v61  ;;  %s262_s15 = scalar_lea.vmem %s10082_s6, %s6990_s9 }
  0x1d   : > { %504 = vst [vmem:[#allocation2 + $0xb8] sm:$0xf] %v8801_v2  ;;  %505 = vst [vmem:[#allocation2 + $0xbc] sm:$0x1] %v8801_v2  ;;  %8110 = vmatprep.subr.bf16.mxu0 %v8685_v20  ;;  %vm608_vm0 = vsmask.f32 256 }
  0x1e   : > { %506 = vst [vmem:[#allocation2 + $0xc0] sm:$0xf] %v8801_v2  ;;  %507 = vst [vmem:[#allocation2 + $0xc4] sm:$0xf] %v8801_v2  ;;  %vm609_vm1 = vsmask.f32 4368 }
  0x1f   : > { %508 = vst [vmem:[#allocation2 + $0xc8] sm:$0x1] %v8801_v2  ;;  %509 = vst [vmem:[#allocation2 + $0xcc] sm:$0xf] %v8801_v2  ;;  %7919 = vmatpush3.bf16.msra.mxu1 %v8679_v17  ;;  %vm933_vm3 = vsmask.f32 7938 }
  0x20   : > { %510 = vst [vmem:[#allocation2 + $0xd0] sm:$0xf] %v8801_v2  ;;  %511 = vst [vmem:[#allocation2 + $0xd4] sm:$0x1] %v8801_v2  ;;  %7920 = vmatprep.subr.bf16.mxu1 %v8681_v21  ;;  %8111 = vmatpush3.bf16.msra.mxu0 %v8685_v20  ;;  %v8958_v2 = vld [vmem:[%s8919_s14 + $0x60] sm:$0xff]   ;;  %vm939_vm4 = vcmask 1040384  }
  0x21   : > { %8112 = vmatprep.subr.bf16.mxu0 %v8686_v25  ;;  %v8790_v51 = vpop.eup %8789  ;;  %v7566_v10 = vunpack.c.l.bf16 %v8958_v2  ;;  %v7567_v11 = vunpack.c.h.bf16 %v8958_v2  ;;  %vm9035_vm5 = vmor %vm608_vm0, %vm609_vm1  ;;  %vm1482_vm8 = vsmask.f32 3328  ;;  %vm1483_vm9 = vsmask.f32 7440 }
  0x22   : > { %v282_v57 = vmul.f32 %v8790_v51, %v6991_v34  ;;  %vm9041_vm6 = vmand %vm932_vm2, %vm933_vm3  ;;  %vm2351_vm11 = vcmask 1042432   ;;  %vm2352_vm12 = vcmask 1046532   ;;  %vm6892_vm14 = vcmp.lt.s32.totalorder %v352_v24, 256 }
  0x23   : > { %7921 = vmatpush3.bf16.msra.mxu1 %v8681_v21  ;;  %vm9047_vm7 = vmand %vm939_vm4, %vm608_vm0 }
  0x24   : > { %7954 = vmatprep.subr.bf16.mxu1 %v8932_v28  ;;  %8113 = vmatpush3.bf16.msra.mxu0 %v8686_v25  ;;  %v284_v3 = vrot.slane %v282_v57, 1  ;;  %v8960_v4 = vrot.slane %v282_v57, %v354_v36  ;;  %vm9133_vm10 = vmor %vm1482_vm8, %vm1483_vm9 }
  0x25   : > { %8146 = vmatprep.subr.bf16.mxu0 %v8924_v26  ;;  %vm9427_vm13 = vmor %vm2351_vm11, %vm2352_vm12 }
  0x26   : > { %v286_v12 = vmul.f32 %v284_v3, %v8887_v14  ;;  %v356_v13 = vmul.f32 %v7518_v35, %v8960_v4  ;;  %v357_v15 = vmul.f32 %v7519_v40, %v8960_v4  ;;  %v358_v16 = vmul.f32 %v7522_v41, %v8960_v4 }
  0x27   : > { %v359_v17 = vmul.f32 %v7523_v42, %v8960_v4  ;;  %v360_v18 = vmul.f32 %v7526_v43, %v8960_v4  ;;  %v361_v19 = vmul.f32 %v7527_v45, %v8960_v4  ;;  %v362_v20 = vmul.f32 %v7530_v46, %v8960_v4 }
  0x28   : > { %v287_v21 = vsub.f32 %v266_v7, %v286_v12  ;;  %v363_v22 = vmul.f32 %v7531_v47, %v8960_v4  ;;  %v8981_v23 = vmul.f32 %v7534_v48, %v8960_v4  ;;  %v8984_v14 = vmul.f32 %v7535_v52, %v8960_v4 }
  0x29   : > { %v8987_v25 = vmul.f32 %v7538_v53, %v8960_v4  ;;  %v8990_v29 = vmul.f32 %v7539_v54, %v8960_v4  ;;  %v8993_v30 = vmul.f32 %v7542_v55, %v8960_v4  ;;  %v8996_v31 = vmul.f32 %v7543_v58, %v8960_v4 }
  0x2a   : > { %v8998_v32 = vrot.slane %v287_v21, %v391_v37  ;;  %v9001_v33 = vmul.f32 %v7546_v59, %v8960_v4  ;;  %v9004_v34 = vmul.f32 %v7547_v60, %v8960_v4  ;;  %v9007_v35 = vmul.f32 %v7550_v62, %v8960_v4 }
  0x2b   : > { %v9010_v36 = vmul.f32 %v7551_v63, %v8960_v4  ;;  %v9013_v38 = vmul.f32 %v7554_v0, %v8960_v4  ;;  %v9016_v37 = vmul.f32 %v7555_v1, %v8960_v4  ;;  %v9019_v39 = vmul.f32 %v7558_v5, %v8960_v4 }
  0x2c   : > { %v394_v40 = vadd.f32 %v8998_v32, %v356_v13  ;;  %v395_v41 = vadd.f32 %v8998_v32, %v357_v15  ;;  %v396_v42 = vadd.f32 %v8998_v32, %v358_v16  ;;  %v397_v43 = vadd.f32 %v8998_v32, %v359_v17  ;;  %v935_v13 = vld [vmem:[#allocation2 + $0xc] sm:$0xf] }
  0x2d   : > { %v398_v44 = vadd.f32 %v8998_v32, %v360_v18  ;;  %v399_v45 = vadd.f32 %v8998_v32, %v361_v19  ;;  %v400_v46 = vadd.f32 %v8998_v32, %v362_v20  ;;  %v401_v47 = vadd.f32 %v8998_v32, %v363_v22  ;;  %v944_v22 = vld [vmem:[#allocation2 + $0x18] sm:$0xf] }
  0x2e   : > { %v426_v48 = vmax.f32 %v394_v40, 0.0  ;;  %v427_v49 = vmax.f32 %v395_v41, 0.0  ;;  %v428_v50 = vmax.f32 %v396_v42, 0.0  ;;  %v429_v51 = vmax.f32 %v397_v43, 0.0  ;;  %v8726_v42 = vld [vmem:[%s10080_s4 + $0xa0] sm:$0xff]  }
  0x2f   : > { %v430_v52 = vmax.f32 %v398_v44, 0.0  ;;  %v431_v53 = vmax.f32 %v399_v45, 0.0  ;;  %v432_v54 = vmax.f32 %v400_v46, 0.0  ;;  %v433_v55 = vmax.f32 %v401_v47, 0.0  ;;  %v951_v47 = vld [vmem:[#allocation2 + $0x24] sm:$0xf] }
  0x30   : > { %v7452_v57 = vpack.c.bf16 %v426_v48, %v426_v48  ;;  %v7453_v58 = vpack.c.bf16 %v427_v49, %v427_v49  ;;  %v7454_v59 = vpack.c.bf16 %v428_v50, %v428_v50  ;;  %v7455_v60 = vpack.c.bf16 %v429_v51, %v429_v51 }
  0x31   : > { %v7456_v62 = vpack.c.bf16 %v430_v52, %v430_v52  ;;  %v7457_v63 = vpack.c.bf16 %v431_v53, %v431_v53  ;;  %v9029_v0 = vpack.c.bf16 %v432_v54, %v432_v54  ;;  %v9031_v1 = vpack.c.bf16 %v433_v55, %v433_v55  ;;  %v941_v52 = vld [vmem:[#allocation2 + $0x14] sm:$0x1]  ;;  %v948_v53 = vld [vmem:[#allocation2 + $0x20] sm:$0x1] }
  0x32   : > { %v612_v3 = vshrl.u32 %v7452_v57, 16  ;;  %v615_v5 = vshll.u32 %v7452_v57, 16  ;;  %v620_v7 = vshrl.u32 %v7453_v58, 16  ;;  %v623_v12 = vshll.u32 %v7453_v58, 16 }
  0x33   : > { %v629_v15 = vshrl.u32 %v7454_v59, 16  ;;  %v632_v16 = vshll.u32 %v7454_v59, 16  ;;  %v637_v17 = vshrl.u32 %v7455_v60, 16  ;;  %v640_v18 = vshll.u32 %v7455_v60, 16 }
  0x34   : > { %v614_v20 = vrot.slane %v612_v3, 7  ;;  %v622_v21 = vrot.slane %v620_v7, 7  ;;  %v646_v40 = vshrl.u32 %v7456_v62, 16  ;;  %v649_v41 = vshll.u32 %v7456_v62, 16 }
  0x35   : > { %v631_v43 = vrot.slane %v629_v15, 7  ;;  %v639_v44 = vrot.slane %v637_v17, 7  ;;  %v654_v45 = vshrl.u32 %v7457_v63, 16  ;;  %v657_v46 = vshll.u32 %v7457_v63, 16 }
  0x36   : > { %v617_v48 = vor.u32 %v615_v5, %v614_v20  ;;  %v618_v49 = vrot.slane %v614_v20, 4  ;;  %v625_v50 = vor.u32 %v623_v12, %v622_v21  ;;  %v648_v51 = vrot.slane %v646_v40, 7 }
  0x37   : > { %v634_v55 = vor.u32 %v632_v16, %v631_v43  ;;  %v635_v57 = vrot.slane %v631_v43, 4  ;;  %v642_v58 = vor.u32 %v640_v18, %v639_v44  ;;  %v644_v59 = vrot.slane %v639_v44, 4  ;;  %v955_v16 = vld [vmem:[#allocation2 + $0x2c] sm:$0x1]  ;;  %v958_v43 = vld [vmem:[#allocation2 + $0x30] sm:$0xf] }
  0x38   : > { %v626_v60 = vsel %vm9035_vm5, %v618_v49, %v625_v50  ;;  %v936_v62 = vsel %vm9041_vm6, %v617_v48, %v935_v13  ;;  %v651_v63 = vor.u32 %v649_v41, %v648_v51  ;;  %v652_v3 = vrot.slane %v648_v51, 4 }
  0x39   : > { %937 = vst [vmem:[#allocation2 + $0xc] sm:$0xf] %v936_v62  ;;  %938 = vst [vmem:[#allocation2 + $0x10] sm:$0xf] %v626_v60  ;;  %v643_v5 = vsel %vm9035_vm5, %v635_v57, %v642_v58  ;;  %v945_v7 = vsel %vm9041_vm6, %v634_v55, %v944_v22  ;;  %v656_v12 = vrot.slane %v654_v45, 7  ;;  %v627_v15 = vrot.slane %v622_v21, 4 }
  0x3a   : > { %946 = vst [vmem:[#allocation2 + $0x18] sm:$0xf] %v945_v7  ;;  %947 = vst [vmem:[#allocation2 + $0x1c] sm:$0xf] %v643_v5  ;;  %v952_v17 = vsel %vm9041_vm6, %v651_v63, %v951_v47  ;;  %v949_v13 = vsel %vm9047_vm7, %v644_v59, %v948_v53  ;;  %v663_v18 = vshrl.u32 %v9029_v0, 16  ;;  %v666_v20 = vshll.u32 %v9029_v0, 16 }
  0x3b   : > { %v659_v40 = vor.u32 %v657_v46, %v656_v12  ;;  %v661_v41 = vrot.slane %v656_v12, 4  ;;  %953 = vst [vmem:[#allocation2 + $0x24] sm:$0xf] %v952_v17  ;;  %v942_v22 = vsel %vm9047_vm7, %v627_v15, %v941_v52  ;;  %950 = vst [vmem:[#allocation2 + $0x20] sm:$0x1] %v949_v13  ;;  %v671_v21 = vshrl.u32 %v9031_v1, 16 }
  0x3c   : > { %943 = vst [vmem:[#allocation2 + $0x14] sm:$0x1] %v942_v22  ;;  %v665_v44 = vrot.slane %v663_v18, 7  ;;  %v674_v45 = vshll.u32 %v9031_v1, 16  ;;  %v402_v47 = vadd.f32 %v8998_v32, %v8981_v23  ;;  %v403_v0 = vadd.f32 %v8998_v32, %v8984_v14  ;;  %v962_v46 = vld [vmem:[#allocation2 + $0x38] sm:$0x1] }
  0x3d   : > { %v660_v48 = vsel %vm9035_vm5, %v652_v3, %v659_v40  ;;  %v673_v49 = vrot.slane %v671_v21, 7  ;;  %v956_v50 = vsel %vm9047_vm7, %v661_v41, %v955_v16  ;;  %v404_v51 = vadd.f32 %v8998_v32, %v8987_v25  ;;  %v8700_v14 = vld [vmem:[%s10080_s4 + $0x48] sm:$0xff]   ;;  %v8703_v40 = vld [vmem:[%s10080_s4 + $0x50] sm:$0xff]  }
  0x3e   : > { %954 = vst [vmem:[#allocation2 + $0x28] sm:$0xf] %v660_v48  ;;  %v668_v1 = vor.u32 %v666_v20, %v665_v44  ;;  %v669_v52 = vrot.slane %v665_v44, 4  ;;  %v434_v23 = vmax.f32 %v402_v47, 0.0  ;;  %v435_v53 = vmax.f32 %v403_v0, 0.0 }
  0x3f   : > { %957 = vst [vmem:[#allocation2 + $0x2c] sm:$0x1] %v956_v50  ;;  %v676_v55 = vor.u32 %v674_v45, %v673_v49  ;;  %v678_v57 = vrot.slane %v673_v49, 4  ;;  %v405_v58 = vadd.f32 %v8998_v32, %v8990_v29  ;;  %v436_v59 = vmax.f32 %v404_v51, 0.0 }
  0x40   : > { %v8684_v60 = vld [vmem:[#allocation2 + $0xc] sm:$0xff]   ;;  %v959_v25 = vsel %vm9041_vm6, %v668_v1, %v958_v43  ;;  %v9086_v62 = vpack.c.bf16 %v434_v23, %v434_v23  ;;  %v9088_v63 = vpack.c.bf16 %v435_v53, %v435_v53  ;;  %v9092_v3 = vadd.f32 %v8998_v32, %v8993_v30 }
  0x41   : > { %v8687_v5 = vld [vmem:[#allocation2 + $0x18] sm:$0xff]   ;;  %v677_v7 = vsel %vm9035_vm5, %v669_v52, %v676_v55  ;;  %960 = vst [vmem:[#allocation2 + $0x30] sm:$0xf] %v959_v25  ;;  %v963_v29 = vsel %vm9047_vm7, %v678_v57, %v962_v46  ;;  %v437_v12 = vmax.f32 %v405_v58, 0.0  ;;  %v9098_v15 = vpack.c.bf16 %v436_v59, %v436_v59  ;;  %7923 = vmatmul.mubr.bf16.vlgmr.msra.gmra.mrb[0].mxu1 %v8684_v60  ;;  %v3302_v16 = vld [vmem:[#allocation2 + $0xc] sm:$0xf] }
  0x42   : > { %v3303_v17 = vld [vmem:[#allocation2 + $0x10] sm:$0xf]  ;;  %961 = vst [vmem:[#allocation2 + $0x34] sm:$0xf] %v677_v7  ;;  %964 = vst [vmem:[#allocation2 + $0x38] sm:$0x1] %v963_v29  ;;  %v9102_v30 = vadd.f32 %v8998_v32, %v8996_v31  ;;  %v9106_v13 = vadd.f32 %v8998_v32, %v9001_v33  ;;  %v9110_v18 = vadd.f32 %v8998_v32, %v9004_v34  ;;  %7926 = vmatprep.mubr.bf16.mxu1 %v8687_v5 }
  0x43   : > { %v9114_v20 = vadd.f32 %v8998_v32, %v9007_v35  ;;  %v3304_v41 = vld [vmem:[#allocation2 + $0x14] sm:$0x1]  ;;  %v3351_v31 = vshrl.u32 %v3302_v16, 16  ;;  %v3354_v22 = vshll.u32 %v3302_v16, 16  ;;  %v3360_v21 = vshll.u32 %v3303_v17, 16  ;;  %7955 = vmatpush3.bf16.msra.mxu1 %v8932_v28  ;;  %v8705_v7 = vld [vmem:[%s10080_s4 + $0x58] sm:$0xff]  }
  0x44   : > { %v3364_v43 = vshrl.u32 %v3303_v17, 16  ;;  %v3370_v33 = vshll.u32 %v3304_v41, 16  ;;  %v3305_v44 = vld [vmem:[#allocation2 + $0x18] sm:$0xf]  ;;  %v3306_v34 = vld [vmem:[#allocation2 + $0x1c] sm:$0xf]  ;;  %v9121_v47 = vpack.c.bf16 %v437_v12, %v437_v12  ;;  %v9125_v35 = vadd.f32 %v8998_v32, %v9010_v36  ;;  %7956 = vmatprep.subr.bf16.mxu1 %v8700_v14 }
  0x45   : > { %v680_v45 = vshrl.u32 %v9086_v62, 16  ;;  %v8688_v0 = vld [vmem:[#allocation2 + $0x24] sm:$0xff]   ;;  %v3353_v46 = vrot.slane %v3351_v31, 4  ;;  %v3356_v48 = vrot.slane %v3354_v22, 5  ;;  %v3362_v49 = vrot.slane %v3360_v21, 5 }
  0x46   : > { %v9129_v50 = vadd.f32 %v8998_v32, %v9013_v38  ;;  %v3366_v28 = vrot.slane %v3364_v43, 4  ;;  %v3372_v51 = vrot.slane %v3370_v33, 5  ;;  %v3307_v1 = vld [vmem:[#allocation2 + $0x20] sm:$0x1]  ;;  %v3375_v52 = vshrl.u32 %v3305_v44, 16 }
  0x47   : > { %v3378_v23 = vshll.u32 %v3305_v44, 16  ;;  %v3357_v53 = vor.u32 %v3356_v48, %v3353_v46  ;;  %v3384_v55 = vshll.u32 %v3306_v34, 16  ;;  %v3388_v57 = vshrl.u32 %v3306_v34, 16  ;;  %v3308_v36 = vld [vmem:[#allocation2 + $0x24] sm:$0xf]  ;;  %7957 = vmatpush3.bf16.msra.mxu1 %v8700_v14 }
  0x48   : > { %v3394_v58 = vshll.u32 %v3307_v1, 16  ;;  %v3367_v60 = vor.u32 %v3366_v28, %v3362_v49  ;;  %v3377_v38 = vrot.slane %v3375_v52, 4  ;;  %v682_v5 = vrot.slane %v680_v45, 7  ;;  %7958 = vmatprep.subr.bf16.mxu1 %v8703_v40  ;;  %v965_v45 = vld [vmem:[#allocation2 + $0x3c] sm:$0xf] }
  0x49   : > { %v3380_v25 = vrot.slane %v3378_v23, 5  ;;  %v3358_v29 = vrot.slane %v3357_v53, 4  ;;  %v3386_v12 = vrot.slane %v3384_v55, 5  ;;  %v3390_v16 = vrot.slane %v3388_v57, 4  ;;  %7927 = vmatmul.mubr.bf16.gmra.mrb[4].mxu1 %v8688_v0  ;;  %v8690_v31 = vld [vmem:[#allocation2 + $0x30] sm:$0xff]  }
  0x4a   : > { %v3396_v17 = vrot.slane %v3394_v58, 5  ;;  %v3368_v14 = vrot.slane %v3367_v60, 4  ;;  %v683_v22 = vshll.u32 %v9086_v62, 16  ;;  %v686_v21 = vrot.slane %v682_v5, 4  ;;  %v3309_v46 = vld [vmem:[#allocation2 + $0x28] sm:$0xf]  ;;  %7930 = vmatprep.mubr.bf16.mxu1 %v8690_v31 }
  0x4b   : > { %v3381_v41 = vor.u32 %v3380_v25, %v3377_v38  ;;  %v3363_v43 = vsel %vm9133_vm10, %v3358_v29, %v3362_v49  ;;  %v3391_v33 = vor.u32 %v3390_v16, %v3386_v12  ;;  %v688_v44 = vshrl.u32 %v9088_v63, 16  ;;  %7959 = vmatpush3.bf16.msra.mxu1 %v8703_v40  ;;  %v8708_v62 = vld [vmem:[%s10080_s4 + $0x60] sm:$0xff]   ;;  %v3311_v58 = vld [vmem:[#allocation2 + $0x30] sm:$0xf]  ;;  %v8692_v60 = vld [vmem:[%s10080_s4 + $0x148] sm:$0xff]  }
  0x4c   : > { %v691_v34 = vshll.u32 %v9088_v63, 16  ;;  %v3373_v0 = vsel %vm9133_vm10, %v3368_v14, %v3372_v51  ;;  %v685_v28 = vor.u32 %v683_v22, %v682_v5  ;;  %v3399_v1 = vshrl.u32 %v3308_v36, 16  ;;  %7960 = vmatprep.subr.bf16.mxu1 %v8705_v7  ;;  %v3310_v63 = vld [vmem:[#allocation2 + $0x2c] sm:$0x1]  ;;  %v3312_v29 = vld [vmem:[#allocation2 + $0x34] sm:$0xf] }
  0x4d   : > { %v3382_v48 = vrot.slane %v3381_v41, 4  ;;  %v7200_v49 = vcombine.low %v3363_v43, %v3373_v0  ;;  %v3392_v52 = vrot.slane %v3391_v33, 4  ;;  %v9150_v23 = vrot.slane %v688_v44, 7  ;;  %v8710_v22 = vld [vmem:[%s10080_s4 + $0x68] sm:$0xff]  }
  0x4e   : > { %v3402_v53 = vshll.u32 %v3308_v36, 16  ;;  %v966_v51 = vsel %vm9041_vm6, %v685_v28, %v965_v45  ;;  %v3401_v55 = vrot.slane %v3399_v1, 4  ;;  %v3408_v57 = vshll.u32 %v3309_v46, 16 }
  0x4f   : > { %v3387_v40 = vsel %vm9133_vm10, %v3382_v48, %v3386_v12  ;;  %8114 = vmatprep.mubr.bf16.mxu0 %v7200_v49  ;;  %v3397_v38 = vsel %vm9133_vm10, %v3392_v52, %v3396_v17  ;;  %v693_v25 = vor.u32 %v691_v34, %v9150_v23  ;;  %v695_v36 = vrot.slane %v9150_v23, 4  ;;  %967 = vst [vmem:[#allocation2 + $0x3c] sm:$0xf] %v966_v51  ;;  %v3313_v12 = vld [vmem:[#allocation2 + $0x38] sm:$0x1] }
  0x50   : > { %v3404_v5 = vrot.slane %v3402_v53, 5  ;;  %7961 = vmatpush3.bf16.msra.mxu1 %v8705_v7  ;;  %v7201_v16 = vcombine.low %v3387_v40, %v3397_v38  ;;  %v3410_v14 = vrot.slane %v3408_v57, 5  ;;  %v3412_v41 = vshrl.u32 %v3309_v46, 16  ;;  %v8695_v46 = vld [vmem:[%s10080_s4 + $0x150] sm:$0xff]  }
  0x51   : > { %v3418_v31 = vshll.u32 %v3310_v63, 16  ;;  %7962 = vmatprep.subr.bf16.mxu1 %v8708_v62  ;;  %v694_v17 = vsel %vm9035_vm5, %v686_v21, %v693_v25  ;;  %v3423_v33 = vshrl.u32 %v3311_v58, 16  ;;  %v3426_v44 = vshll.u32 %v3311_v58, 16  ;;  %v8713_v40 = vld [vmem:[%s10080_s4 + $0x70] sm:$0xff]   ;;  %v972_v58 = vld [vmem:[#allocation2 + $0x48] sm:$0xf] }
  0x52   : > { %v3405_v43 = vor.u32 %v3404_v5, %v3401_v55  ;;  %8115 = vmatmul.mubr.bf16.vlgmr.msra.gmra.mrb[0].mxu0 %v7201_v16  ;;  %968 = vst [vmem:[#allocation2 + $0x40] sm:$0xf] %v694_v17  ;;  %v3414_v34 = vrot.slane %v3412_v41, 4  ;;  %v3432_v7 = vshll.u32 %v3312_v29, 16  ;;  %v3436_v0 = vshrl.u32 %v3312_v29, 16 }
  0x53   : > { %v3420_v45 = vrot.slane %v3418_v31, 5  ;;  %8147 = vmatpush3.bf16.msra.mxu0 %v8924_v26  ;;  %v3425_v28 = vrot.slane %v3423_v33, 4  ;;  %v3428_v1 = vrot.slane %v3426_v44, 5  ;;  %v3442_v49 = vshll.u32 %v3313_v12, 16  ;;  %v969_v31 = vld [vmem:[#allocation2 + $0x44] sm:$0x1] }
  0x54   : > { %v3406_v48 = vrot.slane %v3405_v43, 4  ;;  %7963 = vmatpush3.bf16.msra.mxu1 %v8708_v62  ;;  %v3415_v21 = vor.u32 %v3414_v34, %v3410_v14  ;;  %v3434_v52 = vrot.slane %v3432_v7, 5  ;;  %v3438_v63 = vrot.slane %v3436_v0, 4  ;;  %8148 = vmatprep.subr.bf16.mxu0 %v8692_v60  ;;  %v8699_v33 = vld [vmem:[%s10080_s4 + $0x158] sm:$0xff]   ;;  %v976_v34 = vld [vmem:[#allocation2 + $0x50] sm:$0x1] }
  0x55   : > { %v697_v53 = vshrl.u32 %v9098_v15, 16  ;;  %7964 = vmatprep.subr.bf16.mxu1 %v8710_v22  ;;  %v3429_v26 = vor.u32 %v3428_v1, %v3425_v28  ;;  %v3444_v55 = vrot.slane %v3442_v49, 5  ;;  %v700_v57 = vshll.u32 %v9098_v15, 16  ;;  %v8715_v1 = vld [vmem:[%s10080_s4 + $0x78] sm:$0xff]  }
  0x56   : > { %v3411_v51 = vsel %vm9133_vm10, %v3406_v48, %v3410_v14  ;;  %v3416_v62 = vrot.slane %v3415_v21, 4  ;;  %v3439_v38 = vor.u32 %v3438_v63, %v3434_v52  ;;  %v705_v5 = vshrl.u32 %v9121_v47, 16 }
  0x57   : > { %v699_v25 = vrot.slane %v697_v53, 7  ;;  %v3430_v29 = vrot.slane %v3429_v26, 4  ;;  %8149 = vmatpush3.bf16.msra.mxu0 %v8692_v60  ;;  %v708_v12 = vshll.u32 %v9121_v47, 16  ;;  %v438_v16 = vmax.f32 %v9092_v3, 0.0 }
  0x58   : > { %v439_v41 = vmax.f32 %v9102_v30, 0.0  ;;  %7965 = vmatpush3.bf16.msra.mxu1 %v8710_v22  ;;  %v3421_v14 = vsel %vm9133_vm10, %v3416_v62, %v3420_v45  ;;  %v3440_v15 = vrot.slane %v3439_v38, 4  ;;  %8150 = vmatprep.subr.bf16.mxu0 %v8695_v46  ;;  %v707_v30 = vrot.slane %v705_v5, 7  ;;  %v3314_v22 = vld [vmem:[#allocation2 + $0x3c] sm:$0xf]  ;;  %v8704_v62 = vld [vmem:[%s10080_s4 + $0x160] sm:$0xff]  }
  0x59   : > { %v702_v17 = vor.u32 %v700_v57, %v699_v25  ;;  %v703_v43 = vrot.slane %v699_v25, 4  ;;  %7966 = vmatprep.subr.bf16.mxu1 %v8713_v40  ;;  %v8691_v60 = vld [vmem:[#allocation2 + $0x3c] sm:$0xff]   ;;  %v7202_v47 = vcombine.low %v3411_v51, %v3421_v14  ;;  %v3435_v3 = vsel %vm9133_vm10, %v3430_v29, %v3434_v52  ;;  %v979_v25 = vld [vmem:[#allocation2 + $0x54] sm:$0xf] }
  0x5a   : > { %v7464_v44 = vpack.c.bf16 %v438_v16, %v438_v16  ;;  %v3445_v45 = vsel %vm9133_vm10, %v3440_v15, %v3444_v55  ;;  %v7465_v0 = vpack.c.bf16 %v439_v41, %v439_v41  ;;  %v970_v48 = vsel %vm9047_vm7, %v695_v36, %v969_v31  ;;  %v3315_v28 = vld [vmem:[#allocation2 + $0x40] sm:$0xf]  ;;  %7931 = vmatmul.mubr.bf16.gmra.mrb[8].mxu1 %v8691_v60  ;;  %v983_v31 = vld [vmem:[#allocation2 + $0x5c] sm:$0x1] }
  0x5b   : > { %v973_v7 = vsel %vm9041_vm6, %v702_v17, %v972_v58  ;;  %8118 = vmatprep.mubr.bf16.mxu0 %v7202_v47  ;;  %v7203_v49 = vcombine.low %v3435_v3, %v3445_v45  ;;  %v710_v21 = vor.u32 %v708_v12, %v707_v30  ;;  %v712_v52 = vrot.slane %v707_v30, 4  ;;  %971 = vst [vmem:[#allocation2 + $0x44] sm:$0x1] %v970_v48 }
  0x5c   : > { %974 = vst [vmem:[#allocation2 + $0x48] sm:$0xf] %v973_v7  ;;  %v714_v63 = vshrl.u32 %v7464_v44, 16  ;;  %v717_v53 = vshll.u32 %v7464_v44, 16  ;;  %v722_v51 = vshrl.u32 %v7465_v0, 16  ;;  %v725_v26 = vshll.u32 %v7465_v0, 16  ;;  %8151 = vmatpush3.bf16.msra.mxu0 %v8695_v46  ;;  %7967 = vmatpush3.bf16.msra.mxu1 %v8713_v40 }
  0x5d   : > { %v3447_v23 = vshrl.u32 %v3314_v22, 16  ;;  %8119 = vmatmul.mubr.bf16.gmra.mrb[4].mxu0 %v7203_v49  ;;  %v711_v36 = vsel %vm9035_vm5, %v703_v43, %v710_v21  ;;  %v3450_v57 = vshll.u32 %v3314_v22, 16  ;;  %v3456_v58 = vshll.u32 %v3315_v28, 16  ;;  %8152 = vmatprep.subr.bf16.mxu0 %v8699_v33  ;;  %v8709_v44 = vld [vmem:[%s10080_s4 + $0x168] sm:$0xff]  }
  0x5e   : > { %v716_v55 = vrot.slane %v714_v63, 7  ;;  %975 = vst [vmem:[#allocation2 + $0x4c] sm:$0xf] %v711_v36  ;;  %v724_v38 = vrot.slane %v722_v51, 7  ;;  %v3460_v29 = vshrl.u32 %v3315_v28, 16  ;;  %v977_v46 = vsel %vm9047_vm7, %v712_v52, %v976_v34  ;;  %7968 = vmatprep.subr.bf16.mxu1 %v8715_v1  ;;  %v8714_v52 = vld [vmem:[%s10080_s4 + $0x170] sm:$0xff]  }
  0x5f   : > { %v3449_v5 = vrot.slane %v3447_v23, 4  ;;  %v3452_v16 = vrot.slane %v3450_v57, 5  ;;  %v3458_v41 = vrot.slane %v3456_v58, 5  ;;  %978 = vst [vmem:[#allocation2 + $0x50] sm:$0x1] %v977_v46  ;;  %v440_v43 = vmax.f32 %v9106_v13, 0.0 }
  0x60   : > { %v719_v40 = vor.u32 %v717_v53, %v716_v55  ;;  %v720_v12 = vrot.slane %v716_v55, 4  ;;  %v727_v14 = vor.u32 %v725_v26, %v724_v38  ;;  %v729_v15 = vrot.slane %v724_v38, 4  ;;  %8153 = vmatpush3.bf16.msra.mxu0 %v8699_v33  ;;  %7969 = vmatpush3.bf16.msra.mxu1 %v8715_v1 }
  0x61   : > { %v3462_v17 = vrot.slane %v3460_v29, 4  ;;  %v3453_v47 = vor.u32 %v3452_v16, %v3449_v5  ;;  %v441_v3 = vmax.f32 %v9110_v18, 0.0  ;;  %v442_v30 = vmax.f32 %v9114_v20, 0.0  ;;  %8154 = vmatprep.subr.bf16.mxu0 %v8704_v62 }
  0x62   : > { %v980_v60 = vsel %vm9041_vm6, %v719_v40, %v979_v25  ;;  %v728_v22 = vsel %vm9035_vm5, %v720_v12, %v727_v14  ;;  %v3316_v13 = vld [vmem:[#allocation2 + $0x44] sm:$0x1]  ;;  %v7466_v45 = vpack.c.bf16 %v440_v43, %v440_v43  ;;  %v984_v7 = vsel %vm9047_vm7, %v729_v15, %v983_v31  ;;  %v986_v31 = vld [vmem:[#allocation2 + $0x60] sm:$0xf]  ;;  %v8716_v43 = vld [vmem:[%s10080_s4 + $0x178] sm:$0xff]  }
  0x63   : > { %981 = vst [vmem:[#allocation2 + $0x54] sm:$0xf] %v980_v60  ;;  %v3463_v33 = vor.u32 %v3462_v17, %v3458_v41  ;;  %v3317_v34 = vld [vmem:[#allocation2 + $0x48] sm:$0xf]  ;;  %982 = vst [vmem:[#allocation2 + $0x58] sm:$0xf] %v728_v22  ;;  %v7467_v1 = vpack.c.bf16 %v441_v3, %v441_v3  ;;  %v7468_v23 = vpack.c.bf16 %v442_v30, %v442_v30 }
  0x64   : > { %v3454_v18 = vrot.slane %v3453_v47, 4  ;;  %v3466_v0 = vshll.u32 %v3316_v13, 16  ;;  %v3471_v20 = vshrl.u32 %v3317_v34, 16  ;;  %v3474_v48 = vshll.u32 %v3317_v34, 16  ;;  %985 = vst [vmem:[#allocation2 + $0x5c] sm:$0x1] %v984_v7  ;;  %8155 = vmatpush3.bf16.msra.mxu0 %v8704_v62 }
  0x65   : > { %v3464_v28 = vrot.slane %v3463_v33, 4  ;;  %v731_v49 = vshrl.u32 %v7466_v45, 16  ;;  %v734_v21 = vshll.u32 %v7466_v45, 16  ;;  %v8693_v63 = vld [vmem:[#allocation2 + $0x48] sm:$0xff]   ;;  %v9227_v36 = vadd.f32 %v8998_v32, %v9016_v37  ;;  %8156 = vmatprep.subr.bf16.mxu0 %v8709_v44 }
  0x66   : > { %v3459_v53 = vsel %vm9133_vm10, %v3454_v18, %v3458_v41  ;;  %v3468_v51 = vrot.slane %v3466_v0, 5  ;;  %v3318_v26 = vld [vmem:[#allocation2 + $0x4c] sm:$0xf]  ;;  %v3319_v55 = vld [vmem:[#allocation2 + $0x50] sm:$0x1]  ;;  %v3473_v57 = vrot.slane %v3471_v20, 4  ;;  %7934 = vmatprep.mubr.bf16.mxu1 %v8693_v63  ;;  %v414_v56 = vadd.f32 %v8998_v32, %v9019_v39 }
  0x67   : > { %v3476_v58 = vrot.slane %v3474_v48, 5  ;;  %v3480_v62 = vshll.u32 %v3318_v26, 16  ;;  %v3484_v38 = vshrl.u32 %v3318_v26, 16  ;;  %v3490_v5 = vshll.u32 %v3319_v55, 16  ;;  %v993_v48 = vld [vmem:[#allocation2 + $0x6c] sm:$0xf] }
  0x68   : > { %v3469_v25 = vsel %vm9133_vm10, %v3464_v28, %v3468_v51  ;;  %v733_v29 = vrot.slane %v731_v49, 7  ;;  %v739_v46 = vshrl.u32 %v7467_v1, 16  ;;  %8157 = vmatpush3.bf16.msra.mxu0 %v8709_v44  ;;  %v742_v30 = vshll.u32 %v7467_v1, 16  ;;  %v8717_v63 = vld [vmem:[%s10080_s4 + $0x180] sm:$0xff]  }
  0x69   : > { %v7204_v40 = vcombine.low %v3459_v53, %v3469_v25  ;;  %v3477_v12 = vor.u32 %v3476_v58, %v3473_v57  ;;  %v3482_v16 = vrot.slane %v3480_v62, 5  ;;  %v3486_v41 = vrot.slane %v3484_v38, 4  ;;  %8158 = vmatprep.subr.bf16.mxu0 %v8714_v52  ;;  %v990_v57 = vld [vmem:[#allocation2 + $0x68] sm:$0x1] }
  0x6a   : > { %v3492_v37 = vrot.slane %v3490_v5, 5  ;;  %v736_v14 = vor.u32 %v734_v21, %v733_v29  ;;  %v737_v15 = vrot.slane %v733_v29, 4  ;;  %v741_v17 = vrot.slane %v739_v46, 7  ;;  %v8694_v60 = vld [vmem:[#allocation2 + $0x54] sm:$0xff]  }
  0x6b   : > { %8122 = vmatprep.mubr.bf16.mxu0 %v7204_v40  ;;  %v3478_v47 = vrot.slane %v3477_v12, 4  ;;  %v3487_v3 = vor.u32 %v3486_v41, %v3482_v16  ;;  %v443_v22 = vmax.f32 %v9125_v35, 0.0  ;;  %v748_v33 = vshrl.u32 %v7468_v23, 16  ;;  %v3320_v45 = vld [vmem:[#allocation2 + $0x54] sm:$0xf]  ;;  %7935 = vmatmul.mubr.bf16.gmra.mrb[12].mxu1 %v8694_v60 }
  0x6c   : > { %v746_v13 = vrot.slane %v741_v17, 4  ;;  %v987_v44 = vsel %vm9041_vm6, %v736_v14, %v986_v31  ;;  %v751_v34 = vshll.u32 %v7468_v23, 16  ;;  %v744_v0 = vor.u32 %v742_v30, %v741_v17  ;;  %v3321_v28 = vld [vmem:[#allocation2 + $0x58] sm:$0xf]  ;;  %8159 = vmatpush3.bf16.msra.mxu0 %v8714_v52  ;;  %v3322_v55 = vld [vmem:[#allocation2 + $0x5c] sm:$0x1] }
  0x6d   : > { %v3483_v7 = vsel %vm9133_vm10, %v3478_v47, %v3482_v16  ;;  %v3488_v18 = vrot.slane %v3487_v3, 4  ;;  %988 = vst [vmem:[#allocation2 + $0x60] sm:$0xf] %v987_v44  ;;  %v7469_v20 = vpack.c.bf16 %v443_v22, %v443_v22  ;;  %v750_v1 = vrot.slane %v748_v33, 7  ;;  %8160 = vmatprep.subr.bf16.mxu0 %v8716_v43 }
  0x6e   : > { %v3495_v35 = vshrl.u32 %v3320_v45, 16  ;;  %v3498_v49 = vshll.u32 %v3320_v45, 16  ;;  %v3504_v21 = vshll.u32 %v3321_v28, 16  ;;  %v745_v51 = vsel %vm9035_vm5, %v737_v15, %v744_v0 }
  0x6f   : > { %v3493_v53 = vsel %vm9133_vm10, %v3488_v18, %v3492_v37  ;;  %v756_v26 = vshrl.u32 %v7469_v20, 16  ;;  %v759_v23 = vshll.u32 %v7469_v20, 16  ;;  %989 = vst [vmem:[#allocation2 + $0x64] sm:$0xf] %v745_v51  ;;  %v753_v58 = vor.u32 %v751_v34, %v750_v1 }
  0x70   : > { %v7205_v52 = vcombine.low %v3483_v7, %v3493_v53  ;;  %v754_v62 = vrot.slane %v750_v1, 4  ;;  %v3497_v38 = vrot.slane %v3495_v35, 4  ;;  %v3500_v5 = vrot.slane %v3498_v49, 5  ;;  %8161 = vmatpush3.bf16.msra.mxu0 %v8716_v43  ;;  %v1000_v53 = vld [vmem:[#allocation2 + $0x78] sm:$0xf] }
  0x71   : > { %v9246_v25 = vrot.slane %v756_v26, 7  ;;  %v3506_v29 = vrot.slane %v3504_v21, 5  ;;  %v3508_v46 = vshrl.u32 %v3321_v28, 16  ;;  %v994_v40 = vsel %vm9041_vm6, %v753_v58, %v993_v48  ;;  %8194 = vmatprep.subr.bf16.mxu0 %v8717_v63 }
  0x72   : > { %8123 = vmatmul.mubr.bf16.gmra.mrb[8].mxu0 %v7205_v52  ;;  %v3514_v12 = vshll.u32 %v3322_v55, 16  ;;  %v991_v16 = vsel %vm9047_vm7, %v746_v13, %v990_v57  ;;  %v444_v41 = vmax.f32 %v9129_v50, 0.0  ;;  %995 = vst [vmem:[#allocation2 + $0x6c] sm:$0xf] %v994_v40  ;;  %v3501_v14 = vor.u32 %v3500_v5, %v3497_v38  ;;  %v997_v38 = vld [vmem:[#allocation2 + $0x74] sm:$0x1] }
  0x73   : > { %v761_v31 = vor.u32 %v759_v23, %v9246_v25  ;;  %v763_v37 = vrot.slane %v9246_v25, 4  ;;  %v3510_v15 = vrot.slane %v3508_v46, 4  ;;  %992 = vst [vmem:[#allocation2 + $0x68] sm:$0x1] %v991_v16  ;;  %v445_v60 = vmax.f32 %v9227_v36, 0.0  ;;  %v9271_v16 = vld [vmem:[%s10080_s4 + $0x80] sm:$0xff]  }
  0x74   : > { %v3516_v17 = vrot.slane %v3514_v12, 5  ;;  %v3323_v43 = vld [vmem:[#allocation2 + $0x60] sm:$0xf]  ;;  %v7470_v47 = vpack.c.bf16 %v444_v41, %v444_v41  ;;  %v377_v3 = vmul.f32 %v7559_v6, %v8960_v4  ;;  %v3502_v30 = vrot.slane %v3501_v14, 4  ;;  %8002 = vmatprep.subr.bf16.mxu1 %v9271_v16 }
  0x75   : > { %v762_v50 = vsel %vm9035_vm5, %v754_v62, %v761_v31  ;;  %v3511_v22 = vor.u32 %v3510_v15, %v3506_v29  ;;  %v3519_v13 = vshrl.u32 %v3323_v43, 16  ;;  %v3522_v44 = vshll.u32 %v3323_v43, 16 }
  0x76   : > { %996 = vst [vmem:[#allocation2 + $0x70] sm:$0xf] %v762_v50  ;;  %v7471_v33 = vpack.c.bf16 %v445_v60, %v445_v60  ;;  %v765_v34 = vshrl.u32 %v7470_v47, 16  ;;  %v768_v45 = vshll.u32 %v7470_v47, 16  ;;  %v8696_v7 = vld [vmem:[#allocation2 + $0x60] sm:$0xff]   ;;  %v3507_v36 = vsel %vm9133_vm10, %v3502_v30, %v3506_v29 }
  0x77   : > { %v3512_v18 = vrot.slane %v3511_v22, 4  ;;  %v3324_v0 = vld [vmem:[#allocation2 + $0x64] sm:$0xf]  ;;  %v415_v6 = vadd.f32 %v8998_v32, %v377_v3  ;;  %v3521_v20 = vrot.slane %v3519_v13, 4  ;;  %v3524_v48 = vrot.slane %v3522_v44, 5  ;;  %7938 = vmatprep.mubr.bf16.mxu1 %v8696_v7 }
  0x78   : > { %v3528_v28 = vshll.u32 %v3324_v0, 16  ;;  %v3532_v1 = vshrl.u32 %v3324_v0, 16  ;;  %v767_v49 = vrot.slane %v765_v34, 7  ;;  %v773_v21 = vshrl.u32 %v7471_v33, 16 }
  0x79   : > { %v3517_v35 = vsel %vm9133_vm10, %v3512_v18, %v3516_v17  ;;  %v776_v63 = vshll.u32 %v7471_v33, 16  ;;  %v3525_v23 = vor.u32 %v3524_v48, %v3521_v20  ;;  %v446_v46 = vmax.f32 %v414_v56, 0.0  ;;  %v3326_v12 = vld [vmem:[#allocation2 + $0x6c] sm:$0xf] }
  0x7a   : > { %v7206_v51 = vcombine.low %v3507_v36, %v3517_v35  ;;  %v3325_v26 = vld [vmem:[#allocation2 + $0x68] sm:$0x1]  ;;  %v3530_v55 = vrot.slane %v3528_v28, 5  ;;  %v3534_v57 = vrot.slane %v3532_v1, 4  ;;  %v770_v52 = vor.u32 %v768_v45, %v767_v49  ;;  %v1004_v36 = vld [vmem:[#allocation2 + $0x80] sm:$0x1] }
  0x7b   : > { %v3538_v39 = vshll.u32 %v3325_v26, 16  ;;  %v771_v58 = vrot.slane %v767_v49, 4  ;;  %v775_v62 = vrot.slane %v773_v21, 7  ;;  %v3526_v5 = vrot.slane %v3525_v23, 4  ;;  %v1007_v28 = vld [vmem:[#allocation2 + $0x84] sm:$0xf] }
  0x7c   : > { %8126 = vmatprep.mubr.bf16.mxu0 %v7206_v51  ;;  %v3535_v29 = vor.u32 %v3534_v57, %v3530_v55  ;;  %v447_v40 = vmax.f32 %v415_v6, 0.0  ;;  %v1001_v17 = vsel %vm9041_vm6, %v770_v52, %v1000_v53  ;;  %v7472_v47 = vpack.c.bf16 %v446_v46, %v446_v46 }
  0x7d   : > { %v8697_v41 = vld [vmem:[#allocation2 + $0x6c] sm:$0xff]   ;;  %v3540_v31 = vrot.slane %v3538_v39, 5  ;;  %v778_v14 = vor.u32 %v776_v63, %v775_v62  ;;  %v780_v15 = vrot.slane %v775_v62, 4  ;;  %v3531_v43 = vsel %vm9133_vm10, %v3526_v5, %v3530_v55  ;;  %1002 = vst [vmem:[#allocation2 + $0x78] sm:$0xf] %v1001_v17 }
  0x7e   : > { %v3536_v60 = vrot.slane %v3535_v29, 4  ;;  %v7473_v3 = vpack.c.bf16 %v447_v40, %v447_v40  ;;  %7939 = vmatmul.mubr.bf16.gmra.mrb[16].mxu1 %v8697_v41  ;;  %v998_v30 = vsel %vm9047_vm7, %v763_v37, %v997_v38  ;;  %v3327_v22 = vld [vmem:[#allocation2 + $0x70] sm:$0xf]  ;;  %v3543_v13 = vshrl.u32 %v3326_v12, 16 }
  0x7f   : > { %v779_v50 = vsel %vm9035_vm5, %v771_v58, %v778_v14  ;;  %v3546_v44 = vshll.u32 %v3326_v12, 16  ;;  %v782_v34 = vshrl.u32 %v7472_v47, 16  ;;  %v785_v45 = vshll.u32 %v7472_v47, 16  ;;  %999 = vst [vmem:[#allocation2 + $0x74] sm:$0x1] %v998_v30 }
  0x80   : > { %v3541_v33 = vsel %vm9133_vm10, %v3536_v60, %v3540_v31  ;;  %1003 = vst [vmem:[#allocation2 + $0x7c] sm:$0xf] %v779_v50  ;;  %v790_v7 = vshrl.u32 %v7473_v3, 16  ;;  %v793_v0 = vshll.u32 %v7473_v3, 16  ;;  %v3545_v56 = vrot.slane %v3543_v13, 4 }
  0x81   : > { %v7207_v18 = vcombine.low %v3531_v43, %v3541_v33  ;;  %v3548_v6 = vrot.slane %v3546_v44, 5  ;;  %v784_v25 = vrot.slane %v782_v34, 7  ;;  %v3552_v37 = vshll.u32 %v3327_v22, 16  ;;  %v9315_v34 = vld [vmem:[%s8919_s14 + $0x68] sm:$0xff]  }
  0x82   : > { %v9286_v20 = vrot.slane %v790_v7, 7  ;;  %v3556_v48 = vshrl.u32 %v3327_v22, 16  ;;  %v1005_v35 = vsel %vm9047_vm7, %v780_v15, %v1004_v36  ;;  %v378_v49 = vmul.f32 %v7562_v8, %v8960_v4  ;;  %v1011_v22 = vld [vmem:[#allocation2 + $0x8c] sm:$0x1] }
  0x83   : > { %8127 = vmatmul.mubr.bf16.gmra.mrb[12].mxu0 %v7207_v18  ;;  %v3549_v1 = vor.u32 %v3548_v6, %v3545_v56  ;;  %v379_v21 = vmul.f32 %v7563_v9, %v8960_v4  ;;  %v787_v63 = vor.u32 %v785_v45, %v784_v25  ;;  %v788_v53 = vrot.slane %v784_v25, 4  ;;  %1006 = vst [vmem:[#allocation2 + $0x80] sm:$0x1] %v1005_v35 }
  0x84   : > { %v795_v51 = vor.u32 %v793_v0, %v9286_v20  ;;  %v797_v26 = vrot.slane %v9286_v20, 4  ;;  %v3554_v55 = vrot.slane %v3552_v37, 5  ;;  %v3558_v57 = vrot.slane %v3556_v48, 4  ;;  %v3329_v61 = vld [vmem:[#allocation2 + $0x78] sm:$0xf] }
  0x85   : > { %v3550_v23 = vrot.slane %v3549_v1, 4  ;;  %v416_v39 = vadd.f32 %v8998_v32, %v378_v49  ;;  %v1008_v8 = vsel %vm9041_vm6, %v787_v63, %v1007_v28  ;;  %v417_v9 = vadd.f32 %v8998_v32, %v379_v21  ;;  %v1014_v48 = vld [vmem:[#allocation2 + $0x90] sm:$0xf] }
  0x86   : > { %v796_v52 = vsel %vm9035_vm5, %v788_v53, %v795_v51  ;;  %v380_v58 = vmul.f32 %v7566_v10, %v8960_v4  ;;  %1009 = vst [vmem:[#allocation2 + $0x84] sm:$0xf] %v1008_v8  ;;  %v3328_v38 = vld [vmem:[#allocation2 + $0x74] sm:$0x1]  ;;  %v3559_v29 = vor.u32 %v3558_v57, %v3554_v55  ;;  %v3567_v46 = vshrl.u32 %v3329_v61, 16 }
  0x87   : > { %v8701_v62 = vld [vmem:[#allocation2 + $0x78] sm:$0xff]   ;;  %1010 = vst [vmem:[#allocation2 + $0x88] sm:$0xf] %v796_v52  ;;  %v3555_v5 = vsel %vm9133_vm10, %v3550_v23, %v3554_v55  ;;  %v381_v40 = vmul.f32 %v7567_v11, %v8960_v4  ;;  %v3562_v12 = vshll.u32 %v3328_v38, 16  ;;  %v3570_v31 = vshll.u32 %v3329_v61, 16 }
  0x88   : > { %v3330_v41 = vld [vmem:[#allocation2 + $0x7c] sm:$0xf]  ;;  %v448_v14 = vmax.f32 %v416_v39, 0.0  ;;  %v449_v15 = vmax.f32 %v417_v9, 0.0  ;;  %7942 = vmatprep.mubr.bf16.mxu1 %v8701_v62  ;;  %v3560_v10 = vrot.slane %v3559_v29, 4  ;;  %v3569_v17 = vrot.slane %v3567_v46, 4 }
  0x89   : > { %v3576_v43 = vshll.u32 %v3330_v41, 16  ;;  %v3580_v60 = vshrl.u32 %v3330_v41, 16  ;;  %v3564_v47 = vrot.slane %v3562_v12, 5  ;;  %v3572_v3 = vrot.slane %v3570_v31, 5  ;;  %v1018_v41 = vld [vmem:[#allocation2 + $0x98] sm:$0x1] }
  0x8a   : > { %v7474_v50 = vpack.c.bf16 %v448_v14, %v448_v14  ;;  %v7475_v30 = vpack.c.bf16 %v449_v15, %v449_v15  ;;  %v3331_v13 = vld [vmem:[#allocation2 + $0x80] sm:$0x1]  ;;  %v418_v11 = vadd.f32 %v8998_v32, %v380_v58  ;;  %v419_v33 = vadd.f32 %v8998_v32, %v381_v40 }
  0x8b   : > { %v3578_v44 = vrot.slane %v3576_v43, 5  ;;  %v3582_v2 = vrot.slane %v3580_v60, 4  ;;  %v3565_v45 = vsel %vm9133_vm10, %v3560_v10, %v3564_v47  ;;  %v3573_v7 = vor.u32 %v3572_v3, %v3569_v17 }
  0x8c   : > { %v3586_v36 = vshll.u32 %v3331_v13, 16  ;;  %v799_v18 = vshrl.u32 %v7474_v50, 16  ;;  %v7208_v0 = vcombine.low %v3555_v5, %v3565_v45  ;;  %v802_v6 = vshll.u32 %v7474_v50, 16  ;;  %v7673_v45 = vld [vmem:[%s8919_s14 + $0x70] sm:$0xff]  }
  0x8d   : > { %v3583_v56 = vor.u32 %v3582_v2, %v3578_v44  ;;  %v807_v25 = vshrl.u32 %v7475_v30, 16  ;;  %v3574_v37 = vrot.slane %v3573_v7, 4  ;;  %v1012_v28 = vsel %vm9047_vm7, %v797_v26, %v1011_v22  ;;  %v3332_v51 = vld [vmem:[#allocation2 + $0x84] sm:$0xf] }
  0x8e   : > { %v8702_v20 = vld [vmem:[#allocation2 + $0x84] sm:$0xff]   ;;  %v7570_v1 = vunpack.c.l.bf16 %v9315_v34  ;;  %v7571_v35 = vunpack.c.h.bf16 %v9315_v34  ;;  %8130 = vmatprep.mubr.bf16.mxu0 %v7208_v0  ;;  %v3588_v21 = vrot.slane %v3586_v36, 5  ;;  %v801_v63 = vrot.slane %v799_v18, 7  ;;  %1013 = vst [vmem:[#allocation2 + $0x8c] sm:$0x1] %v1012_v28 }
  0x8f   : > { %v3584_v49 = vrot.slane %v3583_v56, 4  ;;  %v809_v53 = vrot.slane %v807_v25, 7  ;;  %7943 = vmatmul.mubr.bf16.gmra.mrb[20].mxu1 %v8702_v20  ;;  %v3579_v23 = vsel %vm9133_vm10, %v3574_v37, %v3578_v44  ;;  %v810_v55 = vshll.u32 %v7475_v30, 16  ;;  %v3333_v52 = vld [vmem:[#allocation2 + $0x88] sm:$0xf] }
  0x90   : > { %v450_v57 = vmax.f32 %v418_v11, 0.0  ;;  %v451_v39 = vmax.f32 %v419_v33, 0.0  ;;  %v804_v8 = vor.u32 %v802_v6, %v801_v63  ;;  %v805_v61 = vrot.slane %v801_v63, 4  ;;  %v1021_v44 = vld [vmem:[#allocation2 + $0x9c] sm:$0xf] }
  0x91   : > { %v3589_v26 = vsel %vm9133_vm10, %v3584_v49, %v3588_v21  ;;  %v814_v9 = vrot.slane %v809_v53, 4  ;;  %v812_v62 = vor.u32 %v810_v55, %v809_v53  ;;  %v3591_v46 = vshrl.u32 %v3332_v51, 16  ;;  %v1025_v7 = vld [vmem:[#allocation2 + $0xa4] sm:$0x1] }
  0x92   : > { %v7209_v58 = vcombine.low %v3579_v23, %v3589_v26  ;;  %v7476_v38 = vpack.c.bf16 %v450_v57, %v450_v57  ;;  %v7477_v5 = vpack.c.bf16 %v451_v39, %v451_v39  ;;  %v1015_v29 = vsel %vm9041_vm6, %v804_v8, %v1014_v48  ;;  %v9338_v48 = vld [vmem:[%s8919_s14 + $0x78] sm:$0xff]  }
  0x93   : > { %v3594_v40 = vshll.u32 %v3332_v51, 16  ;;  %v3600_v12 = vshll.u32 %v3333_v52, 16  ;;  %v813_v31 = vsel %vm9035_vm5, %v805_v61, %v812_v62  ;;  %1016 = vst [vmem:[#allocation2 + $0x90] sm:$0xf] %v1015_v29  ;;  %v3593_v43 = vrot.slane %v3591_v46, 4 }
  0x94   : > { %8131 = vmatmul.mubr.bf16.gmra.mrb[16].mxu0 %v7209_v58  ;;  %v816_v14 = vshrl.u32 %v7476_v38, 16  ;;  %v819_v15 = vshll.u32 %v7476_v38, 16  ;;  %v824_v10 = vshrl.u32 %v7477_v5, 16  ;;  %1017 = vst [vmem:[#allocation2 + $0x94] sm:$0xf] %v813_v31  ;;  %v827_v17 = vshll.u32 %v7477_v5, 16 }
  0x95   : > { %v3596_v60 = vrot.slane %v3594_v40, 5  ;;  %v3602_v47 = vrot.slane %v3600_v12, 5  ;;  %v3334_v30 = vld [vmem:[#allocation2 + $0x8c] sm:$0x1]  ;;  %v3604_v22 = vshrl.u32 %v3333_v52, 16  ;;  %v1019_v13 = vsel %vm9047_vm7, %v814_v9, %v1018_v41 }
  0x96   : > { %v818_v3 = vrot.slane %v816_v14, 7  ;;  %v826_v50 = vrot.slane %v824_v10, 7  ;;  %v3610_v11 = vshll.u32 %v3334_v30, 16  ;;  %1020 = vst [vmem:[#allocation2 + $0x98] sm:$0x1] %v1019_v13  ;;  %v382_v33 = vmul.f32 %v7570_v1, %v8960_v4 }
  0x97   : > { %v3597_v2 = vor.u32 %v3596_v60, %v3593_v43  ;;  %v383_v34 = vmul.f32 %v7571_v35, %v8960_v4  ;;  %v3606_v25 = vrot.slane %v3604_v22, 4  ;;  %v7574_v49 = vunpack.c.l.bf16 %v7673_v45  ;;  %v1028_v13 = vld [vmem:[#allocation2 + $0xa8] sm:$0xf] }
  0x98   : > { %v821_v36 = vor.u32 %v819_v15, %v818_v3  ;;  %v822_v18 = vrot.slane %v818_v3, 4  ;;  %v829_v0 = vor.u32 %v827_v17, %v826_v50  ;;  %v831_v56 = vrot.slane %v826_v50, 4 }
  0x99   : > { %v3598_v6 = vrot.slane %v3597_v2, 4  ;;  %v3612_v20 = vrot.slane %v3610_v11, 5  ;;  %v420_v37 = vadd.f32 %v8998_v32, %v382_v33  ;;  %v421_v35 = vadd.f32 %v8998_v32, %v383_v34 }
  0x9a   : > { %v830_v28 = vsel %vm9035_vm5, %v822_v18, %v829_v0  ;;  %v1022_v1 = vsel %vm9041_vm6, %v821_v36, %v1021_v44  ;;  %v3607_v63 = vor.u32 %v3606_v25, %v3602_v47  ;;  %v3335_v53 = vld [vmem:[#allocation2 + $0x90] sm:$0xf]  ;;  %v7575_v23 = vunpack.c.h.bf16 %v7673_v45 }
  0x9b   : > { %1023 = vst [vmem:[#allocation2 + $0x9c] sm:$0xf] %v1022_v1  ;;  %1024 = vst [vmem:[#allocation2 + $0xa0] sm:$0xf] %v830_v28  ;;  %v3603_v21 = vsel %vm9133_vm10, %v3598_v6, %v3602_v47  ;;  %v452_v51 = vmax.f32 %v420_v37, 0.0  ;;  %v8706_v55 = vld [vmem:[#allocation2 + $0x90] sm:$0xff]   ;;  %v384_v52 = vmul.f32 %v7574_v49, %v8960_v4  ;;  %v1026_v26 = vsel %vm9047_vm7, %v831_v56, %v1025_v7 }
  0x9c   : > { %v3336_v57 = vld [vmem:[#allocation2 + $0x94] sm:$0xf]  ;;  %v3615_v39 = vshrl.u32 %v3335_v53, 16  ;;  %v7578_v8 = vunpack.c.l.bf16 %v9338_v48  ;;  %v3608_v61 = vrot.slane %v3607_v63, 4  ;;  %v3618_v9 = vshll.u32 %v3335_v53, 16  ;;  %7946 = vmatprep.mubr.bf16.mxu1 %v8706_v55 }
  0x9d   : > { %v3624_v58 = vshll.u32 %v3336_v57, 16  ;;  %v3628_v62 = vshrl.u32 %v3336_v57, 16  ;;  %1027 = vst [vmem:[#allocation2 + $0xa4] sm:$0x1] %v1026_v26  ;;  %v3337_v38 = vld [vmem:[#allocation2 + $0x98] sm:$0x1]  ;;  %v7478_v46 = vpack.c.bf16 %v452_v51, %v452_v51  ;;  %v385_v40 = vmul.f32 %v7575_v23, %v8960_v4 }
  0x9e   : > { %v3617_v5 = vrot.slane %v3615_v39, 4  ;;  %v453_v29 = vmax.f32 %v421_v35, 0.0  ;;  %v3613_v12 = vsel %vm9133_vm10, %v3608_v61, %v3612_v20  ;;  %v3620_v41 = vrot.slane %v3618_v9, 5  ;;  %v1032_v53 = vld [vmem:[#allocation2 + $0xb0] sm:$0x1] }
  0x9f   : > { %v3626_v31 = vrot.slane %v3624_v58, 5  ;;  %v3630_v14 = vrot.slane %v3628_v62, 4  ;;  %v7210_v15 = vcombine.low %v3603_v21, %v3613_v12  ;;  %v3634_v10 = vshll.u32 %v3337_v38, 16  ;;  %v1434_v9 = vld [vmem:[#allocation2] sm:$0xf] }
  0xa0   : > { %v7479_v17 = vpack.c.bf16 %v453_v29, %v453_v29  ;;  %v833_v43 = vshrl.u32 %v7478_v46, 16  ;;  %v3621_v60 = vor.u32 %v3620_v41, %v3617_v5  ;;  %v836_v3 = vshll.u32 %v7478_v46, 16 }
  0xa1   : > { %v3631_v47 = vor.u32 %v3630_v14, %v3626_v31  ;;  %v422_v50 = vadd.f32 %v8998_v32, %v384_v52  ;;  %8134 = vmatprep.mubr.bf16.mxu0 %v7210_v15  ;;  %v3636_v22 = vrot.slane %v3634_v10, 5  ;;  %v423_v44 = vadd.f32 %v8998_v32, %v385_v40  ;;  %v1435_v10 = vld [vmem:[#allocation2 + $0x4] sm:$0xf] }
  0xa2   : > { %v8707_v30 = vld [vmem:[#allocation2 + $0x9c] sm:$0xff]   ;;  %v7579_v2 = vunpack.c.h.bf16 %v9338_v48  ;;  %v9358_v11 = vmul.f32 %v7578_v8, %v8960_v4  ;;  %v3622_v33 = vrot.slane %v3621_v60, 4  ;;  %v835_v45 = vrot.slane %v833_v43, 7 }
  0xa3   : > { %v3632_v34 = vrot.slane %v3631_v47, 4  ;;  %v841_v7 = vshrl.u32 %v7479_v17, 16  ;;  %v3338_v36 = vld [vmem:[#allocation2 + $0x9c] sm:$0xf]  ;;  %7947 = vmatmul.mubr.bf16.gmra.mrb[24].mxu1 %v8707_v30  ;;  %v844_v18 = vshll.u32 %v7479_v17, 16  ;;  %v454_v0 = vmax.f32 %v422_v50, 0.0 }
  0xa4   : > { %v455_v56 = vmax.f32 %v423_v44, 0.0  ;;  %v3339_v6 = vld [vmem:[#allocation2 + $0xa0] sm:$0xf]  ;;  %v3639_v25 = vshrl.u32 %v3338_v36, 16  ;;  %v3627_v20 = vsel %vm9133_vm10, %v3622_v33, %v3626_v31  ;;  %v838_v28 = vor.u32 %v836_v3, %v835_v45  ;;  %v3340_v23 = vld [vmem:[#allocation2 + $0xa4] sm:$0x1] }
  0xa5   : > { %v3637_v37 = vsel %vm9133_vm10, %v3632_v34, %v3636_v22  ;;  %v839_v1 = vrot.slane %v835_v45, 4  ;;  %v843_v49 = vrot.slane %v841_v7, 7  ;;  %v7480_v21 = vpack.c.bf16 %v454_v0, %v454_v0  ;;  %v1035_v31 = vld [vmem:[#allocation2 + $0xb4] sm:$0xf]  ;;  %v1436_v50 = vld [vmem:[#allocation2 + $0x8] sm:$0x1] }
  0xa6   : > { %v7211_v35 = vcombine.low %v3627_v20, %v3637_v37  ;;  %v7481_v63 = vpack.c.bf16 %v455_v56, %v455_v56  ;;  %v1029_v51 = vsel %vm9041_vm6, %v838_v28, %v1028_v13  ;;  %v3641_v55 = vrot.slane %v3639_v25, 4 }
  0xa7   : > { %v3642_v57 = vshll.u32 %v3338_v36, 16  ;;  %v3648_v39 = vshll.u32 %v3339_v6, 16  ;;  %v846_v52 = vor.u32 %v844_v18, %v843_v49  ;;  %v848_v26 = vrot.slane %v843_v49, 4  ;;  %1030 = vst [vmem:[#allocation2 + $0xa8] sm:$0xf] %v1029_v51 }
  0xa8   : > { %8135 = vmatmul.mubr.bf16.gmra.mrb[20].mxu0 %v7211_v35  ;;  %v850_v8 = vshrl.u32 %v7480_v21, 16  ;;  %v853_v61 = vshll.u32 %v7480_v21, 16  ;;  %v858_v58 = vshrl.u32 %v7481_v63, 16  ;;  %v861_v62 = vshll.u32 %v7481_v63, 16  ;;  %v1437_v36 = vld [vmem:[#allocation2 + $0xc] sm:$0xf] }
  0xa9   : > { %v3644_v38 = vrot.slane %v3642_v57, 5  ;;  %v3650_v5 = vrot.slane %v3648_v39, 5  ;;  %v847_v29 = vsel %vm9035_vm5, %v839_v1, %v846_v52  ;;  %v3652_v40 = vshrl.u32 %v3339_v6, 16  ;;  %v1039_v18 = vld [vmem:[#allocation2 + $0xbc] sm:$0x1] }
  0xaa   : > { %v852_v46 = vrot.slane %v850_v8, 7  ;;  %v3658_v12 = vshll.u32 %v3340_v23, 16  ;;  %1031 = vst [vmem:[#allocation2 + $0xac] sm:$0xf] %v847_v29  ;;  %v860_v41 = vrot.slane %v858_v58, 7  ;;  %v1033_v15 = vsel %vm9047_vm7, %v848_v26, %v1032_v53 }
  0xab   : > { %v3645_v14 = vor.u32 %v3644_v38, %v3641_v55  ;;  %v1486_v17 = vshrl.u32 %v1434_v9, 16  ;;  %v3654_v47 = vrot.slane %v3652_v40, 4  ;;  %1034 = vst [vmem:[#allocation2 + $0xb0] sm:$0x1] %v1033_v15  ;;  %v1489_v45 = vshll.u32 %v1434_v9, 16 }
  0xac   : > { %v855_v43 = vor.u32 %v853_v61, %v852_v46  ;;  %v856_v60 = vrot.slane %v852_v46, 4  ;;  %v3660_v3 = vrot.slane %v3658_v12, 5  ;;  %v863_v30 = vor.u32 %v861_v62, %v860_v41  ;;  %v1438_v53 = vld [vmem:[#allocation2 + $0x10] sm:$0xf] }
  0xad   : > { %v865_v22 = vrot.slane %v860_v41, 4  ;;  %v3646_v13 = vrot.slane %v3645_v14, 4  ;;  %v1488_v44 = vrot.slane %v1486_v17, 4  ;;  %v3655_v34 = vor.u32 %v3654_v47, %v3650_v5 }
  0xae   : > { %v1036_v33 = vsel %vm9041_vm6, %v855_v43, %v1035_v31  ;;  %v1495_v7 = vshll.u32 %v1435_v10, 16  ;;  %v864_v0 = vsel %vm9035_vm5, %v856_v60, %v863_v30  ;;  %v3341_v6 = vld [vmem:[#allocation2 + $0xa8] sm:$0xf]  ;;  %v1499_v25 = vshrl.u32 %v1435_v10, 16  ;;  %v1439_v31 = vld [vmem:[#allocation2 + $0x14] sm:$0x1] }
  0xaf   : > { %1037 = vst [vmem:[#allocation2 + $0xb4] sm:$0xf] %v1036_v33  ;;  %v3651_v56 = vsel %vm9133_vm10, %v3646_v13, %v3650_v5  ;;  %v1505_v20 = vshll.u32 %v1436_v50, 16  ;;  %1038 = vst [vmem:[#allocation2 + $0xb8] sm:$0xf] %v864_v0  ;;  %v3656_v37 = vrot.slane %v3655_v34, 4  ;;  %v1040_v26 = vsel %vm9047_vm7, %v865_v22, %v1039_v18 }
  0xb0   : > { %v3663_v28 = vshrl.u32 %v3341_v6, 16  ;;  %v3666_v1 = vshll.u32 %v3341_v6, 16  ;;  %v1491_v35 = vrot.slane %v1489_v45, 5  ;;  %v1497_v49 = vrot.slane %v1495_v7, 5  ;;  %1041 = vst [vmem:[#allocation2 + $0xbc] sm:$0x1] %v1040_v26 }
  0xb1   : > { %v1501_v21 = vrot.slane %v1499_v25, 4  ;;  %v1507_v63 = vrot.slane %v1505_v20, 5  ;;  %v1510_v51 = vshrl.u32 %v1437_v36, 16  ;;  %v8711_v23 = vld [vmem:[#allocation2 + $0xa8] sm:$0xff]   ;;  %v3661_v55 = vsel %vm9133_vm10, %v3656_v37, %v3660_v3 }
  0xb2   : > { %v3342_v57 = vld [vmem:[#allocation2 + $0xac] sm:$0xf]  ;;  %v3665_v39 = vrot.slane %v3663_v28, 4  ;;  %v1492_v52 = vor.u32 %v1491_v35, %v1488_v44  ;;  %v7212_v8 = vcombine.low %v3651_v56, %v3661_v55  ;;  %v3343_v61 = vld [vmem:[#allocation2 + $0xb0] sm:$0x1]  ;;  %v3668_v9 = vrot.slane %v3666_v1, 5  ;;  %7950 = vmatprep.mubr.bf16.mxu1 %v8711_v23 }
  0xb3   : > { %v3672_v58 = vshll.u32 %v3342_v57, 16  ;;  %v3676_v62 = vshrl.u32 %v3342_v57, 16  ;;  %v3682_v38 = vshll.u32 %v3343_v61, 16  ;;  %v1502_v29 = vor.u32 %v1501_v21, %v1497_v49 }
  0xb4   : > { %v1493_v5 = vrot.slane %v1492_v52, 4  ;;  %v1512_v46 = vrot.slane %v1510_v51, 4  ;;  %8138 = vmatprep.mubr.bf16.mxu0 %v7212_v8  ;;  %v3669_v40 = vor.u32 %v3668_v9, %v3665_v39  ;;  %v1513_v14 = vshll.u32 %v1437_v36, 16  ;;  %v1441_v9 = vld [vmem:[#allocation2 + $0x1c] sm:$0xf] }
  0xb5   : > { %v3674_v12 = vrot.slane %v3672_v58, 5  ;;  %v3678_v41 = vrot.slane %v3676_v62, 4  ;;  %v3684_v15 = vrot.slane %v3682_v38, 5  ;;  %v1503_v17 = vrot.slane %v1502_v29, 4 }
  0xb6   : > { %v1498_v10 = vsel %vm9133_vm10, %v1493_v5, %v1497_v49  ;;  %v1519_v43 = vshll.u32 %v1438_v53, 16  ;;  %v8712_v60 = vld [vmem:[#allocation2 + $0xb4] sm:$0xff]   ;;  %v3670_v47 = vrot.slane %v3669_v40, 4  ;;  %v1515_v50 = vrot.slane %v1513_v14, 5  ;;  %v1442_v40 = vld [vmem:[#allocation2 + $0x20] sm:$0x1] }
  0xb7   : > { %v3679_v3 = vor.u32 %v3678_v41, %v3674_v12  ;;  %v1523_v30 = vshrl.u32 %v1438_v53, 16  ;;  %v1508_v22 = vsel %vm9133_vm10, %v1503_v17, %v1507_v63  ;;  %v1529_v44 = vshll.u32 %v1439_v31, 16  ;;  %v3344_v33 = vld [vmem:[#allocation2 + $0xb4] sm:$0xf]  ;;  %v3345_v34 = vld [vmem:[#allocation2 + $0xb8] sm:$0xf]  ;;  %7951 = vmatmul.mubr.bf16.gmra.mrb[28].mxu1 %v8712_v60 }
  0xb8   : > { %v1521_v13 = vrot.slane %v1519_v43, 5  ;;  %v387_v45 = vmul.f32 %v7579_v2, %v8960_v4  ;;  %v3675_v7 = vsel %vm9133_vm10, %v3670_v47, %v3674_v12  ;;  %v7064_v18 = vcombine.low %v1498_v10, %v1508_v22  ;;  %v3346_v25 = vld [vmem:[#allocation2 + $0xbc] sm:$0x1]  ;;  %v1440_v63 = vld [vmem:[#allocation2 + $0x18] sm:$0xf] }
  0xb9   : > { %v3680_v36 = vrot.slane %v3679_v3, 4  ;;  %v1516_v0 = vor.u32 %v1515_v50, %v1512_v46  ;;  %v1525_v56 = vrot.slane %v1523_v30, 4  ;;  %v1531_v6 = vrot.slane %v1529_v44, 5  ;;  %v1443_v50 = vld [vmem:[#allocation2 + $0x24] sm:$0xf] }
  0xba   : > { %v3687_v20 = vshrl.u32 %v3344_v33, 16  ;;  %v3690_v37 = vshll.u32 %v3344_v33, 16  ;;  %7970 = vmatprep.mubr.bf16.mxu1 %v7064_v18  ;;  %v3696_v35 = vshll.u32 %v3345_v34, 16  ;;  %v3700_v48 = vshrl.u32 %v3345_v34, 16  ;;  %v1444_v33 = vld [vmem:[#allocation2 + $0x28] sm:$0xf] }
  0xbb   : > { %v3685_v28 = vsel %vm9133_vm10, %v3680_v36, %v3684_v15  ;;  %v1517_v1 = vrot.slane %v1516_v0, 4  ;;  %v1526_v2 = vor.u32 %v1525_v56, %v1521_v13  ;;  %v3706_v55 = vshll.u32 %v3346_v25, 16  ;;  %v8723_v18 = vld [vmem:[%s10080_s4 + $0x90] sm:$0xff]  }
  0xbc   : > { %v7213_v4 = vcombine.low %v3675_v7, %v3685_v28  ;;  %v3689_v49 = vrot.slane %v3687_v20, 4  ;;  %v3692_v21 = vrot.slane %v3690_v37, 5  ;;  %v3698_v51 = vrot.slane %v3696_v35, 5  ;;  %v1046_v37 = vld [vmem:[#allocation2 + $0xc8] sm:$0x1] }
  0xbd   : > { %v1522_v53 = vsel %vm9133_vm10, %v1517_v1, %v1521_v13  ;;  %v3702_v23 = vrot.slane %v3700_v48, 4  ;;  %v1527_v57 = vrot.slane %v1526_v2, 4  ;;  %v424_v52 = vadd.f32 %v8998_v32, %v9358_v11  ;;  %v1445_v1 = vld [vmem:[#allocation2 + $0x2c] sm:$0x1] }
  0xbe   : > { %8139 = vmatmul.mubr.bf16.gmra.mrb[24].mxu0 %v7213_v4  ;;  %v3693_v39 = vor.u32 %v3692_v21, %v3689_v49  ;;  %v425_v26 = vadd.f32 %v8998_v32, %v387_v45  ;;  %v3708_v61 = vrot.slane %v3706_v55, 5  ;;  %v1534_v58 = vshrl.u32 %v1440_v63, 16  ;;  %v8722_v32 = vld [vmem:[%s10080_s4 + $0x88] sm:$0xff]  }
  0xbf   : > { %v3703_v8 = vor.u32 %v3702_v23, %v3698_v51  ;;  %v1537_v62 = vshll.u32 %v1440_v63, 16  ;;  %v1532_v38 = vsel %vm9133_vm10, %v1527_v57, %v1531_v6  ;;  %v456_v29 = vmax.f32 %v424_v52, 0.0  ;;  %v1042_v6 = vld [vmem:[#allocation2 + $0xc0] sm:$0xf]  ;;  %v4120_v63 = vld [vmem:[#allocation2 + $0xc] sm:$0xe] }
  0xc0   : > { %v3694_v5 = vrot.slane %v3693_v39, 4  ;;  %v457_v46 = vmax.f32 %v425_v26, 0.0  ;;  %v7065_v12 = vcombine.low %v1522_v53, %v1532_v38  ;;  %v1536_v31 = vrot.slane %v1534_v58, 4  ;;  %v4121_v53 = vld [vmem:[#allocation2 + $0x10] sm:$0xf] }
  0xc1   : > { %v3704_v41 = vrot.slane %v3703_v8, 4  ;;  %v1539_v14 = vrot.slane %v1537_v62, 5  ;;  %v7482_v15 = vpack.c.bf16 %v456_v29, %v456_v29  ;;  %v1543_v17 = vshll.u32 %v1441_v9, 16  ;;  %v4123_v52 = vld [vmem:[#allocation2 + $0x18] sm:$0xe] }
  0xc2   : > { %v3699_v11 = vsel %vm9133_vm10, %v3694_v5, %v3698_v51  ;;  %v7483_v10 = vpack.c.bf16 %v457_v46, %v457_v46  ;;  %7971 = vmatmul.mubr.bf16.vlgmr.msra.gmra.mrb[0].mxu1 %v7065_v12  ;;  %v1547_v47 = vshrl.u32 %v1441_v9, 16  ;;  %v1553_v3 = vshll.u32 %v1442_v40, 16  ;;  %v4122_v51 = vld [vmem:[#allocation2 + $0x14] sm:$0x1]  ;;  %v4124_v26 = vld [vmem:[#allocation2 + $0x1c] sm:$0xf] }
  0xc3   : > { %v3709_v43 = vsel %vm9133_vm10, %v3704_v41, %v3708_v61  ;;  %v1540_v60 = vor.u32 %v1539_v14, %v1536_v31  ;;  %v867_v22 = vshrl.u32 %v7482_v15, 16  ;;  %v870_v13 = vshll.u32 %v7482_v15, 16  ;;  %8003 = vmatpush3.bf16.msra.mxu1 %v9271_v16  ;;  %v4125_v8 = vld [vmem:[#allocation2 + $0x20] sm:$0x1]  ;;  %v8725_v61 = vld [vmem:[%s10080_s4 + $0x98] sm:$0xff]  }
  0xc4   : > { %v7214_v30 = vcombine.low %v3699_v11, %v3709_v43  ;;  %v875_v44 = vshrl.u32 %v7483_v10, 16  ;;  %v878_v34 = vshll.u32 %v7483_v10, 16  ;;  %v1545_v7 = vrot.slane %v1543_v17, 5  ;;  %8004 = vmatprep.subr.bf16.mxu1 %v8722_v32  ;;  %v1446_v5 = vld [vmem:[#allocation2 + $0x30] sm:$0xf] }
  0xc5   : > { %v1541_v45 = vrot.slane %v1540_v60, 4  ;;  %v1549_v36 = vrot.slane %v1547_v47, 4  ;;  %v869_v0 = vrot.slane %v867_v22, 7  ;;  %v1555_v25 = vrot.slane %v1553_v3, 5  ;;  %v1447_v60 = vld [vmem:[#allocation2 + $0x34] sm:$0xf] }
  0xc6   : > { %8142 = vmatprep.mubr.bf16.mxu0 %v7214_v30  ;;  %v877_v56 = vrot.slane %v875_v44, 7  ;;  %v1558_v20 = vshrl.u32 %v1443_v50, 16  ;;  %v1561_v35 = vshll.u32 %v1443_v50, 16  ;;  %v1567_v48 = vshll.u32 %v1444_v33, 16 }
  0xc7   : > { %v1546_v28 = vsel %vm9133_vm10, %v1541_v45, %v1545_v7  ;;  %v1550_v16 = vor.u32 %v1549_v36, %v1545_v7  ;;  %v872_v4 = vor.u32 %v870_v13, %v869_v0  ;;  %v873_v2 = vrot.slane %v869_v0, 4  ;;  %8005 = vmatpush3.bf16.msra.mxu1 %v8722_v32 }
  0xc8   : > { %v880_v49 = vor.u32 %v878_v34, %v877_v56  ;;  %v882_v21 = vrot.slane %v877_v56, 4  ;;  %v1560_v55 = vrot.slane %v1558_v20, 4  ;;  %v1563_v57 = vrot.slane %v1561_v35, 5  ;;  %8006 = vmatprep.subr.bf16.mxu1 %v8723_v18 }
  0xc9   : > { %v1551_v23 = vrot.slane %v1550_v16, 4  ;;  %v9411_v39 = vrot.slane %v1567_v48, 5  ;;  %v1043_v58 = vsel %vm9041_vm6, %v872_v4, %v1042_v6  ;;  %v1571_v38 = vshrl.u32 %v1444_v33, 16  ;;  %v1448_v48 = vld [vmem:[#allocation2 + $0x38] sm:$0x1] }
  0xca   : > { %v881_v9 = vsel %vm9035_vm5, %v873_v2, %v880_v49  ;;  %v1047_v62 = vsel %vm9047_vm7, %v882_v21, %v1046_v37  ;;  %1044 = vst [vmem:[#allocation2 + $0xc0] sm:$0xf] %v1043_v58  ;;  %v1564_v46 = vor.u32 %v1563_v57, %v1560_v55  ;;  %v1577_v40 = vshll.u32 %v1445_v1, 16 }
  0xcb   : > { %1045 = vst [vmem:[#allocation2 + $0xc4] sm:$0xf] %v881_v9  ;;  %1048 = vst [vmem:[#allocation2 + $0xc8] sm:$0x1] %v1047_v62  ;;  %v1556_v29 = vsel %vm9133_vm10, %v1551_v23, %v1555_v25  ;;  %v1573_v19 = vrot.slane %v1571_v38, 4  ;;  %v7224_v41 = vrot.slane %v4120_v63, 9  ;;  %8007 = vmatpush3.bf16.msra.mxu1 %v8723_v18 }
  0xcc   : > { %v7066_v12 = vcombine.low %v1546_v28, %v1556_v29  ;;  %v1565_v54 = vrot.slane %v1564_v46, 4  ;;  %v1579_v31 = vrot.slane %v1577_v40, 5  ;;  %v4218_v32 = vrot.slane %v4121_v53, 5  ;;  %8008 = vmatprep.subr.bf16.mxu1 %v8725_v61  ;;  %v8728_v18 = vld [vmem:[%s10080_s4 + $0xa8] sm:$0xff]   ;;  %v1449_v63 = vld [vmem:[#allocation2 + $0x3c] sm:$0xf] }
  0xcd   : > { %v4221_v11 = vrot.slane %v4122_v51, 5  ;;  %v1574_v15 = vor.u32 %v1573_v19, %v9411_v39  ;;  %v7225_v10 = vrot.slane %v4123_v52, 9  ;;  %v4225_v17 = vrot.slane %v4124_v26, 5  ;;  %v1450_v53 = vld [vmem:[#allocation2 + $0x40] sm:$0xf] }
  0xce   : > { %7974 = vmatprep.mubr.bf16.mxu1 %v7066_v12  ;;  %v4228_v43 = vrot.slane %v4125_v8, 5  ;;  %v1570_v47 = vsel %vm9133_vm10, %v1565_v54, %v9411_v39  ;;  %v9437_v3 = vsel %vm9427_vm13, %v7224_v41, %v4218_v32  ;;  %v4220_v50 = vrot.slane %v4218_v32, 4  ;;  %v8729_v39 = vld [vmem:[%s10080_s4 + $0xb0] sm:$0xff]   ;;  %v1451_v9 = vld [vmem:[#allocation2 + $0x44] sm:$0x1] }
  0xcf   : > { %v1582_v30 = vshrl.u32 %v1446_v5, 16  ;;  %v1575_v22 = vrot.slane %v1574_v15, 4  ;;  %v9441_v13 = vsel %vm9427_vm13, %v7225_v10, %v4225_v17  ;;  %v4227_v44 = vrot.slane %v4225_v17, 4  ;;  %8009 = vmatpush3.bf16.msra.mxu1 %v8725_v61  ;;  %v4126_v29 = vld [vmem:[#allocation2 + $0x24] sm:$0xe] }
  0xd0   : > { %v1585_v33 = vshll.u32 %v1446_v5, 16  ;;  %v9445_v34 = vsel %vm9427_vm13, %v4220_v50, %v4221_v11  ;;  %v1591_v7 = vshll.u32 %v1447_v60, 16  ;;  %v1595_v36 = vshrl.u32 %v1447_v60, 16  ;;  %8010 = vmatprep.subr.bf16.mxu1 %v8726_v42  ;;  %v4127_v41 = vld [vmem:[#allocation2 + $0x28] sm:$0xf] }
  0xd1   : > { %v1584_v45 = vrot.slane %v1582_v30, 4  ;;  %v3347_v0 = vld [vmem:[#allocation2 + $0xc0] sm:$0xf]  ;;  %v1580_v25 = vsel %vm9133_vm10, %v1575_v22, %v1579_v31  ;;  %v7256_v20 = vcombine.low %v9437_v3, %v9445_v34  ;;  %v9456_v37 = vsel %vm9427_vm13, %v4227_v44, %v4228_v43  ;;  %v4128_v15 = vld [vmem:[#allocation2 + $0x2c] sm:$0x1] }
  0xd2   : > { %v3348_v56 = vld [vmem:[#allocation2 + $0xc4] sm:$0xf]  ;;  %v3349_v6 = vld [vmem:[#allocation2 + $0xc8] sm:$0x1]  ;;  %v3711_v28 = vshrl.u32 %v3347_v0, 16  ;;  %v3714_v16 = vshll.u32 %v3347_v0, 16  ;;  %v7067_v2 = vcombine.low %v1570_v47, %v1580_v25  ;;  %v7257_v49 = vcombine.low %v9441_v13, %v9456_v37 }
  0xd3   : > { %v3720_v1 = vshll.u32 %v3348_v56, 16  ;;  %v3724_v35 = vshrl.u32 %v3348_v56, 16  ;;  %v3730_v4 = vshll.u32 %v3349_v6, 16  ;;  %v1587_v21 = vrot.slane %v1585_v33, 5  ;;  %8011 = vmatpush3.bf16.msra.mxu1 %v8726_v42  ;;  %v8731_v42 = vld [vmem:[%s10080_s4 + $0xb8] sm:$0xff]  }
  0xd4   : > { %v3713_v51 = vrot.slane %v3711_v28, 4  ;;  %v3716_v23 = vrot.slane %v3714_v16, 5  ;;  %8012 = vmatprep.subr.bf16.mxu1 %v8728_v18  ;;  %7975 = vmatmul.mubr.bf16.gmra.mrb[4].mxu1 %v7067_v2  ;;  %v1593_v8 = vrot.slane %v1591_v7, 5  ;;  %v1597_v61 = vrot.slane %v1595_v36, 4  ;;  %v4129_v10 = vld [vmem:[#allocation2 + $0x30] sm:$0xe] }
  0xd5   : > { %v3722_v55 = vrot.slane %v3720_v1, 5  ;;  %v3726_v57 = vrot.slane %v3724_v35, 4  ;;  %v3732_v52 = vrot.slane %v3730_v4, 5  ;;  %v1588_v26 = vor.u32 %v1587_v21, %v1584_v45  ;;  %v4130_v17 = vld [vmem:[#allocation2 + $0x34] sm:$0xf]  ;;  %v8742_v1 = vld [vmem:[%s10080_s4 + $0xc0] sm:$0xff]  }
  0xd6   : > { %v3717_v58 = vor.u32 %v3716_v23, %v3713_v51  ;;  %v1601_v38 = vshll.u32 %v1448_v48, 16  ;;  %v1606_v5 = vshrl.u32 %v1449_v63, 16  ;;  %v1598_v40 = vor.u32 %v1597_v61, %v1593_v8  ;;  %v4131_v30 = vld [vmem:[#allocation2 + $0x38] sm:$0x1]  ;;  %v1452_v16 = vld [vmem:[#allocation2 + $0x48] sm:$0xf] }
  0xd7   : > { %v3727_v62 = vor.u32 %v3726_v57, %v3722_v55  ;;  %v1589_v46 = vrot.slane %v1588_v26, 4  ;;  %v1609_v12 = vshll.u32 %v1449_v63, 16  ;;  %v1615_v19 = vshll.u32 %v1450_v53, 16  ;;  %8013 = vmatpush3.bf16.msra.mxu1 %v8728_v18  ;;  %v1453_v21 = vld [vmem:[#allocation2 + $0x4c] sm:$0xf] }
  0xd8   : > { %v3718_v54 = vrot.slane %v3717_v58, 4  ;;  %v1603_v32 = vrot.slane %v1601_v38, 5  ;;  %v1608_v11 = vrot.slane %v1606_v5, 4  ;;  %8014 = vmatprep.subr.bf16.mxu1 %v8729_v39  ;;  %v1599_v60 = vrot.slane %v1598_v40, 4  ;;  %v1456_v3 = vld [vmem:[#allocation2 + $0x58] sm:$0xf] }
  0xd9   : > { %v3728_v31 = vrot.slane %v3727_v62, 4  ;;  %v1594_v43 = vsel %vm9133_vm10, %v1589_v46, %v1593_v8  ;;  %v1611_v47 = vrot.slane %v1609_v12, 5  ;;  %v1617_v50 = vrot.slane %v1615_v19, 5  ;;  %v1455_v8 = vld [vmem:[#allocation2 + $0x54] sm:$0xf] }
  0xda   : > { %v3723_v22 = vsel %vm9133_vm10, %v3718_v54, %v3722_v55  ;;  %v1619_v33 = vshrl.u32 %v1450_v53, 16  ;;  %v1625_v45 = vshll.u32 %v1451_v9, 16  ;;  %v1604_v36 = vsel %vm9133_vm10, %v1599_v60, %v1603_v32  ;;  %v1454_v55 = vld [vmem:[#allocation2 + $0x50] sm:$0x1]  ;;  %v1457_v58 = vld [vmem:[#allocation2 + $0x5c] sm:$0x1] }
  0xdb   : > { %v3733_v44 = vsel %vm9133_vm10, %v3728_v31, %v3732_v52  ;;  %v1612_v18 = vor.u32 %v1611_v47, %v1608_v11  ;;  %v7226_v0 = vrot.slane %v4126_v29, 9  ;;  %8015 = vmatpush3.bf16.msra.mxu1 %v8729_v39  ;;  %v7068_v56 = vcombine.low %v1594_v43, %v1604_v36  ;;  %v8718_v31 = vld [vmem:[%s10080_s4 + $0x188] sm:$0xff]   ;;  %v8791_v36 = vld [vmem:[%s10080_s4 + $0x180] sm:$0xff]  }
  0xdc   : > { %v7215_v7 = vcombine.low %v3723_v22, %v3733_v44  ;;  %v1621_v6 = vrot.slane %v1619_v33, 4  ;;  %v1627_v25 = vrot.slane %v1625_v45, 5  ;;  %v4232_v28 = vrot.slane %v4127_v41, 5  ;;  %8016 = vmatprep.subr.bf16.mxu1 %v8731_v42  ;;  %v4132_v41 = vld [vmem:[#allocation2 + $0x3c] sm:$0xe] }
  0xdd   : > { %v1613_v35 = vrot.slane %v1612_v18, 4  ;;  %v4235_v48 = vrot.slane %v4128_v15, 5  ;;  %v7227_v4 = vrot.slane %v4129_v10, 9  ;;  %v4239_v2 = vrot.slane %v4130_v17, 5  ;;  %7978 = vmatprep.mubr.bf16.mxu1 %v7068_v56  ;;  %v4134_v10 = vld [vmem:[#allocation2 + $0x44] sm:$0x1] }
  0xde   : > { %8143 = vmatmul.mubr.bf16.gmra.mrb[28].mxu0 %v7215_v7  ;;  %v1622_v63 = vor.u32 %v1621_v6, %v1617_v50  ;;  %v4233_v53 = vsel %vm9427_vm13, %v7226_v0, %v4232_v28  ;;  %v4234_v51 = vrot.slane %v4232_v28, 4  ;;  %v4242_v23 = vrot.slane %v4131_v30, 5  ;;  %v4136_v45 = vld [vmem:[#allocation2 + $0x4c] sm:$0xf]  ;;  %v8719_v7 = vld [vmem:[%s10080_s4 + $0x190] sm:$0xff]  }
  0xdf   : > { %8162 = vmatprep.mubr.bf16.mxu0 %v7256_v20  ;;  %v1618_v57 = vsel %vm9133_vm10, %v1613_v35, %v1617_v50  ;;  %v9486_v39 = vsel %vm9427_vm13, %v7227_v4, %v4239_v2  ;;  %v4241_v52 = vrot.slane %v4239_v2, 4  ;;  %v1630_v26 = vshrl.u32 %v1452_v16, 16  ;;  %8017 = vmatpush3.bf16.msra.mxu1 %v8731_v42  ;;  %v4133_v42 = vld [vmem:[#allocation2 + $0x40] sm:$0xf]  ;;  %v4135_v50 = vld [vmem:[#allocation2 + $0x48] sm:$0xe] }
  0xe0   : > { %v1623_v34 = vrot.slane %v1622_v63, 4  ;;  %v4236_v20 = vsel %vm9427_vm13, %v4234_v51, %v4235_v48  ;;  %v1633_v61 = vshll.u32 %v1452_v16, 16  ;;  %v1639_v9 = vshll.u32 %v1453_v21, 16  ;;  %8050 = vmatprep.subr.bf16.mxu1 %v8742_v1  ;;  %v4137_v48 = vld [vmem:[#allocation2 + $0x50] sm:$0x1] }
  0xe1   : > { %v7258_v62 = vcombine.low %v4233_v53, %v4236_v20  ;;  %v9492_v38 = vsel %vm9427_vm13, %v4241_v52, %v4242_v23  ;;  %v1632_v5 = vrot.slane %v1630_v26, 4  ;;  %v1643_v29 = vshrl.u32 %v1453_v21, 16  ;;  %v1458_v4 = vld [vmem:[#allocation2 + $0x60] sm:$0xf]  ;;  %v1459_v51 = vld [vmem:[#allocation2 + $0x64] sm:$0xf] }
  0xe2   : > { %v1628_v46 = vsel %vm9133_vm10, %v1623_v34, %v1627_v25  ;;  %v7259_v40 = vcombine.low %v9486_v39, %v9492_v38  ;;  %v1635_v12 = vrot.slane %v1633_v61, 5  ;;  %v1641_v19 = vrot.slane %v1639_v9, 5  ;;  %v1460_v23 = vld [vmem:[#allocation2 + $0x68] sm:$0x1]  ;;  %v1462_v9 = vld [vmem:[#allocation2 + $0x70] sm:$0xf] }
  0xe3   : > { %v7069_v54 = vcombine.low %v1618_v57, %v1628_v46  ;;  %v1645_v32 = vrot.slane %v1643_v29, 4  ;;  %v1649_v11 = vshll.u32 %v1454_v55, 16  ;;  %v1654_v15 = vshrl.u32 %v1455_v8, 16 }
  0xe4   : > { %v1636_v17 = vor.u32 %v1635_v12, %v1632_v5  ;;  %v1657_v43 = vshll.u32 %v1455_v8, 16  ;;  %v1663_v60 = vshll.u32 %v1456_v3, 16  ;;  %v1667_v47 = vshrl.u32 %v1456_v3, 16  ;;  %v1461_v8 = vld [vmem:[#allocation2 + $0x6c] sm:$0xf] }
  0xe5   : > { %7979 = vmatmul.mubr.bf16.gmra.mrb[8].mxu1 %v7069_v54  ;;  %v1646_v30 = vor.u32 %v1645_v32, %v1641_v19  ;;  %v1651_v22 = vrot.slane %v1649_v11, 5  ;;  %v1656_v44 = vrot.slane %v1654_v15, 4  ;;  %v1673_v33 = vshll.u32 %v1457_v58, 16  ;;  %v8721_v58 = vld [vmem:[%s10080_s4 + $0x198] sm:$0xff]   ;;  %v1463_v54 = vld [vmem:[#allocation2 + $0x74] sm:$0x1] }
  0xe6   : > { %8163 = vmatmul.mubr.bf16.vlgmr.msra.gmra.mrb[0].mxu0 %v7257_v49  ;;  %v1637_v18 = vrot.slane %v1636_v17, 4  ;;  %v1659_v0 = vrot.slane %v1657_v43, 5  ;;  %v1665_v13 = vrot.slane %v1663_v60, 5  ;;  %v1669_v37 = vrot.slane %v1667_v47, 4  ;;  %v8724_v32 = vld [vmem:[%s10080_s4 + $0x1a0] sm:$0xff]  }
  0xe7   : > { %8195 = vmatpush3.bf16.msra.mxu0 %v8791_v36  ;;  %8166 = vmatprep.mubr.bf16.mxu0 %v7258_v62  ;;  %v1647_v49 = vrot.slane %v1646_v30, 4  ;;  %v1675_v56 = vrot.slane %v1673_v33, 5  ;;  %v7228_v6 = vrot.slane %v4132_v41, 9  ;;  %v4246_v25 = vrot.slane %v4133_v42, 5  ;;  %v4139_v43 = vld [vmem:[#allocation2 + $0x58] sm:$0xf] }
  0xe8   : > { %8196 = vmatprep.subr.bf16.mxu0 %v8718_v31  ;;  %v1642_v28 = vsel %vm9133_vm10, %v1637_v18, %v1641_v19  ;;  %v1660_v16 = vor.u32 %v1659_v0, %v1656_v44  ;;  %v1670_v1 = vor.u32 %v1669_v37, %v1665_v13  ;;  %v4249_v35 = vrot.slane %v4134_v10, 5  ;;  %v4140_v60 = vld [vmem:[#allocation2 + $0x5c] sm:$0x1] }
  0xe9   : > { %v1652_v2 = vsel %vm9133_vm10, %v1647_v49, %v1651_v22  ;;  %v4247_v21 = vsel %vm9427_vm13, %v7228_v6, %v4246_v25  ;;  %v4248_v63 = vrot.slane %v4246_v25, 4  ;;  %v7229_v53 = vrot.slane %v4135_v50, 9  ;;  %v4141_v50 = vld [vmem:[#allocation2 + $0x60] sm:$0xe] }
  0xea   : > { %v7070_v55 = vcombine.low %v1642_v28, %v1652_v2  ;;  %v1661_v57 = vrot.slane %v1660_v16, 4  ;;  %v1671_v52 = vrot.slane %v1670_v1, 4  ;;  %v4253_v26 = vrot.slane %v4136_v45, 5  ;;  %v4142_v45 = vld [vmem:[#allocation2 + $0x64] sm:$0xf] }
  0xeb   : > { %8197 = vmatpush3.bf16.msra.mxu0 %v8718_v31  ;;  %v4250_v3 = vsel %vm9427_vm13, %v4248_v63, %v4249_v35  ;;  %v4256_v34 = vrot.slane %v4137_v48, 5  ;;  %v1678_v20 = vshrl.u32 %v1458_v4, 16  ;;  %v1681_v61 = vshll.u32 %v1458_v4, 16  ;;  %v4138_v31 = vld [vmem:[#allocation2 + $0x54] sm:$0xe]  ;;  %v8727_v48 = vld [vmem:[%s10080_s4 + $0x1a8] sm:$0xff]  }
  0xec   : > { %8198 = vmatprep.subr.bf16.mxu0 %v8719_v7  ;;  %7982 = vmatprep.mubr.bf16.mxu1 %v7070_v55  ;;  %v1666_v62 = vsel %vm9133_vm10, %v1661_v57, %v1665_v13  ;;  %v1676_v5 = vsel %vm9133_vm10, %v1671_v52, %v1675_v56  ;;  %v7260_v29 = vcombine.low %v4247_v21, %v4250_v3  ;;  %v4255_v19 = vrot.slane %v4253_v26, 4  ;;  %v4143_v13 = vld [vmem:[#allocation2 + $0x68] sm:$0x1]  ;;  %v1464_v35 = vld [vmem:[#allocation2 + $0x78] sm:$0xf] }
  0xed   : > { %v4254_v46 = vsel %vm9427_vm13, %v7229_v53, %v4253_v26  ;;  %v7071_v12 = vcombine.low %v1666_v62, %v1676_v5  ;;  %v1680_v41 = vrot.slane %v1678_v20, 4  ;;  %v1683_v42 = vrot.slane %v1681_v61, 5  ;;  %v1465_v53 = vld [vmem:[#allocation2 + $0x7c] sm:$0xf]  ;;  %v1466_v52 = vld [vmem:[#allocation2 + $0x80] sm:$0x1] }
  0xee   : > { %8167 = vmatmul.mubr.bf16.gmra.mrb[4].mxu0 %v7259_v40  ;;  %v1687_v11 = vshll.u32 %v1459_v51, 16  ;;  %v1691_v15 = vshrl.u32 %v1459_v51, 16  ;;  %v1697_v10 = vshll.u32 %v1460_v23, 16  ;;  %v1702_v17 = vshrl.u32 %v1461_v8, 16  ;;  %v1467_v20 = vld [vmem:[#allocation2 + $0x84] sm:$0xf] }
  0xef   : > { %8170 = vmatprep.mubr.bf16.mxu0 %v7260_v29  ;;  %8199 = vmatpush3.bf16.msra.mxu0 %v8719_v7  ;;  %v4257_v39 = vsel %vm9427_vm13, %v4255_v19, %v4256_v34  ;;  %v1684_v38 = vor.u32 %v1683_v42, %v1680_v41  ;;  %v1705_v40 = vshll.u32 %v1461_v8, 16  ;;  %v1711_v47 = vshll.u32 %v1462_v9, 16  ;;  %v8730_v61 = vld [vmem:[%s10080_s4 + $0x1b0] sm:$0xff]   ;;  %v1468_v41 = vld [vmem:[#allocation2 + $0x88] sm:$0xf] }
  0xf0   : > { %7983 = vmatmul.mubr.bf16.gmra.mrb[12].mxu1 %v7071_v12  ;;  %8200 = vmatprep.subr.bf16.mxu0 %v8721_v58  ;;  %v7261_v30 = vcombine.low %v4254_v46, %v4257_v39  ;;  %v1689_v22 = vrot.slane %v1687_v11, 5  ;;  %v1693_v44 = vrot.slane %v1691_v15, 4  ;;  %v1699_v33 = vrot.slane %v1697_v10, 5  ;;  %v1469_v42 = vld [vmem:[#allocation2 + $0x8c] sm:$0x1] }
  0xf1   : > { %v1685_v7 = vrot.slane %v1684_v38, 4  ;;  %v1704_v36 = vrot.slane %v1702_v17, 4  ;;  %v1707_v18 = vrot.slane %v1705_v40, 5  ;;  %v1713_v0 = vrot.slane %v1711_v47, 5  ;;  %v4144_v15 = vld [vmem:[#allocation2 + $0x6c] sm:$0xe] }
  0xf2   : > { %v1694_v37 = vor.u32 %v1693_v44, %v1689_v22  ;;  %v1715_v49 = vshrl.u32 %v1462_v9, 16  ;;  %v1721_v56 = vshll.u32 %v1463_v54, 16  ;;  %v7230_v6 = vrot.slane %v4138_v31, 9  ;;  %v4145_v10 = vld [vmem:[#allocation2 + $0x70] sm:$0xf]  ;;  %v8732_v17 = vld [vmem:[%s10080_s4 + $0x1b8] sm:$0xff]  }
  0xf3   : > { %8201 = vmatpush3.bf16.msra.mxu0 %v8721_v58  ;;  %v1690_v25 = vsel %vm9133_vm10, %v1685_v7, %v1689_v22  ;;  %v1708_v28 = vor.u32 %v1707_v18, %v1704_v36  ;;  %v4260_v16 = vrot.slane %v4139_v43, 5  ;;  %v4263_v1 = vrot.slane %v4140_v60, 5  ;;  %v4146_v7 = vld [vmem:[#allocation2 + $0x74] sm:$0x1]  ;;  %v4147_v36 = vld [vmem:[#allocation2 + $0x78] sm:$0xe] }
  0xf4   : > { %8202 = vmatprep.subr.bf16.mxu0 %v8724_v32  ;;  %v1695_v4 = vrot.slane %v1694_v37, 4  ;;  %v1717_v2 = vrot.slane %v1715_v49, 4  ;;  %v1723_v21 = vrot.slane %v1721_v56, 5  ;;  %v7231_v63 = vrot.slane %v4141_v50, 9  ;;  %v4148_v49 = vld [vmem:[#allocation2 + $0x7c] sm:$0xf] }
  0xf5   : > { %v1709_v51 = vrot.slane %v1708_v28, 4  ;;  %v4261_v23 = vsel %vm9427_vm13, %v7230_v6, %v4260_v16  ;;  %v4262_v55 = vrot.slane %v4260_v16, 4  ;;  %v4267_v57 = vrot.slane %v4142_v45, 5  ;;  %v4149_v56 = vld [vmem:[#allocation2 + $0x80] sm:$0x1] }
  0xf6   : > { %8171 = vmatmul.mubr.bf16.gmra.mrb[8].mxu0 %v7261_v30  ;;  %v1700_v26 = vsel %vm9133_vm10, %v1695_v4, %v1699_v33  ;;  %v1718_v8 = vor.u32 %v1717_v2, %v1713_v0  ;;  %v4270_v3 = vrot.slane %v4143_v13, 5  ;;  %v1726_v34 = vshrl.u32 %v1464_v35, 16  ;;  %v9563_v6 = vld [vmem:[%s10080_s4 + $0x1c0] sm:$0xff]  }
  0xf7   : > { %8203 = vmatpush3.bf16.msra.mxu0 %v8724_v32  ;;  %v7072_v9 = vcombine.low %v1690_v25, %v1700_v26  ;;  %v1714_v58 = vsel %vm9133_vm10, %v1709_v51, %v1713_v0  ;;  %v4264_v62 = vsel %vm9427_vm13, %v4262_v55, %v4263_v1  ;;  %v4268_v5 = vsel %vm9427_vm13, %v7231_v63, %v4267_v57  ;;  %v1471_v55 = vld [vmem:[#allocation2 + $0x94] sm:$0xf] }
  0xf8   : > { %8204 = vmatprep.subr.bf16.mxu0 %v8727_v48  ;;  %v1719_v29 = vrot.slane %v1718_v8, 4  ;;  %v7262_v46 = vcombine.low %v4261_v23, %v4264_v62  ;;  %v4269_v12 = vrot.slane %v4267_v57, 4  ;;  %v1728_v19 = vrot.slane %v1726_v34, 4 }
  0xf9   : > { %7986 = vmatprep.mubr.bf16.mxu1 %v7072_v9  ;;  %v1729_v54 = vshll.u32 %v1464_v35, 16  ;;  %v1735_v31 = vshll.u32 %v1465_v53, 16  ;;  %v1739_v32 = vshrl.u32 %v1465_v53, 16  ;;  %v1745_v11 = vshll.u32 %v1466_v52, 16  ;;  %v1470_v35 = vld [vmem:[#allocation2 + $0x90] sm:$0xf] }
  0xfa   : > { %v1724_v43 = vsel %vm9133_vm10, %v1719_v29, %v1723_v21  ;;  %8174 = vmatprep.mubr.bf16.mxu0 %v7262_v46  ;;  %v4271_v60 = vsel %vm9427_vm13, %v4269_v12, %v4270_v3  ;;  %v1750_v39 = vshrl.u32 %v1467_v20, 16  ;;  %v1753_v38 = vshll.u32 %v1467_v20, 16  ;;  %v1472_v3 = vld [vmem:[#allocation2 + $0x98] sm:$0x1]  ;;  %v1474_v12 = vld [vmem:[#allocation2 + $0xa0] sm:$0xf] }
  0xfb   : > { %8205 = vmatpush3.bf16.msra.mxu0 %v8727_v48  ;;  %v7073_v40 = vcombine.low %v1714_v58, %v1724_v43  ;;  %v7263_v47 = vcombine.low %v4268_v5, %v4271_v60  ;;  %v1731_v50 = vrot.slane %v1729_v54, 5  ;;  %v1737_v30 = vrot.slane %v1735_v31, 5  ;;  %v1473_v58 = vld [vmem:[#allocation2 + $0x9c] sm:$0xf] }
  0xfc   : > { %8206 = vmatprep.subr.bf16.mxu0 %v8730_v61  ;;  %v1741_v22 = vrot.slane %v1739_v32, 4  ;;  %v1747_v44 = vrot.slane %v1745_v11, 5  ;;  %v1752_v33 = vrot.slane %v1750_v39, 4  ;;  %v1755_v45 = vrot.slane %v1753_v38, 5  ;;  %v1475_v38 = vld [vmem:[#allocation2 + $0xa4] sm:$0x1] }
  0xfd   : > { %7987 = vmatmul.mubr.bf16.gmra.mrb[16].mxu1 %v7073_v40  ;;  %v1732_v18 = vor.u32 %v1731_v50, %v1728_v19  ;;  %v1759_v0 = vshll.u32 %v1468_v41, 16  ;;  %v1763_v13 = vshrl.u32 %v1468_v41, 16  ;;  %v1769_v37 = vshll.u32 %v1469_v42, 16  ;;  %v4151_v40 = vld [vmem:[#allocation2 + $0x88] sm:$0xf] }
  0xfe   : > { %8175 = vmatmul.mubr.bf16.gmra.mrb[12].mxu0 %v7263_v47  ;;  %v1742_v25 = vor.u32 %v1741_v22, %v1737_v30  ;;  %v1756_v28 = vor.u32 %v1755_v45, %v1752_v33  ;;  %v7232_v16 = vrot.slane %v4144_v15, 9  ;;  %v4274_v1 = vrot.slane %v4145_v10, 5  ;;  %v4150_v10 = vld [vmem:[#allocation2 + $0x84] sm:$0xe] }
  0xff   : > { %8207 = vmatpush3.bf16.msra.mxu0 %v8730_v61  ;;  %v1733_v48 = vrot.slane %v1732_v18, 4  ;;  %v1761_v4 = vrot.slane %v1759_v0, 5  ;;  %v1765_v2 = vrot.slane %v1763_v13, 4  ;;  %v1771_v21 = vrot.slane %v1769_v37, 5  ;;  %v4153_v18 = vld [vmem:[#allocation2 + $0x90] sm:$0xe] }
 0x100   : > { %8208 = vmatprep.subr.bf16.mxu0 %v8732_v17  ;;  %v1743_v63 = vrot.slane %v1742_v25, 4  ;;  %v1757_v53 = vrot.slane %v1756_v28, 4  ;;  %v4275_v51 = vsel %vm9427_vm13, %v7232_v16, %v4274_v1  ;;  %v4276_v23 = vrot.slane %v4274_v1, 4 }
 0x101   : > { %v1738_v57 = vsel %vm9133_vm10, %v1733_v48, %v1737_v30  ;;  %v1766_v52 = vor.u32 %v1765_v2, %v1761_v4  ;;  %v4277_v26 = vrot.slane %v4146_v7, 5  ;;  %v7233_v8 = vrot.slane %v4147_v36, 9 }
 0x102   : > { %v1748_v34 = vsel %vm9133_vm10, %v1743_v63, %v1747_v44  ;;  %v1762_v20 = vsel %vm9133_vm10, %v1757_v53, %v1761_v4  ;;  %v4281_v61 = vrot.slane %v4148_v49, 5  ;;  %v4284_v9 = vrot.slane %v4149_v56, 5  ;;  %v4152_v44 = vld [vmem:[#allocation2 + $0x8c] sm:$0x1]  ;;  %v4154_v56 = vld [vmem:[#allocation2 + $0x94] sm:$0xf] }
 0x103   : > { %8209 = vmatpush3.bf16.msra.mxu0 %v8732_v17  ;;  %v7074_v62 = vcombine.low %v1738_v57, %v1748_v34  ;;  %v1767_v5 = vrot.slane %v1766_v52, 4  ;;  %v4278_v29 = vsel %vm9427_vm13, %v4276_v23, %v4277_v26  ;;  %v1774_v46 = vshrl.u32 %v1470_v35, 16  ;;  %v1476_v63 = vld [vmem:[#allocation2 + $0xa8] sm:$0xf]  ;;  %v1477_v57 = vld [vmem:[#allocation2 + $0xac] sm:$0xf] }
 0x104   : > { %8242 = vmatprep.subr.bf16.mxu0 %v9563_v6  ;;  %v7264_v19 = vcombine.low %v4275_v51, %v4278_v29  ;;  %v4282_v41 = vsel %vm9427_vm13, %v7233_v8, %v4281_v61  ;;  %v4283_v42 = vrot.slane %v4281_v61, 4  ;;  %v1777_v54 = vshll.u32 %v1470_v35, 16  ;;  %v4155_v35 = vld [vmem:[#allocation2 + $0x98] sm:$0x1]  ;;  %v1478_v34 = vld [vmem:[#allocation2 + $0xb0] sm:$0x1] }
 0x105   : > { %7990 = vmatprep.mubr.bf16.mxu1 %v7074_v62  ;;  %v1772_v31 = vsel %vm9133_vm10, %v1767_v5, %v1771_v21  ;;  %v1776_v32 = vrot.slane %v1774_v46, 4  ;;  %v1783_v11 = vshll.u32 %v1471_v55, 16  ;;  %v1787_v15 = vshrl.u32 %v1471_v55, 16 }
 0x106   : > { %v7075_v17 = vcombine.low %v1762_v20, %v1772_v31  ;;  %8178 = vmatprep.mubr.bf16.mxu0 %v7264_v19  ;;  %v4285_v43 = vsel %vm9427_vm13, %v4283_v42, %v4284_v9  ;;  %v1779_v60 = vrot.slane %v1777_v54, 5  ;;  %v1793_v39 = vshll.u32 %v1472_v3, 16  ;;  %v1479_v54 = vld [vmem:[#allocation2 + $0xb4] sm:$0xf] }
 0x107   : > { %v7265_v47 = vcombine.low %v4282_v41, %v4285_v43  ;;  %v1785_v50 = vrot.slane %v1783_v11, 5  ;;  %v1789_v30 = vrot.slane %v1787_v15, 4  ;;  %v1798_v22 = vshrl.u32 %v1473_v58, 16 }
 0x108   : > { %7991 = vmatmul.mubr.bf16.gmra.mrb[20].mxu1 %v7075_v17  ;;  %v1780_v33 = vor.u32 %v1779_v60, %v1776_v32  ;;  %v1795_v45 = vrot.slane %v1793_v39, 5  ;;  %v1801_v7 = vshll.u32 %v1473_v58, 16  ;;  %v1807_v36 = vshll.u32 %v1474_v12, 16  ;;  %v4156_v17 = vld [vmem:[#allocation2 + $0x9c] sm:$0xe] }
 0x109   : > { %8179 = vmatmul.mubr.bf16.gmra.mrb[16].mxu0 %v7265_v47  ;;  %v1790_v0 = vor.u32 %v1789_v30, %v1785_v50  ;;  %v1800_v13 = vrot.slane %v1798_v22, 4  ;;  %v1811_v37 = vshrl.u32 %v1474_v12, 16  ;;  %v1817_v49 = vshll.u32 %v1475_v38, 16  ;;  %v4157_v47 = vld [vmem:[#allocation2 + $0xa0] sm:$0xf] }
 0x10a   : > { %v1781_v25 = vrot.slane %v1780_v33, 4  ;;  %v1803_v28 = vrot.slane %v1801_v7, 5  ;;  %v1809_v16 = vrot.slane %v1807_v36, 5  ;;  %v7234_v1 = vrot.slane %v4150_v10, 9  ;;  %v1480_v10 = vld [vmem:[#allocation2 + $0xb8] sm:$0xf] }
 0x10b   : > { %v1791_v48 = vrot.slane %v1790_v0, 4  ;;  %v1813_v4 = vrot.slane %v1811_v37, 4  ;;  %v1819_v2 = vrot.slane %v1817_v49, 5  ;;  %v4288_v21 = vrot.slane %v4151_v40, 5  ;;  %v1481_v40 = vld [vmem:[#allocation2 + $0xbc] sm:$0x1] }
 0x10c   : > { %v1786_v53 = vsel %vm9133_vm10, %v1781_v25, %v1785_v50  ;;  %v1804_v51 = vor.u32 %v1803_v28, %v1800_v13  ;;  %v4291_v23 = vrot.slane %v4152_v44, 5  ;;  %v7235_v55 = vrot.slane %v4153_v18, 9  ;;  %v4158_v33 = vld [vmem:[#allocation2 + $0xa4] sm:$0x1]  ;;  %v4160_v13 = vld [vmem:[#allocation2 + $0xac] sm:$0xf] }
 0x10d   : > { %v1796_v52 = vsel %vm9133_vm10, %v1791_v48, %v1795_v45  ;;  %v1814_v26 = vor.u32 %v1813_v4, %v1809_v16  ;;  %v4289_v8 = vsel %vm9427_vm13, %v7234_v1, %v4288_v21  ;;  %v4290_v3 = vrot.slane %v4288_v21, 4  ;;  %v4159_v45 = vld [vmem:[#allocation2 + $0xa8] sm:$0xe]  ;;  %v4161_v28 = vld [vmem:[#allocation2 + $0xb0] sm:$0x1] }
 0x10e   : > { %v7076_v20 = vcombine.low %v1786_v53, %v1796_v52  ;;  %v1805_v61 = vrot.slane %v1804_v51, 4  ;;  %v4295_v9 = vrot.slane %v4154_v56, 5  ;;  %v4298_v58 = vrot.slane %v4155_v35, 5  ;;  %v2256_v51 = vld [vmem:[#allocation2 + $0x4] sm:$0xf] }
 0x10f   : > { %v1815_v62 = vrot.slane %v1814_v26, 4  ;;  %v4292_v5 = vsel %vm9427_vm13, %v4290_v3, %v4291_v23  ;;  %v1822_v29 = vshrl.u32 %v1476_v63, 16  ;;  %v1825_v46 = vshll.u32 %v1476_v63, 16  ;;  %v2257_v26 = vld [vmem:[#allocation2 + $0x8] sm:$0x1] }
 0x110   : > { %7994 = vmatprep.mubr.bf16.mxu1 %v7076_v20  ;;  %v1810_v12 = vsel %vm9133_vm10, %v1805_v61, %v1809_v16  ;;  %v7266_v19 = vcombine.low %v4289_v8, %v4292_v5  ;;  %v4296_v41 = vsel %vm9427_vm13, %v7235_v55, %v4295_v9  ;;  %v4297_v42 = vrot.slane %v4295_v9, 4  ;;  %v2255_v16 = vld [vmem:[#allocation2] sm:$0xe]  ;;  %v2258_v61 = vld [vmem:[#allocation2 + $0xc] sm:$0xe] }
 0x111   : > { %v1820_v31 = vsel %vm9133_vm10, %v1815_v62, %v1819_v2  ;;  %v1824_v32 = vrot.slane %v1822_v29, 4  ;;  %v1827_v11 = vrot.slane %v1825_v46, 5  ;;  %v1831_v15 = vshll.u32 %v1477_v57, 16  ;;  %v2259_v9 = vld [vmem:[#allocation2 + $0x10] sm:$0xf] }
 0x112   : > { %v7077_v43 = vcombine.low %v1810_v12, %v1820_v31  ;;  %8182 = vmatprep.mubr.bf16.mxu0 %v7266_v19  ;;  %v4299_v60 = vsel %vm9427_vm13, %v4297_v42, %v4298_v58  ;;  %v1835_v39 = vshrl.u32 %v1477_v57, 16  ;;  %v1841_v38 = vshll.u32 %v1478_v34, 16  ;;  %v2260_v46 = vld [vmem:[#allocation2 + $0x14] sm:$0x1]  ;;  %v4163_v31 = vld [vmem:[#allocation2 + $0xb8] sm:$0xf] }
 0x113   : > { %v7267_v50 = vcombine.low %v4296_v41, %v4299_v60  ;;  %v1828_v30 = vor.u32 %v1827_v11, %v1824_v32  ;;  %v1833_v22 = vrot.slane %v1831_v15, 5  ;;  %v1846_v44 = vshrl.u32 %v1479_v54, 16  ;;  %v4164_v32 = vld [vmem:[#allocation2 + $0xbc] sm:$0x1]  ;;  %v4166_v60 = vld [vmem:[#allocation2 + $0xc4] sm:$0xf] }
 0x114   : > { %7995 = vmatmul.mubr.bf16.gmra.mrb[24].mxu1 %v7077_v43  ;;  %v1837_v7 = vrot.slane %v1835_v39, 4  ;;  %v1843_v36 = vrot.slane %v1841_v38, 5  ;;  %v1849_v18 = vshll.u32 %v1479_v54, 16  ;;  %v1855_v0 = vshll.u32 %v1480_v10, 16  ;;  %v4162_v54 = vld [vmem:[#allocation2 + $0xb4] sm:$0xe] }
 0x115   : > { %8183 = vmatmul.mubr.bf16.gmra.mrb[20].mxu0 %v7267_v50  ;;  %v1829_v37 = vrot.slane %v1828_v30, 4  ;;  %v1848_v49 = vrot.slane %v1846_v44, 4  ;;  %v1859_v56 = vshrl.u32 %v1480_v10, 16  ;;  %v1865_v25 = vshll.u32 %v1481_v40, 16  ;;  %v4165_v43 = vld [vmem:[#allocation2 + $0xc0] sm:$0xe] }
 0x116   : > { %v1838_v1 = vor.u32 %v1837_v7, %v1833_v22  ;;  %v1851_v35 = vrot.slane %v1849_v18, 5  ;;  %v1857_v48 = vrot.slane %v1855_v0, 5  ;;  %v7236_v4 = vrot.slane %v4156_v17, 9  ;;  %v4167_v50 = vld [vmem:[#allocation2 + $0xc8] sm:$0x1] }
 0x117   : > { %v1834_v2 = vsel %vm9133_vm10, %v1829_v37, %v1833_v22  ;;  %v1861_v21 = vrot.slane %v1859_v56, 4  ;;  %v1867_v63 = vrot.slane %v1865_v25, 5  ;;  %v4302_v53 = vrot.slane %v4157_v47, 5  ;;  %v2262_v7 = vld [vmem:[#allocation2 + $0x1c] sm:$0xf] }
 0x118   : > { %v1839_v23 = vrot.slane %v1838_v1, 4  ;;  %v1852_v55 = vor.u32 %v1851_v35, %v1848_v49  ;;  %v4305_v57 = vrot.slane %v4158_v33, 5  ;;  %v7237_v52 = vrot.slane %v4159_v45, 9  ;;  %v2261_v45 = vld [vmem:[#allocation2 + $0x18] sm:$0xe] }
 0x119   : > { %v1862_v8 = vor.u32 %v1861_v21, %v1857_v48  ;;  %v4303_v3 = vsel %vm9427_vm13, %v7236_v4, %v4302_v53  ;;  %v4304_v34 = vrot.slane %v4302_v53, 4  ;;  %v4309_v20 = vrot.slane %v4160_v13, 5  ;;  %v2263_v37 = vld [vmem:[#allocation2 + $0x20] sm:$0x1]  ;;  %v2266_v21 = vld [vmem:[#allocation2 + $0x2c] sm:$0x1] }
 0x11a   : > { %v1844_v58 = vsel %vm9133_vm10, %v1839_v23, %v1843_v36  ;;  %v1853_v62 = vrot.slane %v1852_v55, 4  ;;  %v4312_v5 = vrot.slane %v4161_v28, 5  ;;  %v7088_v29 = vrot.slane %v2255_v16, 9  ;;  %v2264_v16 = vld [vmem:[#allocation2 + $0x24] sm:$0xe] }
 0x11b   : > { %v7078_v12 = vcombine.low %v1834_v2, %v1844_v58  ;;  %v1863_v19 = vrot.slane %v1862_v8, 4  ;;  %v4306_v41 = vsel %vm9427_vm13, %v4304_v34, %v4305_v57  ;;  %v4310_v42 = vsel %vm9427_vm13, %v7237_v52, %v4309_v20  ;;  %v2265_v2 = vld [vmem:[#allocation2 + $0x28] sm:$0xf]  ;;  %v2267_v55 = vld [vmem:[#allocation2 + $0x30] sm:$0xe] }
 0x11c   : > { %v1858_v11 = vsel %vm9133_vm10, %v1853_v62, %v1857_v48  ;;  %v7268_v15 = vcombine.low %v4303_v3, %v4306_v41  ;;  %v4311_v10 = vrot.slane %v4309_v20, 4  ;;  %v2356_v17 = vrot.slane %v2256_v51, 5  ;;  %v2268_v57 = vld [vmem:[#allocation2 + $0x34] sm:$0xf]  ;;  %v2269_v34 = vld [vmem:[#allocation2 + $0x38] sm:$0x1] }
 0x11d   : > { %7998 = vmatprep.mubr.bf16.mxu1 %v7078_v12  ;;  %v1868_v39 = vsel %vm9133_vm10, %v1863_v19, %v1867_v63  ;;  %v2359_v38 = vrot.slane %v2257_v26, 5  ;;  %v7089_v40 = vrot.slane %v2258_v61, 9  ;;  %v2363_v47 = vrot.slane %v2259_v9, 5  ;;  %v2271_v62 = vld [vmem:[#allocation2 + $0x40] sm:$0xf]  ;;  %v8733_v19 = vld [vmem:[#allocation2 + $0x18] sm:$0xff]  }
 0x11e   : > { %v7079_v30 = vcombine.low %v1858_v11, %v1868_v39  ;;  %8186 = vmatprep.mubr.bf16.mxu0 %v7268_v15  ;;  %v4313_v22 = vsel %vm9427_vm13, %v4311_v10, %v4312_v5  ;;  %v2357_v44 = vsel %vm9427_vm13, %v7088_v29, %v2356_v17  ;;  %v2358_v33 = vrot.slane %v2356_v17, 4  ;;  %v2274_v41 = vld [vmem:[#allocation2 + $0x4c] sm:$0xf] }
 0x11f   : > { %v7269_v36 = vcombine.low %v4310_v42, %v4313_v22  ;;  %v2364_v18 = vsel %vm9427_vm13, %v7089_v40, %v2363_v47  ;;  %v2365_v0 = vrot.slane %v2363_v47, 4  ;;  %v2366_v13 = vrot.slane %v2260_v46, 5  ;;  %v8746_v17 = vld [vmem:[%s10080_s4 + $0xc8] sm:$0xff]   ;;  %v2270_v40 = vld [vmem:[#allocation2 + $0x3c] sm:$0xe] }
 0x120   : > { %7999 = vmatmul.mubr.bf16.gmra.mrb[28].mxu1 %v7079_v30  ;;  %v2360_v49 = vsel %vm9427_vm13, %v2358_v33, %v2359_v38  ;;  %v7238_v56 = vrot.slane %v4162_v54, 9  ;;  %v4316_v25 = vrot.slane %v4163_v31, 5  ;;  %v4319_v28 = vrot.slane %v4164_v32, 5  ;;  %v2272_v22 = vld [vmem:[#allocation2 + $0x44] sm:$0x1]  ;;  %v8747_v33 = vld [vmem:[%s10080_s4 + $0xd0] sm:$0xff]  }
 0x121   : > { %8187 = vmatmul.mubr.bf16.gmra.mrb[24].mxu0 %v7269_v36  ;;  %v7120_v1 = vcombine.low %v2357_v44, %v2360_v49  ;;  %v2367_v35 = vsel %vm9427_vm13, %v2365_v0, %v2366_v13  ;;  %v7239_v48 = vrot.slane %v4165_v43, 9  ;;  %v4323_v4 = vrot.slane %v4166_v60, 5  ;;  %v2275_v36 = vld [vmem:[#allocation2 + $0x50] sm:$0x1]  ;;  %v8734_v0 = vld [vmem:[#allocation2 + $0x24] sm:$0xff]  }
 0x122   : > { %v7121_v63 = vcombine.low %v2364_v18, %v2367_v35  ;;  %v4317_v53 = vsel %vm9427_vm13, %v7238_v56, %v4316_v25  ;;  %v4318_v51 = vrot.slane %v4316_v25, 4  ;;  %v4326_v23 = vrot.slane %v4167_v50, 5  ;;  %v8792_v50 = vld [vmem:[%s10080_s4 + $0xc0] sm:$0xff]  }
 0x123   : > { %8018 = vmatprep.mubr.bf16.mxu1 %v7120_v1  ;;  %v4324_v52 = vsel %vm9427_vm13, %v7239_v48, %v4323_v4  ;;  %v4325_v26 = vrot.slane %v4323_v4, 4  ;;  %v7090_v8 = vrot.slane %v2261_v45, 9  ;;  %v2370_v3 = vrot.slane %v2262_v7, 5  ;;  %v2273_v7 = vld [vmem:[#allocation2 + $0x48] sm:$0xe] }
 0x124   : > { %v4320_v20 = vsel %vm9427_vm13, %v4318_v51, %v4319_v28  ;;  %v2373_v61 = vrot.slane %v2263_v37, 5  ;;  %v7091_v9 = vrot.slane %v2264_v16, 9  ;;  %v2377_v58 = vrot.slane %v2265_v2, 5  ;;  %v2277_v37 = vld [vmem:[#allocation2 + $0x58] sm:$0xf]  ;;  %v8736_v28 = vld [vmem:[#allocation2 + $0x30] sm:$0xff]  }
 0x125   : > { %v7270_v5 = vcombine.low %v4317_v53, %v4320_v20  ;;  %v4327_v29 = vsel %vm9427_vm13, %v4325_v26, %v4326_v23  ;;  %v2371_v46 = vsel %vm9427_vm13, %v7090_v8, %v2370_v3  ;;  %v2372_v12 = vrot.slane %v2370_v3, 4  ;;  %v8738_v48 = vld [vmem:[%s10080_s4 + $0x1c8] sm:$0xff]   ;;  %v2280_v4 = vld [vmem:[#allocation2 + $0x64] sm:$0xf]  ;;  %v8751_v2 = vld [vmem:[%s10080_s4 + $0xd8] sm:$0xff]  }
 0x126   : > { %v7271_v42 = vcombine.low %v4324_v52, %v4327_v29  ;;  %v2379_v54 = vrot.slane %v2377_v58, 4  ;;  %v2380_v31 = vrot.slane %v2266_v21, 5  ;;  %v7092_v11 = vrot.slane %v2267_v55, 9  ;;  %v2276_v53 = vld [vmem:[#allocation2 + $0x54] sm:$0xe]  ;;  %v8737_v8 = vld [vmem:[#allocation2 + $0x3c] sm:$0xff]  }
 0x127   : > { %8190 = vmatprep.mubr.bf16.mxu0 %v7270_v5  ;;  %v2374_v32 = vsel %vm9427_vm13, %v2372_v12, %v2373_v61  ;;  %v2384_v15 = vrot.slane %v2268_v57, 5  ;;  %v2387_v10 = vrot.slane %v2269_v34, 5  ;;  %v2378_v60 = vsel %vm9427_vm13, %v7091_v9, %v2377_v58  ;;  %v2278_v57 = vld [vmem:[#allocation2 + $0x5c] sm:$0x1]  ;;  %v2279_v52 = vld [vmem:[#allocation2 + $0x60] sm:$0xe] }
 0x128   : > { %8019 = vmatmul.mubr.bf16.vlgmr.msra.gmra.mrb[0].mxu1 %v7121_v63  ;;  %v7122_v43 = vcombine.low %v2371_v46, %v2374_v32  ;;  %v2381_v39 = vsel %vm9427_vm13, %v2379_v54, %v2380_v31  ;;  %v2391_v47 = vrot.slane %v2271_v62, 5  ;;  %v2398_v44 = vrot.slane %v2274_v41, 5  ;;  %v8741_v3 = vld [vmem:[%s10080_s4 + $0x1d0] sm:$0xff]   ;;  %v2281_v34 = vld [vmem:[#allocation2 + $0x68] sm:$0x1]  ;;  %v8752_v9 = vld [vmem:[%s10080_s4 + $0xe0] sm:$0xff]  }
 0x129   : > { %8191 = vmatmul.mubr.bf16.gmra.mrb[28].mxu0 %v7271_v42  ;;  %v2386_v38 = vrot.slane %v2384_v15, 4  ;;  %8051 = vmatpush3.bf16.msra.mxu1 %v8792_v50  ;;  %v2385_v30 = vsel %vm9427_vm13, %v7092_v11, %v2384_v15  ;;  %v7123_v18 = vcombine.low %v2378_v60, %v2381_v39  ;;  %v7093_v13 = vrot.slane %v2270_v40, 9  ;;  %v2283_v61 = vld [vmem:[#allocation2 + $0x70] sm:$0xf]  ;;  %v8739_v29 = vld [vmem:[#allocation2 + $0x48] sm:$0xff]   ;;  %v8745_v41 = vld [vmem:[%s10080_s4 + $0x1d8] sm:$0xff]  }
 0x12a   : > { %8022 = vmatprep.mubr.bf16.mxu1 %v7122_v43  ;;  %8210 = vmatprep.mubr.bf16.mxu0 %v8733_v19  ;;  %v2393_v56 = vrot.slane %v2391_v47, 4  ;;  %v2394_v25 = vrot.slane %v2272_v22, 5  ;;  %v7094_v16 = vrot.slane %v2273_v7, 9  ;;  %v2400_v1 = vrot.slane %v2398_v44, 4  ;;  %v2286_v42 = vld [vmem:[#allocation2 + $0x7c] sm:$0xf] }
 0x12b   : > { %v2388_v45 = vsel %vm9427_vm13, %v2386_v38, %v2387_v10  ;;  %8052 = vmatprep.subr.bf16.mxu1 %v8746_v17  ;;  %v2401_v35 = vrot.slane %v2275_v36, 5  ;;  %v2392_v21 = vsel %vm9427_vm13, %v7093_v13, %v2391_v47  ;;  %v2405_v51 = vrot.slane %v2277_v37, 5  ;;  %v8756_v54 = vld [vmem:[%s10080_s4 + $0xe8] sm:$0xff]   ;;  %v2284_v43 = vld [vmem:[#allocation2 + $0x74] sm:$0x1]  ;;  %v8750_v38 = vld [vmem:[%s10080_s4 + $0x1e0] sm:$0xff]  }
 0x12c   : > { %v7124_v49 = vcombine.low %v2385_v30, %v2388_v45  ;;  %v2395_v63 = vsel %vm9427_vm13, %v2393_v56, %v2394_v25  ;;  %v2399_v23 = vsel %vm9427_vm13, %v7094_v16, %v2398_v44  ;;  %v2412_v26 = vrot.slane %v2280_v4, 5  ;;  %v2282_v11 = vld [vmem:[#allocation2 + $0x6c] sm:$0xe]  ;;  %v2285_v60 = vld [vmem:[#allocation2 + $0x78] sm:$0xe]  ;;  %v8757_v50 = vld [vmem:[%s10080_s4 + $0xf0] sm:$0xff]  }
 0x12d   : > { %8053 = vmatpush3.bf16.msra.mxu1 %v8746_v17  ;;  %v2402_v55 = vsel %vm9427_vm13, %v2400_v1, %v2401_v35  ;;  %v7125_v20 = vcombine.low %v2392_v21, %v2395_v63  ;;  %v2407_v62 = vrot.slane %v2405_v51, 4  ;;  %v2408_v5 = vrot.slane %v2278_v57, 5  ;;  %v2287_v40 = vld [vmem:[#allocation2 + $0x80] sm:$0x1]  ;;  %v8740_v30 = vld [vmem:[#allocation2 + $0x54] sm:$0xff]   ;;  %v8744_v57 = vld [vmem:[#allocation2 + $0x6c] sm:$0xff]  }
 0x12e   : > { %8054 = vmatprep.subr.bf16.mxu1 %v8747_v33  ;;  %v7126_v58 = vcombine.low %v2399_v23, %v2402_v55  ;;  %v7096_v46 = vrot.slane %v2279_v52, 9  ;;  %v2414_v12 = vrot.slane %v2412_v26, 4  ;;  %v2415_v19 = vrot.slane %v2281_v34, 5  ;;  %v8743_v7 = vld [vmem:[#allocation2 + $0x60] sm:$0xff]   ;;  %v2289_v13 = vld [vmem:[#allocation2 + $0x88] sm:$0xf] }
 0x12f   : > { %v2409_v32 = vsel %vm9427_vm13, %v2407_v62, %v2408_v5  ;;  %v2419_v15 = vrot.slane %v2283_v61, 5  ;;  %v2426_v39 = vrot.slane %v2286_v42, 5  ;;  %v7097_v44 = vrot.slane %v2282_v11, 9  ;;  %v2292_v37 = vld [vmem:[#allocation2 + $0x94] sm:$0xf]  ;;  %v8761_v25 = vld [vmem:[%s10080_s4 + $0xf8] sm:$0xff]  }
 0x130   : > { %8023 = vmatmul.mubr.bf16.gmra.mrb[4].mxu1 %v7123_v18  ;;  %v2413_v10 = vsel %vm9427_vm13, %v7096_v46, %v2412_v26  ;;  %v2416_v17 = vsel %vm9427_vm13, %v2414_v12, %v2415_v19  ;;  %v2422_v45 = vrot.slane %v2284_v43, 5  ;;  %v7098_v36 = vrot.slane %v2285_v60, 9  ;;  %v2288_v56 = vld [vmem:[#allocation2 + $0x84] sm:$0xe]  ;;  %v2290_v1 = vld [vmem:[#allocation2 + $0x8c] sm:$0x1] }
 0x131   : > { %8211 = vmatmul.mubr.bf16.vlgmr.msra.gmra.mrb[0].mxu0 %v8734_v0  ;;  %8026 = vmatprep.mubr.bf16.mxu1 %v7124_v49  ;;  %v7128_v22 = vcombine.low %v2413_v10, %v2416_v17  ;;  %v2428_v18 = vrot.slane %v2426_v39, 4  ;;  %v2429_v0 = vrot.slane %v2287_v40, 5  ;;  %v8755_v49 = vld [vmem:[%s10080_s4 + $0x1e8] sm:$0xff]   ;;  %v2433_v35 = vrot.slane %v2289_v13, 5  ;;  %v2293_v63 = vld [vmem:[#allocation2 + $0x98] sm:$0x1] }
 0x132   : > { %8243 = vmatpush3.bf16.msra.mxu0 %v9563_v6  ;;  %8214 = vmatprep.mubr.bf16.mxu0 %v8736_v28  ;;  %v7095_v6 = vrot.slane %v2276_v53, 9  ;;  %v2420_v28 = vsel %vm9427_vm13, %v7097_v44, %v2419_v15  ;;  %v2440_v21 = vrot.slane %v2292_v37, 5  ;;  %v2295_v53 = vld [vmem:[#allocation2 + $0xa0] sm:$0xf]  ;;  %v7099_v55 = vrot.slane %v2288_v56, 9  ;;  %v8766_v5 = vld [vmem:[%s10080_s4 + $0x1f8] sm:$0xff]  }
 0x133   : > { %8244 = vmatprep.subr.bf16.mxu0 %v8738_v48  ;;  %8055 = vmatpush3.bf16.msra.mxu1 %v8747_v33  ;;  %v2421_v33 = vrot.slane %v2419_v15, 4  ;;  %v2430_v4 = vsel %vm9427_vm13, %v2428_v18, %v2429_v0  ;;  %v2435_v26 = vrot.slane %v2433_v35, 4  ;;  %v2294_v34 = vld [vmem:[#allocation2 + $0x9c] sm:$0xe]  ;;  %v2443_v61 = vrot.slane %v2293_v63, 5  ;;  %v9723_v43 = vld [vmem:[%s10080_s4 + $0x200] sm:$0xff]  }
 0x134   : > { %8056 = vmatprep.subr.bf16.mxu1 %v8751_v2  ;;  %v2406_v31 = vsel %vm9427_vm13, %v7095_v6, %v2405_v51  ;;  %v8760_v51 = vld [vmem:[%s10080_s4 + $0x1f0] sm:$0xff]   ;;  %v2442_v6 = vrot.slane %v2440_v21, 4  ;;  %v2298_v62 = vld [vmem:[#allocation2 + $0xac] sm:$0xf]  ;;  %v2434_v46 = vsel %vm9427_vm13, %v7099_v55, %v2433_v35  ;;  %v5165_v10 = vld [vmem:[#allocation2 + $0x18] sm:$0xf] }
 0x135   : > { %v7127_v47 = vcombine.low %v2406_v31, %v2409_v32  ;;  %v2423_v16 = vsel %vm9427_vm13, %v2421_v33, %v2422_v45  ;;  %v2299_v42 = vld [vmem:[#allocation2 + $0xb0] sm:$0x1]  ;;  %v2454_v15 = vrot.slane %v2298_v62, 5  ;;  %v5166_v17 = vld [vmem:[#allocation2 + $0x1c] sm:$0xf]  ;;  %v5214_v44 = vshrl.u32 %v5165_v10, 16 }
 0x136   : > { %8245 = vmatpush3.bf16.msra.mxu0 %v8738_v48  ;;  %v2427_v48 = vsel %vm9427_vm13, %v7098_v36, %v2426_v39  ;;  %v7129_v23 = vcombine.low %v2420_v28, %v2423_v16  ;;  %v2444_v31 = vsel %vm9427_vm13, %v2442_v6, %v2443_v61  ;;  %v2457_v40 = vrot.slane %v2299_v42, 5  ;;  %v2302_v13 = vld [vmem:[#allocation2 + $0xbc] sm:$0x1]  ;;  %v5168_v37 = vld [vmem:[#allocation2 + $0x24] sm:$0xf]  ;;  %v8758_v62 = vld [vmem:[#allocation2 + $0xa8] sm:$0xff]  }
 0x137   : > { %8246 = vmatprep.subr.bf16.mxu0 %v8741_v3  ;;  %8057 = vmatpush3.bf16.msra.mxu1 %v8751_v2  ;;  %v2291_v2 = vld [vmem:[#allocation2 + $0x90] sm:$0xe]  ;;  %v7130_v52 = vcombine.low %v2427_v48, %v2430_v4  ;;  %v5217_v33 = vshll.u32 %v5165_v10, 16  ;;  %v2456_v36 = vrot.slane %v2454_v15, 4  ;;  %v5223_v18 = vshll.u32 %v5166_v17, 16 }
 0x138   : > { %8027 = vmatmul.mubr.bf16.gmra.mrb[8].mxu1 %v7125_v20  ;;  %8058 = vmatprep.subr.bf16.mxu1 %v8752_v9  ;;  %v8748_v20 = vld [vmem:[#allocation2 + $0x78] sm:$0xff]   ;;  %v5227_v0 = vshrl.u32 %v5166_v17, 16  ;;  %v5171_v28 = vld [vmem:[#allocation2 + $0x30] sm:$0xf]  ;;  %v5216_v35 = vrot.slane %v5214_v44, 4  ;;  %v5241_v55 = vshll.u32 %v5168_v37, 16 }
 0x139   : > { %8215 = vmatmul.mubr.bf16.gmra.mrb[4].mxu0 %v8737_v8  ;;  %8030 = vmatprep.mubr.bf16.mxu1 %v7126_v58  ;;  %v2436_v8 = vrot.slane %v2290_v1, 5  ;;  %v2296_v58 = vld [vmem:[#allocation2 + $0xa4] sm:$0x1]  ;;  %v5219_v48 = vrot.slane %v5217_v33, 5  ;;  %v5172_v4 = vld [vmem:[#allocation2 + $0x34] sm:$0xf] }
 0x13a   : > { %8218 = vmatprep.mubr.bf16.mxu0 %v8739_v29  ;;  %8247 = vmatpush3.bf16.msra.mxu0 %v8741_v3  ;;  %v7100_v3 = vrot.slane %v2291_v2, 9  ;;  %v7101_v29 = vrot.slane %v2294_v34, 9  ;;  %v2450_v11 = vrot.slane %v2296_v58, 5  ;;  %v2458_v2 = vsel %vm9427_vm13, %v2456_v36, %v2457_v40 }
 0x13b   : > { %8248 = vmatprep.subr.bf16.mxu0 %v8745_v41  ;;  %8059 = vmatpush3.bf16.msra.mxu1 %v8752_v9  ;;  %v2447_v9 = vrot.slane %v2295_v53, 5  ;;  %v2437_v12 = vsel %vm9427_vm13, %v2435_v26, %v2436_v8  ;;  %v9734_v63 = vrot.slane %v5223_v18, 5  ;;  %v5229_v53 = vrot.slane %v5227_v0, 4 }
 0x13c   : > { %8060 = vmatprep.subr.bf16.mxu1 %v8756_v54  ;;  %v2441_v19 = vsel %vm9427_vm13, %v7100_v3, %v2440_v21  ;;  %v7131_v60 = vcombine.low %v2434_v46, %v2437_v12  ;;  %v2464_v21 = vrot.slane %v2302_v13, 5  ;;  %v5262_v26 = vshrl.u32 %v5171_v28, 16  ;;  %v5170_v46 = vld [vmem:[#allocation2 + $0x2c] sm:$0x1]  ;;  %v8759_v13 = vld [vmem:[#allocation2 + $0xb4] sm:$0xff]  }
 0x13d   : > { %v2449_v32 = vrot.slane %v2447_v9, 4  ;;  %v2448_v39 = vsel %vm9427_vm13, %v7101_v29, %v2447_v9  ;;  %v5265_v8 = vshll.u32 %v5171_v28, 16  ;;  %v5271_v3 = vshll.u32 %v5172_v4, 16 }
 0x13e   : > { %8249 = vmatpush3.bf16.msra.mxu0 %v8745_v41  ;;  %v2297_v41 = vld [vmem:[#allocation2 + $0xa8] sm:$0xe]  ;;  %v5275_v34 = vshrl.u32 %v5172_v4, 16  ;;  %v5220_v61 = vor.u32 %v5219_v48, %v5216_v35 }
 0x13f   : > { %8250 = vmatprep.subr.bf16.mxu0 %v8750_v38  ;;  %8061 = vmatpush3.bf16.msra.mxu1 %v8756_v54  ;;  %v2301_v54 = vld [vmem:[#allocation2 + $0xb8] sm:$0xf]  ;;  %v2451_v45 = vsel %vm9427_vm13, %v2449_v32, %v2450_v11  ;;  %v5264_v32 = vrot.slane %v5262_v26, 4  ;;  %v5267_v11 = vrot.slane %v5265_v8, 5 }
 0x140   : > { %8031 = vmatmul.mubr.bf16.gmra.mrb[12].mxu1 %v7127_v47  ;;  %8062 = vmatprep.subr.bf16.mxu1 %v8757_v50  ;;  %v8749_v47 = vld [vmem:[#allocation2 + $0x84] sm:$0xff]   ;;  %v7133_v16 = vcombine.low %v2448_v39, %v2451_v45  ;;  %v5277_v10 = vrot.slane %v5275_v34, 4  ;;  %v5221_v17 = vrot.slane %v5220_v61, 4  ;;  %v5175_v39 = vld [vmem:[#allocation2 + $0x40] sm:$0xf] }
 0x141   : > { %8219 = vmatmul.mubr.bf16.gmra.mrb[8].mxu0 %v8740_v30  ;;  %8034 = vmatprep.mubr.bf16.mxu1 %v7128_v22  ;;  %v2300_v30 = vld [vmem:[#allocation2 + $0xb4] sm:$0xe]  ;;  %v2461_v22 = vrot.slane %v2301_v54, 5  ;;  %v5174_v54 = vld [vmem:[#allocation2 + $0x3c] sm:$0xf]  ;;  %v5295_v18 = vshll.u32 %v5175_v39, 16 }
 0x142   : > { %8222 = vmatprep.mubr.bf16.mxu0 %v8743_v7  ;;  %8251 = vmatpush3.bf16.msra.mxu0 %v8750_v38  ;;  %v7102_v38 = vrot.slane %v2297_v41, 9  ;;  %v8753_v7 = vld [vmem:[#allocation2 + $0x90] sm:$0xff]   ;;  %v7103_v56 = vrot.slane %v2300_v30, 9  ;;  %v5177_v45 = vld [vmem:[#allocation2 + $0x48] sm:$0xf]  ;;  %v5299_v0 = vshrl.u32 %v5175_v39, 16 }
 0x143   : > { %8252 = vmatprep.subr.bf16.mxu0 %v8755_v49  ;;  %8063 = vmatpush3.bf16.msra.mxu1 %v8757_v50  ;;  %v7132_v50 = vcombine.low %v2441_v19, %v2444_v31  ;;  %v2463_v1 = vrot.slane %v2461_v22, 4  ;;  %v5243_v19 = vrot.slane %v5241_v55, 5  ;;  %v5173_v31 = vld [vmem:[#allocation2 + $0x38] sm:$0x1]  ;;  %v5310_v35 = vshrl.u32 %v5177_v45, 16 }
 0x144   : > { %8064 = vmatprep.subr.bf16.mxu1 %v8761_v25  ;;  %v2462_v9 = vsel %vm9427_vm13, %v7103_v56, %v2461_v22  ;;  %v5281_v33 = vshll.u32 %v5173_v31, 16  ;;  %v5226_v56 = vsel %vm9133_vm10, %v5221_v17, %v9734_v63  ;;  %v5313_v48 = vshll.u32 %v5177_v45, 16  ;;  %v5181_v61 = vld [vmem:[#allocation2 + $0x58] sm:$0xf] }
 0x145   : > { %v2465_v58 = vsel %vm9427_vm13, %v2463_v1, %v2464_v21  ;;  %v5178_v1 = vld [vmem:[#allocation2 + $0x4c] sm:$0xf]  ;;  %v9752_v55 = vrot.slane %v5295_v18, 5  ;;  %v5347_v39 = vshrl.u32 %v5181_v61, 16  ;;  %v5182_v18 = vld [vmem:[#allocation2 + $0x5c] sm:$0x1] }
 0x146   : > { %8253 = vmatpush3.bf16.msra.mxu0 %v8755_v49  ;;  %v2455_v49 = vsel %vm9427_vm13, %v7102_v38, %v2454_v15  ;;  %v9743_v15 = vrot.slane %v5271_v3, 5  ;;  %v7135_v38 = vcombine.low %v2462_v9, %v2465_v58  ;;  %v5319_v26 = vshll.u32 %v5178_v1, 16  ;;  %v8763_v9 = vld [vmem:[#allocation2 + $0x18] sm:$0xff]  }
 0x147   : > { %8254 = vmatprep.subr.bf16.mxu0 %v8760_v51  ;;  %8065 = vmatpush3.bf16.msra.mxu1 %v8761_v25  ;;  %v5169_v25 = vld [vmem:[#allocation2 + $0x28] sm:$0xf]  ;;  %v7134_v6 = vcombine.low %v2455_v49, %v2458_v2  ;;  %v8764_v49 = vld [vmem:[#allocation2 + $0xc0] sm:$0xff]   ;;  %v5323_v8 = vshrl.u32 %v5178_v1, 16 }
 0x148   : > { %8035 = vmatmul.mubr.bf16.gmra.mrb[16].mxu1 %v7129_v23  ;;  %v5238_v23 = vshrl.u32 %v5168_v37, 16  ;;  %v5278_v36 = vor.u32 %v5277_v10, %v9743_v15  ;;  %v8762_v37 = vld [vmem:[#allocation2 + $0xc] sm:$0xff]   ;;  %v9765_v10 = vrot.slane %v5319_v26, 5  ;;  %v5185_v1 = vld [vmem:[#allocation2 + $0x68] sm:$0x1] }
 0x149   : > { %8223 = vmatmul.mubr.bf16.gmra.mrb[12].mxu0 %v8744_v57  ;;  %8038 = vmatprep.mubr.bf16.mxu1 %v7130_v52  ;;  %v5247_v57 = vshll.u32 %v5169_v25, 16  ;;  %v5251_v52 = vshrl.u32 %v5169_v25, 16  ;;  %v5325_v17 = vrot.slane %v5323_v8, 4  ;;  %v8770_v8 = vld [vmem:[#allocation2 + $0x3c] sm:$0xff]  }
 0x14a   : > { %8226 = vmatprep.mubr.bf16.mxu0 %v8748_v20  ;;  %8255 = vmatpush3.bf16.msra.mxu0 %v8760_v51  ;;  %v5167_v51 = vld [vmem:[#allocation2 + $0x20] sm:$0x1]  ;;  %v5240_v12 = vrot.slane %v5238_v23, 4  ;;  %v5279_v23 = vrot.slane %v5278_v36, 4 }
 0x14b   : > { %8256 = vmatprep.subr.bf16.mxu0 %v8766_v5  ;;  %v8754_v20 = vld [vmem:[#allocation2 + $0x9c] sm:$0xff]   ;;  %v5233_v29 = vshll.u32 %v5167_v51, 16  ;;  %v9741_v41 = vrot.slane %v5247_v57, 5  ;;  %v5253_v42 = vrot.slane %v5251_v52, 4  ;;  %v5301_v57 = vrot.slane %v5299_v0, 4 }
 0x14c   : > { %v5244_v22 = vor.u32 %v5243_v19, %v5240_v12  ;;  %v5180_v52 = vld [vmem:[#allocation2 + $0x54] sm:$0xf]  ;;  %v8765_v12 = vld [vmem:[#allocation2 + $0xcc] sm:$0xff]   ;;  %v8767_v19 = vld [vmem:[#allocation2 + $0x24] sm:$0xff]  }
 0x14d   : > { %v5235_v40 = vrot.slane %v5233_v29, 5  ;;  %v5254_v44 = vor.u32 %v5253_v42, %v9741_v41  ;;  %v5337_v29 = vshll.u32 %v5180_v52, 16  ;;  %v5302_v31 = vor.u32 %v5301_v57, %v9752_v55  ;;  %v5186_v0 = vld [vmem:[#allocation2 + $0x6c] sm:$0xf] }
 0x14e   : > { %8257 = vmatpush3.bf16.msra.mxu0 %v8766_v5  ;;  %v5230_v5 = vor.u32 %v5229_v53, %v9734_v63  ;;  %v5245_v2 = vrot.slane %v5244_v22, 4  ;;  %v5283_v53 = vrot.slane %v5281_v33, 5  ;;  %v5176_v63 = vld [vmem:[#allocation2 + $0x44] sm:$0x1]  ;;  %v5382_v57 = vshrl.u32 %v5186_v0, 16 }
 0x14f   : > { %8290 = vmatprep.subr.bf16.mxu0 %v9723_v43  ;;  %v5255_v21 = vrot.slane %v5254_v44, 4 }
 0x150   : > { %8039 = vmatmul.mubr.bf16.gmra.mrb[20].mxu1 %v7131_v60  ;;  %v5257_v60 = vshll.u32 %v5170_v46, 16  ;;  %v5231_v30 = vrot.slane %v5230_v5, 4  ;;  %v5250_v58 = vsel %vm9133_vm10, %v5245_v2, %v9741_v41  ;;  %v5334_v5 = vshrl.u32 %v5180_v52, 16  ;;  %v5183_v46 = vld [vmem:[#allocation2 + $0x60] sm:$0xf] }
 0x151   : > { %8227 = vmatmul.mubr.bf16.gmra.mrb[16].mxu0 %v8749_v47  ;;  %8042 = vmatprep.mubr.bf16.mxu1 %v7132_v50  ;;  %v5286_v47 = vshrl.u32 %v5174_v54, 16  ;;  %v5289_v50 = vshll.u32 %v5174_v54, 16  ;;  %v5284_v54 = vsel %vm9133_vm10, %v5279_v23, %v5283_v53  ;;  %v5179_v41 = vld [vmem:[#allocation2 + $0x50] sm:$0x1]  ;;  %v5353_v2 = vshll.u32 %v5182_v18, 16 }
 0x152   : > { %8230 = vmatprep.mubr.bf16.mxu0 %v8753_v7  ;;  %v5268_v7 = vor.u32 %v5267_v11, %v5264_v32  ;;  %v5259_v25 = vrot.slane %v5257_v60, 5  ;;  %v5236_v4 = vsel %vm9133_vm10, %v5231_v30, %v5235_v40  ;;  %v5305_v32 = vshll.u32 %v5176_v63, 16  ;;  %v5184_v11 = vld [vmem:[#allocation2 + $0x64] sm:$0xf]  ;;  %v8768_v23 = vld [vmem:[#allocation2 + $0x30] sm:$0xff]  }
 0x153   : > { %v5288_v28 = vrot.slane %v5286_v47, 4  ;;  %v7336_v3 = vcombine.low %v5226_v56, %v5236_v4  ;;  %v5343_v60 = vshll.u32 %v5181_v61, 16  ;;  %v5358_v47 = vshrl.u32 %v5183_v46, 16 }
 0x154   : > { %v5269_v51 = vrot.slane %v5268_v7, 4  ;;  %v5336_v30 = vrot.slane %v5334_v5, 4  ;;  %v5367_v22 = vshll.u32 %v5184_v11, 16  ;;  %v5371_v44 = vshrl.u32 %v5184_v11, 16  ;;  %v8772_v5 = vld [vmem:[%s10080_s4 + $0x208] sm:$0xff]  }
 0x155   : > { %v9769_v7 = vrot.slane %v5305_v32, 5  ;;  %v5329_v36 = vshll.u32 %v5179_v41, 16  ;;  %v5349_v56 = vrot.slane %v5347_v39, 4  ;;  %v5385_v52 = vshll.u32 %v5186_v0, 16  ;;  %v5193_v41 = vld [vmem:[#allocation2 + $0x88] sm:$0xf] }
 0x156   : > { %v5274_v42 = vsel %vm9133_vm10, %v5269_v51, %v9743_v15  ;;  %v5339_v15 = vrot.slane %v5337_v29, 5  ;;  %v5373_v53 = vrot.slane %v5371_v44, 4  ;;  %v5189_v51 = vld [vmem:[#allocation2 + $0x78] sm:$0xf]  ;;  %v5377_v61 = vshll.u32 %v5185_v1, 16 }
 0x157   : > { %v7338_v45 = vcombine.low %v5274_v42, %v5284_v54  ;;  %v5192_v42 = vld [vmem:[#allocation2 + $0x84] sm:$0xf]  ;;  %v5384_v54 = vrot.slane %v5382_v57, 4 }
 0x158   : > { %8043 = vmatmul.mubr.bf16.gmra.mrb[24].mxu1 %v7133_v16  ;;  %v5291_v16 = vrot.slane %v5289_v50, 5  ;;  %v5361_v50 = vshll.u32 %v5183_v46, 16  ;;  %v5340_v4 = vor.u32 %v5339_v15, %v5336_v30  ;;  %v8775_v15 = vld [vmem:[%s10080_s4 + $0x210] sm:$0xff]   ;;  %v5433_v44 = vshll.u32 %v5192_v42, 16 }
 0x159   : > { %8231 = vmatmul.mubr.bf16.gmra.mrb[20].mxu0 %v8754_v20  ;;  %8046 = vmatprep.mubr.bf16.mxu1 %v7134_v6  ;;  %v5312_v20 = vrot.slane %v5310_v35, 4  ;;  %v5315_v6 = vrot.slane %v5313_v48, 5  ;;  %v5360_v35 = vrot.slane %v5358_v47, 4  ;;  %v5379_v47 = vrot.slane %v5377_v61, 5 }
 0x15a   : > { %8234 = vmatprep.mubr.bf16.mxu0 %v8758_v62  ;;  %v5292_v34 = vor.u32 %v5291_v16, %v5288_v28  ;;  %v5260_v62 = vsel %vm9133_vm10, %v5255_v21, %v5259_v25  ;;  %v5187_v25 = vld [vmem:[#allocation2 + $0x70] sm:$0xf]  ;;  %v5363_v48 = vrot.slane %v5361_v50, 5  ;;  %v9782_v21 = vrot.slane %v5367_v22, 5 }
 0x15b   : > { %v5316_v40 = vor.u32 %v5315_v6, %v5312_v20  ;;  %v7337_v33 = vcombine.low %v5250_v58, %v5260_v62  ;;  %v5391_v63 = vshll.u32 %v5187_v25, 16  ;;  %v5395_v26 = vshrl.u32 %v5187_v25, 16 }
 0x15c   : > { %v5364_v6 = vor.u32 %v5363_v48, %v5360_v35  ;;  %v5406_v58 = vshrl.u32 %v5189_v51, 16  ;;  %v5409_v62 = vshll.u32 %v5189_v51, 16  ;;  %v9796_v46 = vrot.slane %v5340_v4, 4  ;;  %v8778_v48 = vld [vmem:[%s10080_s4 + $0x218] sm:$0xff]   ;;  %v5191_v4 = vld [vmem:[#allocation2 + $0x80] sm:$0x1] }
 0x15d   : > { %v9780_v16 = vrot.slane %v5316_v40, 4  ;;  %v9801_v32 = vrot.slane %v5391_v63, 5  ;;  %v5397_v11 = vrot.slane %v5395_v26, 4  ;;  %v5430_v22 = vshrl.u32 %v5192_v42, 16 }
 0x15e   : > { %v5365_v40 = vrot.slane %v5364_v6, 4  ;;  %v5408_v50 = vrot.slane %v5406_v58, 4  ;;  %v5411_v30 = vrot.slane %v5409_v62, 5 }
 0x15f   : > { %v5322_v29 = vsel %vm9133_vm10, %v9780_v16, %v9765_v10  ;;  %v5432_v51 = vrot.slane %v5430_v22, 4  ;;  %v5202_v22 = vld [vmem:[#allocation2 + $0xac] sm:$0xf] }
 0x160   : > { %8047 = vmatmul.mubr.bf16.gmra.mrb[28].mxu1 %v7135_v38  ;;  %v9767_v38 = vrot.slane %v5292_v34, 4  ;;  %v5331_v34 = vrot.slane %v5329_v36, 5  ;;  %v8771_v36 = vld [vmem:[#allocation2 + $0x48] sm:$0xff]  }
 0x161   : > { %8235 = vmatmul.mubr.bf16.gmra.mrb[24].mxu0 %v8759_v13  ;;  %8066 = vmatprep.mubr.bf16.mxu1 %v8762_v37  ;;  %v9771_v13 = vrot.slane %v5302_v31, 4  ;;  %v5326_v37 = vor.u32 %v5325_v17, %v9765_v10  ;;  %v5387_v31 = vrot.slane %v5385_v52, 5  ;;  %v5196_v52 = vld [vmem:[#allocation2 + $0x94] sm:$0xf] }
 0x162   : > { %8238 = vmatprep.mubr.bf16.mxu0 %v8764_v49  ;;  %v9774_v49 = vrot.slane %v5343_v60, 5  ;;  %v5298_v28 = vsel %vm9133_vm10, %v9767_v38, %v9752_v55  ;;  %v5188_v60 = vld [vmem:[#allocation2 + $0x74] sm:$0x1]  ;;  %v5463_v61 = vshll.u32 %v5196_v52, 16 }
 0x163   : > { %v5308_v55 = vsel %vm9133_vm10, %v9771_v13, %v9769_v7  ;;  %v5443_v7 = vshrl.u32 %v5193_v41, 16  ;;  %v5388_v0 = vor.u32 %v5387_v31, %v5384_v54  ;;  %v5398_v13 = vor.u32 %v5397_v11, %v9801_v32  ;;  %v8776_v54 = vld [vmem:[#allocation2 + $0x6c] sm:$0xff]  }
 0x164   : > { %v5350_v20 = vor.u32 %v5349_v56, %v9774_v49  ;;  %v5346_v1 = vsel %vm9133_vm10, %v9796_v46, %v9774_v49  ;;  %v8781_v46 = vld [vmem:[%s10080_s4 + $0x220] sm:$0xff]  }
 0x165   : > { %v5445_v57 = vrot.slane %v5443_v7, 4  ;;  %v9832_v26 = vrot.slane %v5388_v0, 4 }
 0x166   : > { %v9805_v10 = vrot.slane %v5350_v20, 4 }
 0x167   : > { %v5394_v11 = vsel %vm9133_vm10, %v9832_v26, %v9801_v32  ;;  %v5203_v26 = vld [vmem:[#allocation2 + $0xb0] sm:$0x1] }
 0x168   : > { %8067 = vmatmul.mubr.bf16.vlgmr.msra.gmra.mrb[0].mxu1 %v8763_v9  ;;  %v5190_v9 = vld [vmem:[#allocation2 + $0x7c] sm:$0xf] }
 0x169   : > { %8239 = vmatmul.mubr.bf16.gmra.mrb[28].mxu0 %v8765_v12  ;;  %8070 = vmatprep.mubr.bf16.mxu1 %v8767_v19  ;;  %v9798_v12 = vrot.slane %v5353_v2, 5  ;;  %v5374_v19 = vor.u32 %v5373_v53, %v9782_v21  ;;  %v5415_v39 = vshll.u32 %v5190_v9, 16  ;;  %v5419_v38 = vshrl.u32 %v5190_v9, 16  ;;  %v5195_v53 = vld [vmem:[#allocation2 + $0x90] sm:$0xf] }
 0x16a   : > { %8258 = vmatprep.mubr.bf16.mxu0 %v7336_v3  ;;  %v5327_v3 = vrot.slane %v5326_v37, 4  ;;  %v8773_v37 = vld [vmem:[#allocation2 + $0x54] sm:$0xff]   ;;  %v5412_v2 = vor.u32 %v5411_v30, %v5408_v50  ;;  %v5454_v20 = vshrl.u32 %v5195_v53, 16  ;;  %v5457_v6 = vshll.u32 %v5195_v53, 16 }
 0x16b   : > { %v5375_v18 = vrot.slane %v5374_v19, 4  ;;  %v9812_v25 = vrot.slane %v5415_v39, 5  ;;  %v5421_v16 = vrot.slane %v5419_v38, 4  ;;  %v5356_v35 = vsel %vm9133_vm10, %v9805_v10, %v9798_v12  ;;  %v5198_v12 = vld [vmem:[#allocation2 + $0x9c] sm:$0xf]  ;;  %v8774_v19 = vld [vmem:[#allocation2 + $0x60] sm:$0xff]  }
 0x16c   : > { %v5332_v17 = vsel %vm9133_vm10, %v5327_v3, %v5331_v34  ;;  %v5425_v34 = vshll.u32 %v5191_v4, 16  ;;  %v5467_v9 = vshrl.u32 %v5196_v52, 16  ;;  %v5413_v58 = vrot.slane %v5412_v2, 4  ;;  %v8777_v4 = vld [vmem:[#allocation2 + $0x78] sm:$0xff]  }
 0x16d   : > { %v7340_v56 = vcombine.low %v5322_v29, %v5332_v17  ;;  %v5380_v63 = vsel %vm9133_vm10, %v5375_v18, %v5379_v47  ;;  %v5422_v3 = vor.u32 %v5421_v16, %v9812_v25  ;;  %v7341_v42 = vcombine.low %v5346_v1, %v5356_v35  ;;  %v5199_v17 = vld [vmem:[#allocation2 + $0xa0] sm:$0xf]  ;;  %v8784_v18 = vld [vmem:[%s10080_s4 + $0x228] sm:$0xff]  }
 0x16e   : > { %v5456_v39 = vrot.slane %v5454_v20, 4  ;;  %v5459_v38 = vrot.slane %v5457_v6, 5  ;;  %v9851_v47 = vrot.slane %v5463_v61, 5  ;;  %v5469_v50 = vrot.slane %v5467_v9, 4  ;;  %v5204_v6 = vld [vmem:[#allocation2 + $0xb4] sm:$0xf] }
 0x16f   : > { %v5423_v10 = vrot.slane %v5422_v3, 4  ;;  %v5478_v30 = vshrl.u32 %v5198_v12, 16  ;;  %v5418_v32 = vsel %vm9133_vm10, %v5413_v58, %v9812_v25  ;;  %v5487_v0 = vshll.u32 %v5199_v17, 16 }
 0x170   : > { %8071 = vmatmul.mubr.bf16.gmra.mrb[4].mxu1 %v8768_v23  ;;  %v5435_v23 = vrot.slane %v5433_v44, 5  ;;  %v5511_v25 = vshll.u32 %v5202_v22, 16  ;;  %v5515_v16 = vshrl.u32 %v5202_v22, 16  ;;  %v5470_v1 = vor.u32 %v5469_v50, %v9851_v47 }
 0x171   : > { %8259 = vmatmul.mubr.bf16.vlgmr.msra.gmra.mrb[0].mxu0 %v7337_v33  ;;  %8074 = vmatprep.mubr.bf16.mxu1 %v8770_v8  ;;  %v5439_v33 = vshll.u32 %v5193_v41, 16  ;;  %v9870_v52 = vrot.slane %v5487_v0, 5  ;;  %v8782_v0 = vld [vmem:[#allocation2 + $0x9c] sm:$0xff]  }
 0x172   : > { %8291 = vmatpush3.bf16.msra.mxu0 %v9723_v43  ;;  %8262 = vmatprep.mubr.bf16.mxu0 %v7338_v45  ;;  %v5401_v43 = vshll.u32 %v5188_v60, 16  ;;  %v7339_v45 = vcombine.low %v5298_v28, %v5308_v55  ;;  %v5370_v28 = vsel %vm9133_vm10, %v5365_v40, %v9782_v21  ;;  %v9834_v21 = vrot.slane %v5398_v13, 4  ;;  %v5194_v55 = vld [vmem:[#allocation2 + $0x8c] sm:$0x1]  ;;  %v5201_v40 = vld [vmem:[#allocation2 + $0xa8] sm:$0xf] }
 0x173   : > { %8292 = vmatprep.subr.bf16.mxu0 %v8772_v5  ;;  %v9828_v49 = vrot.slane %v5439_v33, 5  ;;  %v5436_v62 = vor.u32 %v5435_v23, %v5432_v51  ;;  %v5449_v29 = vshll.u32 %v5194_v55, 16  ;;  %v7342_v31 = vcombine.low %v5370_v28, %v5380_v63  ;;  %v5200_v23 = vld [vmem:[#allocation2 + $0xa4] sm:$0x1] }
 0x174   : > { %v9836_v8 = vrot.slane %v5401_v43, 5  ;;  %v5427_v60 = vrot.slane %v5425_v34, 5  ;;  %v5491_v13 = vshrl.u32 %v5199_v17, 16  ;;  %v5502_v43 = vshrl.u32 %v5201_v40, 16  ;;  %v8779_v55 = vld [vmem:[#allocation2 + $0x84] sm:$0xff]  }
 0x175   : > { %v5437_v44 = vrot.slane %v5436_v62, 4  ;;  %v5451_v7 = vrot.slane %v5449_v29, 5  ;;  %v5480_v28 = vrot.slane %v5478_v30, 4  ;;  %v9872_v20 = vrot.slane %v5511_v25, 5  ;;  %v5210_v25 = vld [vmem:[#allocation2 + $0xcc] sm:$0xf] }
 0x176   : > { %8293 = vmatpush3.bf16.msra.mxu0 %v8772_v5  ;;  %v5446_v5 = vor.u32 %v5445_v57, %v9828_v49  ;;  %v5404_v41 = vsel %vm9133_vm10, %v9834_v21, %v9836_v8  ;;  %v8787_v57 = vld [vmem:[%s10080_s4 + $0x230] sm:$0xff]   ;;  %v5493_v63 = vrot.slane %v5491_v13, 4  ;;  %v5504_v21 = vrot.slane %v5502_v43, 4 }
 0x177   : > { %8294 = vmatprep.subr.bf16.mxu0 %v8775_v15  ;;  %v7343_v2 = vcombine.low %v5394_v11, %v5404_v41  ;;  %v5442_v53 = vsel %vm9133_vm10, %v5437_v44, %v9828_v49  ;;  %v5517_v49 = vrot.slane %v5515_v16, 4  ;;  %v5471_v61 = vrot.slane %v5470_v1, 4  ;;  %v5208_v11 = vld [vmem:[#allocation2 + $0xc4] sm:$0xf]  ;;  %v8780_v44 = vld [vmem:[#allocation2 + $0x90] sm:$0xff]  }
 0x178   : > { %8075 = vmatmul.mubr.bf16.gmra.mrb[8].mxu1 %v8771_v36  ;;  %v5447_v33 = vrot.slane %v5446_v5, 4  ;;  %v5197_v36 = vld [vmem:[#allocation2 + $0x98] sm:$0x1]  ;;  %v5497_v62 = vshll.u32 %v5200_v23, 16  ;;  %v5529_v17 = vshll.u32 %v5204_v6, 16  ;;  %v5559_v22 = vshll.u32 %v5208_v11, 16 }
 0x179   : > { %8263 = vmatmul.mubr.bf16.gmra.mrb[4].mxu0 %v7339_v45  ;;  %8078 = vmatprep.mubr.bf16.mxu1 %v8773_v37  ;;  %v5505_v45 = vshll.u32 %v5201_v40, 16  ;;  %v5428_v37 = vsel %vm9133_vm10, %v5423_v10, %v5427_v60  ;;  %v5473_v35 = vshll.u32 %v5197_v36, 16  ;;  %v5205_v5 = vld [vmem:[#allocation2 + $0xb8] sm:$0xf]  ;;  %v5518_v41 = vor.u32 %v5517_v49, %v9872_v20 }
 0x17a   : > { %8266 = vmatprep.mubr.bf16.mxu0 %v7340_v56  ;;  %8295 = vmatpush3.bf16.msra.mxu0 %v8775_v15  ;;  %v5481_v15 = vshll.u32 %v5198_v12, 16  ;;  %v5460_v56 = vor.u32 %v5459_v38, %v5456_v39  ;;  %v5452_v51 = vsel %vm9133_vm10, %v5447_v33, %v5451_v7  ;;  %v7344_v3 = vcombine.low %v5418_v32, %v5428_v37 }
 0x17b   : > { %8296 = vmatprep.subr.bf16.mxu0 %v8778_v48  ;;  %v5507_v8 = vrot.slane %v5505_v45, 5  ;;  %v5475_v9 = vrot.slane %v5473_v35, 5  ;;  %v7345_v29 = vcombine.low %v5442_v53, %v5452_v51  ;;  %v5494_v12 = vor.u32 %v5493_v63, %v9870_v52  ;;  %v5209_v51 = vld [vmem:[#allocation2 + $0xc8] sm:$0x1] }
 0x17c   : > { %v5461_v34 = vrot.slane %v5460_v56, 4  ;;  %v5535_v10 = vshll.u32 %v5205_v5, 16  ;;  %v5539_v60 = vshrl.u32 %v5205_v5, 16  ;;  %v5499_v50 = vrot.slane %v5497_v62, 5  ;;  %v5206_v56 = vld [vmem:[#allocation2 + $0xbc] sm:$0x1] }
 0x17d   : > { %v5476_v38 = vsel %vm9133_vm10, %v5471_v61, %v5475_v9  ;;  %v5563_v32 = vshrl.u32 %v5208_v11, 16  ;;  %v5495_v33 = vrot.slane %v5494_v12, 4  ;;  %v5519_v13 = vrot.slane %v5518_v41, 4  ;;  %v5212_v11 = vld [vmem:[#allocation2 + $0xd4] sm:$0x1] }
 0x17e   : > { %8297 = vmatpush3.bf16.msra.mxu0 %v8778_v48  ;;  %v5483_v48 = vrot.slane %v5481_v15, 5  ;;  %v5466_v39 = vsel %vm9133_vm10, %v5461_v34, %v9851_v47  ;;  %v5531_v43 = vrot.slane %v5529_v17, 5  ;;  %v5537_v47 = vrot.slane %v5535_v10, 5  ;;  %v5984_v41 = vld [vmem:[#allocation2 + $0x1c] sm:$0xf] }
 0x17f   : > { %8298 = vmatprep.subr.bf16.mxu0 %v8781_v46  ;;  %v5541_v45 = vrot.slane %v5539_v60, 4  ;;  %v7346_v37 = vcombine.low %v5466_v39, %v5476_v38  ;;  %v5561_v35 = vrot.slane %v5559_v22, 5  ;;  %v5569_v49 = vshll.u32 %v5209_v51, 16  ;;  %v5983_v22 = vld [vmem:[#allocation2 + $0x18] sm:$0xe] }
 0x180   : > { %8079 = vmatmul.mubr.bf16.gmra.mrb[12].mxu1 %v8774_v19  ;;  %v5484_v58 = vor.u32 %v5483_v48, %v5480_v28  ;;  %v5508_v19 = vor.u32 %v5507_v8, %v5504_v21  ;;  %v5565_v28 = vrot.slane %v5563_v32, 4  ;;  %v5211_v48 = vld [vmem:[#allocation2 + $0xd0] sm:$0xf]  ;;  %v5574_v21 = vshrl.u32 %v5210_v25, 16  ;;  %v5985_v32 = vld [vmem:[#allocation2 + $0x20] sm:$0x1] }
 0x181   : > { %8267 = vmatmul.mubr.bf16.gmra.mrb[8].mxu0 %v7341_v42  ;;  %8082 = vmatprep.mubr.bf16.mxu1 %v8776_v54  ;;  %v5521_v42 = vshll.u32 %v5203_v26, 16  ;;  %v5526_v54 = vshrl.u32 %v5204_v6, 16  ;;  %v5542_v63 = vor.u32 %v5541_v45, %v5537_v47  ;;  %v5545_v26 = vshll.u32 %v5206_v56, 16  ;;  %v8783_v6 = vld [vmem:[#allocation2 + $0xa8] sm:$0xff]   ;;  %v5990_v45 = vld [vmem:[#allocation2 + $0x34] sm:$0xf] }
 0x182   : > { %8270 = vmatprep.mubr.bf16.mxu0 %v7342_v31  ;;  %8299 = vmatpush3.bf16.msra.mxu0 %v8781_v46  ;;  %v8788_v46 = vld [vmem:[%s10080_s4 + $0x238] sm:$0xff]   ;;  %v5207_v31 = vld [vmem:[#allocation2 + $0xc0] sm:$0xf]  ;;  %v5485_v40 = vrot.slane %v5484_v58, 4  ;;  %v5509_v7 = vrot.slane %v5508_v19, 4  ;;  %v5577_v8 = vshll.u32 %v5210_v25, 16  ;;  %v5566_v34 = vor.u32 %v5565_v28, %v5561_v35 }
 0x183   : > { %8300 = vmatprep.subr.bf16.mxu0 %v8784_v18  ;;  %v5550_v30 = vshrl.u32 %v5207_v31, 16  ;;  %v5553_v15 = vshll.u32 %v5207_v31, 16  ;;  %v5523_v36 = vrot.slane %v5521_v42, 5  ;;  %v5543_v62 = vrot.slane %v5542_v63, 4  ;;  %v5988_v28 = vld [vmem:[#allocation2 + $0x2c] sm:$0x1] }
 0x184   : > { %v5514_v53 = vsel %vm9133_vm10, %v5509_v7, %v9872_v20  ;;  %v8785_v20 = vld [vmem:[#allocation2 + $0xb4] sm:$0xff]   ;;  %v5547_v5 = vrot.slane %v5545_v26, 5  ;;  %v5571_v31 = vrot.slane %v5569_v49, 5  ;;  %v5593_v38 = vshll.u32 %v5212_v11, 16 }
 0x185   : > { %v5552_v16 = vrot.slane %v5550_v30, 4  ;;  %v5555_v1 = vrot.slane %v5553_v15, 5  ;;  %v5524_v23 = vsel %vm9133_vm10, %v5519_v13, %v5523_v36  ;;  %v6081_v30 = vrot.slane %v5984_v41, 5  ;;  %v8786_v15 = vld [vmem:[#allocation2 + $0xc0] sm:$0xff]   ;;  %v5999_v11 = vld [vmem:[#allocation2 + $0x58] sm:$0xf] }
 0x186   : > { %8301 = vmatpush3.bf16.msra.mxu0 %v8784_v18  ;;  %v5528_v18 = vrot.slane %v5526_v54, 4  ;;  %v7348_v9 = vcombine.low %v5514_v53, %v5524_v23  ;;  %v5567_v54 = vrot.slane %v5566_v34, 4  ;;  %v5548_v10 = vsel %vm9133_vm10, %v5543_v62, %v5547_v5  ;;  %v5997_v62 = vld [vmem:[#allocation2 + $0x50] sm:$0x1]  ;;  %v6002_v41 = vld [vmem:[#allocation2 + $0x64] sm:$0xf] }
 0x187   : > { %8302 = vmatprep.subr.bf16.mxu0 %v8787_v57  ;;  %v6083_v13 = vrot.slane %v6081_v30, 4  ;;  %v6091_v63 = vrot.slane %v5988_v28, 5 }
 0x188   : > { %8083 = vmatmul.mubr.bf16.gmra.mrb[16].mxu1 %v8777_v4  ;;  %v5490_v4 = vsel %vm9133_vm10, %v5485_v40, %v9870_v52  ;;  %v5583_v52 = vshll.u32 %v5211_v48, 16 }
 0x189   : > { %8271 = vmatmul.mubr.bf16.gmra.mrb[12].mxu0 %v7343_v2  ;;  %8086 = vmatprep.mubr.bf16.mxu1 %v8779_v55  ;;  %v5500_v2 = vsel %vm9133_vm10, %v5495_v33, %v5499_v50  ;;  %v5587_v55 = vshrl.u32 %v5211_v48, 16  ;;  %v5572_v50 = vsel %vm9133_vm10, %v5567_v54, %v5571_v31  ;;  %v6095_v48 = vrot.slane %v5990_v45, 5 }
 0x18a   : > { %8274 = vmatprep.mubr.bf16.mxu0 %v7344_v3  ;;  %8303 = vmatpush3.bf16.msra.mxu0 %v8787_v57  ;;  %v5532_v57 = vor.u32 %v5531_v43, %v5528_v18  ;;  %v5556_v3 = vor.u32 %v5555_v1, %v5552_v16  ;;  %v7347_v61 = vcombine.low %v5490_v4, %v5500_v2  ;;  %v5585_v12 = vrot.slane %v5583_v52, 5  ;;  %v5989_v4 = vld [vmem:[#allocation2 + $0x30] sm:$0xe]  ;;  %v5991_v2 = vld [vmem:[#allocation2 + $0x38] sm:$0x1] }
 0x18b   : > { %8304 = vmatprep.subr.bf16.mxu0 %v8788_v46  ;;  %v5589_v19 = vrot.slane %v5587_v55, 4  ;;  %v5595_v18 = vrot.slane %v5593_v38, 5  ;;  %v6084_v43 = vrot.slane %v5985_v32, 5  ;;  %v7362_v26 = vrot.slane %v5989_v4, 9  ;;  %v5996_v52 = vld [vmem:[#allocation2 + $0x4c] sm:$0xf] }
 0x18c   : > { %v5533_v58 = vrot.slane %v5532_v57, 4  ;;  %v5557_v42 = vrot.slane %v5556_v3, 4  ;;  %v6097_v59 = vrot.slane %v6095_v48, 4  ;;  %v6112_v31 = vrot.slane %v5997_v62, 5  ;;  %v6009_v4 = vld [vmem:[#allocation2 + $0x80] sm:$0x1] }
 0x18d   : > { %v5590_v39 = vor.u32 %v5589_v19, %v5585_v12  ;;  %v6085_v1 = vsel %vm9427_vm13, %v6083_v13, %v6084_v43  ;;  %v6096_v49 = vsel %vm9427_vm13, %v7362_v26, %v6095_v48  ;;  %v6005_v43 = vld [vmem:[#allocation2 + $0x70] sm:$0xf]  ;;  %v6007_v48 = vld [vmem:[#allocation2 + $0x78] sm:$0xe] }
 0x18e   : > { %8305 = vmatpush3.bf16.msra.mxu0 %v8788_v46  ;;  %v5579_v46 = vrot.slane %v5577_v8, 5  ;;  %v5538_v17 = vsel %vm9133_vm10, %v5533_v58, %v5537_v47  ;;  %v5562_v40 = vsel %vm9133_vm10, %v5557_v42, %v5561_v35  ;;  %v5987_v47 = vld [vmem:[#allocation2 + $0x28] sm:$0xf]  ;;  %v5986_v35 = vld [vmem:[#allocation2 + $0x24] sm:$0xe] }
 0x18f   : > { %v7350_v33 = vcombine.low %v5562_v40, %v5572_v50  ;;  %v5591_v36 = vrot.slane %v5590_v39, 4  ;;  %v6088_v25 = vrot.slane %v5987_v47, 5  ;;  %v7361_v23 = vrot.slane %v5986_v35, 9  ;;  %v5993_v8 = vld [vmem:[#allocation2 + $0x40] sm:$0xf] }
 0x190   : > { %8087 = vmatmul.mubr.bf16.gmra.mrb[20].mxu1 %v8780_v44  ;;  %v7349_v44 = vcombine.low %v5538_v17, %v5548_v10  ;;  %v6102_v34 = vrot.slane %v5993_v8, 5  ;;  %v5995_v58 = vld [vmem:[#allocation2 + $0x48] sm:$0xe]  ;;  %v5998_v40 = vld [vmem:[#allocation2 + $0x54] sm:$0xe] }
 0x191   : > { %8275 = vmatmul.mubr.bf16.gmra.mrb[16].mxu0 %v7345_v29  ;;  %8090 = vmatprep.mubr.bf16.mxu1 %v8782_v0  ;;  %v5576_v29 = vrot.slane %v5574_v21, 4  ;;  %v7360_v0 = vrot.slane %v5983_v22, 9  ;;  %v5596_v56 = vsel %vm9133_vm10, %v5591_v36, %v5595_v18  ;;  %v6090_v57 = vrot.slane %v6088_v25, 4  ;;  %v6000_v50 = vld [vmem:[#allocation2 + $0x5c] sm:$0x1] }
 0x192   : > { %8278 = vmatprep.mubr.bf16.mxu0 %v7346_v37  ;;  %v6098_v21 = vrot.slane %v5991_v2, 5  ;;  %v6089_v55 = vsel %vm9427_vm13, %v7361_v23, %v6088_v25  ;;  %v7364_v42 = vrot.slane %v5995_v58, 9  ;;  %v6003_v22 = vld [vmem:[#allocation2 + $0x68] sm:$0x1]  ;;  %v6119_v36 = vrot.slane %v6000_v50, 5 }
 0x193   : > { %v5580_v60 = vor.u32 %v5579_v46, %v5576_v29  ;;  %v6082_v16 = vsel %vm9427_vm13, %v7360_v0, %v6081_v30  ;;  %v6092_v3 = vsel %vm9427_vm13, %v6090_v57, %v6091_v63  ;;  %v6123_v30 = vrot.slane %v6002_v41, 5  ;;  %v6008_v47 = vld [vmem:[#allocation2 + $0x7c] sm:$0xf]  ;;  %v6006_v35 = vld [vmem:[#allocation2 + $0x74] sm:$0x1] }
 0x194   : > { %v7392_v51 = vcombine.low %v6082_v16, %v6085_v1  ;;  %v7393_v5 = vcombine.low %v6089_v55, %v6092_v3  ;;  %v6126_v13 = vrot.slane %v6003_v22, 5  ;;  %v6004_v1 = vld [vmem:[#allocation2 + $0x6c] sm:$0xe]  ;;  %v6137_v28 = vrot.slane %v6008_v47, 5  ;;  %v6014_v8 = vld [vmem:[#allocation2 + $0x94] sm:$0xf] }
 0x195   : > { %v5581_v7 = vrot.slane %v5580_v60, 4  ;;  %v6116_v60 = vrot.slane %v5999_v11, 5  ;;  %v6125_v0 = vrot.slane %v6123_v30, 4  ;;  %v6133_v57 = vrot.slane %v6006_v35, 5  ;;  %v6015_v58 = vld [vmem:[#allocation2 + $0x98] sm:$0x1] }
 0x196   : > { %v7368_v63 = vrot.slane %v6007_v48, 9  ;;  %v6139_v26 = vrot.slane %v6137_v28, 4  ;;  %v6020_v11 = vld [vmem:[#allocation2 + $0xac] sm:$0xf]  ;;  %v6027_v48 = vld [vmem:[#allocation2 + $0xc8] sm:$0x1] }
 0x197   : > { %v5586_v37 = vsel %vm9133_vm10, %v5581_v7, %v5585_v12  ;;  %v6104_v12 = vrot.slane %v6102_v34, 4  ;;  %v6118_v7 = vrot.slane %v6116_v60, 4  ;;  %v6127_v16 = vsel %vm9427_vm13, %v6125_v0, %v6126_v13  ;;  %v6023_v13 = vld [vmem:[#allocation2 + $0xb8] sm:$0xf] }
 0x198   : > { %8091 = vmatmul.mubr.bf16.gmra.mrb[24].mxu1 %v8783_v6  ;;  %v7351_v53 = vcombine.low %v5586_v37, %v5596_v56  ;;  %v6099_v6 = vsel %vm9427_vm13, %v6097_v59, %v6098_v21  ;;  %v6130_v56 = vrot.slane %v6005_v43, 5  ;;  %v6140_v59 = vrot.slane %v6009_v4, 5  ;;  %v6011_v21 = vld [vmem:[#allocation2 + $0x88] sm:$0xf]  ;;  %v6026_v43 = vld [vmem:[#allocation2 + $0xc4] sm:$0xf] }
 0x199   : > { %8279 = vmatmul.mubr.bf16.gmra.mrb[20].mxu0 %v7347_v61  ;;  %8094 = vmatprep.mubr.bf16.mxu1 %v8785_v20  ;;  %v5992_v61 = vld [vmem:[#allocation2 + $0x3c] sm:$0xe]  ;;  %v5994_v20 = vld [vmem:[#allocation2 + $0x44] sm:$0x1]  ;;  %v7394_v29 = vcombine.low %v6096_v49, %v6099_v6  ;;  %v6120_v37 = vsel %vm9427_vm13, %v6118_v7, %v6119_v36  ;;  %v6144_v3 = vrot.slane %v6011_v21, 5  ;;  %v6165_v50 = vrot.slane %v6020_v11, 5 }
 0x19a   : > { %8282 = vmatprep.mubr.bf16.mxu0 %v7348_v9  ;;  %v6109_v9 = vrot.slane %v5996_v52, 5  ;;  %v7363_v46 = vrot.slane %v5992_v61, 9  ;;  %v6105_v19 = vrot.slane %v5994_v20, 5  ;;  %v6132_v23 = vrot.slane %v6130_v56, 4  ;;  %v6010_v6 = vld [vmem:[#allocation2 + $0x84] sm:$0xe] }
 0x19b   : > { %v6141_v49 = vsel %vm9427_vm13, %v6139_v26, %v6140_v59  ;;  %v6012_v61 = vld [vmem:[#allocation2 + $0x8c] sm:$0x1]  ;;  %v6151_v20 = vrot.slane %v6014_v8, 5  ;;  %v6179_v35 = vrot.slane %v6026_v43, 5  ;;  %v6182_v26 = vrot.slane %v6027_v48, 5 }
 0x19c   : > { %v6111_v54 = vrot.slane %v6109_v9, 4  ;;  %v6103_v17 = vsel %vm9427_vm13, %v7363_v46, %v6102_v34  ;;  %v6106_v10 = vsel %vm9427_vm13, %v6104_v12, %v6105_v19  ;;  %v6110_v39 = vsel %vm9427_vm13, %v7364_v42, %v6109_v9  ;;  %v6013_v9 = vld [vmem:[#allocation2 + $0x90] sm:$0xe] }
 0x19d   : > { %v7395_v32 = vcombine.low %v6103_v17, %v6106_v10  ;;  %v6134_v55 = vsel %vm9427_vm13, %v6132_v23, %v6133_v57  ;;  %v6138_v34 = vsel %vm9427_vm13, %v7368_v63, %v6137_v28  ;;  %v6146_v46 = vrot.slane %v6144_v3, 4  ;;  %v6025_v28 = vld [vmem:[#allocation2 + $0xc0] sm:$0xe]  ;;  %v6029_v59 = vld [vmem:[#allocation2 + $0xd0] sm:$0xf] }
 0x19e   : > { %v6113_v38 = vsel %vm9427_vm13, %v6111_v54, %v6112_v31  ;;  %v6147_v12 = vrot.slane %v6012_v61, 5  ;;  %v7370_v19 = vrot.slane %v6013_v9, 9  ;;  %v6153_v42 = vrot.slane %v6151_v20, 4  ;;  %v6017_v31 = vld [vmem:[#allocation2 + $0xa0] sm:$0xf] }
 0x19f   : > { %v6154_v54 = vrot.slane %v6015_v58, 5  ;;  %v6158_v10 = vrot.slane %v6017_v31, 5  ;;  %v7374_v57 = vrot.slane %v6025_v28, 9  ;;  %v6181_v63 = vrot.slane %v6179_v35, 4 }
 0x1a0   : > { %8095 = vmatmul.mubr.bf16.gmra.mrb[28].mxu1 %v8786_v15  ;;  %v6001_v15 = vld [vmem:[#allocation2 + $0x60] sm:$0xe]  ;;  %v6148_v17 = vsel %vm9427_vm13, %v6146_v46, %v6147_v12 }
 0x1a1   : > { %8283 = vmatmul.mubr.bf16.gmra.mrb[24].mxu0 %v7349_v44  ;;  %v7396_v44 = vcombine.low %v6110_v39, %v6113_v38  ;;  %v7366_v18 = vrot.slane %v6001_v15, 9  ;;  %v6155_v39 = vsel %vm9427_vm13, %v6153_v42, %v6154_v54  ;;  %v6016_v38 = vld [vmem:[#allocation2 + $0x9c] sm:$0xe]  ;;  %v6021_v15 = vld [vmem:[#allocation2 + $0xb0] sm:$0x1] }
 0x1a2   : > { %8286 = vmatprep.mubr.bf16.mxu0 %v7350_v33  ;;  %v7365_v33 = vrot.slane %v5998_v40, 9  ;;  %v6018_v40 = vld [vmem:[#allocation2 + $0xa4] sm:$0x1]  ;;  %v6168_v0 = vrot.slane %v6021_v15, 5 }
 0x1a3   : > { %v6124_v25 = vsel %vm9427_vm13, %v7366_v18, %v6123_v30  ;;  %v6019_v30 = vld [vmem:[#allocation2 + $0xa8] sm:$0xe]  ;;  %v6161_v7 = vrot.slane %v6018_v40, 5  ;;  %v6167_v18 = vrot.slane %v6165_v50, 4 }
 0x1a4   : > { %v6117_v45 = vsel %vm9427_vm13, %v7365_v33, %v6116_v60  ;;  %v6152_v60 = vsel %vm9427_vm13, %v7370_v19, %v6151_v20  ;;  %v6160_v33 = vrot.slane %v6158_v10, 4  ;;  %v7372_v36 = vrot.slane %v6019_v30, 9 }
 0x1a5   : > { %v7397_v2 = vcombine.low %v6117_v45, %v6120_v37  ;;  %v6172_v37 = vrot.slane %v6023_v13, 5 }
 0x1a6   : > { %v6162_v45 = vsel %vm9427_vm13, %v6160_v33, %v6161_v7 }
 0x1a9   : > { %8287 = vmatmul.mubr.bf16.gmra.mrb[28].mxu0 %v7351_v53  ;;  %v7398_v53 = vcombine.low %v6124_v25, %v6127_v16  ;;  %v6169_v25 = vsel %vm9427_vm13, %v6167_v18, %v6168_v0  ;;  %v6022_v16 = vld [vmem:[#allocation2 + $0xb4] sm:$0xe] }
 0x1aa   : > { %8306 = vmatprep.mubr.bf16.mxu0 %v7392_v51  ;;  %v7367_v51 = vrot.slane %v6004_v1, 9  ;;  %v6024_v1 = vld [vmem:[#allocation2 + $0xbc] sm:$0x1] }
 0x1ab   : > { %v6175_v23 = vrot.slane %v6024_v1, 5 }
 0x1ac   : > { %v6131_v52 = vsel %vm9427_vm13, %v7367_v51, %v6130_v56  ;;  %v6166_v56 = vsel %vm9427_vm13, %v7372_v36, %v6165_v50  ;;  %v6174_v51 = vrot.slane %v6172_v37, 4 }
 0x1ad   : > { %v7399_v62 = vcombine.low %v6131_v52, %v6134_v55  ;;  %v6186_v52 = vrot.slane %v6029_v59, 5  ;;  %v6180_v55 = vsel %vm9427_vm13, %v7374_v57, %v6179_v35 }
 0x1ae   : > { %v6176_v8 = vsel %vm9427_vm13, %v6174_v51, %v6175_v23 }
 0x1af   : > { %v6188_v9 = vrot.slane %v6186_v52, 4 }
 0x1b1   : > { %8307 = vmatmul.mubr.bf16.vlgmr.msra.gmra.mrb[0].mxu0 %v7393_v5  ;;  %v7400_v5 = vcombine.low %v6138_v34, %v6141_v49  ;;  %v6028_v34 = vld [vmem:[#allocation2 + $0xcc] sm:$0xe]  ;;  %v6030_v49 = vld [vmem:[#allocation2 + $0xd4] sm:$0x1] }
 0x1b2   : > { %8310 = vmatprep.mubr.bf16.mxu0 %v7394_v29  ;;  %v7369_v29 = vrot.slane %v6010_v6, 9  ;;  %v7375_v20 = vrot.slane %v6028_v34, 9  ;;  %v6189_v58 = vrot.slane %v6030_v49, 5 }
 0x1b4   : > { %v6145_v41 = vsel %vm9427_vm13, %v7369_v29, %v6144_v3  ;;  %v6183_v3 = vsel %vm9427_vm13, %v6181_v63, %v6182_v26 }
 0x1b5   : > { %v7401_v22 = vcombine.low %v6145_v41, %v6148_v17  ;;  %v7406_v61 = vcombine.low %v6180_v55, %v6183_v3 }
 0x1b9   : > { %8311 = vmatmul.mubr.bf16.gmra.mrb[4].mxu0 %v7395_v32  ;;  %v7402_v32 = vcombine.low %v6152_v60, %v6155_v39  ;;  %v8802_v60 = vmov 1.0  }
 0x1ba   : > { %8314 = vmatprep.mubr.bf16.mxu0 %v7396_v44  ;;  %v7371_v44 = vrot.slane %v6016_v38, 9  ;;  %6865 = vmatprep.mubr.f32.mxu1 %v8802_v60 }
 0x1bc   : > { %v6159_v47 = vsel %vm9427_vm13, %v7371_v44, %v6158_v10 }
 0x1bd   : > { %v7403_v4 = vcombine.low %v6159_v47, %v6162_v45 }
 0x1c1   : > { %8315 = vmatmul.mubr.bf16.gmra.mrb[8].mxu0 %v7397_v2  ;;  %v7404_v2 = vcombine.low %v6166_v56, %v6169_v25 }
 0x1c2   : > { %8318 = vmatprep.mubr.bf16.mxu0 %v7398_v53  ;;  %v7373_v53 = vrot.slane %v6022_v16, 9 }
 0x1c4   : > { %v6173_v21 = vsel %vm9427_vm13, %v7373_v53, %v6172_v37 }
 0x1c5   : > { %v7405_v6 = vcombine.low %v6173_v21, %v6176_v8 }
 0x1c9   : > { %8319 = vmatmul.mubr.bf16.gmra.mrb[12].mxu0 %v7399_v62  ;;  %v6187_v62 = vsel %vm9427_vm13, %v7375_v20, %v6186_v52 }
 0x1ca   : > { %8322 = vmatprep.mubr.bf16.mxu0 %v7400_v5  ;;  %v6190_v5 = vsel %vm9427_vm13, %v6188_v9, %v6189_v58 }
 0x1cb   : > { %v7407_v29 = vcombine.low %v6187_v62, %v6190_v5 }
 0x1d1   : > { %8323 = vmatmul.mubr.bf16.gmra.mrb[16].mxu0 %v7401_v22 }
 0x1d2   : > { %8326 = vmatprep.mubr.bf16.mxu0 %v7402_v32 }
 0x1d9   : > { %8327 = vmatmul.mubr.bf16.gmra.mrb[20].mxu0 %v7403_v4 }
 0x1da   : > { %8330 = vmatprep.mubr.bf16.mxu0 %v7404_v2 }
 0x1e1   : > { %8331 = vmatmul.mubr.bf16.gmra.mrb[24].mxu0 %v7405_v6 }
 0x1e2   : > { %8334 = vmatprep.mubr.bf16.mxu0 %v7406_v61 }
 0x1e9   : > { %8335 = vmatmul.mubr.bf16.gmra.mrb[28].mxu0 %v7407_v29 }
 0x23b   : > { %v8068_v46 = vpop.f32.mrb[0].mxu1 }
 0x23c   : > { %v3079_v12 = vpop.f32.mrb[1].mxu1 }
 0x23d   : > { %v8069_v19 = vpop.f32.mrb[2].mxu1 }
 0x23e   : > { %v3082_v42 = vpop.f32.mrb[3].mxu1 }
 0x243   : > { %v8072_v54 = vpop.f32.mrb[4].mxu1 }
 0x244   : > { %v3095_v31 = vpop.f32.mrb[5].mxu1 }
 0x245   : > { %v8073_v11 = vpop.f32.mrb[6].mxu1 }
 0x246   : > { %v3098_v41 = vpop.f32.mrb[7].mxu1 }
 0x24b   : > { %v9970_v17 = vpop.f32.mrb[8].mxu1 }
 0x24c   : > { %v9972_v10 = vpop.f32.mrb[9].mxu1 }
 0x24d   : > { %v9975_v39 = vpop.f32.mrb[10].mxu1 }
 0x24e   : > { %v9977_v14 = vpop.f32.mrb[11].mxu1 }
 0x253   : > { %v9979_v38 = vpop.f32.mrb[12].mxu1 }
 0x254   : > { %v9981_v40 = vpop.f32.mrb[13].mxu1 }
 0x255   : > { %v9983_v50 = vpop.f32.mrb[14].mxu1 }
 0x256   : > { %v9985_v30 = vpop.f32.mrb[15].mxu1 }
 0x25b   : > { %v9987_v15 = vpop.f32.mrb[16].mxu1 }
 0x25c   : > { %v9989_v22 = vpop.f32.mrb[17].mxu1 }
 0x25d   : > { %v9991_v32 = vpop.f32.mrb[18].mxu1 }
 0x25e   : > { %v9993_v44 = vpop.f32.mrb[19].mxu1 }
 0x263   : > { %v9995_v33 = vpop.f32.mrb[20].mxu1 }
 0x264   : > { %v9997_v7 = vpop.f32.mrb[21].mxu1 }
 0x265   : > { %v9999_v36 = vpop.f32.mrb[22].mxu1 }
 0x266   : > { %v10001_v18 = vpop.f32.mrb[23].mxu1 }
 0x26b   : > { %v10003_v0 = vpop.f32.mrb[24].mxu1 }
 0x26c   : > { %v10005_v13 = vpop.f32.mrb[25].mxu1 }
 0x26d   : > { %v10007_v43 = vpop.f32.mrb[26].mxu1 }
 0x26e   : > { %v10009_v47 = vpop.f32.mrb[27].mxu1 }
 0x273   : > { %v10011_v45 = vpop.f32.mrb[28].mxu1 }
 0x274   : > { %v10013_v37 = vpop.f32.mrb[29].mxu1 }
 0x275   : > { %v10015_v56 = vpop.f32.mrb[30].mxu1 }
 0x276   : > { %v10017_v25 = vpop.f32.mrb[31].mxu1 }
 0x284   : > { %v8308_v16 = vpop.f32.mrb[0].mxu0 }
 0x285   : > { %v8402_v1 = vadd.f32 %v8308_v16, %v8068_v46  ;;  %v6354_v35 = vpop.f32.mrb[1].mxu0 }
 0x286   : > { %v8403_v28 = vadd.f32 %v6354_v35, %v3079_v12  ;;  %v8309_v48 = vpop.f32.mrb[2].mxu0 }
 0x287   : > { %v8404_v4 = vadd.f32 %v8309_v48, %v8069_v19  ;;  %v6357_v2 = vpop.f32.mrb[3].mxu0  ;;  %v6771_v51 = vmul.f32 %v8402_v1, %v8402_v1 }
 0x288   : > { %v8405_v53 = vadd.f32 %v6357_v2, %v3082_v42  ;;  %v6769_v63 = vmul.f32 %v8403_v28, %v8403_v28 }
 0x289   : > { %v7588_v23 = vpack.c.bf16 %v8404_v4, %v8402_v1  ;;  %v6772_v57 = vmul.f32 %v8404_v4, %v8404_v4 }
 0x28a   : > { %v7583_v26 = vpack.c.bf16 %v8405_v53, %v8403_v28  ;;  %v6770_v59 = vmul.f32 %v8405_v53, %v8405_v53 }
 0x28b   : > { %7675 = vst [vmem:[%s10024_s12 + $0x8] sm:$0xff] %v7588_v23   ;;  %v8342_v21 = vpack.c.bf16 %v6772_v57, %v6771_v51 }
 0x28c   : > { %7584 = vst [vmem:[%s10024_s12] sm:$0xff] %v7583_v26   ;;  %v8312_v8 = vpop.f32.mrb[4].mxu0  ;;  %v8338_v52 = vpack.c.bf16 %v6770_v59, %v6769_v63 }
 0x28d   : > { %v8406_v55 = vadd.f32 %v8312_v8, %v8072_v54  ;;  %v6370_v3 = vpop.f32.mrb[5].mxu0 }
 0x28e   : > { %v8407_v34 = vadd.f32 %v6370_v3, %v3095_v31  ;;  %v8313_v49 = vpop.f32.mrb[6].mxu0  ;;  %8339 = vmatprep.subr.bf16.mxu1 %v8338_v52 }
 0x28f   : > { %v8408_v6 = vadd.f32 %v8313_v49, %v8073_v11  ;;  %v6373_v61 = vpop.f32.mrb[7].mxu0  ;;  %8341 = vmatpush1.bf16.msra.mxu1 %v7583_v26  ;;  %v6775_v9 = vmul.f32 %v8406_v55, %v8406_v55 }
 0x290   : > { %v8409_v20 = vadd.f32 %v6373_v61, %v3098_v41  ;;  %8343 = vmatprep.subr.bf16.mxu1 %v8342_v21  ;;  %v6773_v5 = vmul.f32 %v8407_v34, %v8407_v34 }
 0x291   : > { %v7598_v58 = vpack.c.bf16 %v8408_v6, %v8406_v55  ;;  %v6776_v62 = vmul.f32 %v8408_v6, %v8408_v6 }
 0x292   : > { %v7593_v29 = vpack.c.bf16 %v8409_v20, %v8407_v34  ;;  %v6774_v46 = vmul.f32 %v8409_v20, %v8409_v20 }
 0x293   : > { %7677 = vst [vmem:[%s10024_s12 + $0x18] sm:$0xff] %v7598_v58   ;;  %8345 = vmatpush1.bf16.msra.mxu1 %v7588_v23  ;;  %v8350_v12 = vpack.c.bf16 %v6776_v62, %v6775_v9 }
 0x294   : > { %7676 = vst [vmem:[%s10024_s12 + $0x10] sm:$0xff] %v7593_v29   ;;  %v8316_v19 = vpop.f32.mrb[8].mxu0  ;;  %v8346_v42 = vpack.c.bf16 %v6774_v46, %v6773_v5 }
 0x295   : > { %v8410_v54 = vadd.f32 %v8316_v19, %v9970_v17  ;;  %v6386_v31 = vpop.f32.mrb[9].mxu0 }
 0x296   : > { %v8411_v11 = vadd.f32 %v6386_v31, %v9972_v10  ;;  %v8317_v41 = vpop.f32.mrb[10].mxu0  ;;  %8347 = vmatprep.subr.bf16.mxu1 %v8346_v42 }
 0x297   : > { %v8412_v16 = vadd.f32 %v8317_v41, %v9975_v39  ;;  %v6389_v1 = vpop.f32.mrb[11].mxu0  ;;  %8349 = vmatpush1.bf16.msra.mxu1 %v7593_v29  ;;  %v6779_v28 = vmul.f32 %v8410_v54, %v8410_v54 }
 0x298   : > { %v8413_v35 = vadd.f32 %v6389_v1, %v9977_v14  ;;  %8351 = vmatprep.subr.bf16.mxu1 %v8350_v12  ;;  %v6777_v2 = vmul.f32 %v8411_v11, %v8411_v11 }
 0x299   : > { %v7608_v48 = vpack.c.bf16 %v8412_v16, %v8410_v54  ;;  %v6780_v4 = vmul.f32 %v8412_v16, %v8412_v16 }
 0x29a   : > { %v7603_v53 = vpack.c.bf16 %v8413_v35, %v8411_v11  ;;  %v6778_v17 = vmul.f32 %v8413_v35, %v8413_v35 }
 0x29b   : > { %7679 = vst [vmem:[%s10024_s12 + $0x28] sm:$0xff] %v7608_v48   ;;  %8353 = vmatpush1.bf16.msra.mxu1 %v7598_v58  ;;  %v8358_v51 = vpack.c.bf16 %v6780_v4, %v6779_v28 }
 0x29c   : > { %7678 = vst [vmem:[%s10024_s12 + $0x20] sm:$0xff] %v7603_v53   ;;  %v8320_v10 = vpop.f32.mrb[12].mxu0  ;;  %v8354_v23 = vpack.c.bf16 %v6778_v17, %v6777_v2 }
 0x29d   : > { %v8414_v57 = vadd.f32 %v8320_v10, %v9979_v38  ;;  %v6402_v39 = vpop.f32.mrb[13].mxu0 }
 0x29e   : > { %v8415_v63 = vadd.f32 %v6402_v39, %v9981_v40  ;;  %v8321_v14 = vpop.f32.mrb[14].mxu0  ;;  %8355 = vmatprep.subr.bf16.mxu1 %v8354_v23 }
 0x29f   : > { %v8416_v26 = vadd.f32 %v8321_v14, %v9983_v50  ;;  %v6405_v59 = vpop.f32.mrb[15].mxu0  ;;  %8357 = vmatpush1.bf16.msra.mxu1 %v7603_v53  ;;  %v6783_v8 = vmul.f32 %v8414_v57, %v8414_v57 }
 0x2a0   : > { %v8417_v21 = vadd.f32 %v6405_v59, %v9985_v30  ;;  %8359 = vmatprep.subr.bf16.mxu1 %v8358_v51  ;;  %v6781_v3 = vmul.f32 %v8415_v63, %v8415_v63 }
 0x2a1   : > { %v7618_v52 = vpack.c.bf16 %v8416_v26, %v8414_v57  ;;  %v6784_v55 = vmul.f32 %v8416_v26, %v8416_v26 }
 0x2a2   : > { %v7613_v34 = vpack.c.bf16 %v8417_v21, %v8415_v63  ;;  %v6782_v38 = vmul.f32 %v8417_v21, %v8417_v21 }
 0x2a3   : > { %7681 = vst [vmem:[%s10024_s12 + $0x38] sm:$0xff] %v7618_v52   ;;  %8361 = vmatpush1.bf16.msra.mxu1 %v7608_v48  ;;  %v8366_v49 = vpack.c.bf16 %v6784_v55, %v6783_v8 }
 0x2a4   : > { %7680 = vst [vmem:[%s10024_s12 + $0x30] sm:$0xff] %v7613_v34   ;;  %v8324_v40 = vpop.f32.mrb[16].mxu0  ;;  %v8362_v6 = vpack.c.bf16 %v6782_v38, %v6781_v3 }
 0x2a5   : > { %v8418_v61 = vadd.f32 %v8324_v40, %v9987_v15  ;;  %v6418_v50 = vpop.f32.mrb[17].mxu0 }
 0x2a6   : > { %v8419_v20 = vadd.f32 %v6418_v50, %v9989_v22  ;;  %v8325_v30 = vpop.f32.mrb[18].mxu0  ;;  %8363 = vmatprep.subr.bf16.mxu1 %v8362_v6 }
 0x2a7   : > { %v8420_v9 = vadd.f32 %v8325_v30, %v9991_v32  ;;  %v6421_v58 = vpop.f32.mrb[19].mxu0  ;;  %8365 = vmatpush1.bf16.msra.mxu1 %v7613_v34  ;;  %v6787_v5 = vmul.f32 %v8418_v61, %v8418_v61 }
 0x2a8   : > { %v8421_v62 = vadd.f32 %v6421_v58, %v9993_v44  ;;  %8367 = vmatprep.subr.bf16.mxu1 %v8366_v49  ;;  %v6785_v12 = vmul.f32 %v8419_v20, %v8419_v20 }
 0x2a9   : > { %v7628_v29 = vpack.c.bf16 %v8420_v9, %v8418_v61  ;;  %v6788_v46 = vmul.f32 %v8420_v9, %v8420_v9 }
 0x2aa   : > { %v7623_v19 = vpack.c.bf16 %v8421_v62, %v8419_v20  ;;  %v6786_v15 = vmul.f32 %v8421_v62, %v8421_v62 }
 0x2ab   : > { %7683 = vst [vmem:[%s10024_s12 + $0x48] sm:$0xff] %v7628_v29   ;;  %8369 = vmatpush1.bf16.msra.mxu1 %v7618_v52  ;;  %v8374_v42 = vpack.c.bf16 %v6788_v46, %v6787_v5 }
 0x2ac   : > { %7682 = vst [vmem:[%s10024_s12 + $0x40] sm:$0xff] %v7623_v19   ;;  %v8328_v22 = vpop.f32.mrb[20].mxu0  ;;  %v8370_v54 = vpack.c.bf16 %v6786_v15, %v6785_v12 }
 0x2ad   : > { %v8422_v31 = vadd.f32 %v8328_v22, %v9995_v33  ;;  %v6434_v32 = vpop.f32.mrb[21].mxu0 }
 0x2ae   : > { %v8423_v11 = vadd.f32 %v6434_v32, %v9997_v7  ;;  %v8329_v44 = vpop.f32.mrb[22].mxu0  ;;  %8371 = vmatprep.subr.bf16.mxu1 %v8370_v54 }
 0x2af   : > { %v8424_v41 = vadd.f32 %v8329_v44, %v9999_v36  ;;  %v6437_v16 = vpop.f32.mrb[23].mxu0  ;;  %8373 = vmatpush1.bf16.msra.mxu1 %v7623_v19  ;;  %v6791_v35 = vmul.f32 %v8422_v31, %v8422_v31 }
 0x2b0   : > { %v8425_v1 = vadd.f32 %v6437_v16, %v10001_v18  ;;  %8375 = vmatprep.subr.bf16.mxu1 %v8374_v42  ;;  %v6789_v4 = vmul.f32 %v8423_v11, %v8423_v11 }
 0x2b1   : > { %v7638_v28 = vpack.c.bf16 %v8424_v41, %v8422_v31  ;;  %v6792_v48 = vmul.f32 %v8424_v41, %v8424_v41 }
 0x2b2   : > { %v7633_v2 = vpack.c.bf16 %v8425_v1, %v8423_v11  ;;  %v6790_v33 = vmul.f32 %v8425_v1, %v8425_v1 }
 0x2b3   : > { %7685 = vst [vmem:[%s10024_s12 + $0x58] sm:$0xff] %v7638_v28   ;;  %8377 = vmatpush1.bf16.msra.mxu1 %v7628_v29  ;;  %v8382_v53 = vpack.c.bf16 %v6792_v48, %v6791_v35 }
 0x2b4   : > { %7684 = vst [vmem:[%s10024_s12 + $0x50] sm:$0xff] %v7633_v2   ;;  %v8332_v7 = vpop.f32.mrb[24].mxu0  ;;  %v8378_v17 = vpack.c.bf16 %v6790_v33, %v6789_v4 }
 0x2b5   : > { %v8426_v51 = vadd.f32 %v8332_v7, %v10003_v0  ;;  %v6450_v36 = vpop.f32.mrb[25].mxu0 }
 0x2b6   : > { %v8427_v10 = vadd.f32 %v6450_v36, %v10005_v13  ;;  %v8333_v18 = vpop.f32.mrb[26].mxu0  ;;  %8379 = vmatprep.subr.bf16.mxu1 %v8378_v17 }
 0x2b7   : > { %v8428_v23 = vadd.f32 %v8333_v18, %v10007_v43  ;;  %v6453_v57 = vpop.f32.mrb[27].mxu0  ;;  %8381 = vmatpush1.bf16.msra.mxu1 %v7633_v2  ;;  %v6795_v63 = vmul.f32 %v8426_v51, %v8426_v51 }
 0x2b8   : > { %v8429_v39 = vadd.f32 %v6453_v57, %v10009_v47  ;;  %8383 = vmatprep.subr.bf16.mxu1 %v8382_v53  ;;  %v6793_v59 = vmul.f32 %v8427_v10, %v8427_v10 }
 0x2b9   : > { %v7648_v14 = vpack.c.bf16 %v8428_v23, %v8426_v51  ;;  %v6796_v26 = vmul.f32 %v8428_v23, %v8428_v23 }
 0x2ba   : > { %v7643_v21 = vpack.c.bf16 %v8429_v39, %v8427_v10  ;;  %v6794_v0 = vmul.f32 %v8429_v39, %v8429_v39 }
 0x2bb   : > { %7687 = vst [vmem:[%s10024_s12 + $0x68] sm:$0xff] %v7648_v14   ;;  %8385 = vmatpush1.bf16.msra.mxu1 %v7638_v28  ;;  %v8390_v8 = vpack.c.bf16 %v6796_v26, %v6795_v63 }
 0x2bc   : > { %7686 = vst [vmem:[%s10024_s12 + $0x60] sm:$0xff] %v7643_v21   ;;  %v8336_v13 = vpop.f32.mrb[28].mxu0  ;;  %v8386_v52 = vpack.c.bf16 %v6794_v0, %v6793_v59 }
 0x2bd   : > { %v8430_v55 = vadd.f32 %v8336_v13, %v10011_v45  ;;  %v6466_v43 = vpop.f32.mrb[29].mxu0 }
 0x2be   : > { %v8431_v3 = vadd.f32 %v6466_v43, %v10013_v37  ;;  %v8337_v47 = vpop.f32.mrb[30].mxu0  ;;  %8387 = vmatprep.subr.bf16.mxu1 %v8386_v52 }
 0x2bf   : > { %v8432_v34 = vadd.f32 %v8337_v47, %v10015_v56  ;;  %v6469_v38 = vpop.f32.mrb[31].mxu0  ;;  %8389 = vmatpush1.bf16.msra.mxu1 %v7643_v21  ;;  %v6799_v40 = vmul.f32 %v8430_v55, %v8430_v55  ;;  %v8803_v56 = vmov 1966171168  }
 0x2c0   : > { %v8433_v49 = vadd.f32 %v6469_v38, %v10017_v25  ;;  %8391 = vmatprep.subr.bf16.mxu1 %v8390_v8  ;;  %v6797_v50 = vmul.f32 %v8431_v3, %v8431_v3  ;;  %v6876_v25 = vunpack.c.l.s4 %v8803_v56 }
 0x2c1   : > { %v7658_v6 = vpack.c.bf16 %v8432_v34, %v8430_v55  ;;  %v6800_v61 = vmul.f32 %v8432_v34, %v8432_v34 }
 0x2c2   : > { %v7653_v20 = vpack.c.bf16 %v8433_v49, %v8431_v3  ;;  %v6798_v45 = vmul.f32 %v8433_v49, %v8433_v49  ;;  %v6877_v9 = vunpack.c.0.s8 %v6876_v25 }
 0x2c3   : > { %7689 = vst [vmem:[%s10024_s12 + $0x78] sm:$0xff] %v7658_v6   ;;  %8393 = vmatpush1.bf16.msra.mxu1 %v7648_v14  ;;  %v8398_v37 = vpack.c.bf16 %v6800_v61, %v6799_v40 }
 0x2c4   : > { %7688 = vst [vmem:[%s10024_s12 + $0x70] sm:$0xff] %v7653_v20   ;;  %v8394_v30 = vpack.c.bf16 %v6798_v45, %v6797_v50  ;;  %v6880_v62 = vsub.s32 %v6877_v9, %v8927_v27 }
 0x2c6   : > { %8395 = vmatprep.subr.bf16.mxu1 %v8394_v30 }
 0x2c7   : > { %8397 = vmatpush1.bf16.msra.mxu1 %v7653_v20 }
 0x2c8   : > { %8399 = vmatprep.subr.bf16.mxu1 %v8398_v37 }
 0x2cb   : > { %8401 = vmatpush1.bf16.msra.mxu1 %v7658_v6 }
 0x2ce   : > { %6866 = vmatmul.mubr.f32.vlgmr.msra.gmra.mrb[32].mxu1 %v8802_v60 }
 0x3a1   : > { %v6867_v58 = vpop.f32.mrb[32].mxu1 }
 0x3a2   : > { %v6869_v5 = vpop.f32.mrb[33].mxu1 }
 0x3a3   : > { %v6874_v29 = vcombine.low %v6867_v58, %v6869_v5 }
 0x3a5   : > { %v6881_v46 = vrot.slane %v6874_v29, %v6880_v62 }
 0x3a7   : > { %v6888_v12 = vrot.slane %v6881_v46, %v6880_v62 }
 0x3a9   : > { %6894 = vst.msk [vmem:[%s262_s15] sm:$0x3] %vm6892_vm14, %v6888_v12 }
 0x3aa PF: > { %s17_s21 = sadd.s32 1, %s8799_s21  }
 0x3ab   : > { %p14_p4 = scmp.ge.s32.totalorder %s17_s21, 4  }
 0x3ad   :  { %16 = sbr.rel (!%p14_p4) target bundleno = 1 (0x1), region = 92 }

</bundles_post_ra>
